<compile_context>
chip_gen: v7x
topology: tpu7x:2x2x1
jax: 0.10.0
libtpu: 0.0.40
codegen_flags: <defaults>
</compile_context>

<pallas_src>
import functools

import jax
import jax.numpy as jnp
from jax.experimental import pallas as pl
from jax.experimental.pallas import tpu as pltpu

# Fixed geometry implied by the module.
H_IN, W_IN = 24, 20        # input spatial size (conv pad=2 preserves it)
H1, W1 = 24, 20            # conv1 output spatial size
H1P, W1P = 12, 10          # after MaxPool2d(2)
H2, W2 = 12, 10            # conv2 output spatial size
H2P, W2P = 6, 5            # after MaxPool2d(2)
K = 5                      # conv kernel size (padding = 2)
PAD = K // 2
C1, C2 = 16, 32            # conv1 / conv2 output channels
LANES1 = W1P * C1          # 160 = even/odd bank width of conv1 = conv2 LHS lanes
LANES2 = W2P * C2          # 160 = even/odd bank width of conv2 = fc1 LHS lanes
IM2COL = K * W_IN          # 100 = conv1 im2col contraction depth
D_HID, D_OUT = 128, 10
D_OUT_PAD = 128            # lane-dense logits (sliced back to 10 in the wrapper)
TILE_ALIGN = 16            # bf16 sublane packing: keeps in-kernel reshapes layout-only


def _cnn_fused_kernel(x_ref, w1e_ref, w1o_ref, b1_ref, w2e_ref, w2o_ref, b2_ref,
                      f1w_ref, f1b_ref, f2w_ref, f2b_ref, o_ref, xpad_ref):
    t = x_ref.shape[1]                                      # batch tile
    f32, bf16 = jnp.float32, jnp.bfloat16

    # -------- conv1: im2col -> ONE bf16 matmul per even/odd output-column bank
    win = x_ref[...].reshape(H1 * t, IM2COL)                # bf16 (24*t, 100)
    acc_e = jnp.dot(win, w1e_ref[...], preferred_element_type=f32)
    acc_o = jnp.dot(win, w1o_ref[...], preferred_element_type=f32)
    z_e = jnp.maximum(acc_e + b1_ref[...], 0.0)             # even output columns
    z_o = jnp.maximum(acc_o + b1_ref[...], 0.0)             # odd output columns

    # -------- MaxPool2d(2): W-pool = max(even, odd); H-pool = pairwise rows ---
    pw = jnp.maximum(z_e, z_o)                              # (24*t, 160) f32
    pr = pw.reshape(H1P, 2, t, LANES1)
    p1 = jnp.maximum(pr[:, 0], pr[:, 1])                    # (12, t, 160)

    # -------- conv2: zero-pad H into a bf16 VMEM scratch, 5 banded matmuls ----
    # Halo rows are re-zeroed every step: under dimension_semantics=("parallel",)
    # each TensorCore has its own scratch, so a program_id()==0 guard is unsafe
    # on multi-TC chips; these two tiny stores are negligible.
    xpad_ref[0:PAD] = jnp.zeros((PAD, t, LANES1), bf16)
    xpad_ref[PAD:PAD + H2] = p1.astype(bf16)
    xpad_ref[PAD + H2:2 * PAD + H2] = jnp.zeros((PAD, t, LANES1), bf16)
    acc_e = jnp.zeros((H2 * t, LANES2), f32)
    acc_o = jnp.zeros((H2 * t, LANES2), f32)
    for kh in range(K):
        win2 = xpad_ref[kh:kh + H2].reshape(H2 * t, LANES1)  # bf16 (12*t, 160)
        acc_e += jnp.dot(win2, w2e_ref[kh], preferred_element_type=f32)
        acc_o += jnp.dot(win2, w2o_ref[kh], preferred_element_type=f32)
    z_e = jnp.tanh(acc_e + b2_ref[...])
    z_o = jnp.tanh(acc_o + b2_ref[...])

    # -------- MaxPool2d(2) ---------------------------------------------------
    pw = jnp.maximum(z_e, z_o)                              # (12*t, 160)
    pr = pw.reshape(H2P, 2, t, LANES2)
    p2 = jnp.maximum(pr[:, 0], pr[:, 1]).astype(bf16)       # (6, t, 160) bf16

    # -------- fc1 (torch flatten folded into row-permuted weights) + ReLU -----
    # TODO(synk): Dropout(0.5) is implemented as identity (inference mode).
    acc = jnp.zeros((t, D_HID), f32)
    for h in range(H2P):
        acc += jnp.dot(p2[h], f1w_ref[h], preferred_element_type=f32)
    h1 = jnp.maximum(acc + f1b_ref[...], 0.0)

    # -------- fc2: lane-dense (t, 128) store; wrapper slices the 10 logits ----
    logits = jnp.dot(h1.astype(bf16), f2w_ref[...], preferred_element_type=f32)
    o_ref[...] = (logits + f2b_ref[...]).astype(o_ref.dtype)


def _banded_conv_weights(w, w_in_size, w_out_size):
    """Torch OIHW conv weight -> even/odd output-column banded matmul weights.

    Returns two (K, W_in*Cin, (W_out//2)*Cout) matrices with
      B[kh][w_in*Cin + ci, wc*Cout + co] = w[co, ci, kh, w_in - w_out + 2]
    for w_out = 2*wc (even bank) / 2*wc + 1 (odd bank), and zero where the 5-tap
    window falls outside the zero-padded row.  One matmul per kh computes a full
    conv row for every output column of that parity.
    """
    cout, cin, k, _ = w.shape
    pad = k // 2
    wi = jnp.arange(w_in_size)[:, None]
    wo = jnp.arange(w_out_size)[None, :]
    kw = wi - wo + pad                                      # (W_in, W_out)
    valid = (kw >= 0) & (kw < k)
    gathered = w[:, :, :, jnp.clip(kw, 0, k - 1)]           # (Cout,Cin,K,W_in,W_out)
    band = jnp.where(valid[None, None, None], gathered, 0.0)
    band = band.transpose(2, 3, 1, 4, 0)                    # (K,W_in,Cin,W_out,Cout)
    band = band.reshape(k, w_in_size * cin, w_out_size, cout)
    half = (w_out_size // 2) * cout
    b_even = band[:, :, 0::2, :].reshape(k, w_in_size * cin, half)
    b_odd = band[:, :, 1::2, :].reshape(k, w_in_size * cin, half)
    return b_even, b_odd


def prepare_params(params):
    """One-time re-layout of torch-format parameters for the fused kernel."""
    f32, bf16 = jnp.float32, jnp.bfloat16
    w1e, w1o = _banded_conv_weights(params["w1"].astype(f32), W_IN, W1)
    # conv1 is consumed as an im2col matmul: flatten the (kh, w_in) rows once.
    w1e = w1e.reshape(IM2COL, LANES1).astype(bf16)
    w1o = w1o.reshape(IM2COL, LANES1).astype(bf16)
    w2e, w2o = _banded_conv_weights(params["w2"].astype(f32), W1P, W2)
    w2e, w2o = w2e.astype(bf16), w2o.astype(bf16)
    b1 = jnp.tile(params["b1"].astype(f32), W1 // 2).reshape(1, LANES1)
    b2 = jnp.tile(params["b2"].astype(f32), W2 // 2).reshape(1, LANES2)
    # fc1 consumes the kernel's (h, w*32 + c) pooled-conv2 layout directly: the
    # torch NCHW flatten (view(N, -1)) is absorbed by permuting fw1's rows once.
    f1w = (params["fw1"].astype(f32)
           .reshape(D_HID, C2, H2P, W2P)                    # (d, c, h, w) torch order
           .transpose(2, 3, 1, 0)                           # (h, w, c, d)
           .reshape(H2P, W2P * C2, D_HID)                   # row/lane = w*32 + c
           .astype(bf16))
    f1b = params["fb1"].astype(f32).reshape(1, D_HID)
    # fc2: pad the 10 output columns to 128 lanes (sliced back in the wrapper).
    f2w = (jnp.zeros((D_HID, D_OUT_PAD), f32)
           .at[:, :D_OUT].set(params["fw2"].astype(f32).T).astype(bf16))
    f2b = jnp.zeros((1, D_OUT_PAD), f32).at[0, :D_OUT].set(params["fb2"].astype(f32))
    return dict(w1e=w1e, w1o=w1o, b1=b1, w2e=w2e, w2o=w2o, b2=b2,
                f1w=f1w, f1b=f1b, f2w=f2w, f2b=f2b)


def _round_up(v, m):
    return -(-v // m) * m


@functools.partial(jax.jit, static_argnames=("tile_n",))
def cnn_forward(x_nchw, prep, tile_n=32):
    """Forward pass.  x_nchw: (N, 1, 24, 20) float32, PyTorch NCHW layout.

    tile_n = images per grid step (use a multiple of 16; 32-128 recommended).
    The effective tile is clamped so the grid keeps >= 2 steps when the batch
    allows it (feeds both v7x TensorCores and preserves the DMA pipeline).
    Larger tiles (>=128) may need pltpu.CompilerParams(vmem_limit_bytes=...).
    """
    n = x_nchw.shape[0]
    t = _round_up(max(tile_n, 1), TILE_ALIGN)
    t = max(TILE_ALIGN, min(t, _round_up(n, 2 * TILE_ALIGN) // 2))
    n_pad = _round_up(n, t)

    x = x_nchw[:, 0]                                        # (N, 24, 20), Cin == 1
    if n_pad != n:
        x = jnp.pad(x, ((0, n_pad - n), (0, 0), (0, 0)))
    # H-major layout + im2col over the 5 kernel rows: (H1, N_pad, 5*W_IN).  The
    # 5x replication of a tiny input is negligible and turns conv1 into a single
    # contraction-100 matmul per output-column parity inside the kernel.
    xh = jnp.pad(jnp.transpose(x, (1, 0, 2)), ((PAD, PAD), (0, 0), (0, 0)))
    xim = jnp.concatenate([xh[kh:kh + H1] for kh in range(K)], axis=-1)
    xim = xim.astype(jnp.bfloat16)                          # MXU-native operand dtype

    out = pl.pallas_call(
        _cnn_fused_kernel,
        out_shape=jax.ShapeDtypeStruct((n_pad, D_OUT_PAD), jnp.float32),
        grid_spec=pltpu.PrefetchScalarGridSpec(
            num_scalar_prefetch=0,
            grid=(n_pad // t,),
            in_specs=[
                pl.BlockSpec((H1, t, IM2COL), lambda i: (0, i, 0)),
                pl.BlockSpec((IM2COL, LANES1), lambda i: (0, 0)),
                pl.BlockSpec((IM2COL, LANES1), lambda i: (0, 0)),
                pl.BlockSpec((1, LANES1), lambda i: (0, 0)),
                pl.BlockSpec((K, LANES1, LANES2), lambda i: (0, 0, 0)),
                pl.BlockSpec((K, LANES1, LANES2), lambda i: (0, 0, 0)),
                pl.BlockSpec((1, LANES2), lambda i: (0, 0)),
                pl.BlockSpec((H2P, LANES2, D_HID), lambda i: (0, 0, 0)),
                pl.BlockSpec((1, D_HID), lambda i: (0, 0)),
                pl.BlockSpec((D_HID, D_OUT_PAD), lambda i: (0, 0)),
                pl.BlockSpec((1, D_OUT_PAD), lambda i: (0, 0)),
            ],
            out_specs=pl.BlockSpec((t, D_OUT_PAD), lambda i: (i, 0)),
            scratch_shapes=[
                pltpu.VMEM((H2 + 2 * PAD, t, LANES1), jnp.bfloat16)],
        ),
        compiler_params=pltpu.CompilerParams(
            dimension_semantics=("parallel",)),   # v7x: grid steps split over 2 TCs
    )(xim, prep["w1e"], prep["w1o"], prep["b1"], prep["w2e"], prep["w2o"],
      prep["b2"], prep["f1w"], prep["f1b"], prep["f2w"], prep["f2b"])
    # Kernel stored lane-dense (t, 128) blocks; slice the 10 real logits here.
    return out[:n, :D_OUT]


def init_params(key):
    """Parameters in PyTorch layouts (OIHW convs, (out, in) linears)."""
    ks = jax.random.split(key, 8)
    s = 0.1
    return {
        "w1": s * jax.random.normal(ks[0], (C1, 1, K, K), jnp.float32),
        "b1": s * jax.random.normal(ks[1], (C1,), jnp.float32),
        "w2": s * jax.random.normal(ks[2], (C2, C1, K, K), jnp.float32),
        "b2": s * jax.random.normal(ks[3], (C2,), jnp.float32),
        "fw1": s * jax.random.normal(ks[4], (D_HID, 960), jnp.float32),
        "fb1": s * jax.random.normal(ks[5], (D_HID,), jnp.float32),
        "fw2": s * jax.random.normal(ks[6], (D_OUT, D_HID), jnp.float32),
        "fb2": s * jax.random.normal(ks[7], (D_OUT,), jnp.float32),
    }


if __name__ == "__main__":
    key = jax.random.PRNGKey(0)
    k_x, k_p = jax.random.split(key)
    # NCHW input like the PyTorch module; (24, 20) spatial -> 960 flat features.
    # Batch 64 with tile_n=32 -> a 2-step "parallel" grid (one step per v7x TC).
    x = jax.random.normal(k_x, (64, 1, 24, 20), jnp.float32)
    params = init_params(k_p)
    prep = prepare_params(params)            # one-time weight re-layout

    out = cnn_forward(x, prep, tile_n=32)
    out = jax.block_until_ready(out)
    assert out.shape == (64, 10) and out.dtype == jnp.float32
    print("KERNEL_OK")
</pallas_src>

<mosaic_0001>
module attributes {stable_mosaic.version = 11 : i64} {
  func.func @_cnn_fused_kernel(%arg0: i32, %arg1: memref<24x32x100xbf16, #tpu.memory_space<vmem>>, %arg2: memref<100x160xbf16, #tpu.memory_space<vmem>>, %arg3: memref<100x160xbf16, #tpu.memory_space<vmem>>, %arg4: memref<1x160xf32, #tpu.memory_space<vmem>>, %arg5: memref<5x160x160xbf16, #tpu.memory_space<vmem>>, %arg6: memref<5x160x160xbf16, #tpu.memory_space<vmem>>, %arg7: memref<1x160xf32, #tpu.memory_space<vmem>>, %arg8: memref<6x160x128xbf16, #tpu.memory_space<vmem>>, %arg9: memref<1x128xf32, #tpu.memory_space<vmem>>, %arg10: memref<128x128xbf16, #tpu.memory_space<vmem>>, %arg11: memref<1x128xf32, #tpu.memory_space<vmem>>, %arg12: memref<32x128xf32, #tpu.memory_space<vmem>>, %arg13: memref<16x32x160xbf16, #tpu.memory_space<vmem>>) attributes {dimension_semantics = [#tpu.dimension_semantics<parallel>], iteration_bounds = array<i64: 2>, scalar_prefetch = 0 : i64, scratch_operands = 1 : i64, tpu.core_type = #tpu.core_type<tc>, window_params = [{transform_indices = @transform_0, window_bounds = array<i64: 24, 32, 100>}, {pipeline_mode = #tpu.pipeline_mode<synchronous>, transform_indices = @transform_1, window_bounds = array<i64: 100, 160>}, {pipeline_mode = #tpu.pipeline_mode<synchronous>, transform_indices = @transform_2, window_bounds = array<i64: 100, 160>}, {pipeline_mode = #tpu.pipeline_mode<synchronous>, transform_indices = @transform_3, window_bounds = array<i64: 1, 160>}, {pipeline_mode = #tpu.pipeline_mode<synchronous>, transform_indices = @transform_4, window_bounds = array<i64: 5, 160, 160>}, {pipeline_mode = #tpu.pipeline_mode<synchronous>, transform_indices = @transform_5, window_bounds = array<i64: 5, 160, 160>}, {pipeline_mode = #tpu.pipeline_mode<synchronous>, transform_indices = @transform_6, window_bounds = array<i64: 1, 160>}, {pipeline_mode = #tpu.pipeline_mode<synchronous>, transform_indices = @transform_7, window_bounds = array<i64: 6, 160, 128>}, {pipeline_mode = #tpu.pipeline_mode<synchronous>, transform_indices = @transform_8, window_bounds = array<i64: 1, 128>}, {pipeline_mode = #tpu.pipeline_mode<synchronous>, transform_indices = @transform_9, window_bounds = array<i64: 128, 128>}, {pipeline_mode = #tpu.pipeline_mode<synchronous>, transform_indices = @transform_10, window_bounds = array<i64: 1, 128>}, {transform_indices = @transform_11, window_bounds = array<i64: 32, 128>}]} {
    %c0 = arith.constant 0 : index
    %c0_0 = arith.constant 0 : index
    %c0_1 = arith.constant 0 : index
    %0 = vector.load %arg1[%c0, %c0_0, %c0_1] : memref<24x32x100xbf16, #tpu.memory_space<vmem>>, vector<24x32x100xbf16>
    %1 = vector.shape_cast %0 : vector<24x32x100xbf16> to vector<768x100xbf16>
    %c0_2 = arith.constant 0 : index
    %c0_3 = arith.constant 0 : index
    %2 = vector.load %arg2[%c0_2, %c0_3] : memref<100x160xbf16, #tpu.memory_space<vmem>>, vector<100x160xbf16>
    %cst = arith.constant dense<0.000000e+00> : vector<768x160xf32>
    %3 = tpu.matmul %1, %2, %cst {dimension_numbers = #tpu.dot_dimension_numbers<[1], [0], [0], [1], [0, 0, 1, 1], [], []>} : vector<768x100xbf16>, vector<100x160xbf16>, vector<768x160xf32> -> vector<768x160xf32>
    %c0_4 = arith.constant 0 : index
    %c0_5 = arith.constant 0 : index
    %4 = vector.load %arg3[%c0_4, %c0_5] : memref<100x160xbf16, #tpu.memory_space<vmem>>, vector<100x160xbf16>
    %cst_6 = arith.constant dense<0.000000e+00> : vector<768x160xf32>
    %5 = tpu.matmul %1, %4, %cst_6 {dimension_numbers = #tpu.dot_dimension_numbers<[1], [0], [0], [1], [0, 0, 1, 1], [], []>} : vector<768x100xbf16>, vector<100x160xbf16>, vector<768x160xf32> -> vector<768x160xf32>
    %c0_7 = arith.constant 0 : index
    %c0_8 = arith.constant 0 : index
    %6 = vector.load %arg4[%c0_7, %c0_8] : memref<1x160xf32, #tpu.memory_space<vmem>>, vector<1x160xf32>
    %7 = vector.broadcast %6 : vector<1x160xf32> to vector<768x160xf32>
    %8 = arith.addf %3, %7 : vector<768x160xf32>
    %cst_9 = arith.constant 0.000000e+00 : f32
    %9 = vector.broadcast %cst_9 : f32 to vector<768x160xf32>
    %10 = arith.maximumf %8, %9 : vector<768x160xf32>
    %c0_10 = arith.constant 0 : index
    %c0_11 = arith.constant 0 : index
    %11 = vector.load %arg4[%c0_10, %c0_11] : memref<1x160xf32, #tpu.memory_space<vmem>>, vector<1x160xf32>
    %12 = vector.broadcast %11 : vector<1x160xf32> to vector<768x160xf32>
    %13 = arith.addf %5, %12 : vector<768x160xf32>
    %cst_12 = arith.constant 0.000000e+00 : f32
    %14 = vector.broadcast %cst_12 : f32 to vector<768x160xf32>
    %15 = arith.maximumf %13, %14 : vector<768x160xf32>
    %16 = arith.maximumf %10, %15 : vector<768x160xf32>
    %17 = vector.shape_cast %16 : vector<768x160xf32> to vector<12x2x32x160xf32>
    %18 = vector.extract_strided_slice %17 {offsets = [0, 0, 0, 0], sizes = [12, 1, 32, 160], strides = [1, 1, 1, 1]} : vector<12x2x32x160xf32> to vector<12x1x32x160xf32>
    %19 = vector.shape_cast %18 : vector<12x1x32x160xf32> to vector<12x32x160xf32>
    %20 = vector.extract_strided_slice %17 {offsets = [0, 1, 0, 0], sizes = [12, 1, 32, 160], strides = [1, 1, 1, 1]} : vector<12x2x32x160xf32> to vector<12x1x32x160xf32>
    %21 = vector.shape_cast %20 : vector<12x1x32x160xf32> to vector<12x32x160xf32>
    %22 = arith.maximumf %19, %21 : vector<12x32x160xf32>
    %cst_13 = arith.constant 0.000000e+00 : bf16
    %23 = vector.broadcast %cst_13 : bf16 to vector<2x32x160xbf16>
    %c0_14 = arith.constant 0 : index
    %c0_15 = arith.constant 0 : index
    %c0_16 = arith.constant 0 : index
    %24 = vector.load %arg13[%c0_14, %c0_15, %c0_16] : memref<16x32x160xbf16, #tpu.memory_space<vmem>>, vector<2x32x160xbf16>
    tpu.vector_store %arg13[%c0_14, %c0_15, %c0_16], %23 {strides = array<i32>} : memref<16x32x160xbf16, #tpu.memory_space<vmem>>, vector<2x32x160xbf16>,
    %25 = arith.truncf %22 : vector<12x32x160xf32> to vector<12x32x160xbf16>
    %c2 = arith.constant 2 : index
    %c0_17 = arith.constant 0 : index
    %c0_18 = arith.constant 0 : index
    %26 = vector.load %arg13[%c2, %c0_17, %c0_18] : memref<16x32x160xbf16, #tpu.memory_space<vmem>>, vector<12x32x160xbf16>
    tpu.vector_store %arg13[%c2, %c0_17, %c0_18], %25 {strides = array<i32>} : memref<16x32x160xbf16, #tpu.memory_space<vmem>>, vector<12x32x160xbf16>,
    %cst_19 = arith.constant 0.000000e+00 : bf16
    %27 = vector.broadcast %cst_19 : bf16 to vector<2x32x160xbf16>
    %c14 = arith.constant 14 : index
    %c0_20 = arith.constant 0 : index
    %c0_21 = arith.constant 0 : index
    %28 = vector.load %arg13[%c14, %c0_20, %c0_21] : memref<16x32x160xbf16, #tpu.memory_space<vmem>>, vector<2x32x160xbf16>
    tpu.vector_store %arg13[%c14, %c0_20, %c0_21], %27 {strides = array<i32>} : memref<16x32x160xbf16, #tpu.memory_space<vmem>>, vector<2x32x160xbf16>,
    %cst_22 = arith.constant 0.000000e+00 : f32
    %29 = vector.broadcast %cst_22 : f32 to vector<384x160xf32>
    %cst_23 = arith.constant 0.000000e+00 : f32
    %30 = vector.broadcast %cst_23 : f32 to vector<384x160xf32>
    %c0_24 = arith.constant 0 : index
    %c0_25 = arith.constant 0 : index
    %c0_26 = arith.constant 0 : index
    %31 = vector.load %arg13[%c0_24, %c0_25, %c0_26] : memref<16x32x160xbf16, #tpu.memory_space<vmem>>, vector<12x32x160xbf16>
    %32 = vector.shape_cast %31 : vector<12x32x160xbf16> to vector<384x160xbf16>
    %c0_27 = arith.constant 0 : index
    %c0_28 = arith.constant 0 : index
    %c0_29 = arith.constant 0 : index
    %33 = vector.load %arg5[%c0_27, %c0_28, %c0_29] : memref<5x160x160xbf16, #tpu.memory_space<vmem>>, vector<1x160x160xbf16>
    %34 = vector.shape_cast %33 : vector<1x160x160xbf16> to vector<160x160xbf16>
    %cst_30 = arith.constant dense<0.000000e+00> : vector<384x160xf32>
    %35 = tpu.matmul %32, %34, %cst_30 {dimension_numbers = #tpu.dot_dimension_numbers<[1], [0], [0], [1], [0, 0, 1, 1], [], []>} : vector<384x160xbf16>, vector<160x160xbf16>, vector<384x160xf32> -> vector<384x160xf32>
    %36 = arith.addf %29, %35 : vector<384x160xf32>
    %c0_31 = arith.constant 0 : index
    %c0_32 = arith.constant 0 : index
    %c0_33 = arith.constant 0 : index
    %37 = vector.load %arg6[%c0_31, %c0_32, %c0_33] : memref<5x160x160xbf16, #tpu.memory_space<vmem>>, vector<1x160x160xbf16>
    %38 = vector.shape_cast %37 : vector<1x160x160xbf16> to vector<160x160xbf16>
    %cst_34 = arith.constant dense<0.000000e+00> : vector<384x160xf32>
    %39 = tpu.matmul %32, %38, %cst_34 {dimension_numbers = #tpu.dot_dimension_numbers<[1], [0], [0], [1], [0, 0, 1, 1], [], []>} : vector<384x160xbf16>, vector<160x160xbf16>, vector<384x160xf32> -> vector<384x160xf32>
    %40 = arith.addf %30, %39 : vector<384x160xf32>
    %c1 = arith.constant 1 : index
    %c0_35 = arith.constant 0 : index
    %c0_36 = arith.constant 0 : index
    %41 = vector.load %arg13[%c1, %c0_35, %c0_36] : memref<16x32x160xbf16, #tpu.memory_space<vmem>>, vector<12x32x160xbf16>
    %42 = vector.shape_cast %41 : vector<12x32x160xbf16> to vector<384x160xbf16>
    %c1_37 = arith.constant 1 : index
    %c0_38 = arith.constant 0 : index
    %c0_39 = arith.constant 0 : index
    %43 = vector.load %arg5[%c1_37, %c0_38, %c0_39] : memref<5x160x160xbf16, #tpu.memory_space<vmem>>, vector<1x160x160xbf16>
    %44 = vector.shape_cast %43 : vector<1x160x160xbf16> to vector<160x160xbf16>
    %cst_40 = arith.constant dense<0.000000e+00> : vector<384x160xf32>
    %45 = tpu.matmul %42, %44, %cst_40 {dimension_numbers = #tpu.dot_dimension_numbers<[1], [0], [0], [1], [0, 0, 1, 1], [], []>} : vector<384x160xbf16>, vector<160x160xbf16>, vector<384x160xf32> -> vector<384x160xf32>
    %46 = arith.addf %36, %45 : vector<384x160xf32>
    %c1_41 = arith.constant 1 : index
    %c0_42 = arith.constant 0 : index
    %c0_43 = arith.constant 0 : index
    %47 = vector.load %arg6[%c1_41, %c0_42, %c0_43] : memref<5x160x160xbf16, #tpu.memory_space<vmem>>, vector<1x160x160xbf16>
    %48 = vector.shape_cast %47 : vector<1x160x160xbf16> to vector<160x160xbf16>
    %cst_44 = arith.constant dense<0.000000e+00> : vector<384x160xf32>
    %49 = tpu.matmul %42, %48, %cst_44 {dimension_numbers = #tpu.dot_dimension_numbers<[1], [0], [0], [1], [0, 0, 1, 1], [], []>} : vector<384x160xbf16>, vector<160x160xbf16>, vector<384x160xf32> -> vector<384x160xf32>
    %50 = arith.addf %40, %49 : vector<384x160xf32>
    %c2_45 = arith.constant 2 : index
    %c0_46 = arith.constant 0 : index
    %c0_47 = arith.constant 0 : index
    %51 = vector.load %arg13[%c2_45, %c0_46, %c0_47] : memref<16x32x160xbf16, #tpu.memory_space<vmem>>, vector<12x32x160xbf16>
    %52 = vector.shape_cast %51 : vector<12x32x160xbf16> to vector<384x160xbf16>
    %c2_48 = arith.constant 2 : index
    %c0_49 = arith.constant 0 : index
    %c0_50 = arith.constant 0 : index
    %53 = vector.load %arg5[%c2_48, %c0_49, %c0_50] : memref<5x160x160xbf16, #tpu.memory_space<vmem>>, vector<1x160x160xbf16>
    %54 = vector.shape_cast %53 : vector<1x160x160xbf16> to vector<160x160xbf16>
    %cst_51 = arith.constant dense<0.000000e+00> : vector<384x160xf32>
    %55 = tpu.matmul %52, %54, %cst_51 {dimension_numbers = #tpu.dot_dimension_numbers<[1], [0], [0], [1], [0, 0, 1, 1], [], []>} : vector<384x160xbf16>, vector<160x160xbf16>, vector<384x160xf32> -> vector<384x160xf32>
    %56 = arith.addf %46, %55 : vector<384x160xf32>
    %c2_52 = arith.constant 2 : index
    %c0_53 = arith.constant 0 : index
    %c0_54 = arith.constant 0 : index
    %57 = vector.load %arg6[%c2_52, %c0_53, %c0_54] : memref<5x160x160xbf16, #tpu.memory_space<vmem>>, vector<1x160x160xbf16>
    %58 = vector.shape_cast %57 : vector<1x160x160xbf16> to vector<160x160xbf16>
    %cst_55 = arith.constant dense<0.000000e+00> : vector<384x160xf32>
    %59 = tpu.matmul %52, %58, %cst_55 {dimension_numbers = #tpu.dot_dimension_numbers<[1], [0], [0], [1], [0, 0, 1, 1], [], []>} : vector<384x160xbf16>, vector<160x160xbf16>, vector<384x160xf32> -> vector<384x160xf32>
    %60 = arith.addf %50, %59 : vector<384x160xf32>
    %c3 = arith.constant 3 : index
    %c0_56 = arith.constant 0 : index
    %c0_57 = arith.constant 0 : index
    %61 = vector.load %arg13[%c3, %c0_56, %c0_57] : memref<16x32x160xbf16, #tpu.memory_space<vmem>>, vector<12x32x160xbf16>
    %62 = vector.shape_cast %61 : vector<12x32x160xbf16> to vector<384x160xbf16>
    %c3_58 = arith.constant 3 : index
    %c0_59 = arith.constant 0 : index
    %c0_60 = arith.constant 0 : index
    %63 = vector.load %arg5[%c3_58, %c0_59, %c0_60] : memref<5x160x160xbf16, #tpu.memory_space<vmem>>, vector<1x160x160xbf16>
    %64 = vector.shape_cast %63 : vector<1x160x160xbf16> to vector<160x160xbf16>
    %cst_61 = arith.constant dense<0.000000e+00> : vector<384x160xf32>
    %65 = tpu.matmul %62, %64, %cst_61 {dimension_numbers = #tpu.dot_dimension_numbers<[1], [0], [0], [1], [0, 0, 1, 1], [], []>} : vector<384x160xbf16>, vector<160x160xbf16>, vector<384x160xf32> -> vector<384x160xf32>
    %66 = arith.addf %56, %65 : vector<384x160xf32>
    %c3_62 = arith.constant 3 : index
    %c0_63 = arith.constant 0 : index
    %c0_64 = arith.constant 0 : index
    %67 = vector.load %arg6[%c3_62, %c0_63, %c0_64] : memref<5x160x160xbf16, #tpu.memory_space<vmem>>, vector<1x160x160xbf16>
    %68 = vector.shape_cast %67 : vector<1x160x160xbf16> to vector<160x160xbf16>
    %cst_65 = arith.constant dense<0.000000e+00> : vector<384x160xf32>
    %69 = tpu.matmul %62, %68, %cst_65 {dimension_numbers = #tpu.dot_dimension_numbers<[1], [0], [0], [1], [0, 0, 1, 1], [], []>} : vector<384x160xbf16>, vector<160x160xbf16>, vector<384x160xf32> -> vector<384x160xf32>
    %70 = arith.addf %60, %69 : vector<384x160xf32>
    %c4 = arith.constant 4 : index
    %c0_66 = arith.constant 0 : index
    %c0_67 = arith.constant 0 : index
    %71 = vector.load %arg13[%c4, %c0_66, %c0_67] : memref<16x32x160xbf16, #tpu.memory_space<vmem>>, vector<12x32x160xbf16>
    %72 = vector.shape_cast %71 : vector<12x32x160xbf16> to vector<384x160xbf16>
    %c4_68 = arith.constant 4 : index
    %c0_69 = arith.constant 0 : index
    %c0_70 = arith.constant 0 : index
    %73 = vector.load %arg5[%c4_68, %c0_69, %c0_70] : memref<5x160x160xbf16, #tpu.memory_space<vmem>>, vector<1x160x160xbf16>
    %74 = vector.shape_cast %73 : vector<1x160x160xbf16> to vector<160x160xbf16>
    %cst_71 = arith.constant dense<0.000000e+00> : vector<384x160xf32>
    %75 = tpu.matmul %72, %74, %cst_71 {dimension_numbers = #tpu.dot_dimension_numbers<[1], [0], [0], [1], [0, 0, 1, 1], [], []>} : vector<384x160xbf16>, vector<160x160xbf16>, vector<384x160xf32> -> vector<384x160xf32>
    %76 = arith.addf %66, %75 : vector<384x160xf32>
    %c4_72 = arith.constant 4 : index
    %c0_73 = arith.constant 0 : index
    %c0_74 = arith.constant 0 : index
    %77 = vector.load %arg6[%c4_72, %c0_73, %c0_74] : memref<5x160x160xbf16, #tpu.memory_space<vmem>>, vector<1x160x160xbf16>
    %78 = vector.shape_cast %77 : vector<1x160x160xbf16> to vector<160x160xbf16>
    %cst_75 = arith.constant dense<0.000000e+00> : vector<384x160xf32>
    %79 = tpu.matmul %72, %78, %cst_75 {dimension_numbers = #tpu.dot_dimension_numbers<[1], [0], [0], [1], [0, 0, 1, 1], [], []>} : vector<384x160xbf16>, vector<160x160xbf16>, vector<384x160xf32> -> vector<384x160xf32>
    %80 = arith.addf %70, %79 : vector<384x160xf32>
    %c0_76 = arith.constant 0 : index
    %c0_77 = arith.constant 0 : index
    %81 = vector.load %arg7[%c0_76, %c0_77] : memref<1x160xf32, #tpu.memory_space<vmem>>, vector<1x160xf32>
    %82 = vector.broadcast %81 : vector<1x160xf32> to vector<384x160xf32>
    %83 = arith.addf %76, %82 : vector<384x160xf32>
    %84 = math.tanh %83 : vector<384x160xf32>
    %c0_78 = arith.constant 0 : index
    %c0_79 = arith.constant 0 : index
    %85 = vector.load %arg7[%c0_78, %c0_79] : memref<1x160xf32, #tpu.memory_space<vmem>>, vector<1x160xf32>
    %86 = vector.broadcast %85 : vector<1x160xf32> to vector<384x160xf32>
    %87 = arith.addf %80, %86 : vector<384x160xf32>
    %88 = math.tanh %87 : vector<384x160xf32>
    %89 = arith.maximumf %84, %88 : vector<384x160xf32>
    %90 = vector.shape_cast %89 : vector<384x160xf32> to vector<6x2x32x160xf32>
    %91 = vector.extract_strided_slice %90 {offsets = [0, 0, 0, 0], sizes = [6, 1, 32, 160], strides = [1, 1, 1, 1]} : vector<6x2x32x160xf32> to vector<6x1x32x160xf32>
    %92 = vector.shape_cast %91 : vector<6x1x32x160xf32> to vector<6x32x160xf32>
    %93 = vector.extract_strided_slice %90 {offsets = [0, 1, 0, 0], sizes = [6, 1, 32, 160], strides = [1, 1, 1, 1]} : vector<6x2x32x160xf32> to vector<6x1x32x160xf32>
    %94 = vector.shape_cast %93 : vector<6x1x32x160xf32> to vector<6x32x160xf32>
    %95 = arith.maximumf %92, %94 : vector<6x32x160xf32>
    %96 = arith.truncf %95 : vector<6x32x160xf32> to vector<6x32x160xbf16>
    %cst_80 = arith.constant 0.000000e+00 : f32
    %97 = vector.broadcast %cst_80 : f32 to vector<32x128xf32>
    %98 = vector.extract_strided_slice %96 {offsets = [0, 0, 0], sizes = [1, 32, 160], strides = [1, 1, 1]} : vector<6x32x160xbf16> to vector<1x32x160xbf16>
    %99 = vector.shape_cast %98 : vector<1x32x160xbf16> to vector<32x160xbf16>
    %c0_81 = arith.constant 0 : index
    %c0_82 = arith.constant 0 : index
    %c0_83 = arith.constant 0 : index
    %100 = vector.load %arg8[%c0_81, %c0_82, %c0_83] : memref<6x160x128xbf16, #tpu.memory_space<vmem>>, vector<1x160x128xbf16>
    %101 = vector.shape_cast %100 : vector<1x160x128xbf16> to vector<160x128xbf16>
    %cst_84 = arith.constant dense<0.000000e+00> : vector<32x128xf32>
    %102 = tpu.matmul %99, %101, %cst_84 {dimension_numbers = #tpu.dot_dimension_numbers<[1], [0], [0], [1], [0, 0, 1, 1], [], []>} : vector<32x160xbf16>, vector<160x128xbf16>, vector<32x128xf32> -> vector<32x128xf32>
    %103 = arith.addf %97, %102 : vector<32x128xf32>
    %104 = vector.extract_strided_slice %96 {offsets = [1, 0, 0], sizes = [1, 32, 160], strides = [1, 1, 1]} : vector<6x32x160xbf16> to vector<1x32x160xbf16>
    %105 = vector.shape_cast %104 : vector<1x32x160xbf16> to vector<32x160xbf16>
    %c1_85 = arith.constant 1 : index
    %c0_86 = arith.constant 0 : index
    %c0_87 = arith.constant 0 : index
    %106 = vector.load %arg8[%c1_85, %c0_86, %c0_87] : memref<6x160x128xbf16, #tpu.memory_space<vmem>>, vector<1x160x128xbf16>
    %107 = vector.shape_cast %106 : vector<1x160x128xbf16> to vector<160x128xbf16>
    %cst_88 = arith.constant dense<0.000000e+00> : vector<32x128xf32>
    %108 = tpu.matmul %105, %107, %cst_88 {dimension_numbers = #tpu.dot_dimension_numbers<[1], [0], [0], [1], [0, 0, 1, 1], [], []>} : vector<32x160xbf16>, vector<160x128xbf16>, vector<32x128xf32> -> vector<32x128xf32>
    %109 = arith.addf %103, %108 : vector<32x128xf32>
    %110 = vector.extract_strided_slice %96 {offsets = [2, 0, 0], sizes = [1, 32, 160], strides = [1, 1, 1]} : vector<6x32x160xbf16> to vector<1x32x160xbf16>
    %111 = vector.shape_cast %110 : vector<1x32x160xbf16> to vector<32x160xbf16>
    %c2_89 = arith.constant 2 : index
    %c0_90 = arith.constant 0 : index
    %c0_91 = arith.constant 0 : index
    %112 = vector.load %arg8[%c2_89, %c0_90, %c0_91] : memref<6x160x128xbf16, #tpu.memory_space<vmem>>, vector<1x160x128xbf16>
    %113 = vector.shape_cast %112 : vector<1x160x128xbf16> to vector<160x128xbf16>
    %cst_92 = arith.constant dense<0.000000e+00> : vector<32x128xf32>
    %114 = tpu.matmul %111, %113, %cst_92 {dimension_numbers = #tpu.dot_dimension_numbers<[1], [0], [0], [1], [0, 0, 1, 1], [], []>} : vector<32x160xbf16>, vector<160x128xbf16>, vector<32x128xf32> -> vector<32x128xf32>
    %115 = arith.addf %109, %114 : vector<32x128xf32>
    %116 = vector.extract_strided_slice %96 {offsets = [3, 0, 0], sizes = [1, 32, 160], strides = [1, 1, 1]} : vector<6x32x160xbf16> to vector<1x32x160xbf16>
    %117 = vector.shape_cast %116 : vector<1x32x160xbf16> to vector<32x160xbf16>
    %c3_93 = arith.constant 3 : index
    %c0_94 = arith.constant 0 : index
    %c0_95 = arith.constant 0 : index
    %118 = vector.load %arg8[%c3_93, %c0_94, %c0_95] : memref<6x160x128xbf16, #tpu.memory_space<vmem>>, vector<1x160x128xbf16>
    %119 = vector.shape_cast %118 : vector<1x160x128xbf16> to vector<160x128xbf16>
    %cst_96 = arith.constant dense<0.000000e+00> : vector<32x128xf32>
    %120 = tpu.matmul %117, %119, %cst_96 {dimension_numbers = #tpu.dot_dimension_numbers<[1], [0], [0], [1], [0, 0, 1, 1], [], []>} : vector<32x160xbf16>, vector<160x128xbf16>, vector<32x128xf32> -> vector<32x128xf32>
    %121 = arith.addf %115, %120 : vector<32x128xf32>
    %122 = vector.extract_strided_slice %96 {offsets = [4, 0, 0], sizes = [1, 32, 160], strides = [1, 1, 1]} : vector<6x32x160xbf16> to vector<1x32x160xbf16>
    %123 = vector.shape_cast %122 : vector<1x32x160xbf16> to vector<32x160xbf16>
    %c4_97 = arith.constant 4 : index
    %c0_98 = arith.constant 0 : index
    %c0_99 = arith.constant 0 : index
    %124 = vector.load %arg8[%c4_97, %c0_98, %c0_99] : memref<6x160x128xbf16, #tpu.memory_space<vmem>>, vector<1x160x128xbf16>
    %125 = vector.shape_cast %124 : vector<1x160x128xbf16> to vector<160x128xbf16>
    %cst_100 = arith.constant dense<0.000000e+00> : vector<32x128xf32>
    %126 = tpu.matmul %123, %125, %cst_100 {dimension_numbers = #tpu.dot_dimension_numbers<[1], [0], [0], [1], [0, 0, 1, 1], [], []>} : vector<32x160xbf16>, vector<160x128xbf16>, vector<32x128xf32> -> vector<32x128xf32>
    %127 = arith.addf %121, %126 : vector<32x128xf32>
    %128 = vector.extract_strided_slice %96 {offsets = [5, 0, 0], sizes = [1, 32, 160], strides = [1, 1, 1]} : vector<6x32x160xbf16> to vector<1x32x160xbf16>
    %129 = vector.shape_cast %128 : vector<1x32x160xbf16> to vector<32x160xbf16>
    %c5 = arith.constant 5 : index
    %c0_101 = arith.constant 0 : index
    %c0_102 = arith.constant 0 : index
    %130 = vector.load %arg8[%c5, %c0_101, %c0_102] : memref<6x160x128xbf16, #tpu.memory_space<vmem>>, vector<1x160x128xbf16>
    %131 = vector.shape_cast %130 : vector<1x160x128xbf16> to vector<160x128xbf16>
    %cst_103 = arith.constant dense<0.000000e+00> : vector<32x128xf32>
    %132 = tpu.matmul %129, %131, %cst_103 {dimension_numbers = #tpu.dot_dimension_numbers<[1], [0], [0], [1], [0, 0, 1, 1], [], []>} : vector<32x160xbf16>, vector<160x128xbf16>, vector<32x128xf32> -> vector<32x128xf32>
    %133 = arith.addf %127, %132 : vector<32x128xf32>
    %c0_104 = arith.constant 0 : index
    %c0_105 = arith.constant 0 : index
    %134 = vector.load %arg9[%c0_104, %c0_105] : memref<1x128xf32, #tpu.memory_space<vmem>>, vector<1x128xf32>
    %135 = vector.broadcast %134 : vector<1x128xf32> to vector<32x128xf32>
    %136 = arith.addf %133, %135 : vector<32x128xf32>
    %cst_106 = arith.constant 0.000000e+00 : f32
    %137 = vector.broadcast %cst_106 : f32 to vector<32x128xf32>
    %138 = arith.maximumf %136, %137 : vector<32x128xf32>
    %139 = arith.truncf %138 : vector<32x128xf32> to vector<32x128xbf16>
    %c0_107 = arith.constant 0 : index
    %c0_108 = arith.constant 0 : index
    %140 = vector.load %arg10[%c0_107, %c0_108] : memref<128x128xbf16, #tpu.memory_space<vmem>>, vector<128x128xbf16>
    %cst_109 = arith.constant dense<0.000000e+00> : vector<32x128xf32>
    %141 = tpu.matmul %139, %140, %cst_109 {dimension_numbers = #tpu.dot_dimension_numbers<[1], [0], [0], [1], [0, 0, 1, 1], [], []>} : vector<32x128xbf16>, vector<128x128xbf16>, vector<32x128xf32> -> vector<32x128xf32>
    %c0_110 = arith.constant 0 : index
    %c0_111 = arith.constant 0 : index
    %142 = vector.load %arg11[%c0_110, %c0_111] : memref<1x128xf32, #tpu.memory_space<vmem>>, vector<1x128xf32>
    %143 = vector.broadcast %142 : vector<1x128xf32> to vector<32x128xf32>
    %144 = arith.addf %141, %143 : vector<32x128xf32>
    %c0_112 = arith.constant 0 : index
    %c0_113 = arith.constant 0 : index
    %145 = vector.load %arg12[%c0_112, %c0_113] : memref<32x128xf32, #tpu.memory_space<vmem>>, vector<32x128xf32>
    tpu.vector_store %arg12[%c0_112, %c0_113], %144 {strides = array<i32>} : memref<32x128xf32, #tpu.memory_space<vmem>>, vector<32x128xf32>,
    return
  }
  func.func @transform_0(%arg0: i32) -> (i32, i32, i32) {
    %c0_i32 = arith.constant 0 : i32
    %c0_i32_0 = arith.constant 0 : i32
    %c0_i32_1 = arith.constant 0 : i32
    return %c0_i32, %arg0, %c0_i32_0 : i32, i32, i32
  }
  func.func @transform_1(%arg0: i32) -> (i32, i32) {
    %c0_i32 = arith.constant 0 : i32
    %c0_i32_0 = arith.constant 0 : i32
    %c0_i32_1 = arith.constant 0 : i32
    return %c0_i32, %c0_i32_0 : i32, i32
  }
  func.func @transform_2(%arg0: i32) -> (i32, i32) {
    %c0_i32 = arith.constant 0 : i32
    %c0_i32_0 = arith.constant 0 : i32
    %c0_i32_1 = arith.constant 0 : i32
    return %c0_i32, %c0_i32_0 : i32, i32
  }
  func.func @transform_3(%arg0: i32) -> (i32, i32) {
    %c0_i32 = arith.constant 0 : i32
    %c0_i32_0 = arith.constant 0 : i32
    %c0_i32_1 = arith.constant 0 : i32
    return %c0_i32, %c0_i32_0 : i32, i32
  }
  func.func @transform_4(%arg0: i32) -> (i32, i32, i32) {
    %c0_i32 = arith.constant 0 : i32
    %c0_i32_0 = arith.constant 0 : i32
    %c0_i32_1 = arith.constant 0 : i32
    %c0_i32_2 = arith.constant 0 : i32
    return %c0_i32, %c0_i32_0, %c0_i32_1 : i32, i32, i32
  }
  func.func @transform_5(%arg0: i32) -> (i32, i32, i32) {
    %c0_i32 = arith.constant 0 : i32
    %c0_i32_0 = arith.constant 0 : i32
    %c0_i32_1 = arith.constant 0 : i32
    %c0_i32_2 = arith.constant 0 : i32
    return %c0_i32, %c0_i32_0, %c0_i32_1 : i32, i32, i32
  }
  func.func @transform_6(%arg0: i32) -> (i32, i32) {
    %c0_i32 = arith.constant 0 : i32
    %c0_i32_0 = arith.constant 0 : i32
    %c0_i32_1 = arith.constant 0 : i32
    return %c0_i32, %c0_i32_0 : i32, i32
  }
  func.func @transform_7(%arg0: i32) -> (i32, i32, i32) {
    %c0_i32 = arith.constant 0 : i32
    %c0_i32_0 = arith.constant 0 : i32
    %c0_i32_1 = arith.constant 0 : i32
    %c0_i32_2 = arith.constant 0 : i32
    return %c0_i32, %c0_i32_0, %c0_i32_1 : i32, i32, i32
  }
  func.func @transform_8(%arg0: i32) -> (i32, i32) {
    %c0_i32 = arith.constant 0 : i32
    %c0_i32_0 = arith.constant 0 : i32
    %c0_i32_1 = arith.constant 0 : i32
    return %c0_i32, %c0_i32_0 : i32, i32
  }
  func.func @transform_9(%arg0: i32) -> (i32, i32) {
    %c0_i32 = arith.constant 0 : i32
    %c0_i32_0 = arith.constant 0 : i32
    %c0_i32_1 = arith.constant 0 : i32
    return %c0_i32, %c0_i32_0 : i32, i32
  }
  func.func @transform_10(%arg0: i32) -> (i32, i32) {
    %c0_i32 = arith.constant 0 : i32
    %c0_i32_0 = arith.constant 0 : i32
    %c0_i32_1 = arith.constant 0 : i32
    return %c0_i32, %c0_i32_0 : i32, i32
  }
  func.func @transform_11(%arg0: i32) -> (i32, i32) {
    %c0_i32 = arith.constant 0 : i32
    %c0_i32_0 = arith.constant 0 : i32
    return %arg0, %c0_i32 : i32, i32
  }
}

</mosaic_0001>

<bundles_post_ra>
// kernel: cnn_forward.1
= control target key start
LH: loop header
LB: loop body
LE: loop exit
PB: predicated region body
PF: predicated region fallthrough
CT: control target
= control target key end

     0   :  { %s12727_s17 = smov 0   ;;  %s12729_s18 = smov 0   ;;  %s16178_s0 = inlined_call_operand.vmem [shape: bf16[24,64,100], index: 0, kind: input, shape index: {}]   ;;  %s16179_s1 = inlined_call_operand.vmem [shape: bf16[100,160], index: 1, kind: input, shape index: {}]   ;;  %s16180_s2 = inlined_call_operand.vmem [shape: bf16[100,160], index: 2, kind: input, shape index: {}]   ;;  %s16181_s3 = inlined_call_operand.vmem [shape: f32[1,160], index: 3, kind: input, shape index: {}]   ;;  %s16182_s4 = inlined_call_operand.vmem [shape: bf16[5,160,160], index: 4, kind: input, shape index: {}]   ;;  %s16183_s5 = inlined_call_operand.vmem [shape: bf16[5,160,160], index: 5, kind: input, shape index: {}]   ;;  %s16184_s6 = inlined_call_operand.vmem [shape: f32[1,160], index: 6, kind: input, shape index: {}]   ;;  %s16185_s7 = inlined_call_operand.vmem [shape: bf16[6,160,128], index: 7, kind: input, shape index: {}]   ;;  %s16186_s8 = inlined_call_operand.vmem [shape: f32[1,128], index: 8, kind: input, shape index: {}]   ;;  %s16187_s9 = inlined_call_operand.vmem [shape: bf16[128,128], index: 9, kind: input, shape index: {}]   ;;  %s16188_s10 = inlined_call_operand.vmem [shape: f32[1,128], index: 10, kind: input, shape index: {}]   ;;  %s16189_s11 = inlined_call_operand.vmem [shape: f32[64,128], index: 11, kind: output, shape index: {}]  }
   0x1   :  { %s12731_s19 = smov 0  }
   0x2 LB: > { %s10002_s20 = sadd.s32 4294967295, %s12664_s19   ;;  %s12744_s21 = sadd.s32 1, %s12664_s19   ;;  %s12664_s19 = sphi %s12731_s19, %s16192_s19   ;;  %s12660_s18 = sphi %s12729_s18, %s16191_s18   ;;  %s12656_s17 = sphi %s12727_s17, %s16190_s17  }
   0x3   : > { %s25_s22 = ssub.s32 %s12664_s19, %s12744_s21  ;;  %s28_s23 = sadd.s32 1, %s12660_s18 }
   0x4   : > { %p26_p0 = scmp.eq.s32.totalorder %s25_s22, 0  ;;  %p35_p1 = scmp.ne.s32.totalorder %s12660_s18, %s12656_s17 }
   0x5   : > { %p36_p2 = scmp.eq.s32.totalorder %s12664_s19, 0  ;;  %p10005_p4 = scmp.ge.s32.totalorder %s12664_s19, 2 }
   0x6   : > { %s12753_s24 = scalar_select %p26_p0, %s12660_s18, %s28_s23  }
   0x7   : > { %p37_p3 = por %p36_p2, %p35_p1  ;;  %327 = sbr.rel (%p10005_p4) target bundleno = 42 (0x2a), region = 56 }
   0xe   : > { %330 = sbr.rel (!%p37_p3) target bundleno = 42 (0x2a), region = 60  ;;  %s332_s25 = sand.u32 (%p37_p3), 1, %s12660_s18  }
   0xf   : > { %s10969_s26 = sshll.u32 (%p37_p3), %s12664_s19, 4  ;;  %s11768_s27 = smul.u32 (%p37_p3), 384, %s332_s25 }
  0x10   : > { %s12761_s30 = scalar_lea.vmem (%p37_p3), %s16178_s0, %s10969_s26 }
  0x11   : > { %v353_v0 = vld [vmem:[%s12761_s30] sm:$0xff] (%p37_p3)   ;;  %v357_v1 = vld [vmem:[%s12761_s30 + $0x8] sm:$0xff] (%p37_p3)   ;;  %s12769_s12 = scalar_lea.vmem (%p37_p3), [#allocation3], %s11768_s27 }
  0x12   : > { %v361_v2 = vld [vmem:[%s12761_s30 + $0x20] sm:$0xff] (%p37_p3)   ;;  %v365_v3 = vld [vmem:[%s12761_s30 + $0x28] sm:$0xff] (%p37_p3)   ;;  %354 = vst [vmem:[%s12769_s12] sm:$0xff] (%p37_p3), %v353_v0   ;;  %358 = vst [vmem:[%s12769_s12 + $0x8] sm:$0xff] (%p37_p3), %v357_v1  }
  0x13   : > { %v369_v4 = vld [vmem:[%s12761_s30 + $0x40] sm:$0xff] (%p37_p3)   ;;  %v373_v5 = vld [vmem:[%s12761_s30 + $0x48] sm:$0xff] (%p37_p3)   ;;  %362 = vst [vmem:[%s12769_s12 + $0x10] sm:$0xff] (%p37_p3), %v361_v2   ;;  %366 = vst [vmem:[%s12769_s12 + $0x18] sm:$0xff] (%p37_p3), %v365_v3  }
  0x14   : > { %370 = vst [vmem:[%s12769_s12 + $0x20] sm:$0xff] (%p37_p3), %v369_v4   ;;  %374 = vst [vmem:[%s12769_s12 + $0x28] sm:$0xff] (%p37_p3), %v373_v5   ;;  %v377_v6 = vld [vmem:[%s12761_s30 + $0x60] sm:$0xff] (%p37_p3)   ;;  %v381_v7 = vld [vmem:[%s12761_s30 + $0x68] sm:$0xff] (%p37_p3)  }
  0x15   : > { %v385_v8 = vld [vmem:[%s12761_s30 + $0x80] sm:$0xff]   ;;  %378 = vst [vmem:[%s12769_s12 + $0x30] sm:$0xff] %v377_v6   ;;  %382 = vst [vmem:[%s12769_s12 + $0x38] sm:$0xff] %v381_v7   ;;  %v389_v9 = vld [vmem:[%s12761_s30 + $0x88] sm:$0xff]  }
  0x16   : > { %386 = vst [vmem:[%s12769_s12 + $0x40] sm:$0xff] %v385_v8   ;;  %v393_v10 = vld [vmem:[%s12761_s30 + $0xa0] sm:$0xff]   ;;  %v397_v11 = vld [vmem:[%s12761_s30 + $0xa8] sm:$0xff]   ;;  %390 = vst [vmem:[%s12769_s12 + $0x48] sm:$0xff] %v389_v9  }
  0x17   : > { %394 = vst [vmem:[%s12769_s12 + $0x50] sm:$0xff] %v393_v10   ;;  %398 = vst [vmem:[%s12769_s12 + $0x58] sm:$0xff] %v397_v11   ;;  %v401_v12 = vld [vmem:[%s12761_s30 + $0xc0] sm:$0xff]   ;;  %v405_v13 = vld [vmem:[%s12761_s30 + $0xc8] sm:$0xff]  }
  0x18   : > { %v409_v14 = vld [vmem:[%s12761_s30 + $0xe0] sm:$0xff]   ;;  %402 = vst [vmem:[%s12769_s12 + $0x60] sm:$0xff] %v401_v12   ;;  %406 = vst [vmem:[%s12769_s12 + $0x68] sm:$0xff] %v405_v13   ;;  %v413_v15 = vld [vmem:[%s12761_s30 + $0xe8] sm:$0xff]  }
  0x19   : > { %410 = vst [vmem:[%s12769_s12 + $0x70] sm:$0xff] %v409_v14   ;;  %v417_v16 = vld [vmem:[%s12761_s30 + $0x100] sm:$0xff]   ;;  %v421_v17 = vld [vmem:[%s12761_s30 + $0x108] sm:$0xff]   ;;  %414 = vst [vmem:[%s12769_s12 + $0x78] sm:$0xff] %v413_v15  }
  0x1a   : > { %418 = vst [vmem:[%s12769_s12 + $0x80] sm:$0xff] %v417_v16   ;;  %422 = vst [vmem:[%s12769_s12 + $0x88] sm:$0xff] %v421_v17   ;;  %v425_v18 = vld [vmem:[%s12761_s30 + $0x120] sm:$0xff]   ;;  %v429_v19 = vld [vmem:[%s12761_s30 + $0x128] sm:$0xff]  }
  0x1b   : > { %v433_v20 = vld [vmem:[%s12761_s30 + $0x140] sm:$0xff]   ;;  %426 = vst [vmem:[%s12769_s12 + $0x90] sm:$0xff] %v425_v18   ;;  %430 = vst [vmem:[%s12769_s12 + $0x98] sm:$0xff] %v429_v19   ;;  %v437_v21 = vld [vmem:[%s12761_s30 + $0x148] sm:$0xff]  }
  0x1c   : > { %434 = vst [vmem:[%s12769_s12 + $0xa0] sm:$0xff] %v433_v20   ;;  %v441_v22 = vld [vmem:[%s12761_s30 + $0x160] sm:$0xff]   ;;  %v445_v23 = vld [vmem:[%s12761_s30 + $0x168] sm:$0xff]   ;;  %438 = vst [vmem:[%s12769_s12 + $0xa8] sm:$0xff] %v437_v21  }
  0x1d   : > { %442 = vst [vmem:[%s12769_s12 + $0xb0] sm:$0xff] %v441_v22   ;;  %446 = vst [vmem:[%s12769_s12 + $0xb8] sm:$0xff] %v445_v23   ;;  %v449_v24 = vld [vmem:[%s12761_s30 + $0x180] sm:$0xff]   ;;  %v453_v25 = vld [vmem:[%s12761_s30 + $0x188] sm:$0xff]  }
  0x1e   : > { %v457_v26 = vld [vmem:[%s12761_s30 + $0x1a0] sm:$0xff]   ;;  %450 = vst [vmem:[%s12769_s12 + $0xc0] sm:$0xff] %v449_v24   ;;  %454 = vst [vmem:[%s12769_s12 + $0xc8] sm:$0xff] %v453_v25   ;;  %v461_v27 = vld [vmem:[%s12761_s30 + $0x1a8] sm:$0xff]  }
  0x1f   : > { %458 = vst [vmem:[%s12769_s12 + $0xd0] sm:$0xff] %v457_v26   ;;  %v465_v28 = vld [vmem:[%s12761_s30 + $0x1c0] sm:$0xff]   ;;  %v469_v29 = vld [vmem:[%s12761_s30 + $0x1c8] sm:$0xff]   ;;  %462 = vst [vmem:[%s12769_s12 + $0xd8] sm:$0xff] %v461_v27  }
  0x20   : > { %466 = vst [vmem:[%s12769_s12 + $0xe0] sm:$0xff] %v465_v28   ;;  %470 = vst [vmem:[%s12769_s12 + $0xe8] sm:$0xff] %v469_v29   ;;  %v473_v30 = vld [vmem:[%s12761_s30 + $0x1e0] sm:$0xff]   ;;  %v477_v31 = vld [vmem:[%s12761_s30 + $0x1e8] sm:$0xff]  }
  0x21   : > { %v481_v32 = vld [vmem:[%s12761_s30 + $0x200] sm:$0xff]   ;;  %474 = vst [vmem:[%s12769_s12 + $0xf0] sm:$0xff] %v473_v30   ;;  %478 = vst [vmem:[%s12769_s12 + $0xf8] sm:$0xff] %v477_v31   ;;  %v485_v33 = vld [vmem:[%s12761_s30 + $0x208] sm:$0xff]  }
  0x22   : > { %482 = vst [vmem:[%s12769_s12 + $0x100] sm:$0xff] %v481_v32   ;;  %v489_v34 = vld [vmem:[%s12761_s30 + $0x220] sm:$0xff]   ;;  %v493_v35 = vld [vmem:[%s12761_s30 + $0x228] sm:$0xff]   ;;  %486 = vst [vmem:[%s12769_s12 + $0x108] sm:$0xff] %v485_v33  }
  0x23   : > { %490 = vst [vmem:[%s12769_s12 + $0x110] sm:$0xff] %v489_v34   ;;  %494 = vst [vmem:[%s12769_s12 + $0x118] sm:$0xff] %v493_v35   ;;  %v497_v36 = vld [vmem:[%s12761_s30 + $0x240] sm:$0xff]   ;;  %v501_v37 = vld [vmem:[%s12761_s30 + $0x248] sm:$0xff]  }
  0x24   : > { %v505_v38 = vld [vmem:[%s12761_s30 + $0x260] sm:$0xff]   ;;  %498 = vst [vmem:[%s12769_s12 + $0x120] sm:$0xff] %v497_v36   ;;  %502 = vst [vmem:[%s12769_s12 + $0x128] sm:$0xff] %v501_v37   ;;  %v509_v39 = vld [vmem:[%s12761_s30 + $0x268] sm:$0xff]  }
  0x25   : > { %506 = vst [vmem:[%s12769_s12 + $0x130] sm:$0xff] %v505_v38   ;;  %v513_v40 = vld [vmem:[%s12761_s30 + $0x280] sm:$0xff]   ;;  %v517_v41 = vld [vmem:[%s12761_s30 + $0x288] sm:$0xff]   ;;  %510 = vst [vmem:[%s12769_s12 + $0x138] sm:$0xff] %v509_v39  }
  0x26   : > { %514 = vst [vmem:[%s12769_s12 + $0x140] sm:$0xff] %v513_v40   ;;  %518 = vst [vmem:[%s12769_s12 + $0x148] sm:$0xff] %v517_v41   ;;  %v521_v42 = vld [vmem:[%s12761_s30 + $0x2a0] sm:$0xff]   ;;  %v525_v43 = vld [vmem:[%s12761_s30 + $0x2a8] sm:$0xff]  }
  0x27   : > { %v529_v44 = vld [vmem:[%s12761_s30 + $0x2c0] sm:$0xff]   ;;  %522 = vst [vmem:[%s12769_s12 + $0x150] sm:$0xff] %v521_v42   ;;  %526 = vst [vmem:[%s12769_s12 + $0x158] sm:$0xff] %v525_v43   ;;  %v533_v45 = vld [vmem:[%s12761_s30 + $0x2c8] sm:$0xff]  }
  0x28   : > { %530 = vst [vmem:[%s12769_s12 + $0x160] sm:$0xff] %v529_v44   ;;  %v537_v46 = vld [vmem:[%s12761_s30 + $0x2e0] sm:$0xff]   ;;  %v541_v47 = vld [vmem:[%s12761_s30 + $0x2e8] sm:$0xff]   ;;  %534 = vst [vmem:[%s12769_s12 + $0x168] sm:$0xff] %v533_v45  }
  0x29   : > { %538 = vst [vmem:[%s12769_s12 + $0x170] sm:$0xff] %v537_v46   ;;  %542 = vst [vmem:[%s12769_s12 + $0x178] sm:$0xff] %v541_v47  }
  0x2a PF: > { %p10008_p5 = scmp.ge.s32.totalorder %s12664_s19, 1  ;;  %p758_p6 = scmp.lt.s32.totalorder %s12664_s19, 3 }
  0x2c   : > { %p759_p7 = pnand %p10008_p5, %p758_p6 }
  0x2d   : > { %v11795_v48 = vld [vmem:[%s16179_s1 + $0x4] ss:$8 sps:$4 sm:$0xff] (!%p759_p7)   ;;  %v12666_v50 = vmov (!%p759_p7), 0   ;;  %v11799_v51 = vld [vmem:[%s16179_s1] ss:$8 sps:$4 sm:$0xff] (!%p759_p7)   ;;  %s765_s23 = sand.u32 (!%p759_p7), 1, %s12656_s17  }
  0x2e   : > { %762 = sbr.rel (%p759_p7) target bundleno = 2105 (0x839), region = 101  ;;  %v11797_v49 = vld [vmem:[%s16180_s2 + $0x4] ss:$8 sps:$4 sm:$0xff] (!%p759_p7)   ;;  %1435 = vmatprep.mubr.bf16.mxu0 (!%p759_p7), %v12666_v50  ;;  %3172 = vst [vmem:[#allocation2] sm:$0xff] (!%p759_p7), %v12666_v50  ;;  %2211 = vmatprep.mubr.bf16.mxu1 (!%p759_p7), %v12666_v50  ;;  %v11800_v52 = vld [vmem:[%s16180_s2] ss:$8 sps:$4 sm:$0xff] (!%p759_p7)  }
  0x2f   : > { %1403 = vmatprep.subr.bf16.mxu0 (!%p759_p7), %v11795_v48  ;;  %2179 = vmatprep.subr.bf16.mxu1 (!%p759_p7), %v11797_v49  ;;  %v11801_v53 = vld [vmem:[%s16179_s1 + $0x14] ss:$8 sps:$4 sm:$0xff] (!%p759_p7)   ;;  %v11805_v55 = vld [vmem:[%s16179_s1 + $0x10] ss:$8 sps:$4 sm:$0xff] (!%p759_p7)   ;;  %v11807_v57 = vld [vmem:[%s16179_s1 + $0x24] ss:$8 sps:$4 sm:$0xff] (!%p759_p7)  }
  0x30   : > { %1404 = vmatpush1.bf16.msra.mxu0 (!%p759_p7), %v11799_v51  ;;  %2180 = vmatpush1.bf16.msra.mxu1 (!%p759_p7), %v11800_v52  ;;  %v11803_v54 = vld [vmem:[%s16180_s2 + $0x14] ss:$8 sps:$4 sm:$0xff] (!%p759_p7)   ;;  %v11806_v56 = vld [vmem:[%s16180_s2 + $0x10] ss:$8 sps:$4 sm:$0xff] (!%p759_p7)   ;;  %v11809_v58 = vld [vmem:[%s16180_s2 + $0x24] ss:$8 sps:$4 sm:$0xff] (!%p759_p7)  }
  0x31   : > { %1405 = vmatprep.subr.bf16.mxu0 (!%p759_p7), %v11801_v53  ;;  %2181 = vmatprep.subr.bf16.mxu1 (!%p759_p7), %v11803_v54  ;;  %v11811_v59 = vld [vmem:[%s16179_s1 + $0x20] ss:$8 sps:$4 sm:$0xff] (!%p759_p7)   ;;  %v11813_v61 = vld [vmem:[%s16179_s1 + $0x34] ss:$8 sps:$4 sm:$0xff] (!%p759_p7)   ;;  %s11769_s15 = smul.u32 (!%p759_p7), 384, %s765_s23  ;;  %vm1396_vm0 = vcmask (!%p759_p7), 1041408  }
  0x32   : > { %v11812_v60 = vld [vmem:[%s16180_s2 + $0x20] ss:$8 sps:$4 sm:$0xff] (!%p759_p7)   ;;  %v11815_v62 = vld [vmem:[%s16180_s2 + $0x34] ss:$8 sps:$4 sm:$0xff] (!%p759_p7)   ;;  %v11817_v63 = vld [vmem:[%s16179_s1 + $0x30] ss:$8 sps:$4 sm:$0xff] (!%p759_p7)  }
  0x33   : > { %v11818_v0 = vld [vmem:[%s16180_s2 + $0x30] ss:$8 sps:$4 sm:$0xff] (!%p759_p7)   ;;  %v11819_v1 = vld [vmem:[%s16179_s1 + $0x44] ss:$8 sps:$4 sm:$0xff] (!%p759_p7)   ;;  %v11823_v3 = vld [vmem:[%s16179_s1 + $0x40] ss:$8 sps:$4 sm:$0xff] (!%p759_p7)  }
  0x34   : > { %1406 = vmatpush1.bf16.msra.mxu0 (!%p759_p7), %v11805_v55  ;;  %2182 = vmatpush1.bf16.msra.mxu1 (!%p759_p7), %v11806_v56  ;;  %v11821_v2 = vld [vmem:[%s16180_s2 + $0x44] ss:$8 sps:$4 sm:$0xff] (!%p759_p7)   ;;  %v11824_v4 = vld [vmem:[%s16180_s2 + $0x40] ss:$8 sps:$4 sm:$0xff] (!%p759_p7)   ;;  %v11825_v5 = vld [vmem:[%s16179_s1 + $0x54] ss:$8 sps:$4 sm:$0xff] (!%p759_p7)  }
  0x35   : > { %1407 = vmatprep.subr.bf16.mxu0 %v11807_v57  ;;  %2183 = vmatprep.subr.bf16.mxu1 %v11809_v58  ;;  %v11827_v6 = vld [vmem:[%s16180_s2 + $0x54] ss:$8 sps:$4 sm:$0xff]   ;;  %v920_v7 = vld [vmem:[%s16179_s1 + $0x60] sm:$0x33]  ;;  %s12936_s28 = scalar_lea.vmem [#allocation3], %s11769_s15  ;;  %vm1251_vm1 = vcmask 818176  }
  0x36   : > { %v933_v8 = vld [vmem:[%s16180_s2 + $0x60] sm:$0x33]  ;;  %v11829_v9 = vld [vmem:[%s16179_s1 + $0x50] ss:$8 sps:$4 sm:$0xff]   ;;  %v10071_v11 = vcombine.low %v920_v7, %v920_v7  ;;  %v10072_v13 = vcombine.high %v920_v7, %v920_v7  ;;  %v11850_v22 = vld [vmem:[%s16182_s4 + $0xb4] ss:$8 sps:$4 sm:$0xff]  }
  0x37   : > { %v11830_v10 = vld [vmem:[%s16180_s2 + $0x50] ss:$8 sps:$4 sm:$0xff]   ;;  %v10134_v12 = vcombine.low %v933_v8, %v933_v8  ;;  %v10135_v14 = vcombine.high %v933_v8, %v933_v8  ;;  %v11839_v15 = vld [vmem:[%s16182_s4 + $0xa4] ss:$8 sps:$4 sm:$0xff]   ;;  %v11837_v20 = vld [vmem:[%s16182_s4 + $0xa0] ss:$8 sps:$4 sm:$0xff]  }
  0x38   : > { %1408 = vmatpush1.bf16.msra.mxu0 %v11811_v59  ;;  %2184 = vmatpush1.bf16.msra.mxu1 %v11812_v60  ;;  %v1398_v16 = vsel %vm1396_vm0, %v10071_v11, 0  ;;  %v11842_v18 = vld [vmem:[%s16183_s5 + $0xa4] ss:$8 sps:$4 sm:$0xff]   ;;  %v11840_v21 = vld [vmem:[%s16183_s5 + $0xa0] ss:$8 sps:$4 sm:$0xff]   ;;  %v11843_v31 = vld [vmem:[%s12936_s28 + $0x10] sm:$0xff]  }
  0x39   : > { %1409 = vmatprep.subr.bf16.mxu0 %v11813_v61  ;;  %2185 = vmatprep.subr.bf16.mxu1 %v11815_v62  ;;  %v2174_v17 = vsel %vm1396_vm0, %v10134_v12, 0  ;;  %v11835_v19 = vld [vmem:[%s12936_s28] sm:$0xff]   ;;  %v11853_v23 = vld [vmem:[%s16183_s5 + $0xb4] ss:$8 sps:$4 sm:$0xff]   ;;  %v11848_v24 = vld [vmem:[%s16182_s4 + $0xb0] ss:$8 sps:$4 sm:$0xff]  }
  0x3a   : > { %v11851_v25 = vld [vmem:[%s16183_s5 + $0xb0] ss:$8 sps:$4 sm:$0xff]   ;;  %v11860_v26 = vld [vmem:[%s16182_s4 + $0xc4] ss:$8 sps:$4 sm:$0xff]   ;;  %v11858_v29 = vld [vmem:[%s16182_s4 + $0xc0] ss:$8 sps:$4 sm:$0xff]  }
  0x3b   : > { %v11836_v27 = vld [vmem:[%s12936_s28 + $0x8] sm:$0xff]   ;;  %v11869_v32 = vld [vmem:[%s16182_s4 + $0xd0] ss:$8 sps:$4 sm:$0xff]   ;;  %v11871_v33 = vld [vmem:[%s16182_s4 + $0xd4] ss:$8 sps:$4 sm:$0xff]   ;;  %vm3173_vm2 = vcmask 261120  }
  0x3c   : > { %1410 = vmatpush1.bf16.msra.mxu0 %v11817_v63  ;;  %2186 = vmatpush1.bf16.msra.mxu1 %v11818_v0  ;;  %v11863_v28 = vld [vmem:[%s16183_s5 + $0xc4] ss:$8 sps:$4 sm:$0xff]   ;;  %v11861_v30 = vld [vmem:[%s16183_s5 + $0xc0] ss:$8 sps:$4 sm:$0xff]   ;;  %v11872_v34 = vld [vmem:[%s16183_s5 + $0xd0] ss:$8 sps:$4 sm:$0xff]  }
  0x3d   : > { %1411 = vmatprep.subr.bf16.mxu0 %v11819_v1  ;;  %2187 = vmatprep.subr.bf16.mxu1 %v11821_v2  ;;  %v11874_v35 = vld [vmem:[%s16183_s5 + $0xd4] ss:$8 sps:$4 sm:$0xff]   ;;  %v11845_v37 = vld [vmem:[%s12936_s28 + $0x20] sm:$0xff]   ;;  %v11846_v42 = vld [vmem:[%s12936_s28 + $0x28] sm:$0xff]   ;;  %s10009_s16 = sshll.u32 %s10002_s20, 2 }
  0x3e   : > { %v11844_v36 = vld [vmem:[%s12936_s28 + $0x18] sm:$0xff]   ;;  %v11880_v38 = vld [vmem:[%s16182_s4 + $0xe0] ss:$8 sps:$4 sm:$0xff]   ;;  %v11882_v39 = vld [vmem:[%s16182_s4 + $0xe4] ss:$8 sps:$4 sm:$0xff]   ;;  %p806_p8 = scmp.lt.s32.totalorder %s10009_s16, 7 }
  0x3f   : > { %v11883_v40 = vld [vmem:[%s16183_s5 + $0xe0] ss:$8 sps:$4 sm:$0xff]   ;;  %v11885_v41 = vld [vmem:[%s16183_s5 + $0xe4] ss:$8 sps:$4 sm:$0xff]   ;;  %v11847_v43 = vld [vmem:[%s12936_s28 + $0x30] sm:$0xff]  }
  0x40   : > { %1412 = vmatpush1.bf16.msra.mxu0 %v11823_v3  ;;  %2188 = vmatpush1.bf16.msra.mxu1 %v11824_v4  ;;  %v11854_v44 = vld [vmem:[%s12936_s28 + $0x38] sm:$0xff]   ;;  %v11855_v45 = vld [vmem:[%s12936_s28 + $0x40] sm:$0xff]   ;;  %v11856_v46 = vld [vmem:[%s12936_s28 + $0x48] sm:$0xff]   ;;  %s16194_s16 = smov (!%p806_p8, %s10009_s16), 7 }
  0x41   : > { %1413 = vmatprep.subr.bf16.mxu0 %v11825_v5  ;;  %2189 = vmatprep.subr.bf16.mxu1 %v11827_v6  ;;  %v11891_v47 = vld [vmem:[%s16182_s4 + $0xf0] ss:$8 sps:$4 sm:$0xff]   ;;  %v11893_v48 = vld [vmem:[%s16182_s4 + $0xf4] ss:$8 sps:$4 sm:$0xff]   ;;  %v11865_v54 = vld [vmem:[%s12936_s28 + $0x60] sm:$0xff]   ;;  %s10010_s22 = sshll.u32 %s16194_s16, 3 }
  0x42   : > { %v11894_v49 = vld [vmem:[%s16183_s5 + $0xf0] ss:$8 sps:$4 sm:$0xff]   ;;  %v11896_v51 = vld [vmem:[%s16183_s5 + $0xf4] ss:$8 sps:$4 sm:$0xff]   ;;  %v11866_v55 = vld [vmem:[%s12936_s28 + $0x68] sm:$0xff]  }
  0x43   : > { %v11857_v52 = vld [vmem:[%s12936_s28 + $0x50] sm:$0xff]   ;;  %v11864_v53 = vld [vmem:[%s12936_s28 + $0x58] sm:$0xff]   ;;  %v13088_v56 = vld [vmem:[#allocation2] sm:$0xff] }
  0x44   : > { %1414 = vmatpush1.bf16.msra.mxu0 %v11829_v9  ;;  %2190 = vmatpush1.bf16.msra.mxu1 %v11830_v10  ;;  %v11867_v57 = vld [vmem:[%s12936_s28 + $0x70] sm:$0xff]   ;;  %3174 = vst.msk [vmem:[#allocation2 + $0x8] sm:$0xff] %vm3173_vm2, %v13088_v56  ;;  %3176 = vst.msk [vmem:[#allocation2 + $0x18] sm:$0xff] %vm3173_vm2, %v13088_v56  ;;  %v11875_v58 = vld [vmem:[%s12936_s28 + $0x80] sm:$0xff]  }
  0x45   : > { %10073 = vmatprep.subr.msk.bf16.mxu0 %vm1396_vm0, %v10072_v13  ;;  %10136 = vmatprep.subr.msk.bf16.mxu1 %vm1396_vm0, %v10135_v14  ;;  %3178 = vst.msk [vmem:[#allocation2 + $0x28] sm:$0xff] %vm3173_vm2, %v13088_v56  ;;  %3180 = vst.msk [vmem:[#allocation2 + $0x38] sm:$0xff] %vm3173_vm2, %v13088_v56  ;;  %v11902_v59 = vld [vmem:[%s16182_s4 + $0x100] ss:$8 sps:$4 sm:$0xff]   ;;  %v11904_v60 = vld [vmem:[%s16182_s4 + $0x104] ss:$8 sps:$4 sm:$0xff]  }
  0x46   : > { %3280 = vst.msk [vmem:[#allocation2 + $0x1c8] sm:$0xff] %vm3173_vm2, %v13088_v56  ;;  %3282 = vst.msk [vmem:[#allocation2 + $0x1d8] sm:$0xff] %vm3173_vm2, %v13088_v56  ;;  %v11905_v61 = vld [vmem:[%s16183_s5 + $0x100] ss:$8 sps:$4 sm:$0xff]   ;;  %v11907_v62 = vld [vmem:[%s16183_s5 + $0x104] ss:$8 sps:$4 sm:$0xff]  }
  0x47   : > { %3284 = vst.msk [vmem:[#allocation2 + $0x1e8] sm:$0xff] %vm3173_vm2, %v13088_v56  ;;  %3286 = vst.msk [vmem:[#allocation2 + $0x1f8] sm:$0xff] %vm3173_vm2, %v13088_v56  ;;  %v11876_v63 = vld [vmem:[%s12936_s28 + $0x88] sm:$0xff]   ;;  %v11877_v0 = vld [vmem:[%s12936_s28 + $0x90] sm:$0xff]  }
  0x48   : > { %1416 = vmatpush1.bf16.msra.mxu0 %v1398_v16  ;;  %2192 = vmatpush1.bf16.msra.mxu1 %v2174_v17  ;;  %v11878_v1 = vld [vmem:[%s12936_s28 + $0x98] sm:$0xff]   ;;  %v11879_v2 = vld [vmem:[%s12936_s28 + $0xa0] sm:$0xff]   ;;  %v11886_v7 = vld [vmem:[%s12936_s28 + $0xa8] sm:$0xff]   ;;  %v936_v16 = vlaneseq }
  0x49   : > { %3617 = vmatprep.subr.bf16.mxu0 %v11839_v15  ;;  %4456 = vmatprep.subr.bf16.mxu1 %v11842_v18  ;;  %v11914_v3 = vld [vmem:[%s16182_s4 + $0x114] ss:$8 sps:$4 sm:$0xff]   ;;  %v11912_v4 = vld [vmem:[%s16182_s4 + $0x110] ss:$8 sps:$4 sm:$0xff]   ;;  %v11889_v10 = vld [vmem:[%s12936_s28 + $0xc0] sm:$0xff]  }
  0x4a   : > { %v11917_v5 = vld [vmem:[%s16183_s5 + $0x114] ss:$8 sps:$4 sm:$0xff]   ;;  %v11915_v6 = vld [vmem:[%s16183_s5 + $0x110] ss:$8 sps:$4 sm:$0xff]   ;;  %v11923_v11 = vld [vmem:[%s16182_s4 + $0x120] ss:$8 sps:$4 sm:$0xff]  }
  0x4b   : > { %10074 = vmatmul.mubr.msk.bf16.vlgmr.msra.gmra.mrb[0].mxu0 %vm1251_vm1, %v11835_v19  ;;  %10137 = vmatmul.mubr.msk.bf16.vlgmr.msra.gmra.mrb[0].mxu1 %vm1251_vm1, %v11835_v19  ;;  %v11887_v8 = vld [vmem:[%s12936_s28 + $0xb0] sm:$0xff]   ;;  %v11888_v9 = vld [vmem:[%s12936_s28 + $0xb8] sm:$0xff]   ;;  %v11925_v12 = vld [vmem:[%s16182_s4 + $0x124] ss:$8 sps:$4 sm:$0xff]   ;;  %v13201_v17 = vshrl.u32 %v936_v16, 7 }
  0x4c   : > { %1445 = vmatprep.mubr.bf16.mxu0 %v12666_v50  ;;  %2221 = vmatprep.mubr.bf16.mxu1 %v12666_v50  ;;  %v11926_v13 = vld [vmem:[%s16183_s5 + $0x120] ss:$8 sps:$4 sm:$0xff]   ;;  %v11928_v14 = vld [vmem:[%s16183_s5 + $0x124] ss:$8 sps:$4 sm:$0xff]   ;;  %v11897_v18 = vld [vmem:[%s12936_s28 + $0xd0] sm:$0xff]  }
  0x4d   : > { %3618 = vmatpush1.bf16.msra.mxu0 %v11837_v20  ;;  %4457 = vmatpush1.bf16.msra.mxu1 %v11840_v21  ;;  %v11890_v15 = vld [vmem:[%s12936_s28 + $0xc8] sm:$0xff]   ;;  %v938_v19 = vsub.s32 0, %v13201_v17  ;;  %v934_v20 = vld [vmem:[%s16181_s3] sm:$0x3]  ;;  %v942_v21 = vsub.s32 1, %v13201_v17 }
  0x4e   : > { %3619 = vmatprep.subr.bf16.mxu0 %v11850_v22  ;;  %4458 = vmatprep.subr.bf16.mxu1 %v11853_v23 }
  0x4f   : > { %v13215_v22 = vrot.slane %v934_v20, %v938_v19  ;;  %v13219_v23 = vrot.slane %v934_v20, %v942_v21 }
  0x51   : > { %3620 = vmatpush1.bf16.msra.mxu0 %v11848_v24  ;;  %4459 = vmatpush1.bf16.msra.mxu1 %v11851_v25 }
  0x52   : > { %3621 = vmatprep.subr.bf16.mxu0 %v11860_v26  ;;  %4460 = vmatprep.subr.bf16.mxu1 %v11863_v28 }
  0x53   : > { %10075 = vmatmul.mubr.msk.bf16.gmra.mrb[4].mxu0 %vm1251_vm1, %v11836_v27  ;;  %10138 = vmatmul.mubr.msk.bf16.gmra.mrb[4].mxu1 %vm1251_vm1, %v11836_v27 }
  0x54   : > { %1455 = vmatprep.mubr.bf16.mxu0 %v12666_v50  ;;  %2231 = vmatprep.mubr.bf16.mxu1 %v12666_v50 }
  0x55   : > { %3622 = vmatpush1.bf16.msra.mxu0 %v11858_v29  ;;  %4461 = vmatpush1.bf16.msra.mxu1 %v11861_v30  ;;  %v11898_v30 = vld [vmem:[%s12936_s28 + $0xd8] sm:$0xff]  }
  0x56   : > { %3623 = vmatprep.subr.bf16.mxu0 %v11871_v33  ;;  %4462 = vmatprep.subr.bf16.mxu1 %v11874_v35 }
  0x59   : > { %3624 = vmatpush1.bf16.msra.mxu0 %v11869_v32  ;;  %4463 = vmatpush1.bf16.msra.mxu1 %v11872_v34 }
  0x5a   : > { %3625 = vmatprep.subr.bf16.mxu0 %v11882_v39  ;;  %4464 = vmatprep.subr.bf16.mxu1 %v11885_v41 }
  0x5b   : > { %10076 = vmatmul.mubr.msk.bf16.gmra.mrb[8].mxu0 %vm1251_vm1, %v11843_v31  ;;  %10139 = vmatmul.mubr.msk.bf16.gmra.mrb[8].mxu1 %vm1251_vm1, %v11843_v31 }
  0x5c   : > { %1465 = vmatprep.mubr.bf16.mxu0 %v12666_v50  ;;  %2241 = vmatprep.mubr.bf16.mxu1 %v12666_v50 }
  0x5d   : > { %3626 = vmatpush1.bf16.msra.mxu0 %v11880_v38  ;;  %4465 = vmatpush1.bf16.msra.mxu1 %v11883_v40 }
  0x5e   : > { %3627 = vmatprep.subr.bf16.mxu0 %v11893_v48  ;;  %4466 = vmatprep.subr.bf16.mxu1 %v11896_v51 }
  0x61   : > { %3628 = vmatpush1.bf16.msra.mxu0 %v11891_v47  ;;  %4467 = vmatpush1.bf16.msra.mxu1 %v11894_v49 }
  0x62   : > { %3629 = vmatprep.subr.bf16.mxu0 %v11904_v60  ;;  %4468 = vmatprep.subr.bf16.mxu1 %v11907_v62  ;;  %v11899_v60 = vld [vmem:[%s12936_s28 + $0xe0] sm:$0xff]  }
  0x63   : > { %10077 = vmatmul.mubr.msk.bf16.gmra.mrb[12].mxu0 %vm1251_vm1, %v11844_v36  ;;  %10140 = vmatmul.mubr.msk.bf16.gmra.mrb[12].mxu1 %vm1251_vm1, %v11844_v36 }
  0x64   : > { %1475 = vmatprep.mubr.bf16.mxu0 %v12666_v50  ;;  %2251 = vmatprep.mubr.bf16.mxu1 %v12666_v50 }
  0x65   : > { %3630 = vmatpush1.bf16.msra.mxu0 %v11902_v59  ;;  %4469 = vmatpush1.bf16.msra.mxu1 %v11905_v61 }
  0x66   : > { %3631 = vmatprep.subr.bf16.mxu0 %v11914_v3  ;;  %4470 = vmatprep.subr.bf16.mxu1 %v11917_v5 }
  0x69   : > { %3632 = vmatpush1.bf16.msra.mxu0 %v11912_v4  ;;  %4471 = vmatpush1.bf16.msra.mxu1 %v11915_v6 }
  0x6a   : > { %3633 = vmatprep.subr.bf16.mxu0 %v11925_v12  ;;  %4472 = vmatprep.subr.bf16.mxu1 %v11928_v14 }
  0x6b   : > { %10078 = vmatmul.mubr.msk.bf16.gmra.mrb[16].mxu0 %vm1251_vm1, %v11845_v37  ;;  %10141 = vmatmul.mubr.msk.bf16.gmra.mrb[16].mxu1 %vm1251_vm1, %v11845_v37 }
  0x6c   : > { %1485 = vmatprep.mubr.bf16.mxu0 %v12666_v50  ;;  %2261 = vmatprep.mubr.bf16.mxu1 %v12666_v50 }
  0x6d   : > { %3634 = vmatpush1.bf16.msra.mxu0 %v11923_v11  ;;  %4473 = vmatpush1.bf16.msra.mxu1 %v11926_v13 }
  0x73   : > { %10079 = vmatmul.mubr.msk.bf16.gmra.mrb[20].mxu0 %vm1251_vm1, %v11846_v42  ;;  %10142 = vmatmul.mubr.msk.bf16.gmra.mrb[20].mxu1 %vm1251_vm1, %v11846_v42 }
  0x74   : > { %1495 = vmatprep.mubr.bf16.mxu0 %v12666_v50  ;;  %2271 = vmatprep.mubr.bf16.mxu1 %v12666_v50 }
  0x7b   : > { %10080 = vmatmul.mubr.msk.bf16.gmra.mrb[24].mxu0 %vm1251_vm1, %v11847_v43  ;;  %10143 = vmatmul.mubr.msk.bf16.gmra.mrb[24].mxu1 %vm1251_vm1, %v11847_v43 }
  0x7c   : > { %1505 = vmatprep.mubr.bf16.mxu0 %v12666_v50  ;;  %2281 = vmatprep.mubr.bf16.mxu1 %v12666_v50 }
  0x83   : > { %10081 = vmatmul.mubr.msk.bf16.gmra.mrb[28].mxu0 %vm1251_vm1, %v11854_v44  ;;  %10144 = vmatmul.mubr.msk.bf16.gmra.mrb[28].mxu1 %vm1251_vm1, %v11854_v44 }
  0x84   : > { %1515 = vmatprep.mubr.bf16.mxu0 %v12666_v50  ;;  %2291 = vmatprep.mubr.bf16.mxu1 %v12666_v50 }
  0x8b   : > { %10082 = vmatmul.mubr.msk.bf16.gmra.mrb[32].mxu0 %vm1251_vm1, %v11855_v45  ;;  %10145 = vmatmul.mubr.msk.bf16.gmra.mrb[32].mxu1 %vm1251_vm1, %v11855_v45 }
  0x8c   : > { %1525 = vmatprep.mubr.bf16.mxu0 %v12666_v50  ;;  %2301 = vmatprep.mubr.bf16.mxu1 %v12666_v50 }
  0x93   : > { %10083 = vmatmul.mubr.msk.bf16.gmra.mrb[36].mxu0 %vm1251_vm1, %v11856_v46  ;;  %10146 = vmatmul.mubr.msk.bf16.gmra.mrb[36].mxu1 %vm1251_vm1, %v11856_v46 }
  0x94   : > { %1535 = vmatprep.mubr.bf16.mxu0 %v12666_v50  ;;  %2311 = vmatprep.mubr.bf16.mxu1 %v12666_v50 }
  0x9b   : > { %10084 = vmatmul.mubr.msk.bf16.gmra.mrb[40].mxu0 %vm1251_vm1, %v11857_v52  ;;  %10147 = vmatmul.mubr.msk.bf16.gmra.mrb[40].mxu1 %vm1251_vm1, %v11857_v52 }
  0x9c   : > { %1545 = vmatprep.mubr.bf16.mxu0 %v12666_v50  ;;  %2321 = vmatprep.mubr.bf16.mxu1 %v12666_v50 }
  0xa3   : > { %10085 = vmatmul.mubr.msk.bf16.gmra.mrb[44].mxu0 %vm1251_vm1, %v11864_v53  ;;  %10148 = vmatmul.mubr.msk.bf16.gmra.mrb[44].mxu1 %vm1251_vm1, %v11864_v53 }
  0xa4   : > { %1555 = vmatprep.mubr.bf16.mxu0 %v12666_v50  ;;  %2331 = vmatprep.mubr.bf16.mxu1 %v12666_v50 }
  0xab   : > { %10086 = vmatmul.mubr.msk.bf16.gmra.mrb[48].mxu0 %vm1251_vm1, %v11865_v54  ;;  %10149 = vmatmul.mubr.msk.bf16.gmra.mrb[48].mxu1 %vm1251_vm1, %v11865_v54 }
  0xac   : > { %1565 = vmatprep.mubr.bf16.mxu0 %v12666_v50  ;;  %2341 = vmatprep.mubr.bf16.mxu1 %v12666_v50 }
  0xb3   : > { %10087 = vmatmul.mubr.msk.bf16.gmra.mrb[52].mxu0 %vm1251_vm1, %v11866_v55  ;;  %10150 = vmatmul.mubr.msk.bf16.gmra.mrb[52].mxu1 %vm1251_vm1, %v11866_v55 }
  0xb4   : > { %1575 = vmatprep.mubr.bf16.mxu0 %v12666_v50  ;;  %2351 = vmatprep.mubr.bf16.mxu1 %v13088_v56  ;;  %v11868_v50 = vld [vmem:[%s12936_s28 + $0x78] sm:$0xff]  }
  0xbb   : > { %10088 = vmatmul.mubr.msk.bf16.gmra.mrb[56].mxu0 %vm1251_vm1, %v11867_v57  ;;  %10151 = vmatmul.mubr.msk.bf16.gmra.mrb[56].mxu1 %vm1251_vm1, %v11867_v57 }
  0xbc   : > { %1585 = vmatprep.mubr.bf16.mxu0 %v13088_v56  ;;  %2361 = vmatprep.mubr.bf16.mxu1 %v13088_v56 }
  0xc3   : > { %10089 = vmatmul.mubr.msk.bf16.gmra.mrb[60].mxu0 %vm1251_vm1, %v11868_v50  ;;  %10152 = vmatmul.mubr.msk.bf16.gmra.mrb[60].mxu1 %vm1251_vm1, %v11868_v50 }
  0xc4   : > { %1595 = vmatprep.mubr.bf16.mxu0 %v13088_v56  ;;  %2371 = vmatprep.mubr.bf16.mxu1 %v13088_v56 }
  0xcb   : > { %10090 = vmatmul.mubr.msk.bf16.gmra.mrb[64].mxu0 %vm1251_vm1, %v11875_v58  ;;  %10153 = vmatmul.mubr.msk.bf16.gmra.mrb[64].mxu1 %vm1251_vm1, %v11875_v58 }
  0xcc   : > { %1605 = vmatprep.mubr.bf16.mxu0 %v13088_v56  ;;  %2381 = vmatprep.mubr.bf16.mxu1 %v13088_v56 }
  0xd3   : > { %10091 = vmatmul.mubr.msk.bf16.gmra.mrb[68].mxu0 %vm1251_vm1, %v11876_v63  ;;  %10154 = vmatmul.mubr.msk.bf16.gmra.mrb[68].mxu1 %vm1251_vm1, %v11876_v63 }
  0xd4   : > { %1615 = vmatprep.mubr.bf16.mxu0 %v13088_v56  ;;  %2391 = vmatprep.mubr.bf16.mxu1 %v13088_v56 }
  0xdb   : > { %10092 = vmatmul.mubr.msk.bf16.gmra.mrb[72].mxu0 %vm1251_vm1, %v11877_v0  ;;  %10155 = vmatmul.mubr.msk.bf16.gmra.mrb[72].mxu1 %vm1251_vm1, %v11877_v0 }
  0xdc   : > { %1625 = vmatprep.mubr.bf16.mxu0 %v13088_v56  ;;  %2401 = vmatprep.mubr.bf16.mxu1 %v13088_v56 }
  0xe3   : > { %10093 = vmatmul.mubr.msk.bf16.gmra.mrb[76].mxu0 %vm1251_vm1, %v11878_v1  ;;  %10156 = vmatmul.mubr.msk.bf16.gmra.mrb[76].mxu1 %vm1251_vm1, %v11878_v1 }
  0xe4   : > { %1635 = vmatprep.mubr.bf16.mxu0 %v13088_v56  ;;  %2411 = vmatprep.mubr.bf16.mxu1 %v13088_v56 }
  0xeb   : > { %10094 = vmatmul.mubr.msk.bf16.gmra.mrb[80].mxu0 %vm1251_vm1, %v11879_v2  ;;  %10157 = vmatmul.mubr.msk.bf16.gmra.mrb[80].mxu1 %vm1251_vm1, %v11879_v2 }
  0xec   : > { %1645 = vmatprep.mubr.bf16.mxu0 %v13088_v56  ;;  %2421 = vmatprep.mubr.bf16.mxu1 %v13088_v56 }
  0xf3   : > { %10095 = vmatmul.mubr.msk.bf16.gmra.mrb[84].mxu0 %vm1251_vm1, %v11886_v7  ;;  %10158 = vmatmul.mubr.msk.bf16.gmra.mrb[84].mxu1 %vm1251_vm1, %v11886_v7 }
  0xf4   : > { %1655 = vmatprep.mubr.bf16.mxu0 %v13088_v56  ;;  %2431 = vmatprep.mubr.bf16.mxu1 %v13088_v56 }
  0xfb   : > { %10096 = vmatmul.mubr.msk.bf16.gmra.mrb[88].mxu0 %vm1251_vm1, %v11887_v8  ;;  %10159 = vmatmul.mubr.msk.bf16.gmra.mrb[88].mxu1 %vm1251_vm1, %v11887_v8 }
  0xfc   : > { %1665 = vmatprep.mubr.bf16.mxu0 %v13088_v56  ;;  %2441 = vmatprep.mubr.bf16.mxu1 %v13088_v56 }
 0x103   : > { %10097 = vmatmul.mubr.msk.bf16.gmra.mrb[92].mxu0 %vm1251_vm1, %v11888_v9  ;;  %10160 = vmatmul.mubr.msk.bf16.gmra.mrb[92].mxu1 %vm1251_vm1, %v11888_v9 }
 0x104   : > { %1675 = vmatprep.mubr.bf16.mxu0 %v13088_v56  ;;  %2451 = vmatprep.mubr.bf16.mxu1 %v13088_v56 }
 0x10b   : > { %10098 = vmatmul.mubr.msk.bf16.gmra.mrb[96].mxu0 %vm1251_vm1, %v11889_v10  ;;  %10161 = vmatmul.mubr.msk.bf16.gmra.mrb[96].mxu1 %vm1251_vm1, %v11889_v10 }
 0x10c   : > { %1685 = vmatprep.mubr.bf16.mxu0 %v13088_v56  ;;  %2461 = vmatprep.mubr.bf16.mxu1 %v13088_v56 }
 0x113   : > { %10099 = vmatmul.mubr.msk.bf16.gmra.mrb[100].mxu0 %vm1251_vm1, %v11890_v15  ;;  %10162 = vmatmul.mubr.msk.bf16.gmra.mrb[100].mxu1 %vm1251_vm1, %v11890_v15 }
 0x114   : > { %1695 = vmatprep.mubr.bf16.mxu0 %v13088_v56  ;;  %2471 = vmatprep.mubr.bf16.mxu1 %v13088_v56 }
 0x11b   : > { %10100 = vmatmul.mubr.msk.bf16.gmra.mrb[104].mxu0 %vm1251_vm1, %v11897_v18  ;;  %10163 = vmatmul.mubr.msk.bf16.gmra.mrb[104].mxu1 %vm1251_vm1, %v11897_v18 }
 0x11c   : > { %1705 = vmatprep.mubr.bf16.mxu0 %v13088_v56  ;;  %2481 = vmatprep.mubr.bf16.mxu1 %v13088_v56 }
 0x11e   : > { %v1437_v24 = vpop.f32.mrb[0].mxu0  ;;  %v2213_v25 = vpop.f32.mrb[0].mxu1 }
 0x11f   : > { %v1438_v26 = vadd.f32 %v1437_v24, %v13215_v22  ;;  %v2214_v27 = vadd.f32 %v2213_v25, %v13215_v22  ;;  %v1439_v28 = vpop.f32.mrb[1].mxu0  ;;  %v2215_v29 = vpop.f32.mrb[1].mxu1 }
 0x120   : > { %v1440_v31 = vadd.f32 %v1439_v28, %v13219_v23  ;;  %v2216_v32 = vadd.f32 %v2215_v29, %v13219_v23  ;;  %v1441_v33 = vpop.f32.mrb[2].mxu0  ;;  %v2217_v34 = vpop.f32.mrb[2].mxu1 }
 0x121   : > { %v1916_v35 = vmax.f32 %v1438_v26, 0.0  ;;  %v2692_v36 = vmax.f32 %v2214_v27, 0.0  ;;  %v1442_v37 = vadd.f32 %v1441_v33, %v13215_v22  ;;  %v2218_v38 = vadd.f32 %v2217_v34, %v13215_v22  ;;  %v1443_v39 = vpop.f32.mrb[3].mxu0  ;;  %v2219_v40 = vpop.f32.mrb[3].mxu1 }
 0x122   : > { %v1917_v41 = vmax.f32 %v1440_v31, 0.0  ;;  %v2693_v42 = vmax.f32 %v2216_v32, 0.0  ;;  %v1444_v43 = vadd.f32 %v1443_v39, %v13219_v23  ;;  %v2220_v44 = vadd.f32 %v2219_v40, %v13219_v23 }
 0x123   : > { %v13232_v45 = vmax.f32 %v1916_v35, %v2692_v36  ;;  %v1918_v46 = vmax.f32 %v1442_v37, 0.0  ;;  %v2694_v47 = vmax.f32 %v2218_v38, 0.0  ;;  %10101 = vmatmul.mubr.msk.bf16.gmra.mrb[108].mxu0 %vm1251_vm1, %v11898_v30  ;;  %10164 = vmatmul.mubr.msk.bf16.gmra.mrb[108].mxu1 %vm1251_vm1, %v11898_v30  ;;  %v11900_v30 = vld [vmem:[%s12936_s28 + $0xe8] sm:$0xff]  }
 0x124   : > { %v13236_v48 = vmax.f32 %v1917_v41, %v2693_v42  ;;  %v1919_v49 = vmax.f32 %v1444_v43, 0.0  ;;  %v2695_v51 = vmax.f32 %v2220_v44, 0.0  ;;  %1715 = vmatprep.mubr.bf16.mxu0 %v13088_v56  ;;  %2491 = vmatprep.mubr.bf16.mxu1 %v13088_v56 }
 0x125   : > { %v13240_v52 = vmax.f32 %v1918_v46, %v2694_v47 }
 0x126   : > { %v13242_v53 = vmax.f32 %v1919_v49, %v2695_v51  ;;  %v1447_v54 = vpop.f32.mrb[4].mxu0  ;;  %v2223_v55 = vpop.f32.mrb[4].mxu1 }
 0x127   : > { %v1448_v57 = vadd.f32 %v1447_v54, %v13215_v22  ;;  %v2224_v50 = vadd.f32 %v2223_v55, %v13215_v22  ;;  %v1449_v58 = vpop.f32.mrb[5].mxu0  ;;  %v2225_v59 = vpop.f32.mrb[5].mxu1 }
 0x128   : > { %v1450_v61 = vadd.f32 %v1449_v58, %v13219_v23  ;;  %v2226_v62 = vadd.f32 %v2225_v59, %v13219_v23  ;;  %v1451_v63 = vpop.f32.mrb[6].mxu0  ;;  %v2227_v0 = vpop.f32.mrb[6].mxu1  ;;  %v11934_v58 = vld [vmem:[%s16182_s4 + $0x130] ss:$8 sps:$4 sm:$0xff]   ;;  %v11936_v59 = vld [vmem:[%s16182_s4 + $0x134] ss:$8 sps:$4 sm:$0xff]  }
 0x129   : > { %v1920_v1 = vmax.f32 %v1448_v57, 0.0  ;;  %v2696_v2 = vmax.f32 %v2224_v50, 0.0  ;;  %v1452_v3 = vadd.f32 %v1451_v63, %v13215_v22  ;;  %v2228_v4 = vadd.f32 %v2227_v0, %v13215_v22  ;;  %v1453_v5 = vpop.f32.mrb[7].mxu0  ;;  %v2229_v6 = vpop.f32.mrb[7].mxu1  ;;  %3635 = vmatprep.subr.bf16.mxu0 %v11936_v59 }
 0x12a   : > { %v1921_v7 = vmax.f32 %v1450_v61, 0.0  ;;  %v2697_v8 = vmax.f32 %v2226_v62, 0.0  ;;  %v1454_v9 = vadd.f32 %v1453_v5, %v13219_v23  ;;  %v2230_v10 = vadd.f32 %v2229_v6, %v13219_v23  ;;  %v11901_v6 = vld [vmem:[%s12936_s28 + $0xf0] sm:$0xff]   ;;  %3636 = vmatpush1.bf16.msra.mxu0 %v11934_v58 }
 0x12b   : > { %v13253_v11 = vmax.f32 %v1920_v1, %v2696_v2  ;;  %v1922_v12 = vmax.f32 %v1452_v3, 0.0  ;;  %v2698_v13 = vmax.f32 %v2228_v4, 0.0  ;;  %10102 = vmatmul.mubr.msk.bf16.gmra.mrb[112].mxu0 %vm1251_vm1, %v11899_v60  ;;  %10165 = vmatmul.mubr.msk.bf16.gmra.mrb[112].mxu1 %vm1251_vm1, %v11899_v60  ;;  %v11937_v60 = vld [vmem:[%s16183_s5 + $0x130] ss:$8 sps:$4 sm:$0xff]  }
 0x12c   : > { %v13257_v14 = vmax.f32 %v1921_v7, %v2697_v8  ;;  %v1923_v15 = vmax.f32 %v1454_v9, 0.0  ;;  %v2699_v16 = vmax.f32 %v2230_v10, 0.0  ;;  %1725 = vmatprep.mubr.bf16.mxu0 %v13088_v56  ;;  %2501 = vmatprep.mubr.bf16.mxu1 %v13088_v56 }
 0x12d   : > { %v13261_v18 = vmax.f32 %v1922_v12, %v2698_v13 }
 0x12e   : > { %v13263_v20 = vmax.f32 %v1923_v15, %v2699_v16  ;;  %v1457_v24 = vpop.f32.mrb[8].mxu0  ;;  %v2233_v25 = vpop.f32.mrb[8].mxu1 }
 0x12f   : > { %v1458_v26 = vadd.f32 %v1457_v24, %v13215_v22  ;;  %v2234_v27 = vadd.f32 %v2233_v25, %v13215_v22  ;;  %v1459_v28 = vpop.f32.mrb[9].mxu0  ;;  %v2235_v29 = vpop.f32.mrb[9].mxu1 }
 0x130   : > { %v1460_v31 = vadd.f32 %v1459_v28, %v13219_v23  ;;  %v2236_v32 = vadd.f32 %v2235_v29, %v13219_v23  ;;  %v1461_v33 = vpop.f32.mrb[10].mxu0  ;;  %v2237_v34 = vpop.f32.mrb[10].mxu1 }
 0x131   : > { %v1924_v35 = vmax.f32 %v1458_v26, 0.0  ;;  %v2700_v36 = vmax.f32 %v2234_v27, 0.0  ;;  %v1462_v37 = vadd.f32 %v1461_v33, %v13215_v22  ;;  %v2238_v38 = vadd.f32 %v2237_v34, %v13215_v22  ;;  %v1463_v39 = vpop.f32.mrb[11].mxu0  ;;  %v2239_v40 = vpop.f32.mrb[11].mxu1 }
 0x132   : > { %v1925_v41 = vmax.f32 %v1460_v31, 0.0  ;;  %v2701_v42 = vmax.f32 %v2236_v32, 0.0  ;;  %v1464_v43 = vadd.f32 %v1463_v39, %v13219_v23  ;;  %v2240_v44 = vadd.f32 %v2239_v40, %v13219_v23 }
 0x133   : > { %v2892_v46 = vmax.f32 %v1924_v35, %v2700_v36  ;;  %v1926_v47 = vmax.f32 %v1462_v37, 0.0  ;;  %v2702_v49 = vmax.f32 %v2238_v38, 0.0  ;;  %10103 = vmatmul.mubr.msk.bf16.gmra.mrb[116].mxu0 %vm1251_vm1, %v11900_v30  ;;  %10166 = vmatmul.mubr.msk.bf16.gmra.mrb[116].mxu1 %vm1251_vm1, %v11900_v30 }
 0x134   : > { %v2893_v51 = vmax.f32 %v1925_v41, %v2701_v42  ;;  %v1927_v54 = vmax.f32 %v1464_v43, 0.0  ;;  %v2703_v55 = vmax.f32 %v2240_v44, 0.0  ;;  %1735 = vmatprep.mubr.bf16.mxu0 %v13088_v56  ;;  %2511 = vmatprep.mubr.bf16.mxu1 %v13088_v56 }
 0x135   : > { %v3076_v57 = vmax.f32 %v13232_v45, %v2892_v46  ;;  %v2894_v50 = vmax.f32 %v1926_v47, %v2702_v49  ;;  %v11939_v45 = vld [vmem:[%s16183_s5 + $0x134] ss:$8 sps:$4 sm:$0xff]  }
 0x136   : > { %v3077_v61 = vmax.f32 %v13236_v48, %v2893_v51  ;;  %v2895_v62 = vmax.f32 %v1927_v54, %v2703_v55  ;;  %v1467_v63 = vpop.f32.mrb[12].mxu0  ;;  %v2243_v0 = vpop.f32.mrb[12].mxu1  ;;  %4474 = vmatprep.subr.bf16.mxu1 %v11939_v45  ;;  %v11908_v47 = vld [vmem:[%s12936_s28 + $0xf8] sm:$0xff]  }
 0x137   : > { %v3078_v1 = vmax.f32 %v13240_v52, %v2894_v50  ;;  %v1468_v2 = vadd.f32 %v1467_v63, %v13215_v22  ;;  %v2244_v3 = vadd.f32 %v2243_v0, %v13215_v22  ;;  %v1469_v4 = vpop.f32.mrb[13].mxu0  ;;  %v2245_v5 = vpop.f32.mrb[13].mxu1  ;;  %4475 = vmatpush1.bf16.msra.mxu1 %v11937_v60 }
 0x138   : > { %v3079_v7 = vmax.f32 %v13242_v53, %v2895_v62  ;;  %v1470_v48 = vadd.f32 %v1469_v4, %v13219_v23  ;;  %v2246_v8 = vadd.f32 %v2245_v5, %v13219_v23  ;;  %v1471_v9 = vpop.f32.mrb[14].mxu0  ;;  %v2247_v10 = vpop.f32.mrb[14].mxu1 }
 0x139   : > { %v3181_v12 = vpack.c.bf16 %v3078_v1, %v3076_v57  ;;  %v1928_v52 = vmax.f32 %v1468_v2, 0.0  ;;  %v2704_v13 = vmax.f32 %v2244_v3, 0.0  ;;  %v1472_v15 = vadd.f32 %v1471_v9, %v13215_v22  ;;  %v1473_v16 = vpop.f32.mrb[15].mxu0  ;;  %v2249_v24 = vpop.f32.mrb[15].mxu1 }
 0x13a   : > { %v3182_v25 = vpack.c.bf16 %v3079_v7, %v3077_v61  ;;  %v1929_v26 = vmax.f32 %v1470_v48, 0.0  ;;  %v2705_v27 = vmax.f32 %v2246_v8, 0.0  ;;  %v2248_v53 = vadd.f32 %v2247_v10, %v13215_v22 }
 0x13b   : > { %3230 = vst [vmem:[#allocation2 + $0x40] sm:$0xff] %v3181_v12  ;;  %v2896_v28 = vmax.f32 %v1928_v52, %v2704_v13  ;;  %v1930_v29 = vmax.f32 %v1472_v15, 0.0  ;;  %v1474_v30 = vadd.f32 %v1473_v16, %v13219_v23  ;;  %v2250_v31 = vadd.f32 %v2249_v24, %v13219_v23  ;;  %10104 = vmatmul.mubr.msk.bf16.gmra.mrb[120].mxu0 %vm1251_vm1, %v11901_v6  ;;  %v11909_v13 = vld [vmem:[%s12936_s28 + $0x100] sm:$0xff]  }
 0x13c   : > { %10167 = vmatmul.mubr.msk.bf16.gmra.mrb[120].mxu1 %vm1251_vm1, %v11901_v6  ;;  %3231 = vst.msk [vmem:[#allocation2 + $0x48] sm:$0xff] %vm3173_vm2, %v3182_v25  ;;  %v2897_v32 = vmax.f32 %v1929_v26, %v2705_v27  ;;  %v2706_v33 = vmax.f32 %v2248_v53, 0.0  ;;  %1745 = vmatprep.mubr.bf16.mxu0 %v13088_v56 }
 0x13d   : > { %2521 = vmatprep.mubr.bf16.mxu1 %v13088_v56  ;;  %v3080_v34 = vmax.f32 %v13253_v11, %v2896_v28  ;;  %v1931_v35 = vmax.f32 %v1474_v30, 0.0  ;;  %v2707_v36 = vmax.f32 %v2250_v31, 0.0 }
 0x13e   : > { %v3081_v37 = vmax.f32 %v13257_v14, %v2897_v32  ;;  %v2898_v38 = vmax.f32 %v1930_v29, %v2706_v33  ;;  %v1477_v39 = vpop.f32.mrb[16].mxu0  ;;  %v2253_v40 = vpop.f32.mrb[16].mxu1 }
 0x13f   : > { %v2899_v41 = vmax.f32 %v1931_v35, %v2707_v36  ;;  %v1478_v42 = vadd.f32 %v1477_v39, %v13215_v22  ;;  %v2254_v43 = vadd.f32 %v2253_v40, %v13215_v22  ;;  %v1479_v44 = vpop.f32.mrb[17].mxu0  ;;  %v2255_v46 = vpop.f32.mrb[17].mxu1 }
 0x140   : > { %v3082_v49 = vmax.f32 %v13261_v18, %v2898_v38  ;;  %v1480_v51 = vadd.f32 %v1479_v44, %v13219_v23  ;;  %v2256_v11 = vadd.f32 %v2255_v46, %v13219_v23  ;;  %v1481_v54 = vpop.f32.mrb[18].mxu0  ;;  %v2257_v55 = vpop.f32.mrb[18].mxu1 }
 0x141   : > { %v3083_v14 = vmax.f32 %v13263_v20, %v2899_v41  ;;  %v1932_v57 = vmax.f32 %v1478_v42, 0.0  ;;  %v2708_v50 = vmax.f32 %v2254_v43, 0.0  ;;  %v1482_v58 = vadd.f32 %v1481_v54, %v13215_v22  ;;  %v1483_v59 = vpop.f32.mrb[19].mxu0  ;;  %v2259_v60 = vpop.f32.mrb[19].mxu1  ;;  %v11910_v54 = vld [vmem:[%s12936_s28 + $0x108] sm:$0xff]  }
 0x142   : > { %v3183_v61 = vpack.c.bf16 %v3082_v49, %v3080_v34  ;;  %v1933_v62 = vmax.f32 %v1480_v51, 0.0  ;;  %v2709_v63 = vmax.f32 %v2256_v11, 0.0  ;;  %v2258_v0 = vadd.f32 %v2257_v55, %v13215_v22 }
 0x143   : > { %v3184_v18 = vpack.c.bf16 %v3083_v14, %v3081_v37  ;;  %v13319_v45 = vmax.f32 %v1932_v57, %v2708_v50  ;;  %v1934_v1 = vmax.f32 %v1482_v58, 0.0  ;;  %v1484_v2 = vadd.f32 %v1483_v59, %v13219_v23  ;;  %10105 = vmatmul.mubr.msk.bf16.gmra.mrb[124].mxu0 %vm1251_vm1, %v11908_v47 }
 0x144   : > { %10168 = vmatmul.mubr.msk.bf16.gmra.mrb[124].mxu1 %vm1251_vm1, %v11908_v47  ;;  %3232 = vst [vmem:[#allocation2 + $0x50] sm:$0xff] %v3183_v61  ;;  %v13324_v20 = vmax.f32 %v1933_v62, %v2709_v63  ;;  %v2710_v3 = vmax.f32 %v2258_v0, 0.0  ;;  %v2260_v4 = vadd.f32 %v2259_v60, %v13219_v23  ;;  %1755 = vmatprep.mubr.bf16.mxu0 %v13088_v56 }
 0x145   : > { %2531 = vmatprep.mubr.bf16.mxu1 %v13088_v56  ;;  %3233 = vst.msk [vmem:[#allocation2 + $0x58] sm:$0xff] %vm3173_vm2, %v3184_v18  ;;  %v1935_v5 = vmax.f32 %v1484_v2, 0.0 }
 0x146   : > { %v13330_v6 = vmax.f32 %v1934_v1, %v2710_v3  ;;  %v2711_v7 = vmax.f32 %v2260_v4, 0.0  ;;  %v1487_v48 = vpop.f32.mrb[20].mxu0  ;;  %v2263_v8 = vpop.f32.mrb[20].mxu1 }
 0x147   : > { %v1488_v9 = vadd.f32 %v1487_v48, %v13215_v22  ;;  %v2264_v10 = vadd.f32 %v2263_v8, %v13215_v22  ;;  %v1489_v12 = vpop.f32.mrb[21].mxu0  ;;  %v2265_v52 = vpop.f32.mrb[21].mxu1 }
 0x148   : > { %v13335_v15 = vmax.f32 %v1935_v5, %v2711_v7  ;;  %v1490_v16 = vadd.f32 %v1489_v12, %v13219_v23  ;;  %v2266_v24 = vadd.f32 %v2265_v52, %v13219_v23  ;;  %v1491_v25 = vpop.f32.mrb[22].mxu0  ;;  %v2267_v26 = vpop.f32.mrb[22].mxu1 }
 0x149   : > { %v1936_v27 = vmax.f32 %v1488_v9, 0.0  ;;  %v2712_v53 = vmax.f32 %v2264_v10, 0.0  ;;  %v1492_v28 = vadd.f32 %v1491_v25, %v13215_v22  ;;  %v2268_v29 = vadd.f32 %v2267_v26, %v13215_v22  ;;  %v1493_v30 = vpop.f32.mrb[23].mxu0  ;;  %v2269_v31 = vpop.f32.mrb[23].mxu1 }
 0x14a   : > { %v1937_v32 = vmax.f32 %v1490_v16, 0.0  ;;  %v2713_v33 = vmax.f32 %v2266_v24, 0.0  ;;  %v1494_v34 = vadd.f32 %v1493_v30, %v13219_v23  ;;  %v2270_v35 = vadd.f32 %v2269_v31, %v13219_v23 }
 0x14b   : > { %v13343_v36 = vmax.f32 %v1936_v27, %v2712_v53  ;;  %v1938_v37 = vmax.f32 %v1492_v28, 0.0  ;;  %v2714_v38 = vmax.f32 %v2268_v29, 0.0  ;;  %10106 = vmatmul.mubr.msk.bf16.gmra.mrb[128].mxu0 %vm1251_vm1, %v11909_v13  ;;  %v11911_v28 = vld [vmem:[%s12936_s28 + $0x110] sm:$0xff]  }
 0x14c   : > { %10169 = vmatmul.mubr.msk.bf16.gmra.mrb[128].mxu1 %vm1251_vm1, %v11909_v13  ;;  %v13347_v39 = vmax.f32 %v1937_v32, %v2713_v33  ;;  %v1939_v40 = vmax.f32 %v1494_v34, 0.0  ;;  %v2715_v41 = vmax.f32 %v2270_v35, 0.0  ;;  %1765 = vmatprep.mubr.bf16.mxu0 %v13088_v56 }
 0x14d   : > { %2541 = vmatprep.mubr.bf16.mxu1 %v13088_v56  ;;  %v13351_v42 = vmax.f32 %v1938_v37, %v2714_v38 }
 0x14e   : > { %v13353_v43 = vmax.f32 %v1939_v40, %v2715_v41  ;;  %v1497_v44 = vpop.f32.mrb[24].mxu0  ;;  %v2273_v46 = vpop.f32.mrb[24].mxu1 }
 0x14f   : > { %v1498_v47 = vadd.f32 %v1497_v44, %v13215_v22  ;;  %v2274_v49 = vadd.f32 %v2273_v46, %v13215_v22  ;;  %v1499_v51 = vpop.f32.mrb[25].mxu0  ;;  %v2275_v11 = vpop.f32.mrb[25].mxu1 }
 0x150   : > { %v1500_v55 = vadd.f32 %v1499_v51, %v13219_v23  ;;  %v2276_v14 = vadd.f32 %v2275_v11, %v13219_v23  ;;  %v1501_v57 = vpop.f32.mrb[26].mxu0  ;;  %v2277_v50 = vpop.f32.mrb[26].mxu1  ;;  %v13384_v11 = vld [vmem:[#allocation2] sm:$0xff] }
 0x151   : > { %v1940_v58 = vmax.f32 %v1498_v47, 0.0  ;;  %v2716_v59 = vmax.f32 %v2274_v49, 0.0  ;;  %v1502_v60 = vadd.f32 %v1501_v57, %v13215_v22  ;;  %v2278_v61 = vadd.f32 %v2277_v50, %v13215_v22  ;;  %v1503_v62 = vpop.f32.mrb[27].mxu0  ;;  %v2279_v63 = vpop.f32.mrb[27].mxu1  ;;  %v11948_v50 = vld [vmem:[%s16183_s5 + $0x4] ss:$8 sps:$4 sm:$0xff]  }
 0x152   : > { %v1941_v0 = vmax.f32 %v1500_v55, 0.0  ;;  %v2717_v18 = vmax.f32 %v2276_v14, 0.0  ;;  %v1504_v1 = vadd.f32 %v1503_v62, %v13219_v23  ;;  %v2280_v2 = vadd.f32 %v2279_v63, %v13219_v23  ;;  %4829 = vmatprep.subr.bf16.mxu1 %v11948_v50 }
 0x153   : > { %v2908_v3 = vmax.f32 %v1940_v58, %v2716_v59  ;;  %v1942_v4 = vmax.f32 %v1502_v60, 0.0  ;;  %v2718_v5 = vmax.f32 %v2278_v61, 0.0  ;;  %10107 = vmatmul.mubr.msk.bf16.gmra.mrb[132].mxu0 %vm1251_vm1, %v11910_v54 }
 0x154   : > { %10170 = vmatmul.mubr.msk.bf16.gmra.mrb[132].mxu1 %vm1251_vm1, %v11910_v54  ;;  %v2909_v7 = vmax.f32 %v1941_v0, %v2717_v18  ;;  %v1943_v48 = vmax.f32 %v1504_v1, 0.0  ;;  %v2719_v8 = vmax.f32 %v2280_v2, 0.0  ;;  %1775 = vmatprep.mubr.bf16.mxu0 %v13088_v56  ;;  %v11945_v54 = vld [vmem:[%s16182_s4 + $0x4] ss:$8 sps:$4 sm:$0xff]  }
 0x155   : > { %2551 = vmatprep.mubr.bf16.mxu1 %v13088_v56  ;;  %v3084_v9 = vmax.f32 %v13319_v45, %v2908_v3  ;;  %v2910_v10 = vmax.f32 %v1942_v4, %v2718_v5  ;;  %4062 = vmatprep.subr.bf16.mxu0 %v11945_v54 }
 0x156   : > { %v3085_v12 = vmax.f32 %v13324_v20, %v2909_v7  ;;  %v2911_v52 = vmax.f32 %v1943_v48, %v2719_v8  ;;  %v1507_v13 = vpop.f32.mrb[28].mxu0  ;;  %v2283_v16 = vpop.f32.mrb[28].mxu1 }
 0x157   : > { %v3086_v24 = vmax.f32 %v13330_v6, %v2910_v10  ;;  %v1508_v25 = vadd.f32 %v1507_v13, %v13215_v22  ;;  %v2284_v26 = vadd.f32 %v2283_v16, %v13215_v22  ;;  %v1509_v27 = vpop.f32.mrb[29].mxu0  ;;  %v2285_v53 = vpop.f32.mrb[29].mxu1 }
 0x158   : > { %v3087_v29 = vmax.f32 %v13335_v15, %v2911_v52  ;;  %v1510_v56 = vadd.f32 %v1509_v27, %v13219_v23  ;;  %v2286_v45 = vadd.f32 %v2285_v53, %v13219_v23  ;;  %v1511_v30 = vpop.f32.mrb[30].mxu0  ;;  %v2287_v20 = vpop.f32.mrb[30].mxu1 }
 0x159   : > { %v3185_v31 = vpack.c.bf16 %v3086_v24, %v3084_v9  ;;  %v1944_v32 = vmax.f32 %v1508_v25, 0.0  ;;  %v2720_v33 = vmax.f32 %v2284_v26, 0.0  ;;  %v1512_v6 = vadd.f32 %v1511_v30, %v13215_v22  ;;  %v1513_v34 = vpop.f32.mrb[31].mxu0  ;;  %v2289_v35 = vpop.f32.mrb[31].mxu1 }
 0x15a   : > { %v3186_v37 = vpack.c.bf16 %v3087_v29, %v3085_v12  ;;  %v1945_v38 = vmax.f32 %v1510_v56, 0.0  ;;  %v2721_v40 = vmax.f32 %v2286_v45, 0.0  ;;  %v2288_v41 = vadd.f32 %v2287_v20, %v13215_v22 }
 0x15b   : > { %3234 = vst [vmem:[#allocation2 + $0x60] sm:$0xff] %v3185_v31  ;;  %v2912_v15 = vmax.f32 %v1944_v32, %v2720_v33  ;;  %v1946_v44 = vmax.f32 %v1512_v6, 0.0  ;;  %v1514_v46 = vadd.f32 %v1513_v34, %v13219_v23  ;;  %v2290_v47 = vadd.f32 %v2289_v35, %v13219_v23  ;;  %10108 = vmatmul.mubr.msk.bf16.gmra.mrb[136].mxu0 %vm1251_vm1, %v11911_v28  ;;  %v11919_v34 = vld [vmem:[%s12936_s28 + $0x120] sm:$0xff]  }
 0x15c   : > { %10171 = vmatmul.mubr.msk.bf16.gmra.mrb[136].mxu1 %vm1251_vm1, %v11911_v28  ;;  %3235 = vst.msk [vmem:[#allocation2 + $0x68] sm:$0xff] %vm3173_vm2, %v3186_v37  ;;  %v2913_v49 = vmax.f32 %v1945_v38, %v2721_v40  ;;  %v2722_v51 = vmax.f32 %v2288_v41, 0.0  ;;  %1785 = vmatprep.mubr.bf16.mxu0 %v13384_v11 }
 0x15d   : > { %2561 = vmatprep.mubr.bf16.mxu1 %v13384_v11  ;;  %v3088_v55 = vmax.f32 %v13343_v36, %v2912_v15  ;;  %v1947_v14 = vmax.f32 %v1514_v46, 0.0  ;;  %v2723_v57 = vmax.f32 %v2290_v47, 0.0  ;;  %v11918_v36 = vld [vmem:[%s12936_s28 + $0x118] sm:$0xff]  }
 0x15e   : > { %v3089_v58 = vmax.f32 %v13347_v39, %v2913_v49  ;;  %v2914_v59 = vmax.f32 %v1946_v44, %v2722_v51  ;;  %v1517_v60 = vpop.f32.mrb[32].mxu0  ;;  %v2293_v61 = vpop.f32.mrb[32].mxu1 }
 0x15f   : > { %v2915_v62 = vmax.f32 %v1947_v14, %v2723_v57  ;;  %v1518_v63 = vadd.f32 %v1517_v60, %v13215_v22  ;;  %v2294_v0 = vadd.f32 %v2293_v61, %v13215_v22  ;;  %v1519_v18 = vpop.f32.mrb[33].mxu0  ;;  %v2295_v1 = vpop.f32.mrb[33].mxu1 }
 0x160   : > { %v3090_v2 = vmax.f32 %v13351_v42, %v2914_v59  ;;  %v1520_v3 = vadd.f32 %v1519_v18, %v13219_v23  ;;  %v2296_v4 = vadd.f32 %v2295_v1, %v13219_v23  ;;  %v1521_v39 = vpop.f32.mrb[34].mxu0  ;;  %v2297_v5 = vpop.f32.mrb[34].mxu1 }
 0x161   : > { %v3091_v7 = vmax.f32 %v13353_v43, %v2915_v62  ;;  %v1948_v48 = vmax.f32 %v1518_v63, 0.0  ;;  %v2724_v8 = vmax.f32 %v2294_v0, 0.0  ;;  %v1522_v9 = vadd.f32 %v1521_v39, %v13215_v22  ;;  %v1523_v10 = vpop.f32.mrb[35].mxu0  ;;  %v2299_v12 = vpop.f32.mrb[35].mxu1  ;;  %v11920_v39 = vld [vmem:[%s12936_s28 + $0x128] sm:$0xff]  }
 0x162   : > { %v3187_v52 = vpack.c.bf16 %v3090_v2, %v3088_v55  ;;  %v1949_v13 = vmax.f32 %v1520_v3, 0.0  ;;  %v2725_v16 = vmax.f32 %v2296_v4, 0.0  ;;  %v2298_v24 = vadd.f32 %v2297_v5, %v13215_v22 }
 0x163   : > { %v3188_v42 = vpack.c.bf16 %v3091_v7, %v3089_v58  ;;  %v13405_v25 = vmax.f32 %v1948_v48, %v2724_v8  ;;  %v1950_v26 = vmax.f32 %v1522_v9, 0.0  ;;  %v1524_v27 = vadd.f32 %v1523_v10, %v13219_v23  ;;  %10109 = vmatmul.mubr.msk.bf16.gmra.mrb[140].mxu0 %vm1251_vm1, %v11918_v36 }
 0x164   : > { %10172 = vmatmul.mubr.msk.bf16.gmra.mrb[140].mxu1 %vm1251_vm1, %v11918_v36  ;;  %3236 = vst [vmem:[#allocation2 + $0x70] sm:$0xff] %v3187_v52  ;;  %v13410_v43 = vmax.f32 %v1949_v13, %v2725_v16  ;;  %v2726_v53 = vmax.f32 %v2298_v24, 0.0  ;;  %v2300_v28 = vadd.f32 %v2299_v12, %v13219_v23  ;;  %1795 = vmatprep.mubr.bf16.mxu0 %v13384_v11 }
 0x165   : > { %2571 = vmatprep.mubr.bf16.mxu1 %v13384_v11  ;;  %3237 = vst.msk [vmem:[#allocation2 + $0x78] sm:$0xff] %vm3173_vm2, %v3188_v42  ;;  %v1951_v29 = vmax.f32 %v1524_v27, 0.0 }
 0x166   : > { %v13416_v56 = vmax.f32 %v1950_v26, %v2726_v53  ;;  %v2727_v45 = vmax.f32 %v2300_v28, 0.0  ;;  %v1527_v30 = vpop.f32.mrb[36].mxu0  ;;  %v2303_v20 = vpop.f32.mrb[36].mxu1 }
 0x167   : > { %v1528_v31 = vadd.f32 %v1527_v30, %v13215_v22  ;;  %v2304_v32 = vadd.f32 %v2303_v20, %v13215_v22  ;;  %v1529_v33 = vpop.f32.mrb[37].mxu0  ;;  %v2305_v6 = vpop.f32.mrb[37].mxu1 }
 0x168   : > { %v13421_v35 = vmax.f32 %v1951_v29, %v2727_v45  ;;  %v1530_v37 = vadd.f32 %v1529_v33, %v13219_v23  ;;  %v2306_v38 = vadd.f32 %v2305_v6, %v13219_v23  ;;  %v1531_v40 = vpop.f32.mrb[38].mxu0  ;;  %v2307_v41 = vpop.f32.mrb[38].mxu1 }
 0x169   : > { %v1952_v15 = vmax.f32 %v1528_v31, 0.0  ;;  %v2728_v44 = vmax.f32 %v2304_v32, 0.0  ;;  %v1532_v46 = vadd.f32 %v1531_v40, %v13215_v22  ;;  %v2308_v47 = vadd.f32 %v2307_v41, %v13215_v22  ;;  %v1533_v49 = vpop.f32.mrb[39].mxu0  ;;  %v2309_v51 = vpop.f32.mrb[39].mxu1 }
 0x16a   : > { %v1953_v54 = vmax.f32 %v1530_v37, 0.0  ;;  %v2729_v55 = vmax.f32 %v2306_v38, 0.0  ;;  %v1534_v14 = vadd.f32 %v1533_v49, %v13219_v23  ;;  %v2310_v57 = vadd.f32 %v2309_v51, %v13219_v23 }
 0x16b   : > { %v13429_v50 = vmax.f32 %v1952_v15, %v2728_v44  ;;  %v1954_v58 = vmax.f32 %v1532_v46, 0.0  ;;  %v2730_v59 = vmax.f32 %v2308_v47, 0.0  ;;  %10110 = vmatmul.mubr.msk.bf16.gmra.mrb[144].mxu0 %vm1251_vm1, %v11919_v34  ;;  %v11921_v46 = vld [vmem:[%s12936_s28 + $0x130] sm:$0xff]  }
 0x16c   : > { %10173 = vmatmul.mubr.msk.bf16.gmra.mrb[144].mxu1 %vm1251_vm1, %v11919_v34  ;;  %v13433_v60 = vmax.f32 %v1953_v54, %v2729_v55  ;;  %v1955_v61 = vmax.f32 %v1534_v14, 0.0  ;;  %v2731_v62 = vmax.f32 %v2310_v57, 0.0  ;;  %1805 = vmatprep.mubr.bf16.mxu0 %v13384_v11 }
 0x16d   : > { %2581 = vmatprep.mubr.bf16.mxu1 %v13384_v11  ;;  %v13437_v63 = vmax.f32 %v1954_v58, %v2730_v59 }
 0x16e   : > { %v13439_v0 = vmax.f32 %v1955_v61, %v2731_v62  ;;  %v1537_v18 = vpop.f32.mrb[40].mxu0  ;;  %v2313_v1 = vpop.f32.mrb[40].mxu1 }
 0x16f   : > { %v1538_v36 = vadd.f32 %v1537_v18, %v13215_v22  ;;  %v2314_v2 = vadd.f32 %v2313_v1, %v13215_v22  ;;  %v1539_v3 = vpop.f32.mrb[41].mxu0  ;;  %v2315_v4 = vpop.f32.mrb[41].mxu1 }
 0x170   : > { %v1540_v5 = vadd.f32 %v1539_v3, %v13219_v23  ;;  %v2316_v7 = vadd.f32 %v2315_v4, %v13219_v23  ;;  %v1541_v48 = vpop.f32.mrb[42].mxu0  ;;  %v2317_v8 = vpop.f32.mrb[42].mxu1 }
 0x171   : > { %v1956_v9 = vmax.f32 %v1538_v36, 0.0  ;;  %v2732_v10 = vmax.f32 %v2314_v2, 0.0  ;;  %v1542_v12 = vadd.f32 %v1541_v48, %v13215_v22  ;;  %v2318_v52 = vadd.f32 %v2317_v8, %v13215_v22  ;;  %v1543_v13 = vpop.f32.mrb[43].mxu0  ;;  %v2319_v16 = vpop.f32.mrb[43].mxu1 }
 0x172   : > { %v1957_v24 = vmax.f32 %v1540_v5, 0.0  ;;  %v2733_v42 = vmax.f32 %v2316_v7, 0.0  ;;  %v1544_v26 = vadd.f32 %v1543_v13, %v13219_v23  ;;  %v2320_v27 = vadd.f32 %v2319_v16, %v13219_v23 }
 0x173   : > { %v2924_v53 = vmax.f32 %v1956_v9, %v2732_v10  ;;  %v1958_v28 = vmax.f32 %v1542_v12, 0.0  ;;  %v2734_v29 = vmax.f32 %v2318_v52, 0.0  ;;  %10111 = vmatmul.mubr.msk.bf16.gmra.mrb[148].mxu0 %vm1251_vm1, %v11920_v39 }
 0x174   : > { %10174 = vmatmul.mubr.msk.bf16.gmra.mrb[148].mxu1 %vm1251_vm1, %v11920_v39  ;;  %v2925_v45 = vmax.f32 %v1957_v24, %v2733_v42  ;;  %v1959_v30 = vmax.f32 %v1544_v26, 0.0  ;;  %v2735_v20 = vmax.f32 %v2320_v27, 0.0  ;;  %1815 = vmatprep.mubr.bf16.mxu0 %v13384_v11  ;;  %v11922_v42 = vld [vmem:[%s12936_s28 + $0x138] sm:$0xff]  }
 0x175   : > { %2591 = vmatprep.mubr.bf16.mxu1 %v13384_v11  ;;  %v3092_v31 = vmax.f32 %v13405_v25, %v2924_v53  ;;  %v2926_v32 = vmax.f32 %v1958_v28, %v2734_v29 }
 0x176   : > { %v3093_v33 = vmax.f32 %v13410_v43, %v2925_v45  ;;  %v2927_v6 = vmax.f32 %v1959_v30, %v2735_v20  ;;  %v1547_v34 = vpop.f32.mrb[44].mxu0  ;;  %v2323_v37 = vpop.f32.mrb[44].mxu1 }
 0x177   : > { %v3094_v38 = vmax.f32 %v13416_v56, %v2926_v32  ;;  %v1548_v40 = vadd.f32 %v1547_v34, %v13215_v22  ;;  %v2324_v41 = vadd.f32 %v2323_v37, %v13215_v22  ;;  %v1549_v15 = vpop.f32.mrb[45].mxu0  ;;  %v2325_v44 = vpop.f32.mrb[45].mxu1 }
 0x178   : > { %v3095_v47 = vmax.f32 %v13421_v35, %v2927_v6  ;;  %v1550_v49 = vadd.f32 %v1549_v15, %v13219_v23  ;;  %v2326_v25 = vadd.f32 %v2325_v44, %v13219_v23  ;;  %v1551_v51 = vpop.f32.mrb[46].mxu0  ;;  %v2327_v43 = vpop.f32.mrb[46].mxu1 }
 0x179   : > { %v3189_v54 = vpack.c.bf16 %v3094_v38, %v3092_v31  ;;  %v1960_v55 = vmax.f32 %v1548_v40, 0.0  ;;  %v2736_v14 = vmax.f32 %v2324_v41, 0.0  ;;  %v1552_v56 = vadd.f32 %v1551_v51, %v13215_v22  ;;  %v1553_v57 = vpop.f32.mrb[47].mxu0  ;;  %v2329_v58 = vpop.f32.mrb[47].mxu1 }
 0x17a   : > { %v3190_v59 = vpack.c.bf16 %v3095_v47, %v3093_v33  ;;  %v1961_v61 = vmax.f32 %v1550_v49, 0.0  ;;  %v2737_v62 = vmax.f32 %v2326_v25, 0.0  ;;  %v2328_v18 = vadd.f32 %v2327_v43, %v13215_v22 }
 0x17b   : > { %3238 = vst [vmem:[#allocation2 + $0x80] sm:$0xff] %v3189_v54  ;;  %v2928_v35 = vmax.f32 %v1960_v55, %v2736_v14  ;;  %v1962_v1 = vmax.f32 %v1552_v56, 0.0  ;;  %v1554_v36 = vadd.f32 %v1553_v57, %v13219_v23  ;;  %v2330_v2 = vadd.f32 %v2329_v58, %v13219_v23  ;;  %10112 = vmatmul.mubr.msk.bf16.gmra.mrb[152].mxu0 %vm1251_vm1, %v11921_v46  ;;  %v11929_v14 = vld [vmem:[%s12936_s28 + $0x140] sm:$0xff]  }
 0x17c   : > { %10175 = vmatmul.mubr.msk.bf16.gmra.mrb[152].mxu1 %vm1251_vm1, %v11921_v46  ;;  %3239 = vst.msk [vmem:[#allocation2 + $0x88] sm:$0xff] %vm3173_vm2, %v3190_v59  ;;  %v2929_v3 = vmax.f32 %v1961_v61, %v2737_v62  ;;  %v2738_v4 = vmax.f32 %v2328_v18, 0.0  ;;  %1825 = vmatprep.mubr.bf16.mxu0 %v13384_v11 }
 0x17d   : > { %2601 = vmatprep.mubr.bf16.mxu1 %v13384_v11  ;;  %v3096_v39 = vmax.f32 %v13429_v50, %v2928_v35  ;;  %v1963_v5 = vmax.f32 %v1554_v36, 0.0  ;;  %v2739_v7 = vmax.f32 %v2330_v2, 0.0 }
 0x17e   : > { %v3097_v48 = vmax.f32 %v13433_v60, %v2929_v3  ;;  %v2930_v8 = vmax.f32 %v1962_v1, %v2738_v4  ;;  %v1557_v9 = vpop.f32.mrb[48].mxu0  ;;  %v2333_v10 = vpop.f32.mrb[48].mxu1 }
 0x17f   : > { %v2931_v12 = vmax.f32 %v1963_v5, %v2739_v7  ;;  %v1558_v52 = vadd.f32 %v1557_v9, %v13215_v22  ;;  %v2334_v13 = vadd.f32 %v2333_v10, %v13215_v22  ;;  %v1559_v16 = vpop.f32.mrb[49].mxu0  ;;  %v2335_v24 = vpop.f32.mrb[49].mxu1 }
 0x180   : > { %v3098_v26 = vmax.f32 %v13437_v63, %v2930_v8  ;;  %v1560_v27 = vadd.f32 %v1559_v16, %v13219_v23  ;;  %v2336_v50 = vadd.f32 %v2335_v24, %v13219_v23  ;;  %v1561_v53 = vpop.f32.mrb[50].mxu0  ;;  %v2337_v28 = vpop.f32.mrb[50].mxu1 }
 0x181   : > { %v3099_v60 = vmax.f32 %v13439_v0, %v2931_v12  ;;  %v1964_v29 = vmax.f32 %v1558_v52, 0.0  ;;  %v2740_v45 = vmax.f32 %v2334_v13, 0.0  ;;  %v1562_v30 = vadd.f32 %v1561_v53, %v13215_v22  ;;  %v1563_v20 = vpop.f32.mrb[51].mxu0  ;;  %v2339_v31 = vpop.f32.mrb[51].mxu1  ;;  %v11930_v53 = vld [vmem:[%s12936_s28 + $0x148] sm:$0xff]  }
 0x182   : > { %v3191_v32 = vpack.c.bf16 %v3098_v26, %v3096_v39  ;;  %v1965_v33 = vmax.f32 %v1560_v27, 0.0  ;;  %v2741_v6 = vmax.f32 %v2336_v50, 0.0  ;;  %v2338_v34 = vadd.f32 %v2337_v28, %v13215_v22 }
 0x183   : > { %v3192_v63 = vpack.c.bf16 %v3099_v60, %v3097_v48  ;;  %v13483_v37 = vmax.f32 %v1964_v29, %v2740_v45  ;;  %v1966_v38 = vmax.f32 %v1562_v30, 0.0  ;;  %v1564_v40 = vadd.f32 %v1563_v20, %v13219_v23  ;;  %10113 = vmatmul.mubr.msk.bf16.gmra.mrb[156].mxu0 %vm1251_vm1, %v11922_v42 }
 0x184   : > { %10176 = vmatmul.mubr.msk.bf16.gmra.mrb[156].mxu1 %vm1251_vm1, %v11922_v42  ;;  %3240 = vst [vmem:[#allocation2 + $0x90] sm:$0xff] %v3191_v32  ;;  %v13488_v0 = vmax.f32 %v1965_v33, %v2741_v6  ;;  %v2742_v41 = vmax.f32 %v2338_v34, 0.0  ;;  %v2340_v15 = vadd.f32 %v2339_v31, %v13219_v23  ;;  %1835 = vmatprep.mubr.bf16.mxu0 %v13384_v11 }
 0x185   : > { %2611 = vmatprep.mubr.bf16.mxu1 %v13384_v11  ;;  %3241 = vst.msk [vmem:[#allocation2 + $0x98] sm:$0xff] %vm3173_vm2, %v3192_v63  ;;  %v1967_v44 = vmax.f32 %v1564_v40, 0.0 }
 0x186   : > { %v13494_v46 = vmax.f32 %v1966_v38, %v2742_v41  ;;  %v2743_v47 = vmax.f32 %v2340_v15, 0.0  ;;  %v1567_v49 = vpop.f32.mrb[52].mxu0  ;;  %v2343_v25 = vpop.f32.mrb[52].mxu1 }
 0x187   : > { %v1568_v51 = vadd.f32 %v1567_v49, %v13215_v22  ;;  %v2344_v43 = vadd.f32 %v2343_v25, %v13215_v22  ;;  %v1569_v54 = vpop.f32.mrb[53].mxu0  ;;  %v2345_v55 = vpop.f32.mrb[53].mxu1 }
 0x188   : > { %v13499_v56 = vmax.f32 %v1967_v44, %v2743_v47  ;;  %v1570_v57 = vadd.f32 %v1569_v54, %v13219_v23  ;;  %v2346_v58 = vadd.f32 %v2345_v55, %v13219_v23  ;;  %v1571_v59 = vpop.f32.mrb[54].mxu0  ;;  %v2347_v61 = vpop.f32.mrb[54].mxu1 }
 0x189   : > { %v1968_v62 = vmax.f32 %v1568_v51, 0.0  ;;  %v2744_v18 = vmax.f32 %v2344_v43, 0.0  ;;  %v1572_v35 = vadd.f32 %v1571_v59, %v13215_v22  ;;  %v2348_v1 = vadd.f32 %v2347_v61, %v13215_v22  ;;  %v1573_v36 = vpop.f32.mrb[55].mxu0  ;;  %v2349_v2 = vpop.f32.mrb[55].mxu1 }
 0x18a   : > { %v1969_v3 = vmax.f32 %v1570_v57, 0.0  ;;  %v2745_v4 = vmax.f32 %v2346_v58, 0.0  ;;  %v1574_v39 = vadd.f32 %v1573_v36, %v13219_v23  ;;  %v2350_v5 = vadd.f32 %v2349_v2, %v13219_v23 }
 0x18b   : > { %v13507_v7 = vmax.f32 %v1968_v62, %v2744_v18  ;;  %v1970_v48 = vmax.f32 %v1572_v35, 0.0  ;;  %v2746_v8 = vmax.f32 %v2348_v1, 0.0  ;;  %10114 = vmatmul.mubr.msk.bf16.gmra.mrb[160].mxu0 %vm1251_vm1, %v11929_v14  ;;  %v11931_v35 = vld [vmem:[%s12936_s28 + $0x150] sm:$0xff]  }
 0x18c   : > { %10177 = vmatmul.mubr.msk.bf16.gmra.mrb[160].mxu1 %vm1251_vm1, %v11929_v14  ;;  %v13511_v9 = vmax.f32 %v1969_v3, %v2745_v4  ;;  %v1971_v10 = vmax.f32 %v1574_v39, 0.0  ;;  %v2747_v12 = vmax.f32 %v2350_v5, 0.0  ;;  %1845 = vmatprep.mubr.bf16.mxu0 %v13384_v11 }
 0x18d   : > { %2621 = vmatprep.mubr.bf16.mxu1 %v13384_v11  ;;  %v13515_v52 = vmax.f32 %v1970_v48, %v2746_v8 }
 0x18e   : > { %v13517_v13 = vmax.f32 %v1971_v10, %v2747_v12  ;;  %v1577_v16 = vpop.f32.mrb[56].mxu0  ;;  %v2353_v24 = vpop.f32.mrb[56].mxu1 }
 0x18f   : > { %v1578_v42 = vadd.f32 %v1577_v16, %v13215_v22  ;;  %v2354_v26 = vadd.f32 %v2353_v24, %v13215_v22  ;;  %v1579_v27 = vpop.f32.mrb[57].mxu0  ;;  %v2355_v50 = vpop.f32.mrb[57].mxu1 }
 0x190   : > { %v1580_v28 = vadd.f32 %v1579_v27, %v13219_v23  ;;  %v2356_v60 = vadd.f32 %v2355_v50, %v13219_v23  ;;  %v1581_v29 = vpop.f32.mrb[58].mxu0  ;;  %v2357_v45 = vpop.f32.mrb[58].mxu1 }
 0x191   : > { %v1972_v30 = vmax.f32 %v1578_v42, 0.0  ;;  %v2748_v20 = vmax.f32 %v2354_v26, 0.0  ;;  %v1582_v31 = vadd.f32 %v1581_v29, %v13215_v22  ;;  %v2358_v32 = vadd.f32 %v2357_v45, %v13215_v22  ;;  %v1583_v33 = vpop.f32.mrb[59].mxu0  ;;  %v2359_v6 = vpop.f32.mrb[59].mxu1 }
 0x192   : > { %v1973_v34 = vmax.f32 %v1580_v28, 0.0  ;;  %v2749_v63 = vmax.f32 %v2356_v60, 0.0  ;;  %v1584_v38 = vadd.f32 %v1583_v33, %v13219_v23  ;;  %v2360_v40 = vadd.f32 %v2359_v6, %v13219_v23 }
 0x193   : > { %v2940_v41 = vmax.f32 %v1972_v30, %v2748_v20  ;;  %v1974_v15 = vmax.f32 %v1582_v31, 0.0  ;;  %v2750_v44 = vmax.f32 %v2358_v32, 0.0  ;;  %10115 = vmatmul.mubr.msk.bf16.gmra.mrb[164].mxu0 %vm1251_vm1, %v11930_v53 }
 0x194   : > { %10178 = vmatmul.mubr.msk.bf16.gmra.mrb[164].mxu1 %vm1251_vm1, %v11930_v53  ;;  %v2941_v47 = vmax.f32 %v1973_v34, %v2749_v63  ;;  %v1975_v49 = vmax.f32 %v1584_v38, 0.0  ;;  %v2751_v25 = vmax.f32 %v2360_v40, 0.0  ;;  %1855 = vmatprep.mubr.bf16.mxu0 %v13384_v11  ;;  %v11932_v63 = vld [vmem:[%s12936_s28 + $0x158] sm:$0xff]  }
 0x195   : > { %2631 = vmatprep.mubr.bf16.mxu1 %v13384_v11  ;;  %v3100_v51 = vmax.f32 %v13483_v37, %v2940_v41  ;;  %v2942_v43 = vmax.f32 %v1974_v15, %v2750_v44 }
 0x196   : > { %v3101_v54 = vmax.f32 %v13488_v0, %v2941_v47  ;;  %v2943_v55 = vmax.f32 %v1975_v49, %v2751_v25  ;;  %v1587_v14 = vpop.f32.mrb[60].mxu0  ;;  %v2363_v57 = vpop.f32.mrb[60].mxu1 }
 0x197   : > { %v3102_v58 = vmax.f32 %v13494_v46, %v2942_v43  ;;  %v1588_v59 = vadd.f32 %v1587_v14, %v13215_v22  ;;  %v2364_v61 = vadd.f32 %v2363_v57, %v13215_v22  ;;  %v1589_v62 = vpop.f32.mrb[61].mxu0  ;;  %v2365_v18 = vpop.f32.mrb[61].mxu1 }
 0x198   : > { %v3103_v1 = vmax.f32 %v13499_v56, %v2943_v55  ;;  %v1590_v36 = vadd.f32 %v1589_v62, %v13219_v23  ;;  %v2366_v37 = vadd.f32 %v2365_v18, %v13219_v23  ;;  %v1591_v2 = vpop.f32.mrb[62].mxu0  ;;  %v2367_v0 = vpop.f32.mrb[62].mxu1 }
 0x199   : > { %v3193_v3 = vpack.c.bf16 %v3102_v58, %v3100_v51  ;;  %v1976_v4 = vmax.f32 %v1588_v59, 0.0  ;;  %v2752_v39 = vmax.f32 %v2364_v61, 0.0  ;;  %v1592_v46 = vadd.f32 %v1591_v2, %v13215_v22  ;;  %v1593_v5 = vpop.f32.mrb[63].mxu0  ;;  %v2369_v48 = vpop.f32.mrb[63].mxu1 }
 0x19a   : > { %v3194_v8 = vpack.c.bf16 %v3103_v1, %v3101_v54  ;;  %v1977_v10 = vmax.f32 %v1590_v36, 0.0  ;;  %v2753_v12 = vmax.f32 %v2366_v37, 0.0  ;;  %v2368_v16 = vadd.f32 %v2367_v0, %v13215_v22 }
 0x19b   : > { %3242 = vst [vmem:[#allocation2 + $0xa0] sm:$0xff] %v3193_v3  ;;  %v2944_v56 = vmax.f32 %v1976_v4, %v2752_v39  ;;  %v1978_v24 = vmax.f32 %v1592_v46, 0.0  ;;  %v1594_v42 = vadd.f32 %v1593_v5, %v13219_v23  ;;  %v2370_v26 = vadd.f32 %v2369_v48, %v13219_v23  ;;  %10116 = vmatmul.mubr.msk.bf16.gmra.mrb[168].mxu0 %vm1251_vm1, %v11931_v35  ;;  %v11933_v39 = vld [vmem:[%s12936_s28 + $0x160] sm:$0xff]  }
 0x19c   : > { %10179 = vmatmul.mubr.msk.bf16.gmra.mrb[168].mxu1 %vm1251_vm1, %v11931_v35  ;;  %3243 = vst.msk [vmem:[#allocation2 + $0xa8] sm:$0xff] %vm3173_vm2, %v3194_v8  ;;  %v2945_v27 = vmax.f32 %v1977_v10, %v2753_v12  ;;  %v2754_v50 = vmax.f32 %v2368_v16, 0.0  ;;  %1865 = vmatprep.mubr.bf16.mxu0 %v13384_v11 }
 0x19d   : > { %2641 = vmatprep.mubr.bf16.mxu1 %v13384_v11  ;;  %v3104_v53 = vmax.f32 %v13507_v7, %v2944_v56  ;;  %v1979_v28 = vmax.f32 %v1594_v42, 0.0  ;;  %v2755_v60 = vmax.f32 %v2370_v26, 0.0 }
 0x19e   : > { %v3105_v29 = vmax.f32 %v13511_v9, %v2945_v27  ;;  %v2946_v45 = vmax.f32 %v1978_v24, %v2754_v50  ;;  %v1597_v30 = vpop.f32.mrb[64].mxu0  ;;  %v2373_v20 = vpop.f32.mrb[64].mxu1 }
 0x19f   : > { %v2947_v31 = vmax.f32 %v1979_v28, %v2755_v60  ;;  %v1598_v32 = vadd.f32 %v1597_v30, %v13215_v22  ;;  %v2374_v33 = vadd.f32 %v2373_v20, %v13215_v22  ;;  %v1599_v6 = vpop.f32.mrb[65].mxu0  ;;  %v2375_v34 = vpop.f32.mrb[65].mxu1 }
 0x1a0   : > { %v3106_v38 = vmax.f32 %v13515_v52, %v2946_v45  ;;  %v1600_v40 = vadd.f32 %v1599_v6, %v13219_v23  ;;  %v2376_v7 = vadd.f32 %v2375_v34, %v13219_v23  ;;  %v1601_v41 = vpop.f32.mrb[66].mxu0  ;;  %v2377_v15 = vpop.f32.mrb[66].mxu1 }
 0x1a1   : > { %v3107_v9 = vmax.f32 %v13517_v13, %v2947_v31  ;;  %v1980_v44 = vmax.f32 %v1598_v32, 0.0  ;;  %v2756_v47 = vmax.f32 %v2374_v33, 0.0  ;;  %v1602_v49 = vadd.f32 %v1601_v41, %v13215_v22  ;;  %v1603_v25 = vpop.f32.mrb[67].mxu0  ;;  %v2379_v51 = vpop.f32.mrb[67].mxu1  ;;  %v11940_v41 = vld [vmem:[%s12936_s28 + $0x168] sm:$0xff]  }
 0x1a2   : > { %v3195_v43 = vpack.c.bf16 %v3106_v38, %v3104_v53  ;;  %v1981_v54 = vmax.f32 %v1600_v40, 0.0  ;;  %v2757_v55 = vmax.f32 %v2376_v7, 0.0  ;;  %v2378_v14 = vadd.f32 %v2377_v15, %v13215_v22 }
 0x1a3   : > { %v3196_v52 = vpack.c.bf16 %v3107_v9, %v3105_v29  ;;  %v13561_v57 = vmax.f32 %v1980_v44, %v2756_v47  ;;  %v1982_v58 = vmax.f32 %v1602_v49, 0.0  ;;  %v1604_v59 = vadd.f32 %v1603_v25, %v13219_v23  ;;  %10117 = vmatmul.mubr.msk.bf16.gmra.mrb[172].mxu0 %vm1251_vm1, %v11932_v63 }
 0x1a4   : > { %10180 = vmatmul.mubr.msk.bf16.gmra.mrb[172].mxu1 %vm1251_vm1, %v11932_v63  ;;  %3244 = vst [vmem:[#allocation2 + $0xb0] sm:$0xff] %v3195_v43  ;;  %v13566_v13 = vmax.f32 %v1981_v54, %v2757_v55  ;;  %v2758_v61 = vmax.f32 %v2378_v14, 0.0  ;;  %v2380_v62 = vadd.f32 %v2379_v51, %v13219_v23  ;;  %1875 = vmatprep.mubr.bf16.mxu0 %v13384_v11 }
 0x1a5   : > { %2651 = vmatprep.mubr.bf16.mxu1 %v13384_v11  ;;  %3245 = vst.msk [vmem:[#allocation2 + $0xb8] sm:$0xff] %vm3173_vm2, %v3196_v52  ;;  %v1983_v18 = vmax.f32 %v1604_v59, 0.0 }
 0x1a6   : > { %v13572_v35 = vmax.f32 %v1982_v58, %v2758_v61  ;;  %v2759_v1 = vmax.f32 %v2380_v62, 0.0  ;;  %v1607_v36 = vpop.f32.mrb[68].mxu0  ;;  %v2383_v37 = vpop.f32.mrb[68].mxu1 }
 0x1a7   : > { %v1608_v2 = vadd.f32 %v1607_v36, %v13215_v22  ;;  %v2384_v0 = vadd.f32 %v2383_v37, %v13215_v22  ;;  %v1609_v3 = vpop.f32.mrb[69].mxu0  ;;  %v2385_v4 = vpop.f32.mrb[69].mxu1 }
 0x1a8   : > { %v13577_v46 = vmax.f32 %v1983_v18, %v2759_v1  ;;  %v1610_v5 = vadd.f32 %v1609_v3, %v13219_v23  ;;  %v2386_v48 = vadd.f32 %v2385_v4, %v13219_v23  ;;  %v1611_v8 = vpop.f32.mrb[70].mxu0  ;;  %v2387_v10 = vpop.f32.mrb[70].mxu1 }
 0x1a9   : > { %v1984_v12 = vmax.f32 %v1608_v2, 0.0  ;;  %v2760_v16 = vmax.f32 %v2384_v0, 0.0  ;;  %v1612_v56 = vadd.f32 %v1611_v8, %v13215_v22  ;;  %v2388_v24 = vadd.f32 %v2387_v10, %v13215_v22  ;;  %v1613_v42 = vpop.f32.mrb[71].mxu0  ;;  %v2389_v26 = vpop.f32.mrb[71].mxu1 }
 0x1aa   : > { %v1985_v27 = vmax.f32 %v1610_v5, 0.0  ;;  %v2761_v50 = vmax.f32 %v2386_v48, 0.0  ;;  %v1614_v53 = vadd.f32 %v1613_v42, %v13219_v23  ;;  %v2390_v28 = vadd.f32 %v2389_v26, %v13219_v23 }
 0x1ab   : > { %v13585_v60 = vmax.f32 %v1984_v12, %v2760_v16  ;;  %v1986_v29 = vmax.f32 %v1612_v56, 0.0  ;;  %v2762_v45 = vmax.f32 %v2388_v24, 0.0  ;;  %10118 = vmatmul.mubr.msk.bf16.gmra.mrb[176].mxu0 %vm1251_vm1, %v11933_v39  ;;  %v11941_v56 = vld [vmem:[%s12936_s28 + $0x170] sm:$0xff]  }
 0x1ac   : > { %10181 = vmatmul.mubr.msk.bf16.gmra.mrb[176].mxu1 %vm1251_vm1, %v11933_v39  ;;  %v13589_v30 = vmax.f32 %v1985_v27, %v2761_v50  ;;  %v1987_v20 = vmax.f32 %v1614_v53, 0.0  ;;  %v2763_v31 = vmax.f32 %v2390_v28, 0.0  ;;  %1885 = vmatprep.mubr.bf16.mxu0 %v13384_v11 }
 0x1ad   : > { %2661 = vmatprep.mubr.bf16.mxu1 %v13384_v11  ;;  %v13593_v32 = vmax.f32 %v1986_v29, %v2762_v45 }
 0x1ae   : > { %v13595_v33 = vmax.f32 %v1987_v20, %v2763_v31  ;;  %v1617_v6 = vpop.f32.mrb[72].mxu0  ;;  %v2393_v34 = vpop.f32.mrb[72].mxu1 }
 0x1af   : > { %v1618_v63 = vadd.f32 %v1617_v6, %v13215_v22  ;;  %v2394_v38 = vadd.f32 %v2393_v34, %v13215_v22  ;;  %v1619_v40 = vpop.f32.mrb[73].mxu0  ;;  %v2395_v7 = vpop.f32.mrb[73].mxu1 }
 0x1b0   : > { %v1620_v15 = vadd.f32 %v1619_v40, %v13219_v23  ;;  %v2396_v9 = vadd.f32 %v2395_v7, %v13219_v23  ;;  %v1621_v44 = vpop.f32.mrb[74].mxu0  ;;  %v2397_v47 = vpop.f32.mrb[74].mxu1 }
 0x1b1   : > { %v1988_v49 = vmax.f32 %v1618_v63, 0.0  ;;  %v2764_v25 = vmax.f32 %v2394_v38, 0.0  ;;  %v1622_v51 = vadd.f32 %v1621_v44, %v13215_v22  ;;  %v2398_v43 = vadd.f32 %v2397_v47, %v13215_v22  ;;  %v1623_v54 = vpop.f32.mrb[75].mxu0  ;;  %v2399_v55 = vpop.f32.mrb[75].mxu1 }
 0x1b2   : > { %v1989_v14 = vmax.f32 %v1620_v15, 0.0  ;;  %v2765_v52 = vmax.f32 %v2396_v9, 0.0  ;;  %v1624_v58 = vadd.f32 %v1623_v54, %v13219_v23  ;;  %v2400_v59 = vadd.f32 %v2399_v55, %v13219_v23 }
 0x1b3   : > { %v2956_v61 = vmax.f32 %v1988_v49, %v2764_v25  ;;  %v1990_v62 = vmax.f32 %v1622_v51, 0.0  ;;  %v2766_v18 = vmax.f32 %v2398_v43, 0.0  ;;  %10119 = vmatmul.mubr.msk.bf16.gmra.mrb[180].mxu0 %vm1251_vm1, %v11940_v41 }
 0x1b4   : > { %10182 = vmatmul.mubr.msk.bf16.gmra.mrb[180].mxu1 %vm1251_vm1, %v11940_v41  ;;  %v2957_v1 = vmax.f32 %v1989_v14, %v2765_v52  ;;  %v1991_v36 = vmax.f32 %v1624_v58, 0.0  ;;  %v2767_v37 = vmax.f32 %v2400_v59, 0.0  ;;  %1895 = vmatprep.mubr.bf16.mxu0 %v13384_v11  ;;  %v11942_v52 = vld [vmem:[%s12936_s28 + $0x178] sm:$0xff]   ;;  %s809_s28 = scalar_lea.vmem %s16189_s11, %s10010_s22 }
 0x1b5   : > { %2671 = vmatprep.mubr.bf16.mxu1 %v13384_v11  ;;  %v3108_v2 = vmax.f32 %v13561_v57, %v2956_v61  ;;  %v2958_v0 = vmax.f32 %v1990_v62, %v2766_v18 }
 0x1b6   : > { %v3109_v3 = vmax.f32 %v13566_v13, %v2957_v1  ;;  %v2959_v4 = vmax.f32 %v1991_v36, %v2767_v37  ;;  %v1627_v39 = vpop.f32.mrb[76].mxu0  ;;  %v2403_v5 = vpop.f32.mrb[76].mxu1 }
 0x1b7   : > { %v3110_v48 = vmax.f32 %v13572_v35, %v2958_v0  ;;  %v1628_v8 = vadd.f32 %v1627_v39, %v13215_v22  ;;  %v2404_v10 = vadd.f32 %v2403_v5, %v13215_v22  ;;  %v1629_v12 = vpop.f32.mrb[77].mxu0  ;;  %v2405_v16 = vpop.f32.mrb[77].mxu1 }
 0x1b8   : > { %v3111_v24 = vmax.f32 %v13577_v46, %v2959_v4  ;;  %v1630_v42 = vadd.f32 %v1629_v12, %v13219_v23  ;;  %v2406_v57 = vadd.f32 %v2405_v16, %v13219_v23  ;;  %v1631_v26 = vpop.f32.mrb[78].mxu0  ;;  %v2407_v13 = vpop.f32.mrb[78].mxu1 }
 0x1b9   : > { %v3197_v27 = vpack.c.bf16 %v3110_v48, %v3108_v2  ;;  %v1992_v50 = vmax.f32 %v1628_v8, 0.0  ;;  %v2768_v53 = vmax.f32 %v2404_v10, 0.0  ;;  %v1632_v35 = vadd.f32 %v1631_v26, %v13215_v22  ;;  %v1633_v28 = vpop.f32.mrb[79].mxu0  ;;  %v2409_v29 = vpop.f32.mrb[79].mxu1  ;;  %v3377_v2 = vld [vmem:[#allocation2 + $0x28] sm:$0xff] }
 0x1ba   : > { %v3198_v45 = vpack.c.bf16 %v3111_v24, %v3109_v3  ;;  %v1993_v20 = vmax.f32 %v1630_v42, 0.0  ;;  %v2769_v31 = vmax.f32 %v2406_v57, 0.0  ;;  %v2408_v6 = vadd.f32 %v2407_v13, %v13215_v22 }
 0x1bb   : > { %3246 = vst [vmem:[#allocation2 + $0xc0] sm:$0xff] %v3197_v27  ;;  %v2960_v46 = vmax.f32 %v1992_v50, %v2768_v53  ;;  %v1994_v34 = vmax.f32 %v1632_v35, 0.0  ;;  %v1634_v63 = vadd.f32 %v1633_v28, %v13219_v23  ;;  %v2410_v38 = vadd.f32 %v2409_v29, %v13219_v23  ;;  %10120 = vmatmul.mubr.msk.bf16.gmra.mrb[184].mxu0 %vm1251_vm1, %v11941_v56 }
 0x1bc   : > { %10183 = vmatmul.mubr.msk.bf16.gmra.mrb[184].mxu1 %vm1251_vm1, %v11941_v56  ;;  %3247 = vst.msk [vmem:[#allocation2 + $0xc8] sm:$0xff] %vm3173_vm2, %v3198_v45  ;;  %v2961_v40 = vmax.f32 %v1993_v20, %v2769_v31  ;;  %v2770_v7 = vmax.f32 %v2408_v6, 0.0  ;;  %1905 = vmatprep.mubr.bf16.mxu0 %v13384_v11  ;;  %v3379_v20 = vld [vmem:[#allocation2 + $0x38] sm:$0xff]  ;;  %v11943_v31 = vld [vmem:[%s16182_s4] ss:$8 sps:$4 sm:$0xff]  }
 0x1bd   : > { %2681 = vmatprep.mubr.bf16.mxu1 %v13384_v11  ;;  %v3112_v41 = vmax.f32 %v13585_v60, %v2960_v46  ;;  %v1995_v15 = vmax.f32 %v1634_v63, 0.0  ;;  %v2771_v9 = vmax.f32 %v2410_v38, 0.0 }
 0x1be   : > { %v3113_v44 = vmax.f32 %v13589_v30, %v2961_v40  ;;  %v2962_v47 = vmax.f32 %v1994_v34, %v2770_v7  ;;  %v1637_v49 = vpop.f32.mrb[80].mxu0  ;;  %v2413_v25 = vpop.f32.mrb[80].mxu1  ;;  %v11946_v7 = vld [vmem:[%s16183_s5] ss:$8 sps:$4 sm:$0xff]  }
 0x1bf   : > { %v2963_v51 = vmax.f32 %v1995_v15, %v2771_v9  ;;  %v1638_v43 = vadd.f32 %v1637_v49, %v13215_v22  ;;  %v2414_v54 = vadd.f32 %v2413_v25, %v13215_v22  ;;  %v1639_v55 = vpop.f32.mrb[81].mxu0  ;;  %v2415_v14 = vpop.f32.mrb[81].mxu1  ;;  %v11954_v49 = vld [vmem:[%s16183_s5 + $0x14] ss:$8 sps:$4 sm:$0xff]  }
 0x1c0   : > { %v3114_v58 = vmax.f32 %v13593_v32, %v2962_v47  ;;  %v1640_v11 = vadd.f32 %v1639_v55, %v13219_v23  ;;  %v2416_v60 = vadd.f32 %v2415_v14, %v13219_v23  ;;  %v1641_v59 = vpop.f32.mrb[82].mxu0  ;;  %v2417_v61 = vpop.f32.mrb[82].mxu1  ;;  %v11951_v47 = vld [vmem:[%s16182_s4 + $0x14] ss:$8 sps:$4 sm:$0xff]  }
 0x1c1   : > { %v3115_v30 = vmax.f32 %v13595_v33, %v2963_v51  ;;  %v1996_v62 = vmax.f32 %v1638_v43, 0.0  ;;  %v2772_v18 = vmax.f32 %v2414_v54, 0.0  ;;  %v1642_v1 = vadd.f32 %v1641_v59, %v13215_v22  ;;  %v1643_v36 = vpop.f32.mrb[83].mxu0  ;;  %v2419_v37 = vpop.f32.mrb[83].mxu1  ;;  %v12637_v54 = vld [vmem:[#allocation2] sm:$0xff] }
 0x1c2   : > { %v3199_v0 = vpack.c.bf16 %v3114_v58, %v3112_v41  ;;  %v1997_v3 = vmax.f32 %v1640_v11, 0.0  ;;  %v2773_v4 = vmax.f32 %v2416_v60, 0.0  ;;  %v2418_v32 = vadd.f32 %v2417_v61, %v13215_v22  ;;  %v11949_v11 = vld [vmem:[%s16182_s4 + $0x10] ss:$8 sps:$4 sm:$0xff]  }
 0x1c3   : > { %v3200_v39 = vpack.c.bf16 %v3115_v30, %v3113_v44  ;;  %v13639_v5 = vmax.f32 %v1996_v62, %v2772_v18  ;;  %v1998_v48 = vmax.f32 %v1642_v1, 0.0  ;;  %v1644_v8 = vadd.f32 %v1643_v36, %v13219_v23  ;;  %10121 = vmatmul.mubr.msk.bf16.gmra.mrb[188].mxu0 %vm1251_vm1, %v11942_v52  ;;  %v11952_v60 = vld [vmem:[%s16183_s5 + $0x10] ss:$8 sps:$4 sm:$0xff]   ;;  %v11957_v62 = vld [vmem:[%s16182_s4 + $0x24] ss:$8 sps:$4 sm:$0xff]  }
 0x1c4   : > { %10184 = vmatmul.mubr.msk.bf16.gmra.mrb[188].mxu1 %vm1251_vm1, %v11942_v52  ;;  %3248 = vst [vmem:[#allocation2 + $0xd0] sm:$0xff] %v3199_v0  ;;  %v13644_v33 = vmax.f32 %v1997_v3, %v2773_v4  ;;  %v2774_v10 = vmax.f32 %v2418_v32, 0.0  ;;  %v2420_v12 = vadd.f32 %v2419_v37, %v13219_v23  ;;  %10225 = vmatprep.mubr.msk.bf16.mxu0 %vm3173_vm2, %v3377_v2  ;;  %v11960_v18 = vld [vmem:[%s16183_s5 + $0x24] ss:$8 sps:$4 sm:$0xff]  }
 0x1c5   : > { %10333 = vmatprep.mubr.msk.bf16.mxu1 %vm3173_vm2, %v3377_v2  ;;  %3249 = vst.msk [vmem:[#allocation2 + $0xd8] sm:$0xff] %vm3173_vm2, %v3200_v39  ;;  %v1999_v16 = vmax.f32 %v1644_v8, 0.0  ;;  %v11955_v39 = vld [vmem:[%s16182_s4 + $0x20] ss:$8 sps:$4 sm:$0xff]  }
 0x1c6   : > { %v13650_v56 = vmax.f32 %v1998_v48, %v2774_v10  ;;  %v2775_v24 = vmax.f32 %v2420_v12, 0.0  ;;  %v1647_v42 = vpop.f32.mrb[84].mxu0  ;;  %v2423_v57 = vpop.f32.mrb[84].mxu1 }
 0x1c7   : > { %v1648_v26 = vadd.f32 %v1647_v42, %v13215_v22  ;;  %v2424_v13 = vadd.f32 %v2423_v57, %v13215_v22  ;;  %v1649_v27 = vpop.f32.mrb[85].mxu0  ;;  %v2425_v50 = vpop.f32.mrb[85].mxu1  ;;  %v11958_v42 = vld [vmem:[%s16183_s5 + $0x20] ss:$8 sps:$4 sm:$0xff]  }
 0x1c8   : > { %v13654_v53 = vmax.f32 %v1999_v16, %v2775_v24  ;;  %v1650_v35 = vadd.f32 %v1649_v27, %v13219_v23  ;;  %v2426_v28 = vadd.f32 %v2425_v50, %v13219_v23  ;;  %v1651_v29 = vpop.f32.mrb[86].mxu0  ;;  %v2427_v45 = vpop.f32.mrb[86].mxu1  ;;  %v11963_v50 = vld [vmem:[%s16182_s4 + $0x34] ss:$8 sps:$4 sm:$0xff]  }
 0x1c9   : > { %v2000_v6 = vmax.f32 %v1648_v26, 0.0  ;;  %v2776_v46 = vmax.f32 %v2424_v13, 0.0  ;;  %v1652_v34 = vadd.f32 %v1651_v29, %v13215_v22  ;;  %v2428_v63 = vadd.f32 %v2427_v45, %v13215_v22  ;;  %v1653_v38 = vpop.f32.mrb[87].mxu0  ;;  %v2429_v40 = vpop.f32.mrb[87].mxu1 }
 0x1ca   : > { %v2001_v41 = vmax.f32 %v1650_v35, 0.0  ;;  %v2777_v15 = vmax.f32 %v2426_v28, 0.0  ;;  %v1654_v9 = vadd.f32 %v1653_v38, %v13219_v23  ;;  %v2430_v44 = vadd.f32 %v2429_v40, %v13219_v23  ;;  %v11966_v35 = vld [vmem:[%s16183_s5 + $0x34] ss:$8 sps:$4 sm:$0xff]   ;;  %v11961_v38 = vld [vmem:[%s16182_s4 + $0x30] ss:$8 sps:$4 sm:$0xff]  }
 0x1cb   : > { %v13674_v25 = vmax.f32 %v2000_v6, %v2776_v46  ;;  %v2002_v51 = vmax.f32 %v1652_v34, 0.0  ;;  %v2778_v43 = vmax.f32 %v2428_v63, 0.0  ;;  %3650 = vmatmul.mubr.bf16.vlgmr.msra.gmra.mrb[192].mxu0 %v12637_v54  ;;  %v11964_v40 = vld [vmem:[%s16183_s5 + $0x30] ss:$8 sps:$4 sm:$0xff]  }
 0x1cc   : > { %4489 = vmatmul.mubr.bf16.vlgmr.msra.gmra.mrb[192].mxu1 %v12637_v54  ;;  %v13676_v55 = vmax.f32 %v2001_v41, %v2777_v15  ;;  %v2003_v14 = vmax.f32 %v1654_v9, 0.0  ;;  %v2779_v52 = vmax.f32 %v2430_v44, 0.0  ;;  %10226 = vmatprep.mubr.msk.bf16.mxu0 %vm3173_vm2, %v3379_v20  ;;  %v11972_v44 = vld [vmem:[%s16183_s5 + $0x44] ss:$8 sps:$4 sm:$0xff]  }
 0x1cd   : > { %10334 = vmatprep.mubr.msk.bf16.mxu1 %vm3173_vm2, %v3379_v20  ;;  %v13680_v58 = vmax.f32 %v2002_v51, %v2778_v43  ;;  %4063 = vmatpush1.bf16.msra.mxu0 %v11943_v31  ;;  %v3381_v20 = vld [vmem:[#allocation2 + $0x48] sm:$0xff] }
 0x1ce   : > { %4830 = vmatpush1.bf16.msra.mxu1 %v11946_v7  ;;  %v13688_v59 = vmax.f32 %v2003_v14, %v2779_v52  ;;  %v1657_v61 = vpop.f32.mrb[88].mxu0  ;;  %v2433_v30 = vpop.f32.mrb[88].mxu1  ;;  %4064 = vmatprep.subr.bf16.mxu0 %v11951_v47 }
 0x1cf   : > { %4831 = vmatprep.subr.bf16.mxu1 %v11954_v49  ;;  %v1658_v1 = vadd.f32 %v1657_v61, %v13215_v22  ;;  %v2434_v36 = vadd.f32 %v2433_v30, %v13215_v22  ;;  %v1659_v37 = vpop.f32.mrb[89].mxu0  ;;  %v2435_v2 = vpop.f32.mrb[89].mxu1  ;;  %v3380_v61 = vld [vmem:[#allocation2 + $0x40] sm:$0xff] }
 0x1d0   : > { %v1660_v0 = vadd.f32 %v1659_v37, %v13219_v23  ;;  %v2436_v3 = vadd.f32 %v2435_v2, %v13219_v23  ;;  %v1661_v4 = vpop.f32.mrb[90].mxu0  ;;  %v2437_v32 = vpop.f32.mrb[90].mxu1  ;;  %v11967_v30 = vld [vmem:[%s16182_s4 + $0x40] ss:$8 sps:$4 sm:$0xff]  }
 0x1d1   : > { %v2004_v48 = vmax.f32 %v1658_v1, 0.0  ;;  %v2780_v8 = vmax.f32 %v2434_v36, 0.0  ;;  %v1662_v10 = vadd.f32 %v1661_v4, %v13215_v22  ;;  %v2438_v12 = vadd.f32 %v2437_v32, %v13215_v22  ;;  %v1663_v16 = vpop.f32.mrb[91].mxu0  ;;  %v2439_v24 = vpop.f32.mrb[91].mxu1  ;;  %4065 = vmatpush1.bf16.msra.mxu0 %v11949_v11  ;;  %v11975_v32 = vld [vmem:[%s16182_s4 + $0x54] ss:$8 sps:$4 sm:$0xff]  }
 0x1d2   : > { %4832 = vmatpush1.bf16.msra.mxu1 %v11952_v60  ;;  %v2005_v57 = vmax.f32 %v1660_v0, 0.0  ;;  %v2781_v26 = vmax.f32 %v2436_v3, 0.0  ;;  %v1664_v13 = vadd.f32 %v1663_v16, %v13219_v23  ;;  %v2440_v27 = vadd.f32 %v2439_v24, %v13219_v23  ;;  %4066 = vmatprep.subr.bf16.mxu0 %v11957_v62  ;;  %v3383_v16 = vld [vmem:[#allocation2 + $0x58] sm:$0xff] }
 0x1d3   : > { %4833 = vmatprep.subr.bf16.mxu1 %v11960_v18  ;;  %v2972_v28 = vmax.f32 %v2004_v48, %v2780_v8  ;;  %v2006_v29 = vmax.f32 %v1662_v10, 0.0  ;;  %v2782_v45 = vmax.f32 %v2438_v12, 0.0  ;;  %3660 = vmatmul.mubr.bf16.gmra.mrb[196].mxu0 %v12637_v54 }
 0x1d4   : > { %4499 = vmatmul.mubr.bf16.gmra.mrb[196].mxu1 %v12637_v54  ;;  %v2973_v31 = vmax.f32 %v2005_v57, %v2781_v26  ;;  %v2007_v6 = vmax.f32 %v1664_v13, 0.0  ;;  %v2783_v46 = vmax.f32 %v2440_v27, 0.0  ;;  %10227 = vmatprep.mubr.msk.bf16.mxu0 %vm3173_vm2, %v3381_v20  ;;  %v11973_v27 = vld [vmem:[%s16182_s4 + $0x50] ss:$8 sps:$4 sm:$0xff]  }
 0x1d5   : > { %10335 = vmatprep.mubr.msk.bf16.mxu1 %vm3173_vm2, %v3381_v20  ;;  %v3116_v34 = vmax.f32 %v13639_v5, %v2972_v28  ;;  %v2974_v63 = vmax.f32 %v2006_v29, %v2782_v45  ;;  %4067 = vmatpush1.bf16.msra.mxu0 %v11955_v39  ;;  %v11969_v5 = vld [vmem:[%s16182_s4 + $0x44] ss:$8 sps:$4 sm:$0xff]   ;;  %v11978_v39 = vld [vmem:[%s16183_s5 + $0x54] ss:$8 sps:$4 sm:$0xff]  }
 0x1d6   : > { %4834 = vmatpush1.bf16.msra.mxu1 %v11958_v42  ;;  %v3117_v7 = vmax.f32 %v13644_v33, %v2973_v31  ;;  %v2975_v41 = vmax.f32 %v2007_v6, %v2783_v46  ;;  %v1667_v15 = vpop.f32.mrb[92].mxu0  ;;  %v2443_v9 = vpop.f32.mrb[92].mxu1  ;;  %4068 = vmatprep.subr.bf16.mxu0 %v11963_v50  ;;  %v11976_v50 = vld [vmem:[%s16183_s5 + $0x50] ss:$8 sps:$4 sm:$0xff]   ;;  %v11984_v20 = vld [vmem:[%s16183_s5 + $0x64] ss:$8 sps:$4 sm:$0xff]  }
 0x1d7   : > { %4835 = vmatprep.subr.bf16.mxu1 %v11966_v35  ;;  %v3118_v47 = vmax.f32 %v13650_v56, %v2974_v63  ;;  %v1668_v49 = vadd.f32 %v1667_v15, %v13215_v22  ;;  %v2444_v51 = vadd.f32 %v2443_v9, %v13215_v22  ;;  %v1669_v33 = vpop.f32.mrb[93].mxu0  ;;  %v2445_v43 = vpop.f32.mrb[93].mxu1  ;;  %v11979_v15 = vld [vmem:[%s16182_s4 + $0x60] ss:$8 sps:$4 sm:$0xff]  }
 0x1d8   : > { %v3119_v54 = vmax.f32 %v13654_v53, %v2975_v41  ;;  %v1670_v14 = vadd.f32 %v1669_v33, %v13219_v23  ;;  %v2446_v52 = vadd.f32 %v2445_v43, %v13219_v23  ;;  %v1671_v11 = vpop.f32.mrb[94].mxu0  ;;  %v2447_v60 = vpop.f32.mrb[94].mxu1  ;;  %v11970_v53 = vld [vmem:[%s16183_s5 + $0x40] ss:$8 sps:$4 sm:$0xff]  }
 0x1d9   : > { %v13741_v56 = vpack.c.bf16 %v3118_v47, %v3116_v34  ;;  %v2008_v62 = vmax.f32 %v1668_v49, 0.0  ;;  %v2784_v18 = vmax.f32 %v2444_v51, 0.0  ;;  %v1672_v1 = vadd.f32 %v1671_v11, %v13215_v22  ;;  %v1673_v36 = vpop.f32.mrb[95].mxu0  ;;  %v2449_v37 = vpop.f32.mrb[95].mxu1  ;;  %4069 = vmatpush1.bf16.msra.mxu0 %v11961_v38 }
 0x1da   : > { %4836 = vmatpush1.bf16.msra.mxu1 %v11964_v40  ;;  %v3202_v2 = vpack.c.bf16 %v3119_v54, %v3117_v7  ;;  %v2009_v0 = vmax.f32 %v1670_v14, 0.0  ;;  %v2785_v3 = vmax.f32 %v2446_v52, 0.0  ;;  %v2448_v4 = vadd.f32 %v2447_v60, %v13215_v22  ;;  %4070 = vmatprep.subr.bf16.mxu0 %v11969_v5  ;;  %v3382_v52 = vld [vmem:[#allocation2 + $0x50] sm:$0xff] }
 0x1db   : > { %4837 = vmatprep.subr.bf16.mxu1 %v11972_v44  ;;  %3250 = vst [vmem:[#allocation2 + $0xe0] sm:$0xff] %v13741_v56  ;;  %v2976_v48 = vmax.f32 %v2008_v62, %v2784_v18  ;;  %v2010_v8 = vmax.f32 %v1672_v1, 0.0  ;;  %v1674_v10 = vadd.f32 %v1673_v36, %v13219_v23  ;;  %v2450_v12 = vadd.f32 %v2449_v37, %v13219_v23  ;;  %v11985_v37 = vld [vmem:[%s16182_s4 + $0x70] ss:$8 sps:$4 sm:$0xff]  }
 0x1dc   : > { %3670 = vmatmul.mubr.bf16.gmra.mrb[200].mxu0 %v3380_v61  ;;  %4509 = vmatmul.mubr.bf16.gmra.mrb[200].mxu1 %v3380_v61  ;;  %3251 = vst.msk [vmem:[#allocation2 + $0xe8] sm:$0xff] %vm3173_vm2, %v3202_v2  ;;  %v2977_v24 = vmax.f32 %v2009_v0, %v2785_v3  ;;  %v2786_v42 = vmax.f32 %v2448_v4, 0.0 }
 0x1dd   : > { %10228 = vmatprep.mubr.msk.bf16.mxu0 %vm3173_vm2, %v3383_v16  ;;  %10336 = vmatprep.mubr.msk.bf16.mxu1 %vm3173_vm2, %v3383_v16  ;;  %v3120_v57 = vmax.f32 %v13674_v25, %v2976_v48  ;;  %v2011_v26 = vmax.f32 %v1674_v10, 0.0  ;;  %v2787_v13 = vmax.f32 %v2450_v12, 0.0  ;;  %v11981_v25 = vld [vmem:[%s16182_s4 + $0x64] ss:$8 sps:$4 sm:$0xff]   ;;  %v11990_v12 = vld [vmem:[%s16183_s5 + $0x74] ss:$8 sps:$4 sm:$0xff]  }
 0x1de   : > { %4071 = vmatpush1.bf16.msra.mxu0 %v11967_v30  ;;  %4838 = vmatpush1.bf16.msra.mxu1 %v11970_v53  ;;  %v3121_v35 = vmax.f32 %v13676_v55, %v2977_v24  ;;  %v2978_v28 = vmax.f32 %v2010_v8, %v2786_v42  ;;  %v1677_v29 = vpop.f32.mrb[96].mxu0  ;;  %v2453_v45 = vpop.f32.mrb[96].mxu1  ;;  %v3385_v30 = vld [vmem:[#allocation2 + $0x68] sm:$0xff]  ;;  %v11987_v53 = vld [vmem:[%s16182_s4 + $0x74] ss:$8 sps:$4 sm:$0xff]  }
 0x1df   : > { %4072 = vmatprep.subr.bf16.mxu0 %v11975_v32  ;;  %4839 = vmatprep.subr.bf16.mxu1 %v11978_v39  ;;  %v2979_v31 = vmax.f32 %v2011_v26, %v2787_v13  ;;  %v1678_v6 = vadd.f32 %v1677_v29, %v13215_v22  ;;  %v2454_v46 = vadd.f32 %v2453_v45, %v13215_v22  ;;  %v1679_v34 = vpop.f32.mrb[97].mxu0  ;;  %v2455_v55 = vpop.f32.mrb[97].mxu1  ;;  %v11988_v32 = vld [vmem:[%s16183_s5 + $0x70] ss:$8 sps:$4 sm:$0xff]  }
 0x1e0   : > { %v3122_v63 = vmax.f32 %v13680_v58, %v2978_v28  ;;  %v1680_v38 = vadd.f32 %v1679_v34, %v13219_v23  ;;  %v2456_v40 = vadd.f32 %v2455_v55, %v13219_v23  ;;  %v1681_v7 = vpop.f32.mrb[98].mxu0  ;;  %v2457_v41 = vpop.f32.mrb[98].mxu1  ;;  %v11982_v58 = vld [vmem:[%s16183_s5 + $0x60] ss:$8 sps:$4 sm:$0xff]  }
 0x1e1   : > { %v3123_v9 = vmax.f32 %v13688_v59, %v2979_v31  ;;  %v2012_v5 = vmax.f32 %v1678_v6, 0.0  ;;  %v2788_v44 = vmax.f32 %v2454_v46, 0.0  ;;  %v1682_v47 = vadd.f32 %v1681_v7, %v13215_v22  ;;  %v1683_v49 = vpop.f32.mrb[99].mxu0  ;;  %v2459_v51 = vpop.f32.mrb[99].mxu1  ;;  %v3384_v6 = vld [vmem:[#allocation2 + $0x60] sm:$0xff] }
 0x1e2   : > { %4073 = vmatpush1.bf16.msra.mxu0 %v11973_v27  ;;  %4840 = vmatpush1.bf16.msra.mxu1 %v11976_v50  ;;  %v13787_v33 = vpack.c.bf16 %v3122_v63, %v3120_v57  ;;  %v2013_v43 = vmax.f32 %v1680_v38, 0.0  ;;  %v2789_v54 = vmax.f32 %v2456_v40, 0.0  ;;  %v2458_v14 = vadd.f32 %v2457_v41, %v13215_v22  ;;  %v3387_v63 = vld [vmem:[#allocation2 + $0x78] sm:$0xff] }
 0x1e3   : > { %4074 = vmatprep.subr.bf16.mxu0 %v11981_v25  ;;  %4841 = vmatprep.subr.bf16.mxu1 %v11984_v20  ;;  %v3204_v59 = vpack.c.bf16 %v3123_v9, %v3121_v35  ;;  %v13790_v11 = vmax.f32 %v2012_v5, %v2788_v44  ;;  %v2014_v60 = vmax.f32 %v1682_v47, 0.0  ;;  %v1684_v61 = vadd.f32 %v1683_v49, %v13219_v23 }
 0x1e4   : > { %3680 = vmatmul.mubr.bf16.gmra.mrb[204].mxu0 %v3382_v52  ;;  %4519 = vmatmul.mubr.bf16.gmra.mrb[204].mxu1 %v3382_v52  ;;  %3252 = vst [vmem:[#allocation2 + $0xf0] sm:$0xff] %v13787_v33  ;;  %v13794_v62 = vmax.f32 %v2013_v43, %v2789_v54  ;;  %v2790_v18 = vmax.f32 %v2458_v14, 0.0  ;;  %v2460_v1 = vadd.f32 %v2459_v51, %v13219_v23 }
 0x1e5   : > { %10229 = vmatprep.mubr.msk.bf16.mxu0 %vm3173_vm2, %v3385_v30  ;;  %10337 = vmatprep.mubr.msk.bf16.mxu1 %vm3173_vm2, %v3385_v30  ;;  %3253 = vst.msk [vmem:[#allocation2 + $0xf8] sm:$0xff] %vm3173_vm2, %v3204_v59  ;;  %v2015_v36 = vmax.f32 %v1684_v61, 0.0 }
 0x1e6   : > { %4075 = vmatpush1.bf16.msra.mxu0 %v11979_v15  ;;  %4842 = vmatpush1.bf16.msra.mxu1 %v11982_v58  ;;  %v13806_v2 = vmax.f32 %v2014_v60, %v2790_v18  ;;  %v2791_v0 = vmax.f32 %v2460_v1, 0.0  ;;  %v1687_v3 = vpop.f32.mrb[100].mxu0  ;;  %v2463_v4 = vpop.f32.mrb[100].mxu1 }
 0x1e7   : > { %v1688_v39 = vadd.f32 %v1687_v3, %v13215_v22  ;;  %v2464_v48 = vadd.f32 %v2463_v4, %v13215_v22  ;;  %v1689_v8 = vpop.f32.mrb[101].mxu0  ;;  %v2465_v10 = vpop.f32.mrb[101].mxu1  ;;  %4076 = vmatprep.subr.bf16.mxu0 %v11987_v53  ;;  %4843 = vmatprep.subr.bf16.mxu1 %v11990_v12 }
 0x1e8   : > { %v13816_v16 = vmax.f32 %v2015_v36, %v2791_v0  ;;  %v1690_v24 = vadd.f32 %v1689_v8, %v13219_v23  ;;  %v2466_v42 = vadd.f32 %v2465_v10, %v13219_v23  ;;  %v1691_v57 = vpop.f32.mrb[102].mxu0  ;;  %v2467_v26 = vpop.f32.mrb[102].mxu1  ;;  %v3386_v0 = vld [vmem:[#allocation2 + $0x70] sm:$0xff] }
 0x1e9   : > { %v2016_v13 = vmax.f32 %v1688_v39, 0.0  ;;  %v2792_v27 = vmax.f32 %v2464_v48, 0.0  ;;  %v1692_v50 = vadd.f32 %v1691_v57, %v13215_v22  ;;  %v2468_v35 = vadd.f32 %v2467_v26, %v13215_v22  ;;  %v1693_v28 = vpop.f32.mrb[103].mxu0  ;;  %v2469_v29 = vpop.f32.mrb[103].mxu1  ;;  %v3389_v39 = vld [vmem:[#allocation2 + $0x88] sm:$0xff] }
 0x1ea   : > { %4077 = vmatpush1.bf16.msra.mxu0 %v11985_v37  ;;  %v2017_v45 = vmax.f32 %v1690_v24, 0.0  ;;  %v2793_v25 = vmax.f32 %v2466_v42, 0.0  ;;  %v1694_v20 = vadd.f32 %v1693_v28, %v13219_v23  ;;  %v2470_v31 = vadd.f32 %v2469_v29, %v13219_v23  ;;  %4844 = vmatpush1.bf16.msra.mxu1 %v11988_v32  ;;  %v11991_v42 = vld [vmem:[%s16182_s4 + $0x80] ss:$8 sps:$4 sm:$0xff]   ;;  %v11993_v57 = vld [vmem:[%s16182_s4 + $0x84] ss:$8 sps:$4 sm:$0xff]  }
 0x1eb   : > { %v13824_v46 = vmax.f32 %v2016_v13, %v2792_v27  ;;  %v2018_v34 = vmax.f32 %v1692_v50, 0.0  ;;  %v2794_v55 = vmax.f32 %v2468_v35, 0.0  ;;  %v11994_v26 = vld [vmem:[%s16183_s5 + $0x80] ss:$8 sps:$4 sm:$0xff]   ;;  %4078 = vmatprep.subr.bf16.mxu0 %v11993_v57 }
 0x1ec   : > { %3690 = vmatmul.mubr.bf16.gmra.mrb[208].mxu0 %v3384_v6  ;;  %4529 = vmatmul.mubr.bf16.gmra.mrb[208].mxu1 %v3384_v6  ;;  %v13826_v38 = vmax.f32 %v2017_v45, %v2793_v25  ;;  %v2019_v40 = vmax.f32 %v1694_v20, 0.0  ;;  %v2795_v7 = vmax.f32 %v2470_v31, 0.0 }
 0x1ed   : > { %10230 = vmatprep.mubr.msk.bf16.mxu0 %vm3173_vm2, %v3387_v63  ;;  %10338 = vmatprep.mubr.msk.bf16.mxu1 %vm3173_vm2, %v3387_v63  ;;  %v13830_v41 = vmax.f32 %v2018_v34, %v2794_v55 }
 0x1ee   : > { %v13832_v15 = vmax.f32 %v2019_v40, %v2795_v7  ;;  %v1697_v9 = vpop.f32.mrb[104].mxu0  ;;  %v2473_v5 = vpop.f32.mrb[104].mxu1  ;;  %4079 = vmatpush1.bf16.msra.mxu0 %v11991_v42 }
 0x1ef   : > { %v1698_v44 = vadd.f32 %v1697_v9, %v13215_v22  ;;  %v2474_v47 = vadd.f32 %v2473_v5, %v13215_v22  ;;  %v1699_v49 = vpop.f32.mrb[105].mxu0  ;;  %v2475_v51 = vpop.f32.mrb[105].mxu1 }
 0x1f0   : > { %v1700_v58 = vadd.f32 %v1699_v49, %v13219_v23  ;;  %v2476_v43 = vadd.f32 %v2475_v51, %v13219_v23  ;;  %v1701_v54 = vpop.f32.mrb[106].mxu0  ;;  %v2477_v14 = vpop.f32.mrb[106].mxu1  ;;  %v3388_v51 = vld [vmem:[#allocation2 + $0x80] sm:$0xff] }
 0x1f1   : > { %v2020_v52 = vmax.f32 %v1698_v44, 0.0  ;;  %v2796_v59 = vmax.f32 %v2474_v47, 0.0  ;;  %v1702_v60 = vadd.f32 %v1701_v54, %v13215_v22  ;;  %v2478_v61 = vadd.f32 %v2477_v14, %v13215_v22  ;;  %v1703_v30 = vpop.f32.mrb[107].mxu0  ;;  %v2479_v18 = vpop.f32.mrb[107].mxu1 }
 0x1f2   : > { %v2021_v1 = vmax.f32 %v1700_v58, 0.0  ;;  %v2797_v36 = vmax.f32 %v2476_v43, 0.0  ;;  %v1704_v37 = vadd.f32 %v1703_v30, %v13219_v23  ;;  %v2480_v53 = vadd.f32 %v2479_v18, %v13219_v23 }
 0x1f3   : > { %v2988_v3 = vmax.f32 %v2020_v52, %v2796_v59  ;;  %v2022_v4 = vmax.f32 %v1702_v60, 0.0  ;;  %v2798_v32 = vmax.f32 %v2478_v61, 0.0  ;;  %v3391_v52 = vld [vmem:[#allocation2 + $0x98] sm:$0xff] }
 0x1f4   : > { %3700 = vmatmul.mubr.bf16.gmra.mrb[212].mxu0 %v3386_v0  ;;  %4539 = vmatmul.mubr.bf16.gmra.mrb[212].mxu1 %v3386_v0  ;;  %v2989_v48 = vmax.f32 %v2021_v1, %v2797_v36  ;;  %v2023_v8 = vmax.f32 %v1704_v37, 0.0  ;;  %v2799_v10 = vmax.f32 %v2480_v53, 0.0 }
 0x1f5   : > { %10231 = vmatprep.mubr.msk.bf16.mxu0 %vm3173_vm2, %v3389_v39  ;;  %10339 = vmatprep.mubr.msk.bf16.mxu1 %vm3173_vm2, %v3389_v39  ;;  %v3124_v12 = vmax.f32 %v13790_v11, %v2988_v3  ;;  %v2990_v24 = vmax.f32 %v2022_v4, %v2798_v32  ;;  %v11996_v11 = vld [vmem:[%s16183_s5 + $0x84] ss:$8 sps:$4 sm:$0xff]  }
 0x1f6   : > { %v3125_v13 = vmax.f32 %v13794_v62, %v2989_v48  ;;  %v2991_v27 = vmax.f32 %v2023_v8, %v2799_v10  ;;  %v1707_v50 = vpop.f32.mrb[108].mxu0  ;;  %v2483_v35 = vpop.f32.mrb[108].mxu1  ;;  %4845 = vmatprep.subr.bf16.mxu1 %v11996_v11  ;;  %v3390_v11 = vld [vmem:[#allocation2 + $0x90] sm:$0xff] }
 0x1f7   : > { %v3126_v28 = vmax.f32 %v13806_v2, %v2990_v24  ;;  %v1708_v29 = vadd.f32 %v1707_v50, %v13215_v22  ;;  %v2484_v45 = vadd.f32 %v2483_v35, %v13215_v22  ;;  %v1709_v25 = vpop.f32.mrb[109].mxu0  ;;  %v2485_v20 = vpop.f32.mrb[109].mxu1  ;;  %4846 = vmatpush1.bf16.msra.mxu1 %v11994_v26 }
 0x1f8   : > { %v3127_v31 = vmax.f32 %v13816_v16, %v2991_v27  ;;  %v1710_v62 = vadd.f32 %v1709_v25, %v13219_v23  ;;  %v2486_v6 = vadd.f32 %v2485_v20, %v13219_v23  ;;  %v1711_v34 = vpop.f32.mrb[110].mxu0  ;;  %v2487_v55 = vpop.f32.mrb[110].mxu1 }
 0x1f9   : > { %v13864_v63 = vpack.c.bf16 %v3126_v28, %v3124_v12  ;;  %v2024_v2 = vmax.f32 %v1708_v29, 0.0  ;;  %v2800_v40 = vmax.f32 %v2484_v45, 0.0  ;;  %v1712_v7 = vadd.f32 %v1711_v34, %v13215_v22  ;;  %v1713_v9 = vpop.f32.mrb[111].mxu0  ;;  %v2489_v5 = vpop.f32.mrb[111].mxu1  ;;  %v11997_v34 = vld [vmem:[%s16182_s4 + $0x90] ss:$8 sps:$4 sm:$0xff]  }
 0x1fa   : > { %v3206_v44 = vpack.c.bf16 %v3127_v31, %v3125_v13  ;;  %v2025_v47 = vmax.f32 %v1710_v62, 0.0  ;;  %v2801_v16 = vmax.f32 %v2486_v6, 0.0  ;;  %v2488_v49 = vadd.f32 %v2487_v55, %v13215_v22  ;;  %v11999_v55 = vld [vmem:[%s16182_s4 + $0x94] ss:$8 sps:$4 sm:$0xff]  }
 0x1fb   : > { %3254 = vst [vmem:[#allocation2 + $0x100] sm:$0xff] %v13864_v63  ;;  %v2992_v58 = vmax.f32 %v2024_v2, %v2800_v40  ;;  %v2026_v43 = vmax.f32 %v1712_v7, 0.0  ;;  %v1714_v54 = vadd.f32 %v1713_v9, %v13219_v23  ;;  %v2490_v14 = vadd.f32 %v2489_v5, %v13219_v23  ;;  %v12000_v5 = vld [vmem:[%s16183_s5 + $0x90] ss:$8 sps:$4 sm:$0xff]   ;;  %4080 = vmatprep.subr.bf16.mxu0 %v11999_v55 }
 0x1fc   : > { %3710 = vmatmul.mubr.bf16.gmra.mrb[216].mxu0 %v3388_v51  ;;  %4549 = vmatmul.mubr.bf16.gmra.mrb[216].mxu1 %v3388_v51  ;;  %3255 = vst.msk [vmem:[#allocation2 + $0x108] sm:$0xff] %vm3173_vm2, %v3206_v44  ;;  %v2993_v59 = vmax.f32 %v2025_v47, %v2801_v16  ;;  %v2802_v60 = vmax.f32 %v2488_v49, 0.0  ;;  %v12002_v51 = vld [vmem:[%s16183_s5 + $0x94] ss:$8 sps:$4 sm:$0xff]  }
 0x1fd   : > { %10232 = vmatprep.mubr.msk.bf16.mxu0 %vm3173_vm2, %v3391_v52  ;;  %10340 = vmatprep.mubr.msk.bf16.mxu1 %vm3173_vm2, %v3391_v52  ;;  %v3128_v61 = vmax.f32 %v13824_v46, %v2992_v58  ;;  %v2027_v30 = vmax.f32 %v1714_v54, 0.0  ;;  %v2803_v18 = vmax.f32 %v2490_v14, 0.0 }
 0x1fe   : > { %v3129_v1 = vmax.f32 %v13826_v38, %v2993_v59  ;;  %v2994_v36 = vmax.f32 %v2026_v43, %v2802_v60  ;;  %v1717_v37 = vpop.f32.mrb[112].mxu0  ;;  %v2493_v53 = vpop.f32.mrb[112].mxu1  ;;  %4081 = vmatpush1.bf16.msra.mxu0 %v11997_v34  ;;  %4847 = vmatprep.subr.bf16.mxu1 %v12002_v51 }
 0x1ff   : > { %v2995_v0 = vmax.f32 %v2027_v30, %v2803_v18  ;;  %v1718_v3 = vadd.f32 %v1717_v37, %v13215_v22  ;;  %v2494_v4 = vadd.f32 %v2493_v53, %v13215_v22  ;;  %v1719_v32 = vpop.f32.mrb[113].mxu0  ;;  %v2495_v39 = vpop.f32.mrb[113].mxu1  ;;  %4848 = vmatpush1.bf16.msra.mxu1 %v12000_v5 }
 0x200   : > { %v3130_v48 = vmax.f32 %v13830_v41, %v2994_v36  ;;  %v1720_v8 = vadd.f32 %v1719_v32, %v13219_v23  ;;  %v2496_v46 = vadd.f32 %v2495_v39, %v13219_v23  ;;  %v1721_v10 = vpop.f32.mrb[114].mxu0  ;;  %v2497_v12 = vpop.f32.mrb[114].mxu1 }
 0x201   : > { %v3131_v38 = vmax.f32 %v13832_v15, %v2995_v0  ;;  %v2028_v24 = vmax.f32 %v1718_v3, 0.0  ;;  %v2804_v42 = vmax.f32 %v2494_v4, 0.0  ;;  %v1722_v57 = vadd.f32 %v1721_v10, %v13215_v22  ;;  %v1723_v26 = vpop.f32.mrb[115].mxu0  ;;  %v2499_v13 = vpop.f32.mrb[115].mxu1  ;;  %v3393_v15 = vld [vmem:[#allocation2 + $0xa8] sm:$0xff]  ;;  %v3392_v3 = vld [vmem:[#allocation2 + $0xa0] sm:$0xff] }
 0x202   : > { %v13883_v27 = vpack.c.bf16 %v3130_v48, %v3128_v61  ;;  %v2029_v50 = vmax.f32 %v1720_v8, 0.0  ;;  %v2805_v35 = vmax.f32 %v2496_v46, 0.0  ;;  %v2498_v41 = vadd.f32 %v2497_v12, %v13215_v22  ;;  %v3395_v48 = vld [vmem:[#allocation2 + $0xb8] sm:$0xff] }
 0x203   : > { %v3208_v28 = vpack.c.bf16 %v3131_v38, %v3129_v1  ;;  %v13886_v29 = vmax.f32 %v2028_v24, %v2804_v42  ;;  %v2030_v45 = vmax.f32 %v1722_v57, 0.0  ;;  %v1724_v25 = vadd.f32 %v1723_v26, %v13219_v23 }
 0x204   : > { %3720 = vmatmul.mubr.bf16.gmra.mrb[220].mxu0 %v3390_v11  ;;  %4559 = vmatmul.mubr.bf16.gmra.mrb[220].mxu1 %v3390_v11  ;;  %3256 = vst [vmem:[#allocation2 + $0x110] sm:$0xff] %v13883_v27  ;;  %v13890_v20 = vmax.f32 %v2029_v50, %v2805_v35  ;;  %v2806_v31 = vmax.f32 %v2498_v41, 0.0  ;;  %v2500_v62 = vadd.f32 %v2499_v13, %v13219_v23 }
 0x205   : > { %10233 = vmatprep.mubr.msk.bf16.mxu0 %vm3173_vm2, %v3393_v15  ;;  %10341 = vmatprep.mubr.msk.bf16.mxu1 %vm3173_vm2, %v3393_v15  ;;  %3257 = vst.msk [vmem:[#allocation2 + $0x118] sm:$0xff] %vm3173_vm2, %v3208_v28  ;;  %v2031_v6 = vmax.f32 %v1724_v25, 0.0 }
 0x206   : > { %v13902_v2 = vmax.f32 %v2030_v45, %v2806_v31  ;;  %v2807_v40 = vmax.f32 %v2500_v62, 0.0  ;;  %v1727_v7 = vpop.f32.mrb[116].mxu0  ;;  %v2503_v9 = vpop.f32.mrb[116].mxu1 }
 0x207   : > { %v1728_v44 = vadd.f32 %v1727_v7, %v13215_v22  ;;  %v2504_v47 = vadd.f32 %v2503_v9, %v13215_v22  ;;  %v1729_v16 = vpop.f32.mrb[117].mxu0  ;;  %v2505_v49 = vpop.f32.mrb[117].mxu1  ;;  %v3394_v9 = vld [vmem:[#allocation2 + $0xb0] sm:$0xff] }
 0x208   : > { %v13912_v58 = vmax.f32 %v2031_v6, %v2807_v40  ;;  %v1730_v43 = vadd.f32 %v1729_v16, %v13219_v23  ;;  %v2506_v54 = vadd.f32 %v2505_v49, %v13219_v23  ;;  %v1731_v14 = vpop.f32.mrb[118].mxu0  ;;  %v2507_v52 = vpop.f32.mrb[118].mxu1  ;;  %v3397_v16 = vld [vmem:[#allocation2 + $0xc8] sm:$0xff] }
 0x209   : > { %v2032_v59 = vmax.f32 %v1728_v44, 0.0  ;;  %v2808_v60 = vmax.f32 %v2504_v47, 0.0  ;;  %v1732_v61 = vadd.f32 %v1731_v14, %v13215_v22  ;;  %v2508_v30 = vadd.f32 %v2507_v52, %v13215_v22  ;;  %v1733_v18 = vpop.f32.mrb[119].mxu0  ;;  %v2509_v1 = vpop.f32.mrb[119].mxu1 }
 0x20a   : > { %v2033_v36 = vmax.f32 %v1730_v43, 0.0  ;;  %v2809_v37 = vmax.f32 %v2506_v54, 0.0  ;;  %v1734_v53 = vadd.f32 %v1733_v18, %v13219_v23  ;;  %v2510_v0 = vadd.f32 %v2509_v1, %v13219_v23 }
 0x20b   : > { %v13920_v4 = vmax.f32 %v2032_v59, %v2808_v60  ;;  %v2034_v32 = vmax.f32 %v1732_v61, 0.0  ;;  %v2810_v39 = vmax.f32 %v2508_v30, 0.0 }
 0x20c   : > { %3730 = vmatmul.mubr.bf16.gmra.mrb[224].mxu0 %v3392_v3  ;;  %4569 = vmatmul.mubr.bf16.gmra.mrb[224].mxu1 %v3392_v3  ;;  %v13922_v8 = vmax.f32 %v2033_v36, %v2809_v37  ;;  %v2035_v46 = vmax.f32 %v1734_v53, 0.0  ;;  %v2811_v10 = vmax.f32 %v2510_v0, 0.0 }
 0x20d   : > { %10234 = vmatprep.mubr.msk.bf16.mxu0 %vm3173_vm2, %v3395_v48  ;;  %10342 = vmatprep.mubr.msk.bf16.mxu1 %vm3173_vm2, %v3395_v48  ;;  %v13926_v12 = vmax.f32 %v2034_v32, %v2810_v39 }
 0x20e   : > { %v13928_v38 = vmax.f32 %v2035_v46, %v2811_v10  ;;  %v1737_v24 = vpop.f32.mrb[120].mxu0 }
 0x20f   : > { %v2513_v42 = vpop.f32.mrb[120].mxu1  ;;  %v1738_v57 = vadd.f32 %v1737_v24, %v13215_v22  ;;  %v1739_v13 = vpop.f32.mrb[121].mxu0 }
 0x210   : > { %v2514_v26 = vadd.f32 %v2513_v42, %v13215_v22  ;;  %v2515_v50 = vpop.f32.mrb[121].mxu1  ;;  %v1740_v35 = vadd.f32 %v1739_v13, %v13219_v23  ;;  %v1741_v11 = vpop.f32.mrb[122].mxu0 }
 0x211   : > { %v2516_v41 = vadd.f32 %v2515_v50, %v13219_v23  ;;  %v2517_v28 = vpop.f32.mrb[122].mxu1  ;;  %v2036_v45 = vmax.f32 %v1738_v57, 0.0  ;;  %v1742_v15 = vadd.f32 %v1741_v11, %v13215_v22  ;;  %v1743_v62 = vpop.f32.mrb[123].mxu0  ;;  %v3399_v11 = vld [vmem:[#allocation2 + $0xd8] sm:$0xff] }
 0x212   : > { %v2812_v25 = vmax.f32 %v2514_v26, 0.0  ;;  %v2518_v31 = vadd.f32 %v2517_v28, %v13215_v22  ;;  %v2519_v6 = vpop.f32.mrb[123].mxu1  ;;  %v2037_v34 = vmax.f32 %v1740_v35, 0.0  ;;  %v1744_v40 = vadd.f32 %v1743_v62, %v13219_v23 }
 0x213   : > { %v2813_v55 = vmax.f32 %v2516_v41, 0.0  ;;  %v2520_v7 = vadd.f32 %v2519_v6, %v13219_v23  ;;  %v2038_v44 = vmax.f32 %v1742_v15, 0.0  ;;  %v12008_v6 = vld [vmem:[%s16183_s5 + $0x144] ss:$8 sps:$4 sm:$0xff]  }
 0x214   : > { %v3004_v5 = vmax.f32 %v2036_v45, %v2812_v25  ;;  %v2814_v47 = vmax.f32 %v2518_v31, 0.0  ;;  %3740 = vmatmul.mubr.bf16.gmra.mrb[228].mxu0 %v3394_v9  ;;  %4579 = vmatmul.mubr.bf16.gmra.mrb[228].mxu1 %v3394_v9  ;;  %v2039_v51 = vmax.f32 %v1744_v40, 0.0  ;;  %v12005_v25 = vld [vmem:[%s16182_s4 + $0x144] ss:$8 sps:$4 sm:$0xff]  }
 0x215   : > { %v3005_v49 = vmax.f32 %v2037_v34, %v2813_v55  ;;  %v2815_v43 = vmax.f32 %v2520_v7, 0.0  ;;  %10235 = vmatprep.mubr.msk.bf16.mxu0 %vm3173_vm2, %v3397_v16  ;;  %10343 = vmatprep.mubr.msk.bf16.mxu1 %vm3173_vm2, %v3397_v16 }
 0x216   : > { %v3132_v54 = vmax.f32 %v13886_v29, %v3004_v5  ;;  %v3006_v14 = vmax.f32 %v2038_v44, %v2814_v47  ;;  %v1747_v60 = vpop.f32.mrb[124].mxu0  ;;  %5343 = vmatprep.subr.bf16.mxu0 %v12005_v25  ;;  %5833 = vmatprep.subr.bf16.mxu1 %v12008_v6 }
 0x217   : > { %v3133_v52 = vmax.f32 %v13890_v20, %v3005_v49  ;;  %v3007_v59 = vmax.f32 %v2039_v51, %v2815_v43  ;;  %v2523_v61 = vpop.f32.mrb[124].mxu1  ;;  %v1748_v18 = vadd.f32 %v1747_v60, %v13215_v22  ;;  %v1749_v36 = vpop.f32.mrb[125].mxu0 }
 0x218   : > { %v3134_v30 = vmax.f32 %v13902_v2, %v3006_v14  ;;  %v2524_v1 = vadd.f32 %v2523_v61, %v13215_v22  ;;  %v2525_v37 = vpop.f32.mrb[125].mxu1  ;;  %v1750_v0 = vadd.f32 %v1749_v36, %v13219_v23  ;;  %v1751_v3 = vpop.f32.mrb[126].mxu0  ;;  %v3398_v36 = vld [vmem:[#allocation2 + $0xd0] sm:$0xff] }
 0x219   : > { %v3135_v53 = vmax.f32 %v13912_v58, %v3007_v59  ;;  %v2526_v29 = vadd.f32 %v2525_v37, %v13219_v23  ;;  %v2527_v32 = vpop.f32.mrb[126].mxu1  ;;  %v2040_v39 = vmax.f32 %v1748_v18, 0.0  ;;  %v1752_v2 = vadd.f32 %v1751_v3, %v13215_v22  ;;  %v1753_v46 = vpop.f32.mrb[127].mxu0  ;;  %v3396_v58 = vld [vmem:[#allocation2 + $0xc0] sm:$0xff] }
 0x21a   : > { %v13948_v20 = vpack.c.bf16 %v3134_v30, %v3132_v54  ;;  %v2816_v48 = vmax.f32 %v2524_v1, 0.0  ;;  %v2529_v10 = vpop.f32.mrb[127].mxu1  ;;  %v2041_v42 = vmax.f32 %v1750_v0, 0.0  ;;  %v2528_v26 = vadd.f32 %v2527_v32, %v13215_v22 }
 0x21b   : > { %v3210_v24 = vpack.c.bf16 %v3135_v53, %v3133_v52  ;;  %v2817_v57 = vmax.f32 %v2526_v29, 0.0  ;;  %v2042_v50 = vmax.f32 %v1752_v2, 0.0  ;;  %v1754_v35 = vadd.f32 %v1753_v46, %v13219_v23 }
 0x21c   : > { %3258 = vst [vmem:[#allocation2 + $0x120] sm:$0xff] %v13948_v20  ;;  %v3008_v13 = vmax.f32 %v2040_v39, %v2816_v48  ;;  %v2530_v41 = vadd.f32 %v2529_v10, %v13219_v23  ;;  %3750 = vmatmul.mubr.bf16.gmra.mrb[232].mxu0 %v3396_v58  ;;  %4589 = vmatmul.mubr.bf16.gmra.mrb[232].mxu1 %v3396_v58  ;;  %v2818_v45 = vmax.f32 %v2528_v26, 0.0 }
 0x21d   : > { %3259 = vst.msk [vmem:[#allocation2 + $0x128] sm:$0xff] %vm3173_vm2, %v3210_v24  ;;  %v3009_v28 = vmax.f32 %v2041_v42, %v2817_v57  ;;  %10236 = vmatprep.mubr.msk.bf16.mxu0 %vm3173_vm2, %v3399_v11  ;;  %10344 = vmatprep.mubr.msk.bf16.mxu1 %vm3173_vm2, %v3399_v11  ;;  %v2043_v31 = vmax.f32 %v1754_v35, 0.0 }
 0x21e   : > { %v3136_v15 = vmax.f32 %v13920_v4, %v3008_v13  ;;  %v2819_v62 = vmax.f32 %v2530_v41, 0.0  ;;  %v3010_v55 = vmax.f32 %v2042_v50, %v2818_v45  ;;  %v1757_v40 = vpop.f32.mrb[128].mxu0 }
 0x21f   : > { %v3137_v34 = vmax.f32 %v13922_v8, %v3009_v28  ;;  %v2533_v7 = vpop.f32.mrb[128].mxu1  ;;  %v1758_v5 = vadd.f32 %v1757_v40, %v13215_v22  ;;  %v1759_v47 = vpop.f32.mrb[129].mxu0 }
 0x220   : > { %v3011_v9 = vmax.f32 %v2043_v31, %v2819_v62  ;;  %v2534_v44 = vadd.f32 %v2533_v7, %v13215_v22  ;;  %v2535_v16 = vpop.f32.mrb[129].mxu1  ;;  %v3138_v4 = vmax.f32 %v13926_v12, %v3010_v55  ;;  %v1760_v49 = vadd.f32 %v1759_v47, %v13219_v23  ;;  %v1761_v43 = vpop.f32.mrb[130].mxu0 }
 0x221   : > { %v2536_v51 = vadd.f32 %v2535_v16, %v13219_v23  ;;  %v2537_v8 = vpop.f32.mrb[130].mxu1  ;;  %v2044_v14 = vmax.f32 %v1758_v5, 0.0  ;;  %v1762_v59 = vadd.f32 %v1761_v43, %v13215_v22  ;;  %v1763_v60 = vpop.f32.mrb[131].mxu0 }
 0x222   : > { %v3139_v54 = vmax.f32 %v13928_v38, %v3011_v9  ;;  %v2820_v52 = vmax.f32 %v2534_v44, 0.0  ;;  %v2539_v61 = vpop.f32.mrb[131].mxu1  ;;  %v13973_v30 = vpack.c.bf16 %v3138_v4, %v3136_v15  ;;  %v2045_v18 = vmax.f32 %v1760_v49, 0.0  ;;  %v3401_v38 = vld [vmem:[#allocation2 + $0xe8] sm:$0xff]  ;;  %v3403_v44 = vld [vmem:[#allocation2 + $0xf8] sm:$0xff] }
 0x223   : > { %v2821_v1 = vmax.f32 %v2536_v51, 0.0  ;;  %v2538_v12 = vadd.f32 %v2537_v8, %v13215_v22  ;;  %v2046_v0 = vmax.f32 %v1762_v59, 0.0  ;;  %v1764_v29 = vadd.f32 %v1763_v60, %v13219_v23 }
 0x224   : > { %v3212_v37 = vpack.c.bf16 %v3139_v54, %v3137_v34  ;;  %v13976_v53 = vmax.f32 %v2044_v14, %v2820_v52  ;;  %3760 = vmatmul.mubr.bf16.gmra.mrb[236].mxu0 %v3398_v36  ;;  %4599 = vmatmul.mubr.bf16.gmra.mrb[236].mxu1 %v3398_v36  ;;  %3260 = vst [vmem:[#allocation2 + $0x130] sm:$0xff] %v13973_v30 }
 0x225   : > { %v13980_v3 = vmax.f32 %v2045_v18, %v2821_v1  ;;  %v2822_v32 = vmax.f32 %v2538_v12, 0.0  ;;  %v2540_v39 = vadd.f32 %v2539_v61, %v13219_v23  ;;  %10237 = vmatprep.mubr.msk.bf16.mxu0 %vm3173_vm2, %v3401_v38  ;;  %10345 = vmatprep.mubr.msk.bf16.mxu1 %vm3173_vm2, %v3401_v38  ;;  %v2047_v48 = vmax.f32 %v1764_v29, 0.0 }
 0x226   : > { %3261 = vst.msk [vmem:[#allocation2 + $0x138] sm:$0xff] %vm3173_vm2, %v3212_v37  ;;  %v1767_v10 = vpop.f32.mrb[132].mxu0 }
 0x227   : > { %v13986_v2 = vmax.f32 %v2046_v0, %v2822_v32  ;;  %v2823_v46 = vmax.f32 %v2540_v39, 0.0  ;;  %v2543_v24 = vpop.f32.mrb[132].mxu1  ;;  %v1768_v42 = vadd.f32 %v1767_v10, %v13215_v22  ;;  %v1769_v26 = vpop.f32.mrb[133].mxu0 }
 0x228   : > { %v2544_v57 = vadd.f32 %v2543_v24, %v13215_v22  ;;  %v2545_v58 = vpop.f32.mrb[133].mxu1  ;;  %v1770_v50 = vadd.f32 %v1769_v26, %v13219_v23  ;;  %v1771_v41 = vpop.f32.mrb[134].mxu0 }
 0x229   : > { %v13990_v13 = vmax.f32 %v2047_v48, %v2823_v46  ;;  %v2546_v35 = vadd.f32 %v2545_v58, %v13219_v23  ;;  %v2547_v11 = vpop.f32.mrb[134].mxu1  ;;  %v2048_v28 = vmax.f32 %v1768_v42, 0.0  ;;  %v1772_v25 = vadd.f32 %v1771_v41, %v13215_v22  ;;  %v1773_v31 = vpop.f32.mrb[135].mxu0  ;;  %v3405_v42 = vld [vmem:[#allocation2 + $0x108] sm:$0xff] }
 0x22a   : > { %v2824_v45 = vmax.f32 %v2544_v57, 0.0  ;;  %v2548_v15 = vadd.f32 %v2547_v11, %v13215_v22  ;;  %v2549_v62 = vpop.f32.mrb[135].mxu1  ;;  %v2049_v6 = vmax.f32 %v1770_v50, 0.0  ;;  %v1774_v55 = vadd.f32 %v1773_v31, %v13219_v23 }
 0x22b   : > { %v2825_v34 = vmax.f32 %v2546_v35, 0.0  ;;  %v2550_v40 = vadd.f32 %v2549_v62, %v13219_v23  ;;  %v2050_v9 = vmax.f32 %v1772_v25, 0.0 }
 0x22c   : > { %v13998_v7 = vmax.f32 %v2048_v28, %v2824_v45  ;;  %v2826_v5 = vmax.f32 %v2548_v15, 0.0  ;;  %3770 = vmatmul.mubr.bf16.gmra.mrb[240].mxu0 %v13741_v56  ;;  %4609 = vmatmul.mubr.bf16.gmra.mrb[240].mxu1 %v13741_v56  ;;  %v2051_v16 = vmax.f32 %v1774_v55, 0.0 }
 0x22d   : > { %v14002_v47 = vmax.f32 %v2049_v6, %v2825_v34  ;;  %v2827_v4 = vmax.f32 %v2550_v40, 0.0  ;;  %10238 = vmatprep.mubr.msk.bf16.mxu0 %vm3173_vm2, %v3403_v44  ;;  %10346 = vmatprep.mubr.msk.bf16.mxu1 %vm3173_vm2, %v3403_v44 }
 0x22e   : > { %v14006_v49 = vmax.f32 %v2050_v9, %v2826_v5  ;;  %v1777_v43 = vpop.f32.mrb[136].mxu0 }
 0x22f   : > { %v14008_v51 = vmax.f32 %v2051_v16, %v2827_v4  ;;  %v2553_v8 = vpop.f32.mrb[136].mxu1  ;;  %v1778_v54 = vadd.f32 %v1777_v43, %v13215_v22  ;;  %v1779_v56 = vpop.f32.mrb[137].mxu0 }
 0x230   : > { %v2554_v14 = vadd.f32 %v2553_v8, %v13215_v22  ;;  %v2555_v52 = vpop.f32.mrb[137].mxu1  ;;  %v1780_v59 = vadd.f32 %v1779_v56, %v13219_v23  ;;  %v1781_v61 = vpop.f32.mrb[138].mxu0 }
 0x231   : > { %v2556_v60 = vadd.f32 %v2555_v52, %v13219_v23  ;;  %v2557_v18 = vpop.f32.mrb[138].mxu1  ;;  %v2052_v1 = vmax.f32 %v1778_v54, 0.0  ;;  %v1782_v36 = vadd.f32 %v1781_v61, %v13215_v22  ;;  %v1783_v0 = vpop.f32.mrb[139].mxu0 }
 0x232   : > { %v2828_v12 = vmax.f32 %v2554_v14, 0.0  ;;  %v2558_v37 = vadd.f32 %v2557_v18, %v13215_v22  ;;  %v2559_v29 = vpop.f32.mrb[139].mxu1  ;;  %v2053_v38 = vmax.f32 %v1780_v59, 0.0  ;;  %v1784_v39 = vadd.f32 %v1783_v0, %v13219_v23  ;;  %v3407_v59 = vld [vmem:[#allocation2 + $0x118] sm:$0xff] }
 0x233   : > { %v2829_v32 = vmax.f32 %v2556_v60, 0.0  ;;  %v2560_v48 = vadd.f32 %v2559_v29, %v13219_v23  ;;  %v2054_v10 = vmax.f32 %v1782_v36, 0.0 }
 0x234   : > { %v3020_v46 = vmax.f32 %v2052_v1, %v2828_v12  ;;  %v2830_v24 = vmax.f32 %v2558_v37, 0.0  ;;  %3780 = vmatmul.mubr.bf16.gmra.mrb[244].mxu0 %v13787_v33  ;;  %4619 = vmatmul.mubr.bf16.gmra.mrb[244].mxu1 %v13787_v33  ;;  %v2055_v26 = vmax.f32 %v1784_v39, 0.0 }
 0x235   : > { %v3021_v57 = vmax.f32 %v2053_v38, %v2829_v32  ;;  %v2831_v58 = vmax.f32 %v2560_v48, 0.0  ;;  %10239 = vmatprep.mubr.msk.bf16.mxu0 %vm3173_vm2, %v3405_v42  ;;  %10347 = vmatprep.mubr.msk.bf16.mxu1 %vm3173_vm2, %v3405_v42 }
 0x236   : > { %v3140_v50 = vmax.f32 %v13976_v53, %v3020_v46  ;;  %v3022_v35 = vmax.f32 %v2054_v10, %v2830_v24  ;;  %v1787_v28 = vpop.f32.mrb[140].mxu0 }
 0x237   : > { %v3141_v41 = vmax.f32 %v13980_v3, %v3021_v57  ;;  %v3023_v11 = vmax.f32 %v2055_v26, %v2831_v58  ;;  %v2563_v45 = vpop.f32.mrb[140].mxu1  ;;  %v1788_v33 = vadd.f32 %v1787_v28, %v13215_v22  ;;  %v1789_v31 = vpop.f32.mrb[141].mxu0 }
 0x238   : > { %v3142_v25 = vmax.f32 %v13986_v2, %v3022_v35  ;;  %v2564_v15 = vadd.f32 %v2563_v45, %v13215_v22  ;;  %v2565_v62 = vpop.f32.mrb[141].mxu1  ;;  %v1790_v34 = vadd.f32 %v1789_v31, %v13219_v23  ;;  %v1791_v55 = vpop.f32.mrb[142].mxu0 }
 0x239   : > { %v3143_v6 = vmax.f32 %v13990_v13, %v3023_v11  ;;  %v2566_v53 = vadd.f32 %v2565_v62, %v13219_v23  ;;  %v2567_v40 = vpop.f32.mrb[142].mxu1  ;;  %v2056_v9 = vmax.f32 %v1788_v33, 0.0  ;;  %v1792_v2 = vadd.f32 %v1791_v55, %v13215_v22  ;;  %v1793_v44 = vpop.f32.mrb[143].mxu0 }
 0x23a   : > { %v14030_v3 = vpack.c.bf16 %v3142_v25, %v3140_v50  ;;  %v2832_v5 = vmax.f32 %v2564_v15, 0.0  ;;  %v2569_v16 = vpop.f32.mrb[143].mxu1  ;;  %v2057_v43 = vmax.f32 %v1790_v34, 0.0  ;;  %v2568_v54 = vadd.f32 %v2567_v40, %v13215_v22 }
 0x23b   : > { %v3214_v4 = vpack.c.bf16 %v3143_v6, %v3141_v41  ;;  %v2833_v8 = vmax.f32 %v2566_v53, 0.0  ;;  %v2058_v14 = vmax.f32 %v1792_v2, 0.0  ;;  %v1794_v56 = vadd.f32 %v1793_v44, %v13219_v23 }
 0x23c   : > { %3262 = vst [vmem:[#allocation2 + $0x140] sm:$0xff] %v14030_v3  ;;  %v3024_v13 = vmax.f32 %v2056_v9, %v2832_v5  ;;  %v2570_v52 = vadd.f32 %v2569_v16, %v13219_v23  ;;  %3790 = vmatmul.mubr.bf16.gmra.mrb[248].mxu0 %v13864_v63  ;;  %4629 = vmatmul.mubr.bf16.gmra.mrb[248].mxu1 %v13864_v63  ;;  %v2834_v61 = vmax.f32 %v2568_v54, 0.0 }
 0x23d   : > { %3263 = vst.msk [vmem:[#allocation2 + $0x148] sm:$0xff] %vm3173_vm2, %v3214_v4  ;;  %v3025_v60 = vmax.f32 %v2057_v43, %v2833_v8  ;;  %10240 = vmatprep.mubr.msk.bf16.mxu0 %vm3173_vm2, %v3407_v59  ;;  %10348 = vmatprep.mubr.msk.bf16.mxu1 %vm3173_vm2, %v3407_v59  ;;  %v2059_v1 = vmax.f32 %v1794_v56, 0.0 }
 0x23e   : > { %v3144_v18 = vmax.f32 %v13998_v7, %v3024_v13  ;;  %v2835_v12 = vmax.f32 %v2570_v52, 0.0  ;;  %v3026_v37 = vmax.f32 %v2058_v14, %v2834_v61  ;;  %v1797_v0 = vpop.f32.mrb[144].mxu0 }
 0x23f   : > { %v3145_v36 = vmax.f32 %v14002_v47, %v3025_v60  ;;  %v2573_v29 = vpop.f32.mrb[144].mxu1  ;;  %v1798_v63 = vadd.f32 %v1797_v0, %v13215_v22  ;;  %v1799_v39 = vpop.f32.mrb[145].mxu0 }
 0x240   : > { %v3027_v38 = vmax.f32 %v2059_v1, %v2835_v12  ;;  %v2574_v32 = vadd.f32 %v2573_v29, %v13215_v22  ;;  %v2575_v48 = vpop.f32.mrb[145].mxu1  ;;  %v3146_v46 = vmax.f32 %v14006_v49, %v3026_v37  ;;  %v1800_v10 = vadd.f32 %v1799_v39, %v13219_v23  ;;  %v1801_v24 = vpop.f32.mrb[146].mxu0  ;;  %v3411_v29 = vld [vmem:[#allocation2 + $0x138] sm:$0xff] }
 0x241   : > { %v2576_v7 = vadd.f32 %v2575_v48, %v13219_v23  ;;  %v2577_v42 = vpop.f32.mrb[146].mxu1  ;;  %v2060_v57 = vmax.f32 %v1798_v63, 0.0  ;;  %v1802_v58 = vadd.f32 %v1801_v24, %v13215_v22  ;;  %v1803_v50 = vpop.f32.mrb[147].mxu0 }
 0x242   : > { %v3147_v47 = vmax.f32 %v14008_v51, %v3027_v38  ;;  %v2836_v26 = vmax.f32 %v2574_v32, 0.0  ;;  %v2579_v35 = vpop.f32.mrb[147].mxu1  ;;  %v14051_v41 = vpack.c.bf16 %v3146_v46, %v3144_v18  ;;  %v2061_v11 = vmax.f32 %v1800_v10, 0.0  ;;  %v3409_v51 = vld [vmem:[#allocation2 + $0x128] sm:$0xff] }
 0x243   : > { %v2837_v28 = vmax.f32 %v2576_v7, 0.0  ;;  %v2578_v49 = vadd.f32 %v2577_v42, %v13215_v22  ;;  %v2062_v33 = vmax.f32 %v1802_v58, 0.0  ;;  %v1804_v15 = vadd.f32 %v1803_v50, %v13219_v23 }
 0x244   : > { %v3216_v45 = vpack.c.bf16 %v3147_v47, %v3145_v36  ;;  %v14054_v25 = vmax.f32 %v2060_v57, %v2836_v26  ;;  %3800 = vmatmul.mubr.bf16.gmra.mrb[252].mxu0 %v13883_v27  ;;  %4639 = vmatmul.mubr.bf16.gmra.mrb[252].mxu1 %v13883_v27  ;;  %3264 = vst [vmem:[#allocation2 + $0x150] sm:$0xff] %v14051_v41 }
 0x245   : > { %v14060_v31 = vmax.f32 %v2061_v11, %v2837_v28  ;;  %v2838_v62 = vmax.f32 %v2578_v49, 0.0  ;;  %v2580_v6 = vadd.f32 %v2579_v35, %v13219_v23  ;;  %10241 = vmatprep.mubr.msk.bf16.mxu0 %vm3173_vm2, %v3409_v51  ;;  %10349 = vmatprep.mubr.msk.bf16.mxu1 %vm3173_vm2, %v3409_v51  ;;  %v2063_v34 = vmax.f32 %v1804_v15, 0.0 }
 0x246   : > { %3265 = vst.msk [vmem:[#allocation2 + $0x158] sm:$0xff] %vm3173_vm2, %v3216_v45  ;;  %v1807_v40 = vpop.f32.mrb[148].mxu0 }
 0x247   : > { %v14066_v53 = vmax.f32 %v2062_v33, %v2838_v62  ;;  %v2839_v55 = vmax.f32 %v2580_v6, 0.0  ;;  %v2583_v27 = vpop.f32.mrb[148].mxu1  ;;  %v1808_v9 = vadd.f32 %v1807_v40, %v13215_v22  ;;  %v1809_v2 = vpop.f32.mrb[149].mxu0  ;;  %v3413_v40 = vld [vmem:[#allocation2 + $0x148] sm:$0xff] }
 0x248   : > { %v2584_v5 = vadd.f32 %v2583_v27, %v13215_v22  ;;  %v2585_v44 = vpop.f32.mrb[149].mxu1  ;;  %v1810_v4 = vadd.f32 %v1809_v2, %v13219_v23  ;;  %v1811_v8 = vpop.f32.mrb[150].mxu0 }
 0x249   : > { %v14070_v16 = vmax.f32 %v2063_v34, %v2839_v55  ;;  %v2586_v43 = vadd.f32 %v2585_v44, %v13219_v23  ;;  %v2587_v54 = vpop.f32.mrb[150].mxu1  ;;  %v2064_v13 = vmax.f32 %v1808_v9, 0.0  ;;  %v1812_v56 = vadd.f32 %v1811_v8, %v13215_v22  ;;  %v1813_v59 = vpop.f32.mrb[151].mxu0 }
 0x24a   : > { %v2840_v14 = vmax.f32 %v2584_v5, 0.0  ;;  %v2588_v52 = vadd.f32 %v2587_v54, %v13215_v22  ;;  %v2589_v60 = vpop.f32.mrb[151].mxu1  ;;  %v2065_v61 = vmax.f32 %v1810_v4, 0.0  ;;  %v1814_v1 = vadd.f32 %v1813_v59, %v13219_v23 }
 0x24b   : > { %v2841_v18 = vmax.f32 %v2586_v43, 0.0  ;;  %v2590_v12 = vadd.f32 %v2589_v60, %v13219_v23  ;;  %v2066_v37 = vmax.f32 %v1812_v56, 0.0 }
 0x24c   : > { %v14078_v36 = vmax.f32 %v2064_v13, %v2840_v14  ;;  %v2842_v0 = vmax.f32 %v2588_v52, 0.0  ;;  %3810 = vmatmul.mubr.bf16.gmra.mrb[0].mxu0 %v13948_v20  ;;  %4649 = vmatmul.mubr.bf16.gmra.mrb[0].mxu1 %v13948_v20  ;;  %v2067_v63 = vmax.f32 %v1814_v1, 0.0 }
 0x24d   : > { %v14082_v38 = vmax.f32 %v2065_v61, %v2841_v18  ;;  %v2843_v32 = vmax.f32 %v2590_v12, 0.0  ;;  %10242 = vmatprep.mubr.msk.bf16.mxu0 %vm3173_vm2, %v3411_v29  ;;  %10350 = vmatprep.mubr.msk.bf16.mxu1 %vm3173_vm2, %v3411_v29 }
 0x24e   : > { %v14086_v39 = vmax.f32 %v2066_v37, %v2842_v0  ;;  %v1817_v46 = vpop.f32.mrb[152].mxu0 }
 0x24f   : > { %v14088_v48 = vmax.f32 %v2067_v63, %v2843_v32  ;;  %v2593_v10 = vpop.f32.mrb[152].mxu1  ;;  %v1818_v7 = vadd.f32 %v1817_v46, %v13215_v22  ;;  %v1819_v20 = vpop.f32.mrb[153].mxu0 }
 0x250   : > { %v2594_v24 = vadd.f32 %v2593_v10, %v13215_v22  ;;  %v2595_v42 = vpop.f32.mrb[153].mxu1  ;;  %v1820_v47 = vadd.f32 %v1819_v20, %v13219_v23  ;;  %v1821_v26 = vpop.f32.mrb[154].mxu0  ;;  %v3415_v20 = vld [vmem:[#allocation2 + $0x158] sm:$0xff] }
 0x251   : > { %v2596_v57 = vadd.f32 %v2595_v42, %v13219_v23  ;;  %v2597_v58 = vpop.f32.mrb[154].mxu1  ;;  %v2068_v50 = vmax.f32 %v1818_v7, 0.0  ;;  %v1822_v11 = vadd.f32 %v1821_v26, %v13215_v22  ;;  %v1823_v49 = vpop.f32.mrb[155].mxu0 }
 0x252   : > { %v2844_v35 = vmax.f32 %v2594_v24, 0.0  ;;  %v2598_v28 = vadd.f32 %v2597_v58, %v13215_v22  ;;  %v2599_v45 = vpop.f32.mrb[155].mxu1  ;;  %v2069_v33 = vmax.f32 %v1820_v47, 0.0  ;;  %v1824_v51 = vadd.f32 %v1823_v49, %v13219_v23 }
 0x253   : > { %v2845_v15 = vmax.f32 %v2596_v57, 0.0  ;;  %v2600_v62 = vadd.f32 %v2599_v45, %v13219_v23  ;;  %v2070_v34 = vmax.f32 %v1822_v11, 0.0 }
 0x254   : > { %v3036_v6 = vmax.f32 %v2068_v50, %v2844_v35  ;;  %v2846_v55 = vmax.f32 %v2598_v28, 0.0  ;;  %3820 = vmatmul.mubr.bf16.gmra.mrb[4].mxu0 %v13973_v30  ;;  %4659 = vmatmul.mubr.bf16.gmra.mrb[4].mxu1 %v13973_v30  ;;  %v2071_v9 = vmax.f32 %v1824_v51, 0.0 }
 0x255   : > { %v3037_v27 = vmax.f32 %v2069_v33, %v2845_v15  ;;  %v2847_v5 = vmax.f32 %v2600_v62, 0.0  ;;  %10243 = vmatprep.mubr.msk.bf16.mxu0 %vm3173_vm2, %v3413_v40  ;;  %10351 = vmatprep.mubr.msk.bf16.mxu1 %vm3173_vm2, %v3413_v40 }
 0x256   : > { %v3148_v2 = vmax.f32 %v14054_v25, %v3036_v6  ;;  %v3038_v44 = vmax.f32 %v2070_v34, %v2846_v55  ;;  %v1827_v8 = vpop.f32.mrb[156].mxu0 }
 0x257   : > { %v3149_v4 = vmax.f32 %v14060_v31, %v3037_v27  ;;  %v3039_v43 = vmax.f32 %v2071_v9, %v2847_v5  ;;  %v2603_v54 = vpop.f32.mrb[156].mxu1  ;;  %v1828_v30 = vadd.f32 %v1827_v8, %v13215_v22  ;;  %v1829_v56 = vpop.f32.mrb[157].mxu0 }
 0x258   : > { %v3150_v13 = vmax.f32 %v14066_v53, %v3038_v44  ;;  %v2604_v14 = vadd.f32 %v2603_v54, %v13215_v22  ;;  %v2605_v52 = vpop.f32.mrb[157].mxu1  ;;  %v1830_v60 = vadd.f32 %v1829_v56, %v13219_v23  ;;  %v1831_v61 = vpop.f32.mrb[158].mxu0 }
 0x259   : > { %v3151_v59 = vmax.f32 %v14070_v16, %v3039_v43  ;;  %v2606_v25 = vadd.f32 %v2605_v52, %v13219_v23  ;;  %v2607_v18 = vpop.f32.mrb[158].mxu1  ;;  %v2072_v1 = vmax.f32 %v1828_v30, 0.0  ;;  %v1832_v53 = vadd.f32 %v1831_v61, %v13215_v22  ;;  %v1833_v37 = vpop.f32.mrb[159].mxu0 }
 0x25a   : > { %v14110_v31 = vpack.c.bf16 %v3150_v13, %v3148_v2  ;;  %v2848_v12 = vmax.f32 %v2604_v14, 0.0  ;;  %v2609_v0 = vpop.f32.mrb[159].mxu1  ;;  %v2073_v63 = vmax.f32 %v1830_v60, 0.0  ;;  %v2608_v46 = vadd.f32 %v2607_v18, %v13215_v22 }
 0x25b   : > { %v3218_v29 = vpack.c.bf16 %v3151_v59, %v3149_v4  ;;  %v2849_v32 = vmax.f32 %v2606_v25, 0.0  ;;  %v2074_v10 = vmax.f32 %v1832_v53, 0.0  ;;  %v1834_v7 = vadd.f32 %v1833_v37, %v13219_v23 }
 0x25c   : > { %3266 = vst [vmem:[#allocation2 + $0x160] sm:$0xff] %v14110_v31  ;;  %v3040_v16 = vmax.f32 %v2072_v1, %v2848_v12  ;;  %v2610_v24 = vadd.f32 %v2609_v0, %v13219_v23  ;;  %3830 = vmatmul.mubr.bf16.gmra.mrb[8].mxu0 %v14030_v3  ;;  %4669 = vmatmul.mubr.bf16.gmra.mrb[8].mxu1 %v14030_v3  ;;  %v2850_v47 = vmax.f32 %v2608_v46, 0.0 }
 0x25d   : > { %3267 = vst.msk [vmem:[#allocation2 + $0x168] sm:$0xff] %vm3173_vm2, %v3218_v29  ;;  %v3041_v42 = vmax.f32 %v2073_v63, %v2849_v32  ;;  %10244 = vmatprep.mubr.msk.bf16.mxu0 %vm3173_vm2, %v3415_v20  ;;  %10352 = vmatprep.mubr.msk.bf16.mxu1 %vm3173_vm2, %v3415_v20  ;;  %v2075_v26 = vmax.f32 %v1834_v7, 0.0 }
 0x25e   : > { %v3152_v57 = vmax.f32 %v14078_v36, %v3040_v16  ;;  %v2851_v58 = vmax.f32 %v2610_v24, 0.0  ;;  %v3042_v35 = vmax.f32 %v2074_v10, %v2850_v47  ;;  %v1837_v11 = vpop.f32.mrb[160].mxu0 }
 0x25f   : > { %v3153_v50 = vmax.f32 %v14082_v38, %v3041_v42  ;;  %v2613_v28 = vpop.f32.mrb[160].mxu1  ;;  %v1838_v3 = vadd.f32 %v1837_v11, %v13215_v22  ;;  %v1839_v33 = vpop.f32.mrb[161].mxu0 }
 0x260   : > { %v3043_v49 = vmax.f32 %v2075_v26, %v2851_v58  ;;  %v2614_v45 = vadd.f32 %v2613_v28, %v13215_v22  ;;  %v2615_v15 = vpop.f32.mrb[161].mxu1  ;;  %v3154_v51 = vmax.f32 %v14086_v39, %v3042_v35  ;;  %v1840_v62 = vadd.f32 %v1839_v33, %v13219_v23  ;;  %v1841_v6 = vpop.f32.mrb[162].mxu0 }
 0x261   : > { %v2616_v36 = vadd.f32 %v2615_v15, %v13219_v23  ;;  %v2617_v34 = vpop.f32.mrb[162].mxu1  ;;  %v2076_v55 = vmax.f32 %v1838_v3, 0.0  ;;  %v1842_v27 = vadd.f32 %v1841_v6, %v13215_v22  ;;  %v1843_v9 = vpop.f32.mrb[163].mxu0 }
 0x262   : > { %v3155_v38 = vmax.f32 %v14088_v48, %v3043_v49  ;;  %v2852_v40 = vmax.f32 %v2614_v45, 0.0  ;;  %v2619_v5 = vpop.f32.mrb[163].mxu1  ;;  %v14131_v2 = vpack.c.bf16 %v3154_v51, %v3152_v57  ;;  %v2077_v44 = vmax.f32 %v1840_v62, 0.0 }
 0x263   : > { %v2853_v4 = vmax.f32 %v2616_v36, 0.0  ;;  %v2618_v39 = vadd.f32 %v2617_v34, %v13215_v22  ;;  %v2078_v54 = vmax.f32 %v1842_v27, 0.0  ;;  %v1844_v13 = vadd.f32 %v1843_v9, %v13219_v23 }
 0x264   : > { %v3220_v43 = vpack.c.bf16 %v3155_v38, %v3153_v50  ;;  %v14134_v8 = vmax.f32 %v2076_v55, %v2852_v40  ;;  %3840 = vmatmul.mubr.bf16.gmra.mrb[12].mxu0 %v14051_v41  ;;  %4679 = vmatmul.mubr.bf16.gmra.mrb[12].mxu1 %v14051_v41  ;;  %v3417_v48 = vld [vmem:[#allocation2 + $0x168] sm:$0xff]  ;;  %3268 = vst [vmem:[#allocation2 + $0x170] sm:$0xff] %v14131_v2 }
 0x265   : > { %v14140_v30 = vmax.f32 %v2077_v44, %v2853_v4  ;;  %v2854_v14 = vmax.f32 %v2618_v39, 0.0  ;;  %v2620_v56 = vadd.f32 %v2619_v5, %v13219_v23  ;;  %10245 = vmatprep.mubr.msk.bf16.mxu0 %vm3173_vm2, %v3417_v48  ;;  %10353 = vmatprep.mubr.msk.bf16.mxu1 %vm3173_vm2, %v3417_v48  ;;  %v2079_v52 = vmax.f32 %v1844_v13, 0.0 }
 0x266   : > { %3269 = vst.msk [vmem:[#allocation2 + $0x178] sm:$0xff] %vm3173_vm2, %v3220_v43  ;;  %v1847_v25 = vpop.f32.mrb[164].mxu0 }
 0x267   : > { %v14146_v59 = vmax.f32 %v2078_v54, %v2854_v14  ;;  %v2855_v60 = vmax.f32 %v2620_v56, 0.0  ;;  %v2623_v41 = vpop.f32.mrb[164].mxu1  ;;  %v1848_v61 = vadd.f32 %v1847_v25, %v13215_v22  ;;  %v1849_v1 = vpop.f32.mrb[165].mxu0 }
 0x268   : > { %v2624_v18 = vadd.f32 %v2623_v41, %v13215_v22  ;;  %v2625_v12 = vpop.f32.mrb[165].mxu1  ;;  %v1850_v37 = vadd.f32 %v1849_v1, %v13219_v23  ;;  %v1851_v29 = vpop.f32.mrb[166].mxu0 }
 0x269   : > { %v14150_v53 = vmax.f32 %v2079_v52, %v2855_v60  ;;  %v2626_v0 = vadd.f32 %v2625_v12, %v13219_v23  ;;  %v2627_v63 = vpop.f32.mrb[166].mxu1  ;;  %v2080_v32 = vmax.f32 %v1848_v61, 0.0  ;;  %v1852_v16 = vadd.f32 %v1851_v29, %v13215_v22  ;;  %v1853_v7 = vpop.f32.mrb[167].mxu0 }
 0x26a   : > { %v2856_v46 = vmax.f32 %v2624_v18, 0.0  ;;  %v2628_v10 = vadd.f32 %v2627_v63, %v13215_v22  ;;  %v2629_v24 = vpop.f32.mrb[167].mxu1  ;;  %v2081_v20 = vmax.f32 %v1850_v37, 0.0  ;;  %v1854_v47 = vadd.f32 %v1853_v7, %v13219_v23 }
 0x26b   : > { %v2857_v42 = vmax.f32 %v2626_v0, 0.0  ;;  %v2630_v57 = vadd.f32 %v2629_v24, %v13219_v23  ;;  %v2082_v58 = vmax.f32 %v1852_v16, 0.0 }
 0x26c   : > { %v14158_v26 = vmax.f32 %v2080_v32, %v2856_v46  ;;  %v2858_v50 = vmax.f32 %v2628_v10, 0.0  ;;  %3850 = vmatmul.mubr.bf16.gmra.mrb[16].mxu0 %v14110_v31  ;;  %4689 = vmatmul.mubr.bf16.gmra.mrb[16].mxu1 %v14110_v31  ;;  %v2083_v11 = vmax.f32 %v1854_v47, 0.0 }
 0x26d   : > { %v14162_v35 = vmax.f32 %v2081_v20, %v2857_v42  ;;  %v2859_v28 = vmax.f32 %v2630_v57, 0.0  ;;  %v14164_v49 = vld [vmem:[#allocation2 + $0x178] sm:$0xff] }
 0x26e   : > { %v14166_v3 = vmax.f32 %v2082_v58, %v2858_v50  ;;  %10246 = vmatprep.mubr.msk.bf16.mxu0 %vm3173_vm2, %v14164_v49  ;;  %10354 = vmatprep.mubr.msk.bf16.mxu1 %vm3173_vm2, %v14164_v49  ;;  %v1857_v33 = vpop.f32.mrb[168].mxu0 }
 0x26f   : > { %v14172_v45 = vmax.f32 %v2083_v11, %v2859_v28  ;;  %v2633_v15 = vpop.f32.mrb[168].mxu1  ;;  %v1858_v31 = vadd.f32 %v1857_v33, %v13215_v22  ;;  %v1859_v62 = vpop.f32.mrb[169].mxu0 }
 0x270   : > { %v2634_v51 = vadd.f32 %v2633_v15, %v13215_v22  ;;  %v2635_v36 = vpop.f32.mrb[169].mxu1  ;;  %v1860_v6 = vadd.f32 %v1859_v62, %v13219_v23  ;;  %v1861_v38 = vpop.f32.mrb[170].mxu0 }
 0x271   : > { %v2636_v34 = vadd.f32 %v2635_v36, %v13219_v23  ;;  %v2637_v55 = vpop.f32.mrb[170].mxu1  ;;  %v2084_v40 = vmax.f32 %v1858_v31, 0.0  ;;  %v1862_v9 = vadd.f32 %v1861_v38, %v13215_v22  ;;  %v1863_v44 = vpop.f32.mrb[171].mxu0 }
 0x272   : > { %v2860_v27 = vmax.f32 %v2634_v51, 0.0  ;;  %v2638_v5 = vadd.f32 %v2637_v55, %v13215_v22  ;;  %v2639_v4 = vpop.f32.mrb[171].mxu1  ;;  %v2085_v39 = vmax.f32 %v1860_v6, 0.0  ;;  %v1864_v54 = vadd.f32 %v1863_v44, %v13219_v23 }
 0x273   : > { %v2861_v43 = vmax.f32 %v2636_v34, 0.0  ;;  %v2640_v13 = vadd.f32 %v2639_v4, %v13219_v23  ;;  %v2086_v14 = vmax.f32 %v1862_v9, 0.0 }
 0x274   : > { %v3052_v48 = vmax.f32 %v2084_v40, %v2860_v27  ;;  %v2862_v56 = vmax.f32 %v2638_v5, 0.0  ;;  %3860 = vmatmul.mubr.bf16.gmra.mrb[20].mxu0 %v14131_v2  ;;  %4699 = vmatmul.mubr.bf16.gmra.mrb[20].mxu1 %v14131_v2  ;;  %v2087_v60 = vmax.f32 %v1864_v54, 0.0 }
 0x275   : > { %v3053_v52 = vmax.f32 %v2085_v39, %v2861_v43  ;;  %v2863_v25 = vmax.f32 %v2640_v13, 0.0 }
 0x276   : > { %v3156_v41 = vmax.f32 %v14134_v8, %v3052_v48  ;;  %v3054_v61 = vmax.f32 %v2086_v14, %v2862_v56  ;;  %v1867_v12 = vpop.f32.mrb[172].mxu0 }
 0x277   : > { %v3157_v18 = vmax.f32 %v14140_v30, %v3053_v52  ;;  %v3055_v1 = vmax.f32 %v2087_v60, %v2863_v25  ;;  %v2643_v37 = vpop.f32.mrb[172].mxu1  ;;  %v1868_v29 = vadd.f32 %v1867_v12, %v13215_v22  ;;  %v1869_v32 = vpop.f32.mrb[173].mxu0 }
 0x278   : > { %v3158_v0 = vmax.f32 %v14146_v59, %v3054_v61  ;;  %v2644_v63 = vadd.f32 %v2643_v37, %v13215_v22  ;;  %v2645_v46 = vpop.f32.mrb[173].mxu1  ;;  %v1870_v16 = vadd.f32 %v1869_v32, %v13219_v23  ;;  %v1871_v10 = vpop.f32.mrb[174].mxu0 }
 0x279   : > { %v3159_v2 = vmax.f32 %v14150_v53, %v3055_v1  ;;  %v2646_v8 = vadd.f32 %v2645_v46, %v13219_v23  ;;  %v2647_v7 = vpop.f32.mrb[174].mxu1  ;;  %v2088_v24 = vmax.f32 %v1868_v29, 0.0  ;;  %v1872_v42 = vadd.f32 %v1871_v10, %v13215_v22  ;;  %v1873_v59 = vpop.f32.mrb[175].mxu0 }
 0x27a   : > { %v3221_v30 = vpack.c.bf16 %v3158_v0, %v3156_v41  ;;  %v2864_v20 = vmax.f32 %v2644_v63, 0.0  ;;  %v2649_v47 = vpop.f32.mrb[175].mxu1  ;;  %v2089_v58 = vmax.f32 %v1870_v16, 0.0  ;;  %v2648_v11 = vadd.f32 %v2647_v7, %v13215_v22 }
 0x27b   : > { %v3222_v57 = vpack.c.bf16 %v3159_v2, %v3157_v18  ;;  %v2865_v50 = vmax.f32 %v2646_v8, 0.0  ;;  %v2090_v28 = vmax.f32 %v1872_v42, 0.0  ;;  %v1874_v33 = vadd.f32 %v1873_v59, %v13219_v23 }
 0x27c   : > { %3270 = vst [vmem:[#allocation2 + $0x180] sm:$0xff] %v3221_v30  ;;  %v3056_v53 = vmax.f32 %v2088_v24, %v2864_v20  ;;  %v2650_v15 = vadd.f32 %v2649_v47, %v13219_v23  ;;  %v2866_v51 = vmax.f32 %v2648_v11, 0.0 }
 0x27d   : > { %3271 = vst.msk [vmem:[#allocation2 + $0x188] sm:$0xff] %vm3173_vm2, %v3222_v57  ;;  %v3057_v31 = vmax.f32 %v2089_v58, %v2865_v50  ;;  %v2091_v36 = vmax.f32 %v1874_v33, 0.0 }
 0x27e   : > { %v3160_v62 = vmax.f32 %v14158_v26, %v3056_v53  ;;  %v2867_v6 = vmax.f32 %v2650_v15, 0.0  ;;  %v3058_v38 = vmax.f32 %v2090_v28, %v2866_v51  ;;  %v1877_v55 = vpop.f32.mrb[176].mxu0 }
 0x27f   : > { %v3161_v34 = vmax.f32 %v14162_v35, %v3057_v31  ;;  %v2653_v40 = vpop.f32.mrb[176].mxu1  ;;  %v1878_v9 = vadd.f32 %v1877_v55, %v13215_v22  ;;  %v1879_v44 = vpop.f32.mrb[177].mxu0 }
 0x280   : > { %v3059_v27 = vmax.f32 %v2091_v36, %v2867_v6  ;;  %v2654_v5 = vadd.f32 %v2653_v40, %v13215_v22  ;;  %v2655_v4 = vpop.f32.mrb[177].mxu1  ;;  %v3162_v39 = vmax.f32 %v14166_v3, %v3058_v38  ;;  %v1880_v43 = vadd.f32 %v1879_v44, %v13219_v23  ;;  %v1881_v54 = vpop.f32.mrb[178].mxu0 }
 0x281   : > { %v2656_v26 = vadd.f32 %v2655_v4, %v13219_v23  ;;  %v2657_v13 = vpop.f32.mrb[178].mxu1  ;;  %v2092_v48 = vmax.f32 %v1878_v9, 0.0  ;;  %v1882_v56 = vadd.f32 %v1881_v54, %v13215_v22  ;;  %v1883_v52 = vpop.f32.mrb[179].mxu0  ;;  %v3288_v9 = vld [vmem:[#allocation2 + $0x8] sm:$0xff] }
 0x282   : > { %v3163_v35 = vmax.f32 %v14172_v45, %v3059_v27  ;;  %v2868_v14 = vmax.f32 %v2654_v5, 0.0  ;;  %v2659_v60 = vpop.f32.mrb[179].mxu1  ;;  %v3223_v25 = vpack.c.bf16 %v3162_v39, %v3160_v62  ;;  %v2093_v41 = vmax.f32 %v1880_v43, 0.0 }
 0x283   : > { %v2869_v61 = vmax.f32 %v2656_v26, 0.0  ;;  %v2658_v18 = vadd.f32 %v2657_v13, %v13215_v22  ;;  %v2094_v37 = vmax.f32 %v1882_v56, 0.0  ;;  %v1884_v0 = vadd.f32 %v1883_v52, %v13219_v23 }
 0x284   : > { %v3224_v3 = vpack.c.bf16 %v3163_v35, %v3161_v34  ;;  %v3421_v1 = vld [vmem:[#allocation2 + $0x188] sm:$0xff]  ;;  %v14207_v12 = vmax.f32 %v2092_v48, %v2868_v14  ;;  %3272 = vst [vmem:[#allocation2 + $0x190] sm:$0xff] %v3223_v25  ;;  %v2660_v63 = vadd.f32 %v2659_v60, %v13219_v23 }
 0x285   : > { %10247 = vmatprep.mubr.msk.bf16.mxu0 %vm3173_vm2, %v3421_v1  ;;  %10355 = vmatprep.mubr.msk.bf16.mxu1 %vm3173_vm2, %v3421_v1  ;;  %v14212_v45 = vmax.f32 %v2093_v41, %v2869_v61  ;;  %v2870_v29 = vmax.f32 %v2658_v18, 0.0  ;;  %v2095_v32 = vmax.f32 %v1884_v0, 0.0 }
 0x286   : > { %3273 = vst.msk [vmem:[#allocation2 + $0x198] sm:$0xff] %vm3173_vm2, %v3224_v3  ;;  %3870 = vmatmul.mubr.bf16.gmra.mrb[24].mxu0 %v3221_v30  ;;  %4709 = vmatmul.mubr.bf16.gmra.mrb[24].mxu1 %v3221_v30  ;;  %v2871_v2 = vmax.f32 %v2660_v63, 0.0  ;;  %v1887_v16 = vpop.f32.mrb[180].mxu0 }
 0x287   : > { %v14216_v46 = vmax.f32 %v2094_v37, %v2870_v29  ;;  %v2663_v8 = vpop.f32.mrb[180].mxu1  ;;  %v1888_v10 = vadd.f32 %v1887_v16, %v13215_v22  ;;  %v1889_v24 = vpop.f32.mrb[181].mxu0  ;;  %v12006_v16 = vld [vmem:[%s16183_s5 + $0x140] ss:$8 sps:$4 sm:$0xff]  }
 0x288   : > { %v2664_v7 = vadd.f32 %v2663_v8, %v13215_v22  ;;  %v2665_v20 = vpop.f32.mrb[181].mxu1  ;;  %v14220_v42 = vmax.f32 %v2095_v32, %v2871_v2  ;;  %v1890_v59 = vadd.f32 %v1889_v24, %v13219_v23  ;;  %v1891_v57 = vpop.f32.mrb[182].mxu0  ;;  %v12003_v2 = vld [vmem:[%s16182_s4 + $0x140] ss:$8 sps:$4 sm:$0xff]  }
 0x289   : > { %v2666_v47 = vadd.f32 %v2665_v20, %v13219_v23  ;;  %v2667_v30 = vpop.f32.mrb[182].mxu1  ;;  %v2096_v58 = vmax.f32 %v1888_v10, 0.0  ;;  %v1892_v11 = vadd.f32 %v1891_v57, %v13215_v22  ;;  %v1893_v28 = vpop.f32.mrb[183].mxu0  ;;  %v12014_v57 = vld [vmem:[%s16183_s5 + $0x154] ss:$8 sps:$4 sm:$0xff]  }
 0x28a   : > { %v2872_v50 = vmax.f32 %v2664_v7, 0.0  ;;  %v2668_v53 = vadd.f32 %v2667_v30, %v13215_v22  ;;  %v2669_v33 = vpop.f32.mrb[183].mxu1  ;;  %v2097_v15 = vmax.f32 %v1890_v59, 0.0  ;;  %v1894_v51 = vadd.f32 %v1893_v28, %v13219_v23  ;;  %v3290_v59 = vld [vmem:[#allocation2 + $0x18] sm:$0xff] }
 0x28b   : > { %v2873_v31 = vmax.f32 %v2666_v47, 0.0  ;;  %v2670_v62 = vadd.f32 %v2669_v33, %v13219_v23  ;;  %v2098_v6 = vmax.f32 %v1892_v11, 0.0  ;;  %v12011_v47 = vld [vmem:[%s16182_s4 + $0x154] ss:$8 sps:$4 sm:$0xff]  }
 0x28c   : > { %v14228_v36 = vmax.f32 %v2096_v58, %v2872_v50  ;;  %v2874_v34 = vmax.f32 %v2668_v53, 0.0  ;;  %v2099_v40 = vmax.f32 %v1894_v51, 0.0  ;;  %v14262_v50 = vld [vmem:[#allocation2] sm:$0xff]  ;;  %v12012_v51 = vld [vmem:[%s16183_s5 + $0x150] ss:$8 sps:$4 sm:$0xff]  }
 0x28d   : > { %v14230_v38 = vmax.f32 %v2097_v15, %v2873_v31  ;;  %v3423_v55 = vld [vmem:[#allocation2 + $0x198] sm:$0xff]  ;;  %v2875_v27 = vmax.f32 %v2670_v62, 0.0 }
 0x28e   : > { %v14232_v5 = vmax.f32 %v2098_v6, %v2874_v34  ;;  %10248 = vmatprep.mubr.msk.bf16.mxu0 %vm3173_vm2, %v3423_v55  ;;  %10356 = vmatprep.mubr.msk.bf16.mxu1 %vm3173_vm2, %v3423_v55  ;;  %v1897_v4 = vpop.f32.mrb[184].mxu0 }
 0x28f   : > { %v14236_v44 = vmax.f32 %v2099_v40, %v2875_v27  ;;  %3880 = vmatmul.mubr.bf16.gmra.mrb[28].mxu0 %v3223_v25  ;;  %4719 = vmatmul.mubr.bf16.gmra.mrb[28].mxu1 %v3223_v25  ;;  %v2673_v39 = vpop.f32.mrb[184].mxu1  ;;  %v1898_v43 = vadd.f32 %v1897_v4, %v13215_v22  ;;  %v1899_v54 = vpop.f32.mrb[185].mxu0  ;;  %v12017_v40 = vld [vmem:[%s16182_s4 + $0x164] ss:$8 sps:$4 sm:$0xff]  }
 0x290   : > { %v2674_v26 = vadd.f32 %v2673_v39, %v13215_v22  ;;  %v2675_v13 = vpop.f32.mrb[185].mxu1  ;;  %10269 = vmatprep.mubr.msk.bf16.mxu0 %vm3173_vm2, %v3288_v9  ;;  %10377 = vmatprep.mubr.msk.bf16.mxu1 %vm3173_vm2, %v3288_v9  ;;  %v1900_v35 = vadd.f32 %v1899_v54, %v13219_v23  ;;  %v1901_v14 = vpop.f32.mrb[186].mxu0  ;;  %v12020_v27 = vld [vmem:[%s16183_s5 + $0x164] ss:$8 sps:$4 sm:$0xff]  }
 0x291   : > { %v2676_v48 = vadd.f32 %v2675_v13, %v13219_v23  ;;  %v2677_v56 = vpop.f32.mrb[186].mxu1  ;;  %v2100_v52 = vmax.f32 %v1898_v43, 0.0  ;;  %v1902_v25 = vadd.f32 %v1901_v14, %v13215_v22  ;;  %v1903_v61 = vpop.f32.mrb[187].mxu0 }
 0x292   : > { %v2876_v60 = vmax.f32 %v2674_v26, 0.0  ;;  %v2678_v41 = vadd.f32 %v2677_v56, %v13215_v22  ;;  %v2679_v18 = vpop.f32.mrb[187].mxu1  ;;  %v2101_v3 = vmax.f32 %v1900_v35, 0.0  ;;  %v1904_v37 = vadd.f32 %v1903_v61, %v13219_v23  ;;  %v3292_v61 = vld [vmem:[#allocation2 + $0x28] sm:$0xff] }
 0x293   : > { %v2877_v1 = vmax.f32 %v2676_v48, 0.0  ;;  %v2680_v0 = vadd.f32 %v2679_v18, %v13219_v23  ;;  %v2102_v63 = vmax.f32 %v1902_v25, 0.0  ;;  %v12015_v18 = vld [vmem:[%s16182_s4 + $0x160] ss:$8 sps:$4 sm:$0xff]  }
 0x294   : > { %v3068_v29 = vmax.f32 %v2100_v52, %v2876_v60  ;;  %v2878_v32 = vmax.f32 %v2678_v41, 0.0  ;;  %v2103_v10 = vmax.f32 %v1904_v37, 0.0  ;;  %v12023_v37 = vld [vmem:[%s16182_s4 + $0x174] ss:$8 sps:$4 sm:$0xff]  }
 0x295   : > { %v3069_v8 = vmax.f32 %v2101_v3, %v2877_v1  ;;  %v2879_v7 = vmax.f32 %v2680_v0, 0.0  ;;  %v12026_v0 = vld [vmem:[%s16183_s5 + $0x174] ss:$8 sps:$4 sm:$0xff]  }
 0x296   : > { %v3164_v24 = vmax.f32 %v14207_v12, %v3068_v29  ;;  %v3070_v20 = vmax.f32 %v2102_v63, %v2878_v32  ;;  %v1907_v12 = vpop.f32.mrb[188].mxu0 }
 0x297   : > { %v3165_v30 = vmax.f32 %v14212_v45, %v3069_v8  ;;  %v3071_v58 = vmax.f32 %v2103_v10, %v2879_v7  ;;  %4095 = vmatmul.mubr.bf16.vlgmr.msra.gmra.mrb[192].mxu0 %v14262_v50  ;;  %4862 = vmatmul.mubr.bf16.vlgmr.msra.gmra.mrb[192].mxu1 %v14262_v50  ;;  %v2683_v11 = vpop.f32.mrb[188].mxu1  ;;  %v1908_v28 = vadd.f32 %v1907_v12, %v13215_v22  ;;  %v1909_v15 = vpop.f32.mrb[189].mxu0  ;;  %v12009_v45 = vld [vmem:[%s16182_s4 + $0x150] ss:$8 sps:$4 sm:$0xff]   ;;  %v12029_v8 = vld [vmem:[%s16182_s4 + $0x184] ss:$8 sps:$4 sm:$0xff]  }
 0x298   : > { %v3166_v53 = vmax.f32 %v14216_v46, %v3070_v20  ;;  %5344 = vmatpush1.bf16.msra.mxu0 %v12003_v2  ;;  %5834 = vmatpush1.bf16.msra.mxu1 %v12006_v16  ;;  %v2684_v33 = vadd.f32 %v2683_v11, %v13215_v22  ;;  %v2685_v31 = vpop.f32.mrb[189].mxu1  ;;  %v1910_v46 = vadd.f32 %v1909_v15, %v13219_v23  ;;  %v1911_v34 = vpop.f32.mrb[190].mxu0  ;;  %v12021_v2 = vld [vmem:[%s16182_s4 + $0x170] ss:$8 sps:$4 sm:$0xff]   ;;  %v12030_v20 = vld [vmem:[%s16183_s5 + $0x180] ss:$8 sps:$4 sm:$0xff]  }
 0x299   : > { %v3167_v62 = vmax.f32 %v14220_v42, %v3071_v58  ;;  %v2686_v6 = vadd.f32 %v2685_v31, %v13219_v23  ;;  %v2687_v55 = vpop.f32.mrb[190].mxu1  ;;  %10270 = vmatprep.mubr.msk.bf16.mxu0 %vm3173_vm2, %v3290_v59  ;;  %10378 = vmatprep.mubr.msk.bf16.mxu1 %vm3173_vm2, %v3290_v59  ;;  %v2104_v42 = vmax.f32 %v1908_v28, 0.0  ;;  %v1912_v39 = vadd.f32 %v1911_v34, %v13215_v22  ;;  %v1913_v43 = vpop.f32.mrb[191].mxu0  ;;  %v12035_v59 = vld [vmem:[%s16182_s4 + $0x194] ss:$8 sps:$4 sm:$0xff]   ;;  %v14366_v15 = vld [vmem:[#allocation2 + $0x48] sm:$0xff] }
 0x29a   : > { %v3225_v9 = vpack.c.bf16 %v3166_v53, %v3164_v24  ;;  %v2880_v4 = vmax.f32 %v2684_v33, 0.0  ;;  %v2689_v26 = vpop.f32.mrb[191].mxu1  ;;  %5345 = vmatprep.subr.bf16.mxu0 %v12011_v47  ;;  %5835 = vmatprep.subr.bf16.mxu1 %v12014_v57  ;;  %v2105_v13 = vmax.f32 %v1910_v46, 0.0  ;;  %v2688_v48 = vadd.f32 %v2687_v55, %v13215_v22  ;;  %v12018_v22 = vld [vmem:[%s16183_s5 + $0x160] ss:$8 sps:$4 sm:$0xff]   ;;  %v3294_v24 = vld [vmem:[#allocation2 + $0x38] sm:$0xff] }
 0x29b   : > { %v3226_v54 = vpack.c.bf16 %v3167_v62, %v3165_v30  ;;  %v2881_v35 = vmax.f32 %v2686_v6, 0.0  ;;  %v2106_v56 = vmax.f32 %v1912_v39, 0.0  ;;  %v1914_v52 = vadd.f32 %v1913_v43, %v13219_v23  ;;  %v12038_v47 = vld [vmem:[%s16183_s5 + $0x194] ss:$8 sps:$4 sm:$0xff]   ;;  %v12033_v57 = vld [vmem:[%s16182_s4 + $0x190] ss:$8 sps:$4 sm:$0xff]  }
 0x29c   : > { %3274 = vst [vmem:[#allocation2 + $0x1a0] sm:$0xff] %v3225_v9  ;;  %v3072_v14 = vmax.f32 %v2104_v42, %v2880_v4  ;;  %v2690_v60 = vadd.f32 %v2689_v26, %v13219_v23  ;;  %5346 = vmatpush1.bf16.msra.mxu0 %v12009_v45  ;;  %5836 = vmatpush1.bf16.msra.mxu1 %v12012_v51  ;;  %v2882_v41 = vmax.f32 %v2688_v48, 0.0  ;;  %v12036_v30 = vld [vmem:[%s16183_s5 + $0x190] ss:$8 sps:$4 sm:$0xff]   ;;  %v12041_v58 = vld [vmem:[%s16182_s4 + $0x1a4] ss:$8 sps:$4 sm:$0xff]  }
 0x29d   : > { %3275 = vst.msk [vmem:[#allocation2 + $0x1a8] sm:$0xff] %vm3173_vm2, %v3226_v54  ;;  %v3073_v25 = vmax.f32 %v2105_v13, %v2881_v35  ;;  %5347 = vmatprep.subr.bf16.mxu0 %v12017_v40  ;;  %5837 = vmatprep.subr.bf16.mxu1 %v12020_v27  ;;  %v2107_v23 = vmax.f32 %v1914_v52, 0.0  ;;  %v12044_v12 = vld [vmem:[%s16183_s5 + $0x1a4] ss:$8 sps:$4 sm:$0xff]   ;;  %v12039_v11 = vld [vmem:[%s16182_s4 + $0x1a0] ss:$8 sps:$4 sm:$0xff]  }
 0x29e   : > { %v3168_v3 = vmax.f32 %v14228_v36, %v3072_v14  ;;  %v2883_v1 = vmax.f32 %v2690_v60, 0.0  ;;  %v3074_v63 = vmax.f32 %v2106_v56, %v2882_v41  ;;  %v12042_v53 = vld [vmem:[%s16183_s5 + $0x1a0] ss:$8 sps:$4 sm:$0xff]   ;;  %v12047_v28 = vld [vmem:[%s16182_s4 + $0x1b4] ss:$8 sps:$4 sm:$0xff]  }
 0x29f   : > { %v3169_v29 = vmax.f32 %v14230_v38, %v3073_v25  ;;  %4105 = vmatmul.mubr.bf16.gmra.mrb[196].mxu0 %v14262_v50  ;;  %4872 = vmatmul.mubr.bf16.gmra.mrb[196].mxu1 %v14262_v50  ;;  %v12024_v38 = vld [vmem:[%s16183_s5 + $0x170] ss:$8 sps:$4 sm:$0xff]   ;;  %v12050_v33 = vld [vmem:[%s16183_s5 + $0x1b4] ss:$8 sps:$4 sm:$0xff]   ;;  %v12056_v51 = vld [vmem:[%s16183_s5 + $0x1c4] ss:$8 sps:$4 sm:$0xff]  }
 0x2a0   : > { %v3075_v32 = vmax.f32 %v2107_v23, %v2883_v1  ;;  %10271 = vmatprep.mubr.msk.bf16.mxu0 %vm3173_vm2, %v3292_v61  ;;  %10379 = vmatprep.mubr.msk.bf16.mxu1 %vm3173_vm2, %v3292_v61  ;;  %v3170_v36 = vmax.f32 %v14232_v5, %v3074_v63  ;;  %v12032_v5 = vld [vmem:[%s16183_s5 + $0x184] ss:$8 sps:$4 sm:$0xff]   ;;  %v12045_v31 = vld [vmem:[%s16182_s4 + $0x1b0] ss:$8 sps:$4 sm:$0xff]   ;;  %v12051_v62 = vld [vmem:[%s16182_s4 + $0x1c0] ss:$8 sps:$4 sm:$0xff]  }
 0x2a1   : > { %5348 = vmatpush1.bf16.msra.mxu0 %v12015_v18  ;;  %5838 = vmatpush1.bf16.msra.mxu1 %v12018_v22  ;;  %v12048_v45 = vld [vmem:[%s16183_s5 + $0x1b0] ss:$8 sps:$4 sm:$0xff]   ;;  %v12054_v46 = vld [vmem:[%s16183_s5 + $0x1c0] ss:$8 sps:$4 sm:$0xff]   ;;  %v12059_v9 = vld [vmem:[%s16182_s4 + $0x1d4] ss:$8 sps:$4 sm:$0xff]  }
 0x2a2   : > { %v3171_v16 = vmax.f32 %v14236_v44, %v3075_v32  ;;  %5349 = vmatprep.subr.bf16.mxu0 %v12023_v37  ;;  %5839 = vmatprep.subr.bf16.mxu1 %v12026_v0  ;;  %v3227_v10 = vpack.c.bf16 %v3170_v36, %v3168_v3  ;;  %v12027_v44 = vld [vmem:[%s16182_s4 + $0x180] ss:$8 sps:$4 sm:$0xff]   ;;  %v14394_v34 = vld [vmem:[#allocation2 + $0x58] sm:$0xff]  ;;  %v14400_v55 = vld [vmem:[#allocation2 + $0x50] sm:$0xff] }
 0x2a3   : > { %v14390_v6 = vld [vmem:[#allocation2 + $0x40] sm:$0xff]  ;;  %v14404_v40 = vld [vmem:[#allocation2 + $0x68] sm:$0xff]  ;;  %v12057_v27 = vld [vmem:[%s16182_s4 + $0x1d0] ss:$8 sps:$4 sm:$0xff]  }
 0x2a4   : > { %v3228_v7 = vpack.c.bf16 %v3171_v16, %v3169_v29  ;;  %3276 = vst [vmem:[#allocation2 + $0x1b0] sm:$0xff] %v3227_v10  ;;  %v12060_v42 = vld [vmem:[%s16183_s5 + $0x1d0] ss:$8 sps:$4 sm:$0xff]   ;;  %v12062_v4 = vld [vmem:[%s16183_s5 + $0x1d4] ss:$8 sps:$4 sm:$0xff]   ;;  %v14422_v39 = vld [vmem:[#allocation2 + $0x60] sm:$0xff] }
 0x2a5   : > { %5350 = vmatpush1.bf16.msra.mxu0 %v12021_v2  ;;  %5840 = vmatpush1.bf16.msra.mxu1 %v12024_v38  ;;  %v14426_v43 = vld [vmem:[#allocation2 + $0x78] sm:$0xff]  ;;  %v14432_v26 = vld [vmem:[#allocation2 + $0x70] sm:$0xff]  ;;  %v14436_v54 = vld [vmem:[#allocation2 + $0x88] sm:$0xff] }
 0x2a6   : > { %3277 = vst.msk [vmem:[#allocation2 + $0x1b8] sm:$0xff] %vm3173_vm2, %v3228_v7  ;;  %5351 = vmatprep.subr.bf16.mxu0 %v12029_v8  ;;  %5841 = vmatprep.subr.bf16.mxu1 %v12032_v5  ;;  %v12065_v13 = vld [vmem:[%s16182_s4 + $0x1e4] ss:$8 sps:$4 sm:$0xff]   ;;  %v14452_v14 = vld [vmem:[#allocation2 + $0x98] sm:$0xff]  ;;  %v14458_v56 = vld [vmem:[#allocation2 + $0x90] sm:$0xff] }
 0x2a7   : > { %4115 = vmatmul.mubr.bf16.gmra.mrb[200].mxu0 %v14262_v50  ;;  %4882 = vmatmul.mubr.bf16.gmra.mrb[200].mxu1 %v14262_v50  ;;  %v12068_v35 = vld [vmem:[%s16183_s5 + $0x1e4] ss:$8 sps:$4 sm:$0xff]   ;;  %v14472_v25 = vld [vmem:[#allocation2 + $0xb8] sm:$0xff]  ;;  %v14478_v41 = vld [vmem:[#allocation2 + $0xb0] sm:$0xff] }
 0x2a8   : > { %10272 = vmatprep.mubr.msk.bf16.mxu0 %vm3173_vm2, %v3294_v24  ;;  %10380 = vmatprep.mubr.msk.bf16.mxu1 %vm3173_vm2, %v3294_v24  ;;  %v14448_v48 = vld [vmem:[#allocation2 + $0x80] sm:$0xff]  ;;  %v14462_v52 = vld [vmem:[#allocation2 + $0xa8] sm:$0xff]  ;;  %v14492_v22 = vld [vmem:[#allocation2 + $0xd8] sm:$0xff] }
 0x2a9   : > { %5352 = vmatpush1.bf16.msra.mxu0 %v12027_v44  ;;  %5842 = vmatpush1.bf16.msra.mxu1 %v12030_v20  ;;  %v14468_v60 = vld [vmem:[#allocation2 + $0xa0] sm:$0xff]  ;;  %v14482_v61 = vld [vmem:[#allocation2 + $0xc8] sm:$0xff]  ;;  %v14498_v3 = vld [vmem:[#allocation2 + $0xd0] sm:$0xff] }
 0x2aa   : > { %5353 = vmatprep.subr.bf16.mxu0 %v12035_v59  ;;  %5843 = vmatprep.subr.bf16.mxu1 %v12038_v47  ;;  %v14488_v18 = vld [vmem:[#allocation2 + $0xc0] sm:$0xff]  ;;  %v14502_v23 = vld [vmem:[#allocation2 + $0xe8] sm:$0xff]  ;;  %v14512_v37 = vld [vmem:[#allocation2 + $0xf8] sm:$0xff] }
 0x2ab   : > { %v14508_v1 = vld [vmem:[#allocation2 + $0xe0] sm:$0xff]  ;;  %v14518_v0 = vld [vmem:[#allocation2 + $0xf0] sm:$0xff]  ;;  %v14522_v29 = vld [vmem:[#allocation2 + $0x108] sm:$0xff] }
 0x2ac   : > { %v14528_v63 = vld [vmem:[#allocation2 + $0x100] sm:$0xff]  ;;  %v14532_v32 = vld [vmem:[#allocation2 + $0x118] sm:$0xff]  ;;  %v14538_v36 = vld [vmem:[#allocation2 + $0x110] sm:$0xff] }
 0x2ad   : > { %5354 = vmatpush1.bf16.msra.mxu0 %v12033_v57  ;;  %5844 = vmatpush1.bf16.msra.mxu1 %v12036_v30  ;;  %v14542_v2 = vld [vmem:[#allocation2 + $0x128] sm:$0xff]  ;;  %v14548_v38 = vld [vmem:[#allocation2 + $0x120] sm:$0xff]  ;;  %v14552_v16 = vld [vmem:[#allocation2 + $0x138] sm:$0xff] }
 0x2ae   : > { %5355 = vmatprep.subr.bf16.mxu0 %v12041_v58  ;;  %5845 = vmatprep.subr.bf16.mxu1 %v12044_v12  ;;  %v14558_v8 = vld [vmem:[#allocation2 + $0x130] sm:$0xff]  ;;  %v14562_v5 = vld [vmem:[#allocation2 + $0x148] sm:$0xff]  ;;  %v14568_v10 = vld [vmem:[#allocation2 + $0x140] sm:$0xff] }
 0x2af   : > { %4125 = vmatmul.mubr.bf16.gmra.mrb[204].mxu0 %v14262_v50  ;;  %4892 = vmatmul.mubr.bf16.gmra.mrb[204].mxu1 %v14262_v50  ;;  %v12053_v50 = vld [vmem:[%s16182_s4 + $0x1c4] ss:$8 sps:$4 sm:$0xff]   ;;  %v14572_v7 = vld [vmem:[#allocation2 + $0x158] sm:$0xff]  ;;  %v14578_v24 = vld [vmem:[#allocation2 + $0x150] sm:$0xff] }
 0x2b0   : > { %10273 = vmatprep.mubr.msk.bf16.mxu0 %vm3173_vm2, %v14366_v15  ;;  %10381 = vmatprep.mubr.msk.bf16.mxu1 %vm3173_vm2, %v14366_v15  ;;  %v14582_v44 = vld [vmem:[#allocation2 + $0x168] sm:$0xff]  ;;  %v14588_v20 = vld [vmem:[#allocation2 + $0x160] sm:$0xff]  ;;  %v14596_v59 = vld [vmem:[#allocation2 + $0x170] sm:$0xff] }
 0x2b1   : > { %5356 = vmatpush1.bf16.msra.mxu0 %v12039_v11  ;;  %5846 = vmatpush1.bf16.msra.mxu1 %v12042_v53  ;;  %v12063_v47 = vld [vmem:[%s16182_s4 + $0x1e0] ss:$8 sps:$4 sm:$0xff]   ;;  %v12071_v57 = vld [vmem:[%s16182_s4 + $0x1f4] ss:$8 sps:$4 sm:$0xff]   ;;  %v12069_v58 = vld [vmem:[%s16182_s4 + $0x1f0] ss:$8 sps:$4 sm:$0xff]  }
 0x2b2   : > { %5357 = vmatprep.subr.bf16.mxu0 %v12047_v28  ;;  %5847 = vmatprep.subr.bf16.mxu1 %v12050_v33  ;;  %v12074_v30 = vld [vmem:[%s16183_s5 + $0x1f4] ss:$8 sps:$4 sm:$0xff]   ;;  %v12072_v12 = vld [vmem:[%s16183_s5 + $0x1f0] ss:$8 sps:$4 sm:$0xff]   ;;  %v12077_v11 = vld [vmem:[%s16182_s4 + $0x204] ss:$8 sps:$4 sm:$0xff]  }
 0x2b3   : > { %v12080_v53 = vld [vmem:[%s16183_s5 + $0x204] ss:$8 sps:$4 sm:$0xff]   ;;  %v12075_v28 = vld [vmem:[%s16182_s4 + $0x200] ss:$8 sps:$4 sm:$0xff]  }
 0x2b4   : > { %v12078_v33 = vld [vmem:[%s16183_s5 + $0x200] ss:$8 sps:$4 sm:$0xff]  }
 0x2b5   : > { %5358 = vmatpush1.bf16.msra.mxu0 %v12045_v31  ;;  %5848 = vmatpush1.bf16.msra.mxu1 %v12048_v45  ;;  %v12086_v31 = vld [vmem:[%s16183_s5 + $0x214] ss:$8 sps:$4 sm:$0xff]   ;;  %v12081_v45 = vld [vmem:[%s16182_s4 + $0x210] ss:$8 sps:$4 sm:$0xff]  }
 0x2b6   : > { %5359 = vmatprep.subr.bf16.mxu0 %v12053_v50  ;;  %5849 = vmatprep.subr.bf16.mxu1 %v12056_v51  ;;  %v12084_v50 = vld [vmem:[%s16183_s5 + $0x210] ss:$8 sps:$4 sm:$0xff]   ;;  %v12089_v51 = vld [vmem:[%s16182_s4 + $0x224] ss:$8 sps:$4 sm:$0xff]  }
 0x2b7   : > { %4135 = vmatmul.mubr.bf16.gmra.mrb[208].mxu0 %v14390_v6  ;;  %4902 = vmatmul.mubr.bf16.gmra.mrb[208].mxu1 %v14390_v6 }
 0x2b8   : > { %10274 = vmatprep.mubr.msk.bf16.mxu0 %vm3173_vm2, %v14394_v34  ;;  %10382 = vmatprep.mubr.msk.bf16.mxu1 %vm3173_vm2, %v14394_v34 }
 0x2b9   : > { %5360 = vmatpush1.bf16.msra.mxu0 %v12051_v62  ;;  %5850 = vmatpush1.bf16.msra.mxu1 %v12054_v46  ;;  %v12092_v62 = vld [vmem:[%s16183_s5 + $0x224] ss:$8 sps:$4 sm:$0xff]   ;;  %v12087_v46 = vld [vmem:[%s16182_s4 + $0x220] ss:$8 sps:$4 sm:$0xff]  }
 0x2ba   : > { %5361 = vmatprep.subr.bf16.mxu0 %v12059_v9  ;;  %5851 = vmatprep.subr.bf16.mxu1 %v12062_v4  ;;  %v12096_v9 = vld [vmem:[%s16183_s5 + $0x230] ss:$8 sps:$4 sm:$0xff]   ;;  %v12104_v4 = vld [vmem:[%s16183_s5 + $0x244] ss:$8 sps:$4 sm:$0xff]  }
 0x2bd   : > { %5362 = vmatpush1.bf16.msra.mxu0 %v12057_v27  ;;  %5852 = vmatpush1.bf16.msra.mxu1 %v12060_v42  ;;  %v12093_v27 = vld [vmem:[%s16182_s4 + $0x230] ss:$8 sps:$4 sm:$0xff]   ;;  %v12101_v42 = vld [vmem:[%s16182_s4 + $0x244] ss:$8 sps:$4 sm:$0xff]  }
 0x2be   : > { %6444 = vmatprep.subr.bf16.mxu0 %v12065_v13  ;;  %6934 = vmatprep.subr.bf16.mxu1 %v12068_v35  ;;  %v12099_v13 = vld [vmem:[%s16182_s4 + $0x240] ss:$8 sps:$4 sm:$0xff]  }
 0x2bf   : > { %4145 = vmatmul.mubr.bf16.gmra.mrb[212].mxu0 %v14400_v55  ;;  %4912 = vmatmul.mubr.bf16.gmra.mrb[212].mxu1 %v14400_v55  ;;  %v12102_v35 = vld [vmem:[%s16183_s5 + $0x240] ss:$8 sps:$4 sm:$0xff]  }
 0x2c0   : > { %10275 = vmatprep.mubr.msk.bf16.mxu0 %vm3173_vm2, %v14404_v40  ;;  %10383 = vmatprep.mubr.msk.bf16.mxu1 %vm3173_vm2, %v14404_v40 }
 0x2c7   : > { %4155 = vmatmul.mubr.bf16.gmra.mrb[216].mxu0 %v14422_v39  ;;  %4922 = vmatmul.mubr.bf16.gmra.mrb[216].mxu1 %v14422_v39 }
 0x2c8   : > { %10276 = vmatprep.mubr.msk.bf16.mxu0 %vm3173_vm2, %v14426_v43  ;;  %10384 = vmatprep.mubr.msk.bf16.mxu1 %vm3173_vm2, %v14426_v43 }
 0x2cf   : > { %4165 = vmatmul.mubr.bf16.gmra.mrb[220].mxu0 %v14432_v26  ;;  %4932 = vmatmul.mubr.bf16.gmra.mrb[220].mxu1 %v14432_v26 }
 0x2d0   : > { %10277 = vmatprep.mubr.msk.bf16.mxu0 %vm3173_vm2, %v14436_v54  ;;  %10385 = vmatprep.mubr.msk.bf16.mxu1 %vm3173_vm2, %v14436_v54 }
 0x2d7   : > { %4175 = vmatmul.mubr.bf16.gmra.mrb[224].mxu0 %v14448_v48  ;;  %4942 = vmatmul.mubr.bf16.gmra.mrb[224].mxu1 %v14448_v48 }
 0x2d8   : > { %10278 = vmatprep.mubr.msk.bf16.mxu0 %vm3173_vm2, %v14452_v14  ;;  %10386 = vmatprep.mubr.msk.bf16.mxu1 %vm3173_vm2, %v14452_v14 }
 0x2df   : > { %4185 = vmatmul.mubr.bf16.gmra.mrb[228].mxu0 %v14458_v56  ;;  %4952 = vmatmul.mubr.bf16.gmra.mrb[228].mxu1 %v14458_v56 }
 0x2e0   : > { %10279 = vmatprep.mubr.msk.bf16.mxu0 %vm3173_vm2, %v14462_v52  ;;  %10387 = vmatprep.mubr.msk.bf16.mxu1 %vm3173_vm2, %v14462_v52 }
 0x2e7   : > { %4195 = vmatmul.mubr.bf16.gmra.mrb[232].mxu0 %v14468_v60  ;;  %4962 = vmatmul.mubr.bf16.gmra.mrb[232].mxu1 %v14468_v60 }
 0x2e8   : > { %10280 = vmatprep.mubr.msk.bf16.mxu0 %vm3173_vm2, %v14472_v25  ;;  %10388 = vmatprep.mubr.msk.bf16.mxu1 %vm3173_vm2, %v14472_v25 }
 0x2ef   : > { %4205 = vmatmul.mubr.bf16.gmra.mrb[236].mxu0 %v14478_v41  ;;  %4972 = vmatmul.mubr.bf16.gmra.mrb[236].mxu1 %v14478_v41 }
 0x2f0   : > { %10281 = vmatprep.mubr.msk.bf16.mxu0 %vm3173_vm2, %v14482_v61  ;;  %10389 = vmatprep.mubr.msk.bf16.mxu1 %vm3173_vm2, %v14482_v61 }
 0x2f7   : > { %4215 = vmatmul.mubr.bf16.gmra.mrb[240].mxu0 %v14488_v18  ;;  %4982 = vmatmul.mubr.bf16.gmra.mrb[240].mxu1 %v14488_v18 }
 0x2f8   : > { %10282 = vmatprep.mubr.msk.bf16.mxu0 %vm3173_vm2, %v14492_v22  ;;  %10390 = vmatprep.mubr.msk.bf16.mxu1 %vm3173_vm2, %v14492_v22 }
 0x2ff   : > { %4225 = vmatmul.mubr.bf16.gmra.mrb[244].mxu0 %v14498_v3  ;;  %4992 = vmatmul.mubr.bf16.gmra.mrb[244].mxu1 %v14498_v3 }
 0x300   : > { %10283 = vmatprep.mubr.msk.bf16.mxu0 %vm3173_vm2, %v14502_v23  ;;  %10391 = vmatprep.mubr.msk.bf16.mxu1 %vm3173_vm2, %v14502_v23 }
 0x307   : > { %4235 = vmatmul.mubr.bf16.gmra.mrb[248].mxu0 %v14508_v1  ;;  %5002 = vmatmul.mubr.bf16.gmra.mrb[248].mxu1 %v14508_v1 }
 0x308   : > { %10284 = vmatprep.mubr.msk.bf16.mxu0 %vm3173_vm2, %v14512_v37  ;;  %10392 = vmatprep.mubr.msk.bf16.mxu1 %vm3173_vm2, %v14512_v37 }
 0x30f   : > { %4245 = vmatmul.mubr.bf16.gmra.mrb[252].mxu0 %v14518_v0  ;;  %5012 = vmatmul.mubr.bf16.gmra.mrb[252].mxu1 %v14518_v0 }
 0x310   : > { %10285 = vmatprep.mubr.msk.bf16.mxu0 %vm3173_vm2, %v14522_v29  ;;  %10393 = vmatprep.mubr.msk.bf16.mxu1 %vm3173_vm2, %v14522_v29 }
 0x317   : > { %4255 = vmatmul.mubr.bf16.gmra.mrb[0].mxu0 %v14528_v63  ;;  %5022 = vmatmul.mubr.bf16.gmra.mrb[0].mxu1 %v14528_v63 }
 0x318   : > { %10286 = vmatprep.mubr.msk.bf16.mxu0 %vm3173_vm2, %v14532_v32  ;;  %10394 = vmatprep.mubr.msk.bf16.mxu1 %vm3173_vm2, %v14532_v32 }
 0x31f   : > { %4265 = vmatmul.mubr.bf16.gmra.mrb[4].mxu0 %v14538_v36  ;;  %5032 = vmatmul.mubr.bf16.gmra.mrb[4].mxu1 %v14538_v36 }
 0x320   : > { %10287 = vmatprep.mubr.msk.bf16.mxu0 %vm3173_vm2, %v14542_v2  ;;  %10395 = vmatprep.mubr.msk.bf16.mxu1 %vm3173_vm2, %v14542_v2 }
 0x327   : > { %4275 = vmatmul.mubr.bf16.gmra.mrb[8].mxu0 %v14548_v38  ;;  %5042 = vmatmul.mubr.bf16.gmra.mrb[8].mxu1 %v14548_v38 }
 0x328   : > { %10288 = vmatprep.mubr.msk.bf16.mxu0 %vm3173_vm2, %v14552_v16  ;;  %10396 = vmatprep.mubr.msk.bf16.mxu1 %vm3173_vm2, %v14552_v16 }
 0x32f   : > { %4285 = vmatmul.mubr.bf16.gmra.mrb[12].mxu0 %v14558_v8  ;;  %5052 = vmatmul.mubr.bf16.gmra.mrb[12].mxu1 %v14558_v8 }
 0x330   : > { %10289 = vmatprep.mubr.msk.bf16.mxu0 %vm3173_vm2, %v14562_v5  ;;  %10397 = vmatprep.mubr.msk.bf16.mxu1 %vm3173_vm2, %v14562_v5 }
 0x337   : > { %4295 = vmatmul.mubr.bf16.gmra.mrb[16].mxu0 %v14568_v10  ;;  %5062 = vmatmul.mubr.bf16.gmra.mrb[16].mxu1 %v14568_v10 }
 0x338   : > { %10290 = vmatprep.mubr.msk.bf16.mxu0 %vm3173_vm2, %v14572_v7  ;;  %10398 = vmatprep.mubr.msk.bf16.mxu1 %vm3173_vm2, %v14572_v7 }
 0x33f   : > { %4305 = vmatmul.mubr.bf16.gmra.mrb[20].mxu0 %v14578_v24  ;;  %5072 = vmatmul.mubr.bf16.gmra.mrb[20].mxu1 %v14578_v24 }
 0x340   : > { %10291 = vmatprep.mubr.msk.bf16.mxu0 %vm3173_vm2, %v14582_v44  ;;  %10399 = vmatprep.mubr.msk.bf16.mxu1 %vm3173_vm2, %v14582_v44 }
 0x347   : > { %4315 = vmatmul.mubr.bf16.gmra.mrb[24].mxu0 %v14588_v20  ;;  %5082 = vmatmul.mubr.bf16.gmra.mrb[24].mxu1 %v14588_v20 }
 0x348   : > { %10292 = vmatprep.mubr.msk.bf16.mxu0 %vm3173_vm2, %v14164_v49  ;;  %10400 = vmatprep.mubr.msk.bf16.mxu1 %vm3173_vm2, %v14164_v49  ;;  %v12066_v49 = vld [vmem:[%s16183_s5 + $0x1e0] ss:$8 sps:$4 sm:$0xff]  }
 0x34f   : > { %4325 = vmatmul.mubr.bf16.gmra.mrb[28].mxu0 %v14596_v59  ;;  %5092 = vmatmul.mubr.bf16.gmra.mrb[28].mxu1 %v14596_v59 }
 0x350   : > { %10441 = vmatprep.mubr.msk.bf16.mxu0 %vm3173_vm2, %v14366_v15  ;;  %10505 = vmatprep.mubr.msk.bf16.mxu1 %vm3173_vm2, %v14366_v15  ;;  %v12083_v15 = vld [vmem:[%s16182_s4 + $0x214] ss:$8 sps:$4 sm:$0xff]  }
 0x357   : > { %5376 = vmatmul.mubr.bf16.vlgmr.msra.gmra.mrb[192].mxu0 %v14390_v6  ;;  %5866 = vmatmul.mubr.bf16.vlgmr.msra.gmra.mrb[192].mxu1 %v14390_v6  ;;  %v12090_v6 = vld [vmem:[%s16183_s5 + $0x220] ss:$8 sps:$4 sm:$0xff]  }
 0x358   : > { %6445 = vmatpush1.bf16.msra.mxu0 %v12063_v47  ;;  %6935 = vmatpush1.bf16.msra.mxu1 %v12066_v49  ;;  %v12107_v47 = vld [vmem:[%s16182_s4 + $0x254] ss:$8 sps:$4 sm:$0xff]  }
 0x359   : > { %10442 = vmatprep.mubr.msk.bf16.mxu0 %vm3173_vm2, %v14394_v34  ;;  %10506 = vmatprep.mubr.msk.bf16.mxu1 %vm3173_vm2, %v14394_v34  ;;  %v12095_v34 = vld [vmem:[%s16182_s4 + $0x234] ss:$8 sps:$4 sm:$0xff]  }
 0x35a   : > { %6446 = vmatprep.subr.bf16.mxu0 %v12071_v57  ;;  %6936 = vmatprep.subr.bf16.mxu1 %v12074_v30  ;;  %v12110_v49 = vld [vmem:[%s16183_s5 + $0x254] ss:$8 sps:$4 sm:$0xff]   ;;  %v12105_v57 = vld [vmem:[%s16182_s4 + $0x250] ss:$8 sps:$4 sm:$0xff]  }
 0x35b   : > { %v12108_v30 = vld [vmem:[%s16183_s5 + $0x250] ss:$8 sps:$4 sm:$0xff]  }
 0x35c   : > { %6447 = vmatpush1.bf16.msra.mxu0 %v12069_v58  ;;  %6937 = vmatpush1.bf16.msra.mxu1 %v12072_v12  ;;  %v12113_v58 = vld [vmem:[%s16182_s4 + $0x264] ss:$8 sps:$4 sm:$0xff]  }
 0x35d   : > { %6448 = vmatprep.subr.bf16.mxu0 %v12077_v11  ;;  %6938 = vmatprep.subr.bf16.mxu1 %v12080_v53  ;;  %v12116_v12 = vld [vmem:[%s16183_s5 + $0x264] ss:$8 sps:$4 sm:$0xff]   ;;  %v12111_v11 = vld [vmem:[%s16182_s4 + $0x260] ss:$8 sps:$4 sm:$0xff]  }
 0x35e   : > { %v12114_v53 = vld [vmem:[%s16183_s5 + $0x260] ss:$8 sps:$4 sm:$0xff]  }
 0x35f   : > { %5386 = vmatmul.mubr.bf16.gmra.mrb[196].mxu0 %v14400_v55  ;;  %5876 = vmatmul.mubr.bf16.gmra.mrb[196].mxu1 %v14400_v55  ;;  %v12098_v55 = vld [vmem:[%s16183_s5 + $0x234] ss:$8 sps:$4 sm:$0xff]  }
 0x360   : > { %10443 = vmatprep.mubr.msk.bf16.mxu0 %vm3173_vm2, %v14404_v40  ;;  %10507 = vmatprep.mubr.msk.bf16.mxu1 %vm3173_vm2, %v14404_v40 }
 0x361   : > { %6449 = vmatpush1.bf16.msra.mxu0 %v12075_v28  ;;  %6939 = vmatpush1.bf16.msra.mxu1 %v12078_v33  ;;  %v12117_v28 = vld [vmem:[%s16182_s4 + $0x270] ss:$8 sps:$4 sm:$0xff]   ;;  %v12119_v33 = vld [vmem:[%s16182_s4 + $0x274] ss:$8 sps:$4 sm:$0xff]  }
 0x362   : > { %6450 = vmatprep.subr.bf16.mxu0 %v12083_v15  ;;  %6940 = vmatprep.subr.bf16.mxu1 %v12086_v31  ;;  %v12120_v15 = vld [vmem:[%s16183_s5 + $0x270] ss:$8 sps:$4 sm:$0xff]   ;;  %v12122_v31 = vld [vmem:[%s16183_s5 + $0x274] ss:$8 sps:$4 sm:$0xff]  }
 0x365   : > { %6451 = vmatpush1.bf16.msra.mxu0 %v12081_v45  ;;  %6941 = vmatpush1.bf16.msra.mxu1 %v12084_v50  ;;  %v12125_v45 = vld [vmem:[%s16182_s4 + $0x284] ss:$8 sps:$4 sm:$0xff]  }
 0x366   : > { %6452 = vmatprep.subr.bf16.mxu0 %v12089_v51  ;;  %6942 = vmatprep.subr.bf16.mxu1 %v12092_v62  ;;  %v12128_v50 = vld [vmem:[%s16183_s5 + $0x284] ss:$8 sps:$4 sm:$0xff]   ;;  %v14834_v51 = vld [vmem:[#allocation2 + $0x178] sm:$0xff] }
 0x367   : > { %5396 = vmatmul.mubr.bf16.gmra.mrb[200].mxu0 %v14422_v39  ;;  %5886 = vmatmul.mubr.bf16.gmra.mrb[200].mxu1 %v14422_v39  ;;  %v14842_v62 = vld [vmem:[#allocation2 + $0x188] sm:$0xff] }
 0x368   : > { %10444 = vmatprep.mubr.msk.bf16.mxu0 %vm3173_vm2, %v14426_v43  ;;  %10508 = vmatprep.mubr.msk.bf16.mxu1 %vm3173_vm2, %v14426_v43 }
 0x369   : > { %6453 = vmatpush1.bf16.msra.mxu0 %v12087_v46  ;;  %6943 = vmatpush1.bf16.msra.mxu1 %v12090_v6  ;;  %v14848_v46 = vld [vmem:[#allocation2 + $0x180] sm:$0xff]  ;;  %v14852_v6 = vld [vmem:[#allocation2 + $0x198] sm:$0xff] }
 0x36a   : > { %6454 = vmatprep.subr.bf16.mxu0 %v12095_v34  ;;  %6944 = vmatprep.subr.bf16.mxu1 %v12098_v55  ;;  %v14858_v34 = vld [vmem:[#allocation2 + $0x190] sm:$0xff]  ;;  %v14862_v55 = vld [vmem:[#allocation2 + $0x1a8] sm:$0xff] }
 0x36d   : > { %6455 = vmatpush1.bf16.msra.mxu0 %v12093_v27  ;;  %6945 = vmatpush1.bf16.msra.mxu1 %v12096_v9  ;;  %v14868_v27 = vld [vmem:[#allocation2 + $0x1a0] sm:$0xff]  ;;  %v14872_v9 = vld [vmem:[#allocation2 + $0x1b8] sm:$0xff] }
 0x36e   : > { %6456 = vmatprep.subr.bf16.mxu0 %v12101_v42  ;;  %6946 = vmatprep.subr.bf16.mxu1 %v12104_v4  ;;  %v14878_v42 = vld [vmem:[#allocation2 + $0x1b0] sm:$0xff]  ;;  %v12123_v4 = vld [vmem:[%s16182_s4 + $0x280] ss:$8 sps:$4 sm:$0xff]  }
 0x36f   : > { %5406 = vmatmul.mubr.bf16.gmra.mrb[204].mxu0 %v14432_v26  ;;  %5896 = vmatmul.mubr.bf16.gmra.mrb[204].mxu1 %v14432_v26 }
 0x370   : > { %10445 = vmatprep.mubr.msk.bf16.mxu0 %vm3173_vm2, %v14436_v54  ;;  %10509 = vmatprep.mubr.msk.bf16.mxu1 %vm3173_vm2, %v14436_v54 }
 0x371   : > { %6457 = vmatpush1.bf16.msra.mxu0 %v12099_v13  ;;  %6947 = vmatpush1.bf16.msra.mxu1 %v12102_v35  ;;  %v12126_v13 = vld [vmem:[%s16183_s5 + $0x280] ss:$8 sps:$4 sm:$0xff]   ;;  %v12131_v35 = vld [vmem:[%s16182_s4 + $0x294] ss:$8 sps:$4 sm:$0xff]  }
 0x372   : > { %6458 = vmatprep.subr.bf16.mxu0 %v12107_v47  ;;  %6948 = vmatprep.subr.bf16.mxu1 %v12110_v49  ;;  %v12134_v47 = vld [vmem:[%s16183_s5 + $0x294] ss:$8 sps:$4 sm:$0xff]   ;;  %v12132_v49 = vld [vmem:[%s16183_s5 + $0x290] ss:$8 sps:$4 sm:$0xff]  }
 0x375   : > { %6459 = vmatpush1.bf16.msra.mxu0 %v12105_v57  ;;  %6949 = vmatpush1.bf16.msra.mxu1 %v12108_v30  ;;  %v12140_v57 = vld [vmem:[%s16183_s5 + $0x2a4] ss:$8 sps:$4 sm:$0xff]   ;;  %v12135_v30 = vld [vmem:[%s16182_s4 + $0x2a0] ss:$8 sps:$4 sm:$0xff]  }
 0x376   : > { %6460 = vmatprep.subr.bf16.mxu0 %v12113_v58  ;;  %6950 = vmatprep.subr.bf16.mxu1 %v12116_v12  ;;  %v12143_v58 = vld [vmem:[%s16182_s4 + $0x2b4] ss:$8 sps:$4 sm:$0xff]  }
 0x377   : > { %5416 = vmatmul.mubr.bf16.gmra.mrb[208].mxu0 %v14448_v48  ;;  %5906 = vmatmul.mubr.bf16.gmra.mrb[208].mxu1 %v14448_v48  ;;  %v12146_v12 = vld [vmem:[%s16183_s5 + $0x2b4] ss:$8 sps:$4 sm:$0xff]  }
 0x378   : > { %10446 = vmatprep.mubr.msk.bf16.mxu0 %vm3173_vm2, %v14452_v14  ;;  %10510 = vmatprep.mubr.msk.bf16.mxu1 %vm3173_vm2, %v14452_v14 }
 0x379   : > { %6461 = vmatpush1.bf16.msra.mxu0 %v12111_v11  ;;  %6951 = vmatpush1.bf16.msra.mxu1 %v12114_v53  ;;  %v12141_v11 = vld [vmem:[%s16182_s4 + $0x2b0] ss:$8 sps:$4 sm:$0xff]  }
 0x37a   : > { %6462 = vmatprep.subr.bf16.mxu0 %v12119_v33  ;;  %6952 = vmatprep.subr.bf16.mxu1 %v12122_v31  ;;  %v12144_v53 = vld [vmem:[%s16183_s5 + $0x2b0] ss:$8 sps:$4 sm:$0xff]   ;;  %v12150_v33 = vld [vmem:[%s16183_s5 + $0x2c0] ss:$8 sps:$4 sm:$0xff]   ;;  %v12158_v31 = vld [vmem:[%s16183_s5 + $0x2d4] ss:$8 sps:$4 sm:$0xff]  }
 0x37d   : > { %6463 = vmatpush1.bf16.msra.mxu0 %v12117_v28  ;;  %6953 = vmatpush1.bf16.msra.mxu1 %v12120_v15  ;;  %v12147_v28 = vld [vmem:[%s16182_s4 + $0x2c0] ss:$8 sps:$4 sm:$0xff]   ;;  %v12155_v15 = vld [vmem:[%s16182_s4 + $0x2d4] ss:$8 sps:$4 sm:$0xff]  }
 0x37e   : > { %7545 = vmatprep.subr.bf16.mxu0 %v12125_v45  ;;  %8035 = vmatprep.subr.bf16.mxu1 %v12128_v50  ;;  %v12153_v45 = vld [vmem:[%s16182_s4 + $0x2d0] ss:$8 sps:$4 sm:$0xff]  }
 0x37f   : > { %5426 = vmatmul.mubr.bf16.gmra.mrb[212].mxu0 %v14458_v56  ;;  %5916 = vmatmul.mubr.bf16.gmra.mrb[212].mxu1 %v14458_v56  ;;  %v12156_v50 = vld [vmem:[%s16183_s5 + $0x2d0] ss:$8 sps:$4 sm:$0xff]  }
 0x380   : > { %10447 = vmatprep.mubr.msk.bf16.mxu0 %vm3173_vm2, %v14462_v52  ;;  %10511 = vmatprep.mubr.msk.bf16.mxu1 %vm3173_vm2, %v14462_v52 }
 0x387   : > { %5436 = vmatmul.mubr.bf16.gmra.mrb[216].mxu0 %v14468_v60  ;;  %5926 = vmatmul.mubr.bf16.gmra.mrb[216].mxu1 %v14468_v60 }
 0x388   : > { %10448 = vmatprep.mubr.msk.bf16.mxu0 %vm3173_vm2, %v14472_v25  ;;  %10512 = vmatprep.mubr.msk.bf16.mxu1 %vm3173_vm2, %v14472_v25 }
 0x38f   : > { %5446 = vmatmul.mubr.bf16.gmra.mrb[220].mxu0 %v14478_v41  ;;  %5936 = vmatmul.mubr.bf16.gmra.mrb[220].mxu1 %v14478_v41 }
 0x390   : > { %10449 = vmatprep.mubr.msk.bf16.mxu0 %vm3173_vm2, %v14482_v61  ;;  %10513 = vmatprep.mubr.msk.bf16.mxu1 %vm3173_vm2, %v14482_v61 }
 0x397   : > { %5456 = vmatmul.mubr.bf16.gmra.mrb[224].mxu0 %v14488_v18  ;;  %5946 = vmatmul.mubr.bf16.gmra.mrb[224].mxu1 %v14488_v18 }
 0x398   : > { %10450 = vmatprep.mubr.msk.bf16.mxu0 %vm3173_vm2, %v14492_v22  ;;  %10514 = vmatprep.mubr.msk.bf16.mxu1 %vm3173_vm2, %v14492_v22 }
 0x39f   : > { %5466 = vmatmul.mubr.bf16.gmra.mrb[228].mxu0 %v14498_v3  ;;  %5956 = vmatmul.mubr.bf16.gmra.mrb[228].mxu1 %v14498_v3 }
 0x3a0   : > { %10451 = vmatprep.mubr.msk.bf16.mxu0 %vm3173_vm2, %v14502_v23  ;;  %10515 = vmatprep.mubr.msk.bf16.mxu1 %vm3173_vm2, %v14502_v23 }
 0x3a7   : > { %5476 = vmatmul.mubr.bf16.gmra.mrb[232].mxu0 %v14508_v1  ;;  %5966 = vmatmul.mubr.bf16.gmra.mrb[232].mxu1 %v14508_v1 }
 0x3a8   : > { %10452 = vmatprep.mubr.msk.bf16.mxu0 %vm3173_vm2, %v14512_v37  ;;  %10516 = vmatprep.mubr.msk.bf16.mxu1 %vm3173_vm2, %v14512_v37 }
 0x3af   : > { %5486 = vmatmul.mubr.bf16.gmra.mrb[236].mxu0 %v14518_v0  ;;  %5976 = vmatmul.mubr.bf16.gmra.mrb[236].mxu1 %v14518_v0 }
 0x3b0   : > { %10453 = vmatprep.mubr.msk.bf16.mxu0 %vm3173_vm2, %v14522_v29  ;;  %10517 = vmatprep.mubr.msk.bf16.mxu1 %vm3173_vm2, %v14522_v29 }
 0x3b7   : > { %5496 = vmatmul.mubr.bf16.gmra.mrb[240].mxu0 %v14528_v63  ;;  %5986 = vmatmul.mubr.bf16.gmra.mrb[240].mxu1 %v14528_v63 }
 0x3b8   : > { %10454 = vmatprep.mubr.msk.bf16.mxu0 %vm3173_vm2, %v14532_v32  ;;  %10518 = vmatprep.mubr.msk.bf16.mxu1 %vm3173_vm2, %v14532_v32 }
 0x3bf   : > { %5506 = vmatmul.mubr.bf16.gmra.mrb[244].mxu0 %v14538_v36  ;;  %5996 = vmatmul.mubr.bf16.gmra.mrb[244].mxu1 %v14538_v36 }
 0x3c0   : > { %10455 = vmatprep.mubr.msk.bf16.mxu0 %vm3173_vm2, %v14542_v2  ;;  %10519 = vmatprep.mubr.msk.bf16.mxu1 %vm3173_vm2, %v14542_v2 }
 0x3c7   : > { %5516 = vmatmul.mubr.bf16.gmra.mrb[248].mxu0 %v14548_v38  ;;  %6006 = vmatmul.mubr.bf16.gmra.mrb[248].mxu1 %v14548_v38 }
 0x3c8   : > { %10456 = vmatprep.mubr.msk.bf16.mxu0 %vm3173_vm2, %v14552_v16  ;;  %10520 = vmatprep.mubr.msk.bf16.mxu1 %vm3173_vm2, %v14552_v16 }
 0x3cf   : > { %5526 = vmatmul.mubr.bf16.gmra.mrb[252].mxu0 %v14558_v8  ;;  %6016 = vmatmul.mubr.bf16.gmra.mrb[252].mxu1 %v14558_v8 }
 0x3d0   : > { %10457 = vmatprep.mubr.msk.bf16.mxu0 %vm3173_vm2, %v14562_v5  ;;  %10521 = vmatprep.mubr.msk.bf16.mxu1 %vm3173_vm2, %v14562_v5 }
 0x3d7   : > { %5536 = vmatmul.mubr.bf16.gmra.mrb[0].mxu0 %v14568_v10  ;;  %6026 = vmatmul.mubr.bf16.gmra.mrb[0].mxu1 %v14568_v10 }
 0x3d8   : > { %10458 = vmatprep.mubr.msk.bf16.mxu0 %vm3173_vm2, %v14572_v7  ;;  %10522 = vmatprep.mubr.msk.bf16.mxu1 %vm3173_vm2, %v14572_v7 }
 0x3df   : > { %5546 = vmatmul.mubr.bf16.gmra.mrb[4].mxu0 %v14578_v24  ;;  %6036 = vmatmul.mubr.bf16.gmra.mrb[4].mxu1 %v14578_v24 }
 0x3e0   : > { %10459 = vmatprep.mubr.msk.bf16.mxu0 %vm3173_vm2, %v14582_v44  ;;  %10523 = vmatprep.mubr.msk.bf16.mxu1 %vm3173_vm2, %v14582_v44 }
 0x3e7   : > { %5556 = vmatmul.mubr.bf16.gmra.mrb[8].mxu0 %v14588_v20  ;;  %6046 = vmatmul.mubr.bf16.gmra.mrb[8].mxu1 %v14588_v20 }
 0x3e8   : > { %10460 = vmatprep.mubr.msk.bf16.mxu0 %vm3173_vm2, %v14834_v51  ;;  %10524 = vmatprep.mubr.msk.bf16.mxu1 %vm3173_vm2, %v14834_v51 }
 0x3ef   : > { %5566 = vmatmul.mubr.bf16.gmra.mrb[12].mxu0 %v14596_v59  ;;  %6056 = vmatmul.mubr.bf16.gmra.mrb[12].mxu1 %v14596_v59 }
 0x3f0   : > { %10461 = vmatprep.mubr.msk.bf16.mxu0 %vm3173_vm2, %v14842_v62  ;;  %10525 = vmatprep.mubr.msk.bf16.mxu1 %vm3173_vm2, %v14842_v62 }
 0x3f7   : > { %5576 = vmatmul.mubr.bf16.gmra.mrb[16].mxu0 %v14848_v46  ;;  %6066 = vmatmul.mubr.bf16.gmra.mrb[16].mxu1 %v14848_v46 }
 0x3f8   : > { %10462 = vmatprep.mubr.msk.bf16.mxu0 %vm3173_vm2, %v14852_v6  ;;  %10526 = vmatprep.mubr.msk.bf16.mxu1 %vm3173_vm2, %v14852_v6 }
 0x3ff   : > { %5586 = vmatmul.mubr.bf16.gmra.mrb[20].mxu0 %v14858_v34  ;;  %6076 = vmatmul.mubr.bf16.gmra.mrb[20].mxu1 %v14858_v34 }
 0x400   : > { %10463 = vmatprep.mubr.msk.bf16.mxu0 %vm3173_vm2, %v14862_v55  ;;  %10527 = vmatprep.mubr.msk.bf16.mxu1 %vm3173_vm2, %v14862_v55 }
 0x407   : > { %5596 = vmatmul.mubr.bf16.gmra.mrb[24].mxu0 %v14868_v27  ;;  %6086 = vmatmul.mubr.bf16.gmra.mrb[24].mxu1 %v14868_v27 }
 0x408   : > { %10464 = vmatprep.mubr.msk.bf16.mxu0 %vm3173_vm2, %v14872_v9  ;;  %10528 = vmatprep.mubr.msk.bf16.mxu1 %vm3173_vm2, %v14872_v9 }
 0x40f   : > { %5606 = vmatmul.mubr.bf16.gmra.mrb[28].mxu0 %v14878_v42  ;;  %6096 = vmatmul.mubr.bf16.gmra.mrb[28].mxu1 %v14878_v42 }
 0x410   : > { %10569 = vmatprep.mubr.msk.bf16.mxu0 %vm3173_vm2, %v14404_v40  ;;  %10633 = vmatprep.mubr.msk.bf16.mxu1 %vm3173_vm2, %v14404_v40  ;;  %v12129_v40 = vld [vmem:[%s16182_s4 + $0x290] ss:$8 sps:$4 sm:$0xff]  }
 0x417   : > { %6477 = vmatmul.mubr.bf16.vlgmr.msra.gmra.mrb[192].mxu0 %v14422_v39  ;;  %6967 = vmatmul.mubr.bf16.vlgmr.msra.gmra.mrb[192].mxu1 %v14422_v39  ;;  %v12137_v39 = vld [vmem:[%s16182_s4 + $0x2a4] ss:$8 sps:$4 sm:$0xff]  }
 0x418   : > { %7546 = vmatpush1.bf16.msra.mxu0 %v12123_v4  ;;  %8036 = vmatpush1.bf16.msra.mxu1 %v12126_v13  ;;  %v12159_v4 = vld [vmem:[%s16182_s4 + $0x2e0] ss:$8 sps:$4 sm:$0xff]  }
 0x419   : > { %10570 = vmatprep.mubr.msk.bf16.mxu0 %vm3173_vm2, %v14426_v43  ;;  %10634 = vmatprep.mubr.msk.bf16.mxu1 %vm3173_vm2, %v14426_v43  ;;  %v12138_v43 = vld [vmem:[%s16183_s5 + $0x2a0] ss:$8 sps:$4 sm:$0xff]  }
 0x41a   : > { %7547 = vmatprep.subr.bf16.mxu0 %v12131_v35  ;;  %8037 = vmatprep.subr.bf16.mxu1 %v12134_v47  ;;  %v12162_v13 = vld [vmem:[%s16183_s5 + $0x2e0] ss:$8 sps:$4 sm:$0xff]   ;;  %v12167_v35 = vld [vmem:[%s16182_s4 + $0x2f4] ss:$8 sps:$4 sm:$0xff]  }
 0x41b   : > { %v12170_v47 = vld [vmem:[%s16183_s5 + $0x2f4] ss:$8 sps:$4 sm:$0xff]  }
 0x41c   : > { %7548 = vmatpush1.bf16.msra.mxu0 %v12129_v40  ;;  %8038 = vmatpush1.bf16.msra.mxu1 %v12132_v49  ;;  %v12165_v40 = vld [vmem:[%s16182_s4 + $0x2f0] ss:$8 sps:$4 sm:$0xff]  }
 0x41d   : > { %7549 = vmatprep.subr.bf16.mxu0 %v12137_v39  ;;  %8039 = vmatprep.subr.bf16.mxu1 %v12140_v57  ;;  %v12168_v49 = vld [vmem:[%s16183_s5 + $0x2f0] ss:$8 sps:$4 sm:$0xff]   ;;  %v12171_v39 = vld [vmem:[%s16182_s4 + $0x300] ss:$8 sps:$4 sm:$0xff]  }
 0x41e   : > { %v12174_v57 = vld [vmem:[%s16183_s5 + $0x300] ss:$8 sps:$4 sm:$0xff]  }
 0x41f   : > { %6487 = vmatmul.mubr.bf16.gmra.mrb[196].mxu0 %v14432_v26  ;;  %6977 = vmatmul.mubr.bf16.gmra.mrb[196].mxu1 %v14432_v26  ;;  %v12149_v26 = vld [vmem:[%s16182_s4 + $0x2c4] ss:$8 sps:$4 sm:$0xff]  }
 0x420   : > { %10571 = vmatprep.mubr.msk.bf16.mxu0 %vm3173_vm2, %v14436_v54  ;;  %10635 = vmatprep.mubr.msk.bf16.mxu1 %vm3173_vm2, %v14436_v54  ;;  %v12152_v54 = vld [vmem:[%s16183_s5 + $0x2c4] ss:$8 sps:$4 sm:$0xff]  }
 0x421   : > { %7550 = vmatpush1.bf16.msra.mxu0 %v12135_v30  ;;  %8040 = vmatpush1.bf16.msra.mxu1 %v12138_v43  ;;  %v12177_v30 = vld [vmem:[%s16182_s4 + $0x310] ss:$8 sps:$4 sm:$0xff]  }
 0x422   : > { %7551 = vmatprep.subr.bf16.mxu0 %v12143_v58  ;;  %8041 = vmatprep.subr.bf16.mxu1 %v12146_v12  ;;  %v12180_v43 = vld [vmem:[%s16183_s5 + $0x310] ss:$8 sps:$4 sm:$0xff]   ;;  %v7321_v12 = vld [vmem:[#allocation2 + $0x108] sm:$0xff] }
 0x423   : > { %v7318_v58 = vld [vmem:[#allocation2 + $0xf0] sm:$0xff] }
 0x425   : > { %7552 = vmatpush1.bf16.msra.mxu0 %v12141_v11  ;;  %8042 = vmatpush1.bf16.msra.mxu1 %v12144_v53  ;;  %v12189_v11 = vld [vmem:[%s16185_s7 + $0x68] sm:$0xff]   ;;  %v12190_v53 = vld [vmem:[%s16185_s7 + $0x18] sm:$0xff]  }
 0x426   : > { %7553 = vmatprep.subr.bf16.mxu0 %v12149_v26  ;;  %8043 = vmatprep.subr.bf16.mxu1 %v12152_v54  ;;  %v7320_v26 = vld [vmem:[#allocation2 + $0x100] sm:$0xff]  ;;  %v7323_v54 = vld [vmem:[#allocation2 + $0x118] sm:$0xff] }
 0x427   : > { %6497 = vmatmul.mubr.bf16.gmra.mrb[200].mxu0 %v14448_v48  ;;  %6987 = vmatmul.mubr.bf16.gmra.mrb[200].mxu1 %v14448_v48  ;;  %v12161_v48 = vld [vmem:[%s16182_s4 + $0x2e4] ss:$8 sps:$4 sm:$0xff]  }
 0x428   : > { %10572 = vmatprep.mubr.msk.bf16.mxu0 %vm3173_vm2, %v14452_v14  ;;  %10636 = vmatprep.mubr.msk.bf16.mxu1 %vm3173_vm2, %v14452_v14  ;;  %v12164_v14 = vld [vmem:[%s16183_s5 + $0x2e4] ss:$8 sps:$4 sm:$0xff]  }
 0x429   : > { %7554 = vmatpush1.bf16.msra.mxu0 %v12147_v28  ;;  %8044 = vmatpush1.bf16.msra.mxu1 %v12150_v33  ;;  %v7322_v28 = vld [vmem:[#allocation2 + $0x110] sm:$0xff]  ;;  %v7325_v33 = vld [vmem:[#allocation2 + $0x128] sm:$0xff] }
 0x42a   : > { %7555 = vmatprep.subr.bf16.mxu0 %v12155_v15  ;;  %8045 = vmatprep.subr.bf16.mxu1 %v12158_v31  ;;  %v7324_v15 = vld [vmem:[#allocation2 + $0x120] sm:$0xff]  ;;  %v7327_v31 = vld [vmem:[#allocation2 + $0x138] sm:$0xff] }
 0x42d   : > { %7556 = vmatpush1.bf16.msra.mxu0 %v12153_v45  ;;  %8046 = vmatpush1.bf16.msra.mxu1 %v12156_v50  ;;  %v7326_v45 = vld [vmem:[#allocation2 + $0x130] sm:$0xff]  ;;  %v7329_v50 = vld [vmem:[#allocation2 + $0x148] sm:$0xff] }
 0x42e   : > { %7557 = vmatprep.subr.bf16.mxu0 %v12161_v48  ;;  %8047 = vmatprep.subr.bf16.mxu1 %v12164_v14  ;;  %v7328_v48 = vld [vmem:[#allocation2 + $0x140] sm:$0xff]  ;;  %v7331_v14 = vld [vmem:[#allocation2 + $0x158] sm:$0xff] }
 0x42f   : > { %6507 = vmatmul.mubr.bf16.gmra.mrb[204].mxu0 %v14458_v56  ;;  %6997 = vmatmul.mubr.bf16.gmra.mrb[204].mxu1 %v14458_v56  ;;  %v12173_v56 = vld [vmem:[%s16182_s4 + $0x304] ss:$8 sps:$4 sm:$0xff]  }
 0x430   : > { %10573 = vmatprep.mubr.msk.bf16.mxu0 %vm3173_vm2, %v14462_v52  ;;  %10637 = vmatprep.mubr.msk.bf16.mxu1 %vm3173_vm2, %v14462_v52  ;;  %v12176_v52 = vld [vmem:[%s16183_s5 + $0x304] ss:$8 sps:$4 sm:$0xff]  }
 0x431   : > { %7558 = vmatpush1.bf16.msra.mxu0 %v12159_v4  ;;  %8048 = vmatpush1.bf16.msra.mxu1 %v12162_v13  ;;  %v12191_v4 = vld [vmem:[%s16185_s7 + $0x70] sm:$0xff]   ;;  %v12192_v13 = vld [vmem:[%s16185_s7 + $0x20] sm:$0xff]  }
 0x432   : > { %7559 = vmatprep.subr.bf16.mxu0 %v12167_v35  ;;  %8049 = vmatprep.subr.bf16.mxu1 %v12170_v47  ;;  %v7330_v35 = vld [vmem:[#allocation2 + $0x150] sm:$0xff]  ;;  %v7333_v47 = vld [vmem:[#allocation2 + $0x168] sm:$0xff] }
 0x435   : > { %7560 = vmatpush1.bf16.msra.mxu0 %v12165_v40  ;;  %8050 = vmatpush1.bf16.msra.mxu1 %v12168_v49  ;;  %v12193_v40 = vld [vmem:[%s16185_s7 + $0x28] sm:$0xff]   ;;  %v12195_v49 = vld [vmem:[%s16185_s7 + $0x30] sm:$0xff]  }
 0x436   : > { %7561 = vmatprep.subr.bf16.mxu0 %v12173_v56  ;;  %8051 = vmatprep.subr.bf16.mxu1 %v12176_v52  ;;  %v7332_v56 = vld [vmem:[#allocation2 + $0x160] sm:$0xff]  ;;  %v12196_v52 = vld [vmem:[%s16185_s7 + $0x38] sm:$0xff]  }
 0x437   : > { %6517 = vmatmul.mubr.bf16.gmra.mrb[208].mxu0 %v14468_v60  ;;  %7007 = vmatmul.mubr.bf16.gmra.mrb[208].mxu1 %v14468_v60  ;;  %v12179_v60 = vld [vmem:[%s16182_s4 + $0x314] ss:$8 sps:$4 sm:$0xff]  }
 0x438   : > { %10574 = vmatprep.mubr.msk.bf16.mxu0 %vm3173_vm2, %v14472_v25  ;;  %10638 = vmatprep.mubr.msk.bf16.mxu1 %vm3173_vm2, %v14472_v25  ;;  %v12182_v25 = vld [vmem:[%s16183_s5 + $0x314] ss:$8 sps:$4 sm:$0xff]  }
 0x439   : > { %7562 = vmatpush1.bf16.msra.mxu0 %v12171_v39  ;;  %8052 = vmatpush1.bf16.msra.mxu1 %v12174_v57  ;;  %v12197_v39 = vld [vmem:[%s16185_s7 + $0x40] sm:$0xff]   ;;  %v7334_v57 = vld [vmem:[#allocation2 + $0x170] sm:$0xff] }
 0x43a   : > { %7563 = vmatprep.subr.bf16.mxu0 %v12179_v60  ;;  %8053 = vmatprep.subr.bf16.mxu1 %v12182_v25 }
 0x43d   : > { %7564 = vmatpush1.bf16.msra.mxu0 %v12177_v30  ;;  %8054 = vmatpush1.bf16.msra.mxu1 %v12180_v43  ;;  %v12198_v30 = vld [vmem:[%s16185_s7 + $0x48] sm:$0xff]  }
 0x43f   : > { %6527 = vmatmul.mubr.bf16.gmra.mrb[212].mxu0 %v14478_v41  ;;  %7017 = vmatmul.mubr.bf16.gmra.mrb[212].mxu1 %v14478_v41  ;;  %v15036_v41 = vld [vmem:[#allocation2] sm:$0xff] }
 0x440   : > { %10575 = vmatprep.mubr.msk.bf16.mxu0 %vm3173_vm2, %v14482_v61  ;;  %10639 = vmatprep.mubr.msk.bf16.mxu1 %vm3173_vm2, %v14482_v61  ;;  %v15130_v61 = vld [vmem:[#allocation2 + $0x1c8] sm:$0xff] }
 0x441   : > { %9075 = vmatprep.subr.bf16.mxu0 %v15036_v41  ;;  %9190 = vmatprep.subr.bf16.mxu1 %v15036_v41 }
 0x447   : > { %6537 = vmatmul.mubr.bf16.gmra.mrb[216].mxu0 %v14488_v18  ;;  %7027 = vmatmul.mubr.bf16.gmra.mrb[216].mxu1 %v14488_v18  ;;  %v15138_v18 = vld [vmem:[#allocation2 + $0x1d8] sm:$0xff] }
 0x448   : > { %10576 = vmatprep.mubr.msk.bf16.mxu0 %vm3173_vm2, %v14492_v22  ;;  %10640 = vmatprep.mubr.msk.bf16.mxu1 %vm3173_vm2, %v14492_v22  ;;  %v7305_v22 = vld [vmem:[#allocation2 + $0x88] sm:$0xff] }
 0x44f   : > { %6547 = vmatmul.mubr.bf16.gmra.mrb[220].mxu0 %v14498_v3  ;;  %7037 = vmatmul.mubr.bf16.gmra.mrb[220].mxu1 %v14498_v3  ;;  %v7304_v3 = vld [vmem:[#allocation2 + $0x80] sm:$0xff] }
 0x450   : > { %10577 = vmatprep.mubr.msk.bf16.mxu0 %vm3173_vm2, %v14502_v23  ;;  %10641 = vmatprep.mubr.msk.bf16.mxu1 %vm3173_vm2, %v14502_v23  ;;  %v7307_v23 = vld [vmem:[#allocation2 + $0x98] sm:$0xff] }
 0x457   : > { %6557 = vmatmul.mubr.bf16.gmra.mrb[224].mxu0 %v14508_v1  ;;  %7047 = vmatmul.mubr.bf16.gmra.mrb[224].mxu1 %v14508_v1  ;;  %v7306_v1 = vld [vmem:[#allocation2 + $0x90] sm:$0xff] }
 0x458   : > { %10578 = vmatprep.mubr.msk.bf16.mxu0 %vm3173_vm2, %v14512_v37  ;;  %10642 = vmatprep.mubr.msk.bf16.mxu1 %vm3173_vm2, %v14512_v37  ;;  %v7309_v37 = vld [vmem:[#allocation2 + $0xa8] sm:$0xff] }
 0x45f   : > { %6567 = vmatmul.mubr.bf16.gmra.mrb[228].mxu0 %v14518_v0  ;;  %7057 = vmatmul.mubr.bf16.gmra.mrb[228].mxu1 %v14518_v0  ;;  %v12183_v0 = vld [vmem:[%s16185_s7 + $0x50] sm:$0xff]  }
 0x460   : > { %10579 = vmatprep.mubr.msk.bf16.mxu0 %vm3173_vm2, %v14522_v29  ;;  %10643 = vmatprep.mubr.msk.bf16.mxu1 %vm3173_vm2, %v14522_v29  ;;  %v12184_v29 = vld [vmem:[%s16185_s7] sm:$0xff]  }
 0x467   : > { %6577 = vmatmul.mubr.bf16.gmra.mrb[232].mxu0 %v14528_v63  ;;  %7067 = vmatmul.mubr.bf16.gmra.mrb[232].mxu1 %v14528_v63  ;;  %v7308_v63 = vld [vmem:[#allocation2 + $0xa0] sm:$0xff] }
 0x468   : > { %10580 = vmatprep.mubr.msk.bf16.mxu0 %vm3173_vm2, %v14532_v32  ;;  %10644 = vmatprep.mubr.msk.bf16.mxu1 %vm3173_vm2, %v14532_v32  ;;  %v7311_v32 = vld [vmem:[#allocation2 + $0xb8] sm:$0xff] }
 0x46f   : > { %6587 = vmatmul.mubr.bf16.gmra.mrb[236].mxu0 %v14538_v36  ;;  %7077 = vmatmul.mubr.bf16.gmra.mrb[236].mxu1 %v14538_v36  ;;  %v7310_v36 = vld [vmem:[#allocation2 + $0xb0] sm:$0xff] }
 0x470   : > { %10581 = vmatprep.mubr.msk.bf16.mxu0 %vm3173_vm2, %v14542_v2  ;;  %10645 = vmatprep.mubr.msk.bf16.mxu1 %vm3173_vm2, %v14542_v2  ;;  %v7313_v2 = vld [vmem:[#allocation2 + $0xc8] sm:$0xff] }
 0x477   : > { %6597 = vmatmul.mubr.bf16.gmra.mrb[240].mxu0 %v14548_v38  ;;  %7087 = vmatmul.mubr.bf16.gmra.mrb[240].mxu1 %v14548_v38  ;;  %v12185_v38 = vld [vmem:[%s16185_s7 + $0x58] sm:$0xff]  }
 0x478   : > { %10582 = vmatprep.mubr.msk.bf16.mxu0 %vm3173_vm2, %v14552_v16  ;;  %10646 = vmatprep.mubr.msk.bf16.mxu1 %vm3173_vm2, %v14552_v16  ;;  %v7312_v16 = vld [vmem:[#allocation2 + $0xc0] sm:$0xff] }
 0x47f   : > { %6607 = vmatmul.mubr.bf16.gmra.mrb[244].mxu0 %v14558_v8  ;;  %7097 = vmatmul.mubr.bf16.gmra.mrb[244].mxu1 %v14558_v8  ;;  %v7315_v8 = vld [vmem:[#allocation2 + $0xd8] sm:$0xff] }
 0x480   : > { %10583 = vmatprep.mubr.msk.bf16.mxu0 %vm3173_vm2, %v14562_v5  ;;  %10647 = vmatprep.mubr.msk.bf16.mxu1 %vm3173_vm2, %v14562_v5  ;;  %v12186_v5 = vld [vmem:[%s16185_s7 + $0x8] sm:$0xff]  }
 0x487   : > { %6617 = vmatmul.mubr.bf16.gmra.mrb[248].mxu0 %v14568_v10  ;;  %7107 = vmatmul.mubr.bf16.gmra.mrb[248].mxu1 %v14568_v10  ;;  %v7314_v10 = vld [vmem:[#allocation2 + $0xd0] sm:$0xff] }
 0x488   : > { %10584 = vmatprep.mubr.msk.bf16.mxu0 %vm3173_vm2, %v14572_v7  ;;  %10648 = vmatprep.mubr.msk.bf16.mxu1 %vm3173_vm2, %v14572_v7  ;;  %v7317_v7 = vld [vmem:[#allocation2 + $0xe8] sm:$0xff] }
 0x48f   : > { %6627 = vmatmul.mubr.bf16.gmra.mrb[252].mxu0 %v14578_v24  ;;  %7117 = vmatmul.mubr.bf16.gmra.mrb[252].mxu1 %v14578_v24  ;;  %v7316_v24 = vld [vmem:[#allocation2 + $0xe0] sm:$0xff] }
 0x490   : > { %10585 = vmatprep.mubr.msk.bf16.mxu0 %vm3173_vm2, %v14582_v44  ;;  %10649 = vmatprep.mubr.msk.bf16.mxu1 %vm3173_vm2, %v14582_v44  ;;  %v7319_v44 = vld [vmem:[#allocation2 + $0xf8] sm:$0xff] }
 0x497   : > { %6637 = vmatmul.mubr.bf16.gmra.mrb[0].mxu0 %v14588_v20  ;;  %7127 = vmatmul.mubr.bf16.gmra.mrb[0].mxu1 %v14588_v20  ;;  %v12187_v20 = vld [vmem:[%s16185_s7 + $0x60] sm:$0xff]  }
 0x498   : > { %10586 = vmatprep.mubr.msk.bf16.mxu0 %vm3173_vm2, %v14834_v51  ;;  %10650 = vmatprep.mubr.msk.bf16.mxu1 %vm3173_vm2, %v14834_v51 }
 0x49f   : > { %6647 = vmatmul.mubr.bf16.gmra.mrb[4].mxu0 %v14596_v59  ;;  %7137 = vmatmul.mubr.bf16.gmra.mrb[4].mxu1 %v14596_v59  ;;  %v12188_v59 = vld [vmem:[%s16185_s7 + $0x10] sm:$0xff]  }
 0x4a0   : > { %10587 = vmatprep.mubr.msk.bf16.mxu0 %vm3173_vm2, %v14842_v62  ;;  %10651 = vmatprep.mubr.msk.bf16.mxu1 %vm3173_vm2, %v14842_v62 }
 0x4a7   : > { %6657 = vmatmul.mubr.bf16.gmra.mrb[8].mxu0 %v14848_v46  ;;  %7147 = vmatmul.mubr.bf16.gmra.mrb[8].mxu1 %v14848_v46 }
 0x4a8   : > { %10588 = vmatprep.mubr.msk.bf16.mxu0 %vm3173_vm2, %v14852_v6  ;;  %10652 = vmatprep.mubr.msk.bf16.mxu1 %vm3173_vm2, %v14852_v6 }
 0x4af   : > { %6667 = vmatmul.mubr.bf16.gmra.mrb[12].mxu0 %v14858_v34  ;;  %7157 = vmatmul.mubr.bf16.gmra.mrb[12].mxu1 %v14858_v34 }
 0x4b0   : > { %10589 = vmatprep.mubr.msk.bf16.mxu0 %vm3173_vm2, %v14862_v55  ;;  %10653 = vmatprep.mubr.msk.bf16.mxu1 %vm3173_vm2, %v14862_v55 }
 0x4b7   : > { %6677 = vmatmul.mubr.bf16.gmra.mrb[16].mxu0 %v14868_v27  ;;  %7167 = vmatmul.mubr.bf16.gmra.mrb[16].mxu1 %v14868_v27 }
 0x4b8   : > { %10590 = vmatprep.mubr.msk.bf16.mxu0 %vm3173_vm2, %v14872_v9  ;;  %10654 = vmatprep.mubr.msk.bf16.mxu1 %vm3173_vm2, %v14872_v9 }
 0x4bf   : > { %6687 = vmatmul.mubr.bf16.gmra.mrb[20].mxu0 %v14878_v42  ;;  %7177 = vmatmul.mubr.bf16.gmra.mrb[20].mxu1 %v14878_v42 }
 0x4c0   : > { %10591 = vmatprep.mubr.msk.bf16.mxu0 %vm3173_vm2, %v15130_v61  ;;  %10655 = vmatprep.mubr.msk.bf16.mxu1 %vm3173_vm2, %v15130_v61 }
 0x4c7   : > { %6697 = vmatmul.mubr.bf16.gmra.mrb[24].mxu0 %v15036_v41  ;;  %7187 = vmatmul.mubr.bf16.gmra.mrb[24].mxu1 %v15036_v41 }
 0x4c8   : > { %10592 = vmatprep.mubr.msk.bf16.mxu0 %vm3173_vm2, %v15138_v18  ;;  %10656 = vmatprep.mubr.msk.bf16.mxu1 %vm3173_vm2, %v15138_v18 }
 0x4cf   : > { %6707 = vmatmul.mubr.bf16.gmra.mrb[28].mxu0 %v15036_v41  ;;  %7197 = vmatmul.mubr.bf16.gmra.mrb[28].mxu1 %v15036_v41 }
 0x4d0   : > { %10697 = vmatprep.mubr.msk.bf16.mxu0 %vm3173_vm2, %v7305_v22  ;;  %10761 = vmatprep.mubr.msk.bf16.mxu1 %vm3173_vm2, %v7305_v22 }
 0x4d7   : > { %7578 = vmatmul.mubr.bf16.vlgmr.msra.gmra.mrb[192].mxu0 %v7304_v3  ;;  %8068 = vmatmul.mubr.bf16.vlgmr.msra.gmra.mrb[192].mxu1 %v7304_v3 }
 0x4d8   : > { %10698 = vmatprep.mubr.msk.bf16.mxu0 %vm3173_vm2, %v7307_v23  ;;  %10762 = vmatprep.mubr.msk.bf16.mxu1 %vm3173_vm2, %v7307_v23 }
 0x4d9   : > { %9076 = vmatpush1.bf16.msra.mxu0 %v12183_v0  ;;  %9191 = vmatpush1.bf16.msra.mxu1 %v12184_v29 }
 0x4da   : > { %9077 = vmatprep.subr.bf16.mxu0 %v15036_v41  ;;  %9192 = vmatprep.subr.bf16.mxu1 %v15036_v41 }
 0x4dd   : > { %9078 = vmatpush1.bf16.msra.mxu0 %v12185_v38  ;;  %9193 = vmatpush1.bf16.msra.mxu1 %v12186_v5 }
 0x4de   : > { %9079 = vmatprep.subr.bf16.mxu0 %v15036_v41  ;;  %9194 = vmatprep.subr.bf16.mxu1 %v15036_v41 }
 0x4df   : > { %7588 = vmatmul.mubr.bf16.gmra.mrb[196].mxu0 %v7306_v1  ;;  %8078 = vmatmul.mubr.bf16.gmra.mrb[196].mxu1 %v7306_v1 }
 0x4e0   : > { %10699 = vmatprep.mubr.msk.bf16.mxu0 %vm3173_vm2, %v7309_v37  ;;  %10763 = vmatprep.mubr.msk.bf16.mxu1 %vm3173_vm2, %v7309_v37 }
 0x4e1   : > { %9080 = vmatpush1.bf16.msra.mxu0 %v12187_v20  ;;  %9195 = vmatpush1.bf16.msra.mxu1 %v12188_v59 }
 0x4e2   : > { %9081 = vmatprep.subr.bf16.mxu0 %v15036_v41  ;;  %9196 = vmatprep.subr.bf16.mxu1 %v15036_v41 }
 0x4e5   : > { %9082 = vmatpush1.bf16.msra.mxu0 %v12189_v11  ;;  %9197 = vmatpush1.bf16.msra.mxu1 %v12190_v53 }
 0x4e6   : > { %9083 = vmatprep.subr.bf16.mxu0 %v15036_v41  ;;  %9198 = vmatprep.subr.bf16.mxu1 %v15036_v41 }
 0x4e7   : > { %7598 = vmatmul.mubr.bf16.gmra.mrb[200].mxu0 %v7308_v63  ;;  %8088 = vmatmul.mubr.bf16.gmra.mrb[200].mxu1 %v7308_v63 }
 0x4e8   : > { %10700 = vmatprep.mubr.msk.bf16.mxu0 %vm3173_vm2, %v7311_v32  ;;  %10764 = vmatprep.mubr.msk.bf16.mxu1 %vm3173_vm2, %v7311_v32 }
 0x4e9   : > { %9084 = vmatpush1.bf16.msra.mxu0 %v12191_v4  ;;  %9199 = vmatpush1.bf16.msra.mxu1 %v12192_v13 }
 0x4ea   : > { %9200 = vmatprep.subr.bf16.mxu1 %v15036_v41  ;;  %9085 = vmatprep.subr.bf16.mxu0 %v15036_v41 }
 0x4ed   : > { %9201 = vmatpush1.bf16.msra.mxu1 %v12193_v40 }
 0x4ee   : > { %9202 = vmatprep.subr.bf16.mxu1 %v15036_v41 }
 0x4ef   : > { %7608 = vmatmul.mubr.bf16.gmra.mrb[204].mxu0 %v7310_v36  ;;  %8098 = vmatmul.mubr.bf16.gmra.mrb[204].mxu1 %v7310_v36 }
 0x4f0   : > { %10701 = vmatprep.mubr.msk.bf16.mxu0 %vm3173_vm2, %v7313_v2  ;;  %10765 = vmatprep.mubr.msk.bf16.mxu1 %vm3173_vm2, %v7313_v2 }
 0x4f1   : > { %9203 = vmatpush1.bf16.msra.mxu1 %v12195_v49 }
 0x4f2   : > { %9204 = vmatprep.subr.bf16.mxu1 %v15036_v41 }
 0x4f5   : > { %9205 = vmatpush1.bf16.msra.mxu1 %v12196_v52 }
 0x4f6   : > { %9206 = vmatprep.subr.bf16.mxu1 %v15036_v41 }
 0x4f7   : > { %7618 = vmatmul.mubr.bf16.gmra.mrb[208].mxu0 %v7312_v16  ;;  %8108 = vmatmul.mubr.bf16.gmra.mrb[208].mxu1 %v7312_v16 }
 0x4f8   : > { %10702 = vmatprep.mubr.msk.bf16.mxu0 %vm3173_vm2, %v7315_v8  ;;  %10766 = vmatprep.mubr.msk.bf16.mxu1 %vm3173_vm2, %v7315_v8 }
 0x4f9   : > { %9207 = vmatpush1.bf16.msra.mxu1 %v12197_v39 }
 0x4fa   : > { %9208 = vmatprep.subr.bf16.mxu1 %v15036_v41 }
 0x4fd   : > { %9209 = vmatpush1.bf16.msra.mxu1 %v12198_v30 }
 0x4fe   : > { %9466 = vmatprep.subr.bf16.mxu1 %v15036_v41 }
 0x4ff   : > { %7628 = vmatmul.mubr.bf16.gmra.mrb[212].mxu0 %v7314_v10  ;;  %8118 = vmatmul.mubr.bf16.gmra.mrb[212].mxu1 %v7314_v10 }
 0x500   : > { %10703 = vmatprep.mubr.msk.bf16.mxu0 %vm3173_vm2, %v7317_v7  ;;  %10767 = vmatprep.mubr.msk.bf16.mxu1 %vm3173_vm2, %v7317_v7 }
 0x507   : > { %7638 = vmatmul.mubr.bf16.gmra.mrb[216].mxu0 %v7316_v24  ;;  %8128 = vmatmul.mubr.bf16.gmra.mrb[216].mxu1 %v7316_v24 }
 0x508   : > { %10704 = vmatprep.mubr.msk.bf16.mxu0 %vm3173_vm2, %v7319_v44  ;;  %10768 = vmatprep.mubr.msk.bf16.mxu1 %vm3173_vm2, %v7319_v44 }
 0x50f   : > { %7648 = vmatmul.mubr.bf16.gmra.mrb[220].mxu0 %v7318_v58  ;;  %8138 = vmatmul.mubr.bf16.gmra.mrb[220].mxu1 %v7318_v58 }
 0x510   : > { %10705 = vmatprep.mubr.msk.bf16.mxu0 %vm3173_vm2, %v7321_v12  ;;  %10769 = vmatprep.mubr.msk.bf16.mxu1 %vm3173_vm2, %v7321_v12 }
 0x517   : > { %7658 = vmatmul.mubr.bf16.gmra.mrb[224].mxu0 %v7320_v26  ;;  %8148 = vmatmul.mubr.bf16.gmra.mrb[224].mxu1 %v7320_v26 }
 0x518   : > { %10706 = vmatprep.mubr.msk.bf16.mxu0 %vm3173_vm2, %v7323_v54  ;;  %10770 = vmatprep.mubr.msk.bf16.mxu1 %vm3173_vm2, %v7323_v54 }
 0x51f   : > { %7668 = vmatmul.mubr.bf16.gmra.mrb[228].mxu0 %v7322_v28  ;;  %8158 = vmatmul.mubr.bf16.gmra.mrb[228].mxu1 %v7322_v28 }
 0x520   : > { %10707 = vmatprep.mubr.msk.bf16.mxu0 %vm3173_vm2, %v7325_v33  ;;  %10771 = vmatprep.mubr.msk.bf16.mxu1 %vm3173_vm2, %v7325_v33 }
 0x527   : > { %7678 = vmatmul.mubr.bf16.gmra.mrb[232].mxu0 %v7324_v15  ;;  %8168 = vmatmul.mubr.bf16.gmra.mrb[232].mxu1 %v7324_v15 }
 0x528   : > { %10708 = vmatprep.mubr.msk.bf16.mxu0 %vm3173_vm2, %v7327_v31  ;;  %10772 = vmatprep.mubr.msk.bf16.mxu1 %vm3173_vm2, %v7327_v31 }
 0x52f   : > { %7688 = vmatmul.mubr.bf16.gmra.mrb[236].mxu0 %v7326_v45  ;;  %8178 = vmatmul.mubr.bf16.gmra.mrb[236].mxu1 %v7326_v45 }
 0x530   : > { %10709 = vmatprep.mubr.msk.bf16.mxu0 %vm3173_vm2, %v7329_v50  ;;  %10773 = vmatprep.mubr.msk.bf16.mxu1 %vm3173_vm2, %v7329_v50 }
 0x537   : > { %7698 = vmatmul.mubr.bf16.gmra.mrb[240].mxu0 %v7328_v48  ;;  %8188 = vmatmul.mubr.bf16.gmra.mrb[240].mxu1 %v7328_v48 }
 0x538   : > { %10710 = vmatprep.mubr.msk.bf16.mxu0 %vm3173_vm2, %v7331_v14  ;;  %10774 = vmatprep.mubr.msk.bf16.mxu1 %vm3173_vm2, %v7331_v14 }
 0x53f   : > { %7708 = vmatmul.mubr.bf16.gmra.mrb[244].mxu0 %v7330_v35  ;;  %8198 = vmatmul.mubr.bf16.gmra.mrb[244].mxu1 %v7330_v35 }
 0x540   : > { %10711 = vmatprep.mubr.msk.bf16.mxu0 %vm3173_vm2, %v7333_v47  ;;  %10775 = vmatprep.mubr.msk.bf16.mxu1 %vm3173_vm2, %v7333_v47 }
 0x547   : > { %7718 = vmatmul.mubr.bf16.gmra.mrb[248].mxu0 %v7332_v56  ;;  %8208 = vmatmul.mubr.bf16.gmra.mrb[248].mxu1 %v7332_v56 }
 0x548   : > { %10712 = vmatprep.mubr.msk.bf16.mxu0 %vm3173_vm2, %v14834_v51  ;;  %10776 = vmatprep.mubr.msk.bf16.mxu1 %vm3173_vm2, %v14834_v51  ;;  %v12194_v51 = vld [vmem:[%s16185_s7 + $0x78] sm:$0xff]  }
 0x549   : > { %9086 = vmatpush1.bf16.msra.mxu0 %v12194_v51 }
 0x54a   : > { %9087 = vmatprep.subr.bf16.mxu0 %v15036_v41 }
 0x54f   : > { %7728 = vmatmul.mubr.bf16.gmra.mrb[252].mxu0 %v7334_v57  ;;  %8218 = vmatmul.mubr.bf16.gmra.mrb[252].mxu1 %v7334_v57 }
 0x550   : > { %10713 = vmatprep.mubr.msk.bf16.mxu0 %vm3173_vm2, %v14842_v62  ;;  %10777 = vmatprep.mubr.msk.bf16.mxu1 %vm3173_vm2, %v14842_v62  ;;  %v12199_v62 = vld [vmem:[%s16185_s7 + $0x80] sm:$0xff]  }
 0x551   : > { %9088 = vmatpush1.bf16.msra.mxu0 %v12199_v62 }
 0x552   : > { %9089 = vmatprep.subr.bf16.mxu0 %v15036_v41 }
 0x557   : > { %7738 = vmatmul.mubr.bf16.gmra.mrb[0].mxu0 %v14848_v46  ;;  %8228 = vmatmul.mubr.bf16.gmra.mrb[0].mxu1 %v14848_v46  ;;  %v12200_v46 = vld [vmem:[%s16185_s7 + $0x88] sm:$0xff]  }
 0x558   : > { %10714 = vmatprep.mubr.msk.bf16.mxu0 %vm3173_vm2, %v14852_v6  ;;  %10778 = vmatprep.mubr.msk.bf16.mxu1 %vm3173_vm2, %v14852_v6  ;;  %v12201_v6 = vld [vmem:[%s16185_s7 + $0x90] sm:$0xff]  }
 0x559   : > { %9090 = vmatpush1.bf16.msra.mxu0 %v12200_v46 }
 0x55a   : > { %9091 = vmatprep.subr.bf16.mxu0 %v15036_v41 }
 0x55d   : > { %9092 = vmatpush1.bf16.msra.mxu0 %v12201_v6 }
 0x55e   : > { %9093 = vmatprep.subr.bf16.mxu0 %v15036_v41 }
 0x55f   : > { %7748 = vmatmul.mubr.bf16.gmra.mrb[4].mxu0 %v14858_v34  ;;  %8238 = vmatmul.mubr.bf16.gmra.mrb[4].mxu1 %v14858_v34  ;;  %v12202_v34 = vld [vmem:[%s16185_s7 + $0x98] sm:$0xff]  }
 0x560   : > { %10715 = vmatprep.mubr.msk.bf16.mxu0 %vm3173_vm2, %v14862_v55  ;;  %10779 = vmatprep.mubr.msk.bf16.mxu1 %vm3173_vm2, %v14862_v55  ;;  %v7349_v55 = vld [vmem:[#allocation2 + $0x1e8] sm:$0xff] }
 0x561   : > { %9094 = vmatpush1.bf16.msra.mxu0 %v12202_v34 }
 0x562   : > { %9326 = vmatprep.subr.bf16.mxu0 %v15036_v41 }
 0x567   : > { %7758 = vmatmul.mubr.bf16.gmra.mrb[8].mxu0 %v14868_v27  ;;  %8248 = vmatmul.mubr.bf16.gmra.mrb[8].mxu1 %v14868_v27  ;;  %v7351_v27 = vld [vmem:[#allocation2 + $0x1f8] sm:$0xff] }
 0x568   : > { %10716 = vmatprep.mubr.msk.bf16.mxu0 %vm3173_vm2, %v14872_v9  ;;  %10780 = vmatprep.mubr.msk.bf16.mxu1 %vm3173_vm2, %v14872_v9  ;;  %v8404_v9 = vld [vmem:[%s16184_s6] sm:$0x3] }
 0x569   : > { %v15315_v60 = vrot.slane %v8404_v9, %v942_v21 }
 0x56f   : > { %7768 = vmatmul.mubr.bf16.gmra.mrb[12].mxu0 %v14878_v42  ;;  %8258 = vmatmul.mubr.bf16.gmra.mrb[12].mxu1 %v14878_v42  ;;  %v15311_v42 = vrot.slane %v8404_v9, %v938_v19 }
 0x570   : > { %10717 = vmatprep.mubr.msk.bf16.mxu0 %vm3173_vm2, %v15130_v61  ;;  %10781 = vmatprep.mubr.msk.bf16.mxu1 %vm3173_vm2, %v15130_v61 }
 0x577   : > { %7778 = vmatmul.mubr.bf16.gmra.mrb[16].mxu0 %v15036_v41  ;;  %8268 = vmatmul.mubr.bf16.gmra.mrb[16].mxu1 %v15036_v41 }
 0x578   : > { %10718 = vmatprep.mubr.msk.bf16.mxu0 %vm3173_vm2, %v15138_v18  ;;  %10782 = vmatprep.mubr.msk.bf16.mxu1 %vm3173_vm2, %v15138_v18 }
 0x57f   : > { %7788 = vmatmul.mubr.bf16.gmra.mrb[20].mxu0 %v15036_v41  ;;  %8278 = vmatmul.mubr.bf16.gmra.mrb[20].mxu1 %v15036_v41 }
 0x580   : > { %10719 = vmatprep.mubr.msk.bf16.mxu0 %vm3173_vm2, %v7349_v55  ;;  %10783 = vmatprep.mubr.msk.bf16.mxu1 %vm3173_vm2, %v7349_v55 }
 0x587   : > { %7798 = vmatmul.mubr.bf16.gmra.mrb[24].mxu0 %v15036_v41  ;;  %8288 = vmatmul.mubr.bf16.gmra.mrb[24].mxu1 %v15036_v41 }
 0x588   : > { %10720 = vmatprep.mubr.msk.bf16.mxu0 %vm3173_vm2, %v7351_v27  ;;  %10784 = vmatprep.mubr.msk.bf16.mxu1 %vm3173_vm2, %v7351_v27 }
 0x58f   : > { %7808 = vmatmul.mubr.bf16.gmra.mrb[28].mxu0 %v15036_v41  ;;  %8298 = vmatmul.mubr.bf16.gmra.mrb[28].mxu1 %v15036_v41 }
 0x5aa   : > { %v7579_v43 = vpop.f32.mrb[192].mxu0  ;;  %v8069_v25 = vpop.f32.mrb[192].mxu1 }
 0x5ab   : > { %v8416_v61 = vadd.f32 %v15311_v42, %v7579_v43  ;;  %v8608_v18 = vadd.f32 %v15311_v42, %v8069_v25  ;;  %v7581_v22 = vpop.f32.mrb[193].mxu0  ;;  %v8071_v3 = vpop.f32.mrb[193].mxu1 }
 0x5ac   : > { %v8417_v23 = vadd.f32 %v15315_v60, %v7581_v22  ;;  %v8609_v1 = vadd.f32 %v15315_v60, %v8071_v3  ;;  %v7583_v37 = vpop.f32.mrb[194].mxu0  ;;  %v8073_v0 = vpop.f32.mrb[194].mxu1 }
 0x5ad   : > { %12251 = vtanh.f32 %v8416_v61  ;;  %v8418_v19 = vadd.f32 %v15311_v42, %v7583_v37  ;;  %v7585_v17 = vpop.f32.mrb[195].mxu0  ;;  %v8075_v21 = vpop.f32.mrb[195].mxu1  ;;  %v8610_v29 = vadd.f32 %v15311_v42, %v8073_v0 }
 0x5ae   : > { %12253 = vtanh.f32 %v8608_v18  ;;  %v8419_v63 = vadd.f32 %v15315_v60, %v7585_v17  ;;  %v8611_v32 = vadd.f32 %v15315_v60, %v8075_v21 }
 0x5af   : > { %12255 = vtanh.f32 %v8417_v23 }
 0x5b0   : > { %12257 = vtanh.f32 %v8609_v1 }
 0x5b1   : > { %12259 = vtanh.f32 %v8418_v19 }
 0x5b2   : > { %12261 = vtanh.f32 %v8610_v29  ;;  %v7589_v36 = vpop.f32.mrb[196].mxu0  ;;  %v8079_v2 = vpop.f32.mrb[196].mxu1 }
 0x5b3   : > { %12263 = vtanh.f32 %v8419_v63  ;;  %v8420_v38 = vadd.f32 %v15311_v42, %v7589_v36  ;;  %v8612_v16 = vadd.f32 %v15311_v42, %v8079_v2  ;;  %v7591_v8 = vpop.f32.mrb[197].mxu0  ;;  %v8081_v5 = vpop.f32.mrb[197].mxu1 }
 0x5b4   : > { %12265 = vtanh.f32 %v8611_v32  ;;  %v8421_v10 = vadd.f32 %v15315_v60, %v7591_v8  ;;  %v8613_v7 = vadd.f32 %v15315_v60, %v8081_v5  ;;  %v7593_v24 = vpop.f32.mrb[198].mxu0  ;;  %v8083_v44 = vpop.f32.mrb[198].mxu1 }
 0x5b5   : > { %12267 = vtanh.f32 %v8420_v38  ;;  %v8422_v20 = vadd.f32 %v15311_v42, %v7593_v24  ;;  %v7595_v59 = vpop.f32.mrb[199].mxu0  ;;  %v8085_v58 = vpop.f32.mrb[199].mxu1  ;;  %v8614_v12 = vadd.f32 %v15311_v42, %v8083_v44 }
 0x5b6   : > { %12269 = vtanh.f32 %v8612_v16  ;;  %v8423_v53 = vadd.f32 %v15315_v60, %v7595_v59  ;;  %v8615_v54 = vadd.f32 %v15315_v60, %v8085_v58 }
 0x5b7   : > { %v15331_v11 = vpop.eup %12251  ;;  %12271 = vtanh.f32 %v8421_v10 }
 0x5b8   : > { %v15334_v26 = vpop.eup %12253  ;;  %12273 = vtanh.f32 %v8613_v7 }
 0x5b9   : > { %v15337_v28 = vpop.eup %12255  ;;  %v8800_v33 = vmax.f32 %v15331_v11, %v15334_v26  ;;  %12275 = vtanh.f32 %v8422_v20 }
 0x5ba   : > { %v15341_v15 = vpop.eup %12257  ;;  %12277 = vtanh.f32 %v8614_v12  ;;  %v7599_v31 = vpop.f32.mrb[200].mxu0 }
 0x5bb   : > { %v8089_v45 = vpop.f32.mrb[200].mxu1  ;;  %v15343_v50 = vpop.eup %12259  ;;  %12279 = vtanh.f32 %v8423_v53  ;;  %v8424_v48 = vadd.f32 %v15311_v42, %v7599_v31  ;;  %v8801_v35 = vmax.f32 %v15337_v28, %v15341_v15 }
 0x5bc   : > { %v8616_v14 = vadd.f32 %v15311_v42, %v8089_v45  ;;  %v7601_v4 = vpop.f32.mrb[201].mxu0  ;;  %v8091_v13 = vpop.f32.mrb[201].mxu1  ;;  %12281 = vtanh.f32 %v8615_v54 }
 0x5bd   : > { %v15349_v47 = vpop.eup %12261  ;;  %v8425_v40 = vadd.f32 %v15315_v60, %v7601_v4  ;;  %v8617_v49 = vadd.f32 %v15315_v60, %v8091_v13  ;;  %v7603_v56 = vpop.f32.mrb[202].mxu0  ;;  %12283 = vtanh.f32 %v8424_v48 }
 0x5be   : > { %v8093_v52 = vpop.f32.mrb[202].mxu1  ;;  %v15353_v39 = vpop.eup %12263  ;;  %v8802_v57 = vmax.f32 %v15343_v50, %v15349_v47  ;;  %v8426_v51 = vadd.f32 %v15311_v42, %v7603_v56  ;;  %12285 = vtanh.f32 %v8616_v14 }
 0x5bf   : > { %v7605_v30 = vpop.f32.mrb[203].mxu0  ;;  %v8095_v62 = vpop.f32.mrb[203].mxu1  ;;  %v8618_v6 = vadd.f32 %v15311_v42, %v8093_v52  ;;  %12287 = vtanh.f32 %v8425_v40 }
 0x5c0   : > { %v15358_v46 = vpop.eup %12265  ;;  %v8427_v55 = vadd.f32 %v15315_v60, %v7605_v30  ;;  %12289 = vtanh.f32 %v8617_v49  ;;  %v8619_v43 = vadd.f32 %v15315_v60, %v8095_v62 }
 0x5c1   : > { %v15361_v34 = vpop.eup %12267  ;;  %v8803_v27 = vmax.f32 %v15353_v39, %v15358_v46  ;;  %12291 = vtanh.f32 %v8426_v51  ;;  %v12210_v39 = vld [vmem:[%s16185_s7 + $0xf0] sm:$0xff]  }
 0x5c2   : > { %v15366_v9 = vpop.eup %12269  ;;  %12293 = vtanh.f32 %v8618_v6  ;;  %v7609_v22 = vpop.f32.mrb[204].mxu0 }
 0x5c3   : > { %v15369_v25 = vpop.eup %12271  ;;  %v8804_v61 = vmax.f32 %v15361_v34, %v15366_v9  ;;  %v8099_v3 = vpop.f32.mrb[204].mxu1  ;;  %12295 = vtanh.f32 %v8427_v55  ;;  %v8428_v1 = vadd.f32 %v15311_v42, %v7609_v22 }
 0x5c4   : > { %v15373_v18 = vpop.eup %12273  ;;  %v8620_v37 = vadd.f32 %v15311_v42, %v8099_v3  ;;  %v7611_v0 = vpop.f32.mrb[205].mxu0  ;;  %12297 = vtanh.f32 %v8619_v43 }
 0x5c5   : > { %v15375_v23 = vpop.eup %12275  ;;  %v8101_v19 = vpop.f32.mrb[205].mxu1  ;;  %v8805_v17 = vmax.f32 %v15369_v25, %v15373_v18  ;;  %v8429_v29 = vadd.f32 %v15315_v60, %v7611_v0  ;;  %12299 = vtanh.f32 %v8428_v1 }
 0x5c6   : > { %v15381_v21 = vpop.eup %12277  ;;  %v8621_v63 = vadd.f32 %v15315_v60, %v8101_v19  ;;  %v7613_v32 = vpop.f32.mrb[206].mxu0  ;;  %12301 = vtanh.f32 %v8620_v37 }
 0x5c7   : > { %v8103_v36 = vpop.f32.mrb[206].mxu1  ;;  %v15385_v2 = vpop.eup %12279  ;;  %v8806_v38 = vmax.f32 %v15375_v23, %v15381_v21  ;;  %v8430_v16 = vadd.f32 %v15311_v42, %v7613_v32  ;;  %12303 = vtanh.f32 %v8429_v29 }
 0x5c8   : > { %v7615_v8 = vpop.f32.mrb[207].mxu0  ;;  %v8105_v5 = vpop.f32.mrb[207].mxu1  ;;  %v8622_v7 = vadd.f32 %v15311_v42, %v8103_v36  ;;  %12305 = vtanh.f32 %v8621_v63 }
 0x5c9   : > { %v15390_v10 = vpop.eup %12281  ;;  %v8431_v44 = vadd.f32 %v15315_v60, %v7615_v8  ;;  %v8623_v58 = vadd.f32 %v15315_v60, %v8105_v5  ;;  %12307 = vtanh.f32 %v8430_v16 }
 0x5ca   : > { %v12284_v24 = vpop.eup %12283  ;;  %v8807_v20 = vmax.f32 %v15385_v2, %v15390_v10  ;;  %12309 = vtanh.f32 %v8622_v7  ;;  %v7619_v31 = vpop.f32.mrb[208].mxu0  ;;  %v12214_v2 = vld [vmem:[%s16185_s7 + $0x100] sm:$0xff]  }
 0x5cb   : > { %v12286_v59 = vpop.eup %12285  ;;  %v8109_v45 = vpop.f32.mrb[208].mxu1  ;;  %12311 = vtanh.f32 %v8431_v44  ;;  %v8432_v4 = vadd.f32 %v15311_v42, %v7619_v31 }
 0x5cc   : > { %v12288_v12 = vpop.eup %12287  ;;  %v8808_v53 = vmax.f32 %v12284_v24, %v12286_v59  ;;  %v8624_v13 = vadd.f32 %v15311_v42, %v8109_v45  ;;  %v7621_v40 = vpop.f32.mrb[209].mxu0  ;;  %12313 = vtanh.f32 %v8623_v58 }
 0x5cd   : > { %v12290_v54 = vpop.eup %12289  ;;  %v8111_v49 = vpop.f32.mrb[209].mxu1  ;;  %v8433_v52 = vadd.f32 %v15315_v60, %v7621_v40  ;;  %12315 = vtanh.f32 %v8432_v4 }
 0x5ce   : > { %v12292_v48 = vpop.eup %12291  ;;  %v15400_v14 = vmax.f32 %v8800_v33, %v8808_v53  ;;  %v8625_v51 = vadd.f32 %v15315_v60, %v8111_v49  ;;  %v7623_v30 = vpop.f32.mrb[210].mxu0  ;;  %v8809_v6 = vmax.f32 %v12288_v12, %v12290_v54  ;;  %12317 = vtanh.f32 %v8624_v13 }
 0x5cf   : > { %v12294_v56 = vpop.eup %12293  ;;  %v8113_v62 = vpop.f32.mrb[210].mxu1  ;;  %v8434_v26 = vadd.f32 %v15311_v42, %v7623_v30  ;;  %12319 = vtanh.f32 %v8433_v52 }
 0x5d0   : > { %v12296_v55 = vpop.eup %12295  ;;  %v8810_v11 = vmax.f32 %v12292_v48, %v12294_v56  ;;  %v7625_v33 = vpop.f32.mrb[211].mxu0  ;;  %v8626_v3 = vadd.f32 %v15311_v42, %v8113_v62  ;;  %v8897_v1 = vmax.f32 %v8801_v35, %v8809_v6  ;;  %12321 = vtanh.f32 %v8625_v51  ;;  %v12212_v56 = vld [vmem:[%s16185_s7 + $0xf8] sm:$0xff]  }
 0x5d1   : > { %v8115_v43 = vpop.f32.mrb[211].mxu1  ;;  %v12298_v22 = vpop.eup %12297  ;;  %v8435_v19 = vadd.f32 %v15315_v60, %v7625_v33  ;;  %12323 = vtanh.f32 %v8434_v26 }
 0x5d2   : > { %v12300_v37 = vpop.eup %12299  ;;  %v8898_v0 = vmax.f32 %v8802_v57, %v8810_v11  ;;  %v8811_v29 = vmax.f32 %v12296_v55, %v12298_v22  ;;  %v8627_v32 = vadd.f32 %v15315_v60, %v8115_v43  ;;  %12325 = vtanh.f32 %v8626_v3  ;;  %v7629_v50 = vpop.f32.mrb[212].mxu0 }
 0x5d3   : > { %v12302_v63 = vpop.eup %12301  ;;  %v8119_v35 = vpop.f32.mrb[212].mxu1  ;;  %12327 = vtanh.f32 %v8435_v19  ;;  %v8436_v7 = vadd.f32 %v15311_v42, %v7629_v50 }
 0x5d4   : > { %v12304_v36 = vpop.eup %12303  ;;  %v8944_v16 = vpack.c.bf16 %v8898_v0, %v15400_v14  ;;  %v8812_v8 = vmax.f32 %v12300_v37, %v12302_v63  ;;  %v8899_v28 = vmax.f32 %v8803_v27, %v8811_v29  ;;  %v7631_v24 = vpop.f32.mrb[213].mxu0  ;;  %12329 = vtanh.f32 %v8627_v32 }
 0x5d5   : > { %v12306_v15 = vpop.eup %12305  ;;  %v8121_v44 = vpop.f32.mrb[213].mxu1  ;;  %v8628_v27 = vadd.f32 %v15311_v42, %v8119_v35  ;;  %v8437_v59 = vadd.f32 %v15315_v60, %v7631_v24  ;;  %12331 = vtanh.f32 %v8436_v7 }
 0x5d6   : > { %v12308_v47 = vpop.eup %12307  ;;  %v15423_v57 = vmax.f32 %v8804_v61, %v8812_v8  ;;  %v8945_v5 = vpack.c.bf16 %v8899_v28, %v8897_v1  ;;  %v8629_v34 = vadd.f32 %v15315_v60, %v8121_v44  ;;  %v7633_v9 = vpop.f32.mrb[214].mxu0  ;;  %v8813_v14 = vmax.f32 %v12304_v36, %v12306_v15  ;;  %v12216_v15 = vld [vmem:[%s16185_s7 + $0x108] sm:$0xff]  }
 0x5d7   : > { %v12310_v46 = vpop.eup %12309  ;;  %v8123_v61 = vpop.f32.mrb[214].mxu1  ;;  %v8438_v53 = vadd.f32 %v15311_v42, %v7633_v9  ;;  %12333 = vtanh.f32 %v8628_v27 }
 0x5d8   : > { %v12312_v58 = vpop.eup %12311  ;;  %v8814_v12 = vmax.f32 %v12308_v47, %v12310_v46  ;;  %10827 = vmatprep.mubr.msk.bf16.mxu1 %vm3173_vm2, %v8945_v5  ;;  %v7635_v54 = vpop.f32.mrb[215].mxu0  ;;  %v8630_v48 = vadd.f32 %v15311_v42, %v8123_v61  ;;  %12335 = vtanh.f32 %v8437_v59  ;;  %v8901_v30 = vmax.f32 %v8805_v17, %v8813_v14  ;;  %v15495_v47 = vld [vmem:[#allocation2] sm:$0xff]  ;;  %v12217_v61 = vld [vmem:[%s16185_s7 + $0x110] sm:$0xff]  }
 0x5d9   : > { %v8125_v31 = vpop.f32.mrb[215].mxu1  ;;  %v12314_v45 = vpop.eup %12313  ;;  %9223 = vmatmul.mubr.bf16.vlgmr.msra.gmra.mrb[32].mxu1 %v8944_v16  ;;  %v8439_v40 = vadd.f32 %v15315_v60, %v7635_v54  ;;  %12337 = vtanh.f32 %v8629_v34 }
 0x5da   : > { %v15435_v4 = vpop.eup %12315  ;;  %v8902_v13 = vmax.f32 %v8806_v38, %v8814_v12  ;;  %v8815_v49 = vmax.f32 %v12312_v58, %v12314_v45  ;;  %9467 = vmatpush1.bf16.msra.mxu1 %v12210_v39  ;;  %v8631_v51 = vadd.f32 %v15315_v60, %v8125_v31  ;;  %12339 = vtanh.f32 %v8438_v53  ;;  %v7639_v55 = vpop.f32.mrb[216].mxu0 }
 0x5db   : > { %v15444_v52 = vpop.eup %12317  ;;  %9468 = vmatprep.subr.bf16.mxu1 %v15036_v41  ;;  %12341 = vtanh.f32 %v8630_v48  ;;  %v8129_v25 = vpop.f32.mrb[216].mxu1  ;;  %v8440_v11 = vadd.f32 %v15311_v42, %v7639_v55 }
 0x5dc   : > { %v15451_v23 = vpop.eup %12319  ;;  %v8946_v21 = vpack.c.bf16 %v8902_v13, %v15423_v57  ;;  %v8816_v38 = vmax.f32 %v15435_v4, %v15444_v52  ;;  %v8903_v62 = vmax.f32 %v8807_v20, %v8815_v49  ;;  %12343 = vtanh.f32 %v8439_v40  ;;  %v7641_v33 = vpop.f32.mrb[217].mxu0 }
 0x5dd   : > { %v15459_v6 = vpop.eup %12321  ;;  %v8632_v26 = vadd.f32 %v15311_v42, %v8129_v25  ;;  %v8131_v43 = vpop.f32.mrb[217].mxu1  ;;  %12345 = vtanh.f32 %v8631_v51  ;;  %v8441_v20 = vadd.f32 %v15315_v60, %v7641_v33 }
 0x5de   : > { %v15461_v18 = vpop.eup %12323  ;;  %v8947_v17 = vpack.c.bf16 %v8903_v62, %v8901_v30  ;;  %9469 = vmatpush1.bf16.msra.mxu1 %v12212_v56  ;;  %v8633_v22 = vadd.f32 %v15315_v60, %v8131_v43  ;;  %v7643_v3 = vpop.f32.mrb[218].mxu0  ;;  %v8817_v37 = vmax.f32 %v15451_v23, %v15459_v6  ;;  %12347 = vtanh.f32 %v8440_v11  ;;  %v12218_v62 = vld [vmem:[%s16185_s7 + $0x118] sm:$0xff]  }
 0x5df   : > { %v15468_v10 = vpop.eup %12325  ;;  %v8133_v1 = vpop.f32.mrb[218].mxu1  ;;  %9470 = vmatprep.subr.bf16.mxu1 %v15036_v41  ;;  %v8442_v29 = vadd.f32 %v15311_v42, %v7643_v3  ;;  %12349 = vtanh.f32 %v8632_v26 }
 0x5e0   : > { %v15475_v0 = vpop.eup %12327  ;;  %v8818_v19 = vmax.f32 %v15461_v18, %v15468_v10  ;;  %10828 = vmatprep.mubr.msk.bf16.mxu1 %vm3173_vm2, %v8947_v17  ;;  %v7645_v63 = vpop.f32.mrb[219].mxu0  ;;  %v8634_v16 = vadd.f32 %v15311_v42, %v8133_v1  ;;  %12351 = vtanh.f32 %v8441_v20 }
 0x5e1   : > { %v8135_v32 = vpop.f32.mrb[219].mxu1  ;;  %v15481_v36 = vpop.eup %12329  ;;  %9231 = vmatmul.mubr.bf16.gmra.mrb[36].mxu1 %v8946_v21  ;;  %v8443_v41 = vadd.f32 %v15315_v60, %v7645_v63  ;;  %12353 = vtanh.f32 %v8633_v22  ;;  %v12219_v63 = vld [vmem:[%s16185_s7 + $0x120] sm:$0xff]  }
 0x5e2   : > { %v15484_v8 = vpop.eup %12331  ;;  %v8819_v28 = vmax.f32 %v15475_v0, %v15481_v36  ;;  %9471 = vmatpush1.bf16.msra.mxu1 %v12214_v2  ;;  %v8635_v35 = vadd.f32 %v15315_v60, %v8135_v32  ;;  %12355 = vtanh.f32 %v8442_v29  ;;  %v7649_v24 = vpop.f32.mrb[220].mxu0 }
 0x5e3   : > { %v15492_v50 = vpop.eup %12333  ;;  %9472 = vmatprep.subr.bf16.mxu1 %v15495_v47  ;;  %12357 = vtanh.f32 %v8634_v16  ;;  %v8139_v44 = vpop.f32.mrb[220].mxu1  ;;  %v8444_v46 = vadd.f32 %v15311_v42, %v7649_v24 }
 0x5e4   : > { %v15498_v57 = vpop.eup %12335  ;;  %v8820_v5 = vmax.f32 %v15484_v8, %v15492_v50  ;;  %12359 = vtanh.f32 %v8443_v41  ;;  %v8636_v27 = vadd.f32 %v15311_v42, %v8139_v44  ;;  %v7651_v59 = vpop.f32.mrb[221].mxu0 }
 0x5e5   : > { %v15502_v7 = vpop.eup %12337  ;;  %v8141_v34 = vpop.f32.mrb[221].mxu1  ;;  %12361 = vtanh.f32 %v8635_v35  ;;  %v8445_v12 = vadd.f32 %v15315_v60, %v7651_v59 }
 0x5e6   : > { %v15504_v39 = vpop.eup %12339  ;;  %v8821_v9 = vmax.f32 %v15498_v57, %v15502_v7  ;;  %9473 = vmatpush1.bf16.msra.mxu1 %v12216_v15  ;;  %v8637_v53 = vadd.f32 %v15315_v60, %v8141_v34  ;;  %v7653_v54 = vpop.f32.mrb[222].mxu0  ;;  %12363 = vtanh.f32 %v8444_v46 }
 0x5e7   : > { %v15513_v58 = vpop.eup %12341  ;;  %v8143_v31 = vpop.f32.mrb[222].mxu1  ;;  %9474 = vmatprep.subr.bf16.mxu1 %v15495_v47  ;;  %v8446_v14 = vadd.f32 %v15311_v42, %v7653_v54  ;;  %12365 = vtanh.f32 %v8636_v27 }
 0x5e8   : > { %v15518_v45 = vpop.eup %12343  ;;  %v8822_v48 = vmax.f32 %v15504_v39, %v15513_v58  ;;  %v7655_v13 = vpop.f32.mrb[223].mxu0  ;;  %v8638_v56 = vadd.f32 %v15311_v42, %v8143_v31  ;;  %12367 = vtanh.f32 %v8445_v12  ;;  %v12220_v31 = vld [vmem:[%s16185_s7 + $0x128] sm:$0xff]  }
 0x5e9   : > { %v8145_v40 = vpop.f32.mrb[223].mxu1  ;;  %v15523_v49 = vpop.eup %12345  ;;  %v8447_v30 = vadd.f32 %v15315_v60, %v7655_v13  ;;  %12369 = vtanh.f32 %v8637_v53 }
 0x5ea   : > { %v12348_v51 = vpop.eup %12347  ;;  %v8823_v21 = vmax.f32 %v15518_v45, %v15523_v49  ;;  %9475 = vmatpush1.bf16.msra.mxu1 %v12217_v61  ;;  %v8639_v25 = vadd.f32 %v15315_v60, %v8145_v40  ;;  %12371 = vtanh.f32 %v8446_v14  ;;  %v7659_v33 = vpop.f32.mrb[224].mxu0 }
 0x5eb   : > { %v12350_v55 = vpop.eup %12349  ;;  %9476 = vmatprep.subr.bf16.mxu1 %v15495_v47  ;;  %12373 = vtanh.f32 %v8638_v56  ;;  %v8149_v43 = vpop.f32.mrb[224].mxu1  ;;  %v8448_v22 = vadd.f32 %v15311_v42, %v7659_v33 }
 0x5ec   : > { %v12352_v17 = vpop.eup %12351  ;;  %v8824_v11 = vmax.f32 %v12348_v51, %v12350_v55  ;;  %12375 = vtanh.f32 %v8447_v30  ;;  %v8640_v3 = vadd.f32 %v15311_v42, %v8149_v43  ;;  %v7661_v1 = vpop.f32.mrb[225].mxu0  ;;  %v12203_v55 = vld [vmem:[%s16185_s7 + $0xa0] sm:$0xff]  }
 0x5ed   : > { %v12354_v26 = vpop.eup %12353  ;;  %v8151_v29 = vpop.f32.mrb[225].mxu1  ;;  %12377 = vtanh.f32 %v8639_v25  ;;  %v8449_v16 = vadd.f32 %v15315_v60, %v7661_v1 }
 0x5ee   : > { %v12356_v2 = vpop.eup %12355  ;;  %v15537_v20 = vmax.f32 %v8816_v38, %v8824_v11  ;;  %9477 = vmatpush1.bf16.msra.mxu1 %v12218_v62  ;;  %v8641_v4 = vadd.f32 %v15315_v60, %v8151_v29  ;;  %v7663_v52 = vpop.f32.mrb[226].mxu0  ;;  %v8825_v41 = vmax.f32 %v12352_v17, %v12354_v26  ;;  %12379 = vtanh.f32 %v8448_v22 }
 0x5ef   : > { %v12358_v32 = vpop.eup %12357  ;;  %v8153_v38 = vpop.f32.mrb[226].mxu1  ;;  %9478 = vmatprep.subr.bf16.mxu1 %v15495_v47  ;;  %v8450_v24 = vadd.f32 %v15311_v42, %v7663_v52  ;;  %12381 = vtanh.f32 %v8640_v3  ;;  %v12223_v52 = vld [vmem:[%s16185_s7 + $0x138] sm:$0xff]  }
 0x5f0   : > { %v12360_v15 = vpop.eup %12359  ;;  %v8826_v35 = vmax.f32 %v12356_v2, %v12358_v32  ;;  %v7665_v44 = vpop.f32.mrb[227].mxu0  ;;  %v8642_v59 = vadd.f32 %v15311_v42, %v8153_v38  ;;  %v8905_v34 = vmax.f32 %v8817_v37, %v8825_v41  ;;  %12383 = vtanh.f32 %v8449_v16  ;;  %v12204_v16 = vld [vmem:[%s16185_s7 + $0xa8] sm:$0xff]  }
 0x5f1   : > { %v8155_v46 = vpop.f32.mrb[227].mxu1  ;;  %v12362_v27 = vpop.eup %12361  ;;  %v8451_v53 = vadd.f32 %v15315_v60, %v7665_v44  ;;  %12385 = vtanh.f32 %v8641_v4 }
 0x5f2   : > { %v12364_v61 = vpop.eup %12363  ;;  %v8906_v12 = vmax.f32 %v8818_v19, %v8826_v35  ;;  %v8827_v54 = vmax.f32 %v12360_v15, %v12362_v27  ;;  %9479 = vmatpush1.bf16.msra.mxu1 %v12219_v63  ;;  %v8643_v13 = vadd.f32 %v15315_v60, %v8155_v46  ;;  %12387 = vtanh.f32 %v8450_v24  ;;  %v7669_v19 = vpop.f32.mrb[228].mxu0 }
 0x5f3   : > { %v12366_v14 = vpop.eup %12365  ;;  %9480 = vmatprep.subr.bf16.mxu1 %v15495_v47  ;;  %12389 = vtanh.f32 %v8642_v59  ;;  %v8159_v40 = vpop.f32.mrb[228].mxu1  ;;  %v8452_v62 = vadd.f32 %v15311_v42, %v7669_v19  ;;  %v12205_v59 = vld [vmem:[%s16185_s7 + $0xb0] sm:$0xff]  }
 0x5f4   : > { %v12368_v23 = vpop.eup %12367  ;;  %v8948_v6 = vpack.c.bf16 %v8906_v12, %v15537_v20  ;;  %v8828_v18 = vmax.f32 %v12364_v61, %v12366_v14  ;;  %v8907_v10 = vmax.f32 %v8819_v28, %v8827_v54  ;;  %12391 = vtanh.f32 %v8451_v53  ;;  %v7671_v0 = vpop.f32.mrb[229].mxu0  ;;  %v12221_v28 = vld [vmem:[%s16185_s7 + $0x130] sm:$0xff]  }
 0x5f5   : > { %v12370_v37 = vpop.eup %12369  ;;  %v8161_v36 = vpop.f32.mrb[229].mxu1  ;;  %12393 = vtanh.f32 %v8643_v13  ;;  %v8644_v8 = vadd.f32 %v15311_v42, %v8159_v40  ;;  %v8453_v50 = vadd.f32 %v15315_v60, %v7671_v0  ;;  %v12206_v40 = vld [vmem:[%s16185_s7 + $0xb8] sm:$0xff]  }
 0x5f6   : > { %v12372_v56 = vpop.eup %12371  ;;  %v15568_v51 = vmax.f32 %v8820_v5, %v8828_v18  ;;  %v8949_v30 = vpack.c.bf16 %v8907_v10, %v8905_v34  ;;  %9481 = vmatpush1.bf16.msra.mxu1 %v12220_v31  ;;  %v8645_v5 = vadd.f32 %v15315_v60, %v8161_v36  ;;  %v7673_v17 = vpop.f32.mrb[230].mxu0  ;;  %12395 = vtanh.f32 %v8452_v62 }
 0x5f7   : > { %v12374_v25 = vpop.eup %12373  ;;  %v8163_v11 = vpop.f32.mrb[230].mxu1  ;;  %9482 = vmatprep.subr.bf16.mxu1 %v15495_v47  ;;  %v8454_v43 = vadd.f32 %v15311_v42, %v7673_v17  ;;  %12397 = vtanh.f32 %v8644_v8  ;;  %v8829_v1 = vmax.f32 %v12368_v23, %v12370_v37 }
 0x5f8   : > { %v12376_v26 = vpop.eup %12375  ;;  %v8830_v33 = vmax.f32 %v12372_v56, %v12374_v25  ;;  %10815 = vmatprep.mubr.msk.bf16.mxu0 %vm3173_vm2, %v8949_v30  ;;  %v7675_v2 = vpop.f32.mrb[231].mxu0  ;;  %v8646_v3 = vadd.f32 %v15311_v42, %v8163_v11  ;;  %12399 = vtanh.f32 %v8453_v50 }
 0x5f9   : > { %v8165_v20 = vpop.f32.mrb[231].mxu1  ;;  %v12378_v22 = vpop.eup %12377  ;;  %9108 = vmatmul.mubr.bf16.vlgmr.msra.gmra.mrb[32].mxu0 %v8948_v6  ;;  %v8455_v32 = vadd.f32 %v15315_v60, %v7675_v2  ;;  %12401 = vtanh.f32 %v8645_v5  ;;  %v8909_v58 = vmax.f32 %v8821_v9, %v8829_v1  ;;  %v12207_v5 = vld [vmem:[%s16185_s7 + $0xc0] sm:$0xff]  }
 0x5fa   : > { %v15584_v29 = vpop.eup %12379  ;;  %v8910_v63 = vmax.f32 %v8822_v48, %v8830_v33  ;;  %9327 = vmatpush1.bf16.msra.mxu0 %v12203_v55  ;;  %v8831_v4 = vmax.f32 %v12376_v26, %v12378_v22  ;;  %9483 = vmatpush1.bf16.msra.mxu1 %v12221_v28  ;;  %v8647_v39 = vadd.f32 %v15315_v60, %v8165_v20  ;;  %12403 = vtanh.f32 %v8454_v43  ;;  %v7679_v44 = vpop.f32.mrb[232].mxu0 }
 0x5fb   : > { %v15596_v38 = vpop.eup %12381  ;;  %9328 = vmatprep.subr.bf16.mxu0 %v15495_v47  ;;  %9484 = vmatprep.subr.bf16.mxu1 %v15495_v47  ;;  %12405 = vtanh.f32 %v8646_v3  ;;  %v8169_v57 = vpop.f32.mrb[232].mxu1  ;;  %v8456_v46 = vadd.f32 %v15311_v42, %v7679_v44 }
 0x5fc   : > { %v15604_v48 = vpop.eup %12383  ;;  %v8950_v41 = vpack.c.bf16 %v8910_v63, %v15568_v51  ;;  %v8832_v15 = vmax.f32 %v15584_v29, %v15596_v38  ;;  %v8911_v35 = vmax.f32 %v8823_v21, %v8831_v4  ;;  %12407 = vtanh.f32 %v8455_v32  ;;  %v7681_v45 = vpop.f32.mrb[233].mxu0 }
 0x5fd   : > { %v15612_v24 = vpop.eup %12385  ;;  %v8648_v27 = vadd.f32 %v15311_v42, %v8169_v57  ;;  %v8171_v49 = vpop.f32.mrb[233].mxu1  ;;  %12409 = vtanh.f32 %v8647_v39  ;;  %v8457_v34 = vadd.f32 %v15315_v60, %v7681_v45 }
 0x5fe   : > { %v15614_v7 = vpop.eup %12387  ;;  %9329 = vmatpush1.bf16.msra.mxu0 %v12204_v16  ;;  %v8951_v9 = vpack.c.bf16 %v8911_v35, %v8909_v58  ;;  %9485 = vmatpush1.bf16.msra.mxu1 %v12223_v52  ;;  %v8649_v61 = vadd.f32 %v15315_v60, %v8171_v49  ;;  %v7683_v12 = vpop.f32.mrb[234].mxu0  ;;  %v8833_v54 = vmax.f32 %v15604_v48, %v15612_v24  ;;  %12411 = vtanh.f32 %v8456_v46 }
 0x5ff   : > { %v15621_v21 = vpop.eup %12389  ;;  %9330 = vmatprep.subr.bf16.mxu0 %v15495_v47  ;;  %v8173_v53 = vpop.f32.mrb[234].mxu1  ;;  %9746 = vmatprep.subr.bf16.mxu1 %v15495_v47  ;;  %v8458_v13 = vadd.f32 %v15311_v42, %v7683_v12  ;;  %12413 = vtanh.f32 %v8648_v27 }
 0x600   : > { %v15629_v31 = vpop.eup %12391  ;;  %v8834_v14 = vmax.f32 %v15614_v7, %v15621_v21  ;;  %10816 = vmatprep.mubr.msk.bf16.mxu0 %vm3173_vm2, %v8951_v9  ;;  %v7685_v23 = vpop.f32.mrb[235].mxu0  ;;  %v8650_v10 = vadd.f32 %v15311_v42, %v8173_v53  ;;  %12415 = vtanh.f32 %v8457_v34  ;;  %v12209_v53 = vld [vmem:[%s16185_s7 + $0xd0] sm:$0xff]  }
 0x601   : > { %v8175_v6 = vpop.f32.mrb[235].mxu1  ;;  %v15635_v18 = vpop.eup %12393  ;;  %9116 = vmatmul.mubr.bf16.gmra.mrb[36].mxu0 %v8950_v41  ;;  %v8459_v19 = vadd.f32 %v15315_v60, %v7685_v23  ;;  %12417 = vtanh.f32 %v8649_v61  ;;  %v12208_v41 = vld [vmem:[%s16185_s7 + $0xc8] sm:$0xff]  }
 0x602   : > { %v15638_v37 = vpop.eup %12395  ;;  %9331 = vmatpush1.bf16.msra.mxu0 %v12205_v59  ;;  %v8835_v56 = vmax.f32 %v15629_v31, %v15635_v18  ;;  %v8651_v30 = vadd.f32 %v15315_v60, %v8175_v6  ;;  %12419 = vtanh.f32 %v8458_v13  ;;  %v7689_v36 = vpop.f32.mrb[236].mxu0  ;;  %v12213_v31 = vld [vmem:[%s16185_s7 + $0xe0] sm:$0xff]  }
 0x603   : > { %v15646_v51 = vpop.eup %12397  ;;  %9332 = vmatprep.subr.bf16.mxu0 %v15495_v47  ;;  %12421 = vtanh.f32 %v8650_v10  ;;  %v8179_v28 = vpop.f32.mrb[236].mxu1  ;;  %v8460_v8 = vadd.f32 %v15311_v42, %v7689_v36 }
 0x604   : > { %v15650_v62 = vpop.eup %12399  ;;  %v8836_v55 = vmax.f32 %v15638_v37, %v15646_v51  ;;  %12423 = vtanh.f32 %v8459_v19  ;;  %v8652_v50 = vadd.f32 %v15311_v42, %v8179_v28  ;;  %v7691_v17 = vpop.f32.mrb[237].mxu0 }
 0x605   : > { %v15654_v0 = vpop.eup %12401  ;;  %v8181_v11 = vpop.f32.mrb[237].mxu1  ;;  %12425 = vtanh.f32 %v8651_v30  ;;  %v8461_v43 = vadd.f32 %v15315_v60, %v7691_v17 }
 0x606   : > { %v15656_v25 = vpop.eup %12403  ;;  %9333 = vmatpush1.bf16.msra.mxu0 %v12206_v40  ;;  %v8837_v26 = vmax.f32 %v15650_v62, %v15654_v0  ;;  %v8653_v2 = vadd.f32 %v15315_v60, %v8181_v11  ;;  %v7693_v20 = vpop.f32.mrb[238].mxu0  ;;  %12427 = vtanh.f32 %v8460_v8 }
 0x607   : > { %v15665_v33 = vpop.eup %12405  ;;  %9334 = vmatprep.subr.bf16.mxu0 %v15495_v47  ;;  %v8183_v22 = vpop.f32.mrb[238].mxu1  ;;  %v8462_v63 = vadd.f32 %v15311_v42, %v7693_v20  ;;  %12429 = vtanh.f32 %v8652_v50  ;;  %v12211_v20 = vld [vmem:[%s16185_s7 + $0xd8] sm:$0xff]  }
 0x608   : > { %v15670_v3 = vpop.eup %12407  ;;  %v8838_v1 = vmax.f32 %v15656_v25, %v15665_v33  ;;  %v7695_v32 = vpop.f32.mrb[239].mxu0  ;;  %v8654_v52 = vadd.f32 %v15311_v42, %v8183_v22  ;;  %12431 = vtanh.f32 %v8461_v43 }
 0x609   : > { %v8185_v16 = vpop.f32.mrb[239].mxu1  ;;  %v15675_v4 = vpop.eup %12409  ;;  %v8463_v58 = vadd.f32 %v15315_v60, %v7695_v32  ;;  %12433 = vtanh.f32 %v8653_v2 }
 0x60a   : > { %v12412_v39 = vpop.eup %12411  ;;  %9335 = vmatpush1.bf16.msra.mxu0 %v12207_v5  ;;  %v8839_v35 = vmax.f32 %v15670_v3, %v15675_v4  ;;  %v8655_v57 = vadd.f32 %v15315_v60, %v8185_v16  ;;  %12435 = vtanh.f32 %v8462_v63  ;;  %v7699_v59 = vpop.f32.mrb[240].mxu0  ;;  %v12222_v3 = vld [vmem:[%s16185_s7 + $0x140] sm:$0xff]  }
 0x60b   : > { %v12414_v44 = vpop.eup %12413  ;;  %9336 = vmatprep.subr.bf16.mxu0 %v15495_v47  ;;  %12437 = vtanh.f32 %v8654_v52  ;;  %v8189_v45 = vpop.f32.mrb[240].mxu1  ;;  %v8464_v61 = vadd.f32 %v15311_v42, %v7699_v59 }
 0x60c   : > { %v12416_v9 = vpop.eup %12415  ;;  %v8840_v46 = vmax.f32 %v12412_v39, %v12414_v44  ;;  %12439 = vtanh.f32 %v8463_v58  ;;  %v8656_v12 = vadd.f32 %v15311_v42, %v8189_v45  ;;  %v7701_v13 = vpop.f32.mrb[241].mxu0 }
 0x60d   : > { %v12418_v27 = vpop.eup %12417  ;;  %v8191_v23 = vpop.f32.mrb[241].mxu1  ;;  %12441 = vtanh.f32 %v8655_v57  ;;  %v8465_v29 = vadd.f32 %v15315_v60, %v7701_v13 }
 0x60e   : > { %v12420_v49 = vpop.eup %12419  ;;  %v15689_v34 = vmax.f32 %v8832_v15, %v8840_v46  ;;  %9337 = vmatpush1.bf16.msra.mxu0 %v12208_v41  ;;  %v8657_v38 = vadd.f32 %v15315_v60, %v8191_v23  ;;  %v7703_v15 = vpop.f32.mrb[242].mxu0  ;;  %v8841_v19 = vmax.f32 %v12416_v9, %v12418_v27  ;;  %12443 = vtanh.f32 %v8464_v61 }
 0x60f   : > { %v12422_v6 = vpop.eup %12421  ;;  %9338 = vmatprep.subr.bf16.mxu0 %v15495_v47  ;;  %v8193_v10 = vpop.f32.mrb[242].mxu1  ;;  %v8466_v36 = vadd.f32 %v15311_v42, %v7703_v15  ;;  %12445 = vtanh.f32 %v8656_v12 }
 0x610   : > { %v12424_v40 = vpop.eup %12423  ;;  %v8842_v30 = vmax.f32 %v12420_v49, %v12422_v6  ;;  %v7705_v28 = vpop.f32.mrb[243].mxu0  ;;  %v8658_v5 = vadd.f32 %v15311_v42, %v8193_v10  ;;  %v8913_v17 = vmax.f32 %v8833_v54, %v8841_v19  ;;  %12447 = vtanh.f32 %v8465_v29  ;;  %v12215_v29 = vld [vmem:[%s16185_s7 + $0xe8] sm:$0xff]  }
 0x611   : > { %v8195_v8 = vpop.f32.mrb[243].mxu1  ;;  %v12426_v50 = vpop.eup %12425  ;;  %v8467_v2 = vadd.f32 %v15315_v60, %v7705_v28  ;;  %12449 = vtanh.f32 %v8657_v38 }
 0x612   : > { %v12428_v11 = vpop.eup %12427  ;;  %v15707_v43 = vmax.f32 %v8834_v14, %v8842_v30  ;;  %9339 = vmatpush1.bf16.msra.mxu0 %v12209_v53  ;;  %v8843_v22 = vmax.f32 %v12424_v40, %v12426_v50  ;;  %v8659_v48 = vadd.f32 %v15315_v60, %v8195_v8  ;;  %12451 = vtanh.f32 %v8466_v36  ;;  %v7709_v32 = vpop.f32.mrb[244].mxu0 }
 0x613   : > { %v12430_v63 = vpop.eup %12429  ;;  %9340 = vmatprep.subr.bf16.mxu0 %v15495_v47  ;;  %12453 = vtanh.f32 %v8658_v5  ;;  %v8199_v16 = vpop.f32.mrb[244].mxu1  ;;  %v8468_v41 = vadd.f32 %v15311_v42, %v7709_v32 }
 0x614   : > { %v12432_v24 = vpop.eup %12431  ;;  %v8952_v7 = vpack.c.bf16 %v15707_v43, %v15689_v34  ;;  %v8844_v21 = vmax.f32 %v12428_v11, %v12430_v63  ;;  %v8915_v54 = vmax.f32 %v8835_v56, %v8843_v22  ;;  %12455 = vtanh.f32 %v8467_v2  ;;  %v7711_v18 = vpop.f32.mrb[245].mxu0 }
 0x615   : > { %v12434_v14 = vpop.eup %12433  ;;  %v8201_v56 = vpop.f32.mrb[245].mxu1  ;;  %12457 = vtanh.f32 %v8659_v48  ;;  %v8660_v57 = vadd.f32 %v15311_v42, %v8199_v16  ;;  %v8469_v37 = vadd.f32 %v15315_v60, %v7711_v18 }
 0x616   : > { %v12436_v52 = vpop.eup %12435  ;;  %v15723_v39 = vmax.f32 %v8836_v55, %v8844_v21  ;;  %9341 = vmatpush1.bf16.msra.mxu0 %v12211_v20  ;;  %v8953_v58 = vpack.c.bf16 %v8915_v54, %v8913_v17  ;;  %v8661_v51 = vadd.f32 %v15315_v60, %v8201_v56  ;;  %v7713_v55 = vpop.f32.mrb[246].mxu0  ;;  %12459 = vtanh.f32 %v8468_v41 }
 0x617   : > { %v12438_v44 = vpop.eup %12437  ;;  %9342 = vmatprep.subr.bf16.mxu0 %v15495_v47  ;;  %v8203_v9 = vpop.f32.mrb[246].mxu1  ;;  %v8470_v59 = vadd.f32 %v15311_v42, %v7713_v55  ;;  %12461 = vtanh.f32 %v8660_v57  ;;  %v8845_v53 = vmax.f32 %v12432_v24, %v12434_v14 }
 0x618   : > { %v12440_v46 = vpop.eup %12439  ;;  %v8846_v27 = vmax.f32 %v12436_v52, %v12438_v44  ;;  %10859 = vmatprep.mubr.msk.bf16.mxu0 %vm3173_vm2, %v8953_v58  ;;  %v7715_v45 = vpop.f32.mrb[247].mxu0  ;;  %v8662_v12 = vadd.f32 %v15311_v42, %v8203_v9  ;;  %12463 = vtanh.f32 %v8469_v37  ;;  %v12224_v52 = vld [vmem:[%s16185_s7 + $0x148] sm:$0xff]   ;;  %v12225_v9 = vld [vmem:[%s16185_s7 + $0x150] sm:$0xff]  }
 0x619   : > { %v8205_v49 = vpop.f32.mrb[247].mxu1  ;;  %v12442_v61 = vpop.eup %12441  ;;  %v8471_v6 = vadd.f32 %v15315_v60, %v7715_v45  ;;  %12465 = vtanh.f32 %v8661_v51  ;;  %v8917_v25 = vmax.f32 %v8837_v26, %v8845_v53 }
 0x61a   : > { %v15736_v13 = vpop.eup %12443  ;;  %v15741_v23 = vmax.f32 %v8838_v1, %v8846_v27  ;;  %9343 = vmatpush1.bf16.msra.mxu0 %v12213_v31  ;;  %v8847_v38 = vmax.f32 %v12440_v46, %v12442_v61  ;;  %v8663_v10 = vadd.f32 %v15315_v60, %v8205_v49  ;;  %12467 = vtanh.f32 %v8470_v59  ;;  %v7719_v36 = vpop.f32.mrb[248].mxu0 }
 0x61b   : > { %v15747_v15 = vpop.eup %12445  ;;  %9344 = vmatprep.subr.bf16.mxu0 %v15495_v47  ;;  %12469 = vtanh.f32 %v8662_v12  ;;  %v8209_v28 = vpop.f32.mrb[248].mxu1  ;;  %v8472_v0 = vadd.f32 %v15311_v42, %v7719_v36 }
 0x61c   : > { %v15754_v33 = vpop.eup %12447  ;;  %v8954_v1 = vpack.c.bf16 %v15741_v23, %v15723_v39  ;;  %v8848_v19 = vmax.f32 %v15736_v13, %v15747_v15  ;;  %v8919_v40 = vmax.f32 %v8839_v35, %v8847_v38  ;;  %12471 = vtanh.f32 %v8471_v6  ;;  %v7721_v50 = vpop.f32.mrb[249].mxu0 }
 0x61d   : > { %v15763_v30 = vpop.eup %12449  ;;  %v8664_v26 = vadd.f32 %v15311_v42, %v8209_v28  ;;  %v8211_v5 = vpop.f32.mrb[249].mxu1  ;;  %12473 = vtanh.f32 %v8663_v10  ;;  %v8473_v35 = vadd.f32 %v15315_v60, %v7721_v50  ;;  %v12226_v28 = vld [vmem:[%s16185_s7 + $0x158] sm:$0xff]  }
 0x61e   : > { %v15765_v62 = vpop.eup %12451  ;;  %9345 = vmatpush1.bf16.msra.mxu0 %v12215_v29  ;;  %v8955_v8 = vpack.c.bf16 %v8919_v40, %v8917_v25  ;;  %v8665_v17 = vadd.f32 %v15315_v60, %v8211_v5  ;;  %v7723_v11 = vpop.f32.mrb[250].mxu0  ;;  %v8849_v20 = vmax.f32 %v15754_v33, %v15763_v30  ;;  %12475 = vtanh.f32 %v8472_v0 }
 0x61f   : > { %v15772_v4 = vpop.eup %12453  ;;  %v8213_v2 = vpop.f32.mrb[250].mxu1  ;;  %9606 = vmatprep.subr.bf16.mxu0 %v15495_v47  ;;  %v8474_v48 = vadd.f32 %v15311_v42, %v7723_v11  ;;  %12477 = vtanh.f32 %v8664_v26 }
 0x620   : > { %v15779_v22 = vpop.eup %12455  ;;  %v8850_v63 = vmax.f32 %v15765_v62, %v15772_v4  ;;  %v7725_v24 = vpop.f32.mrb[251].mxu0  ;;  %v8666_v14 = vadd.f32 %v15311_v42, %v8213_v2  ;;  %12479 = vtanh.f32 %v8473_v35 }
 0x621   : > { %v8215_v21 = vpop.f32.mrb[251].mxu1  ;;  %v15784_v54 = vpop.eup %12457  ;;  %9359 = vmatmul.mubr.bf16.vlgmr.msra.gmra.mrb[40].mxu0 %v8952_v7  ;;  %v8475_v16 = vadd.f32 %v15315_v60, %v7725_v24  ;;  %12481 = vtanh.f32 %v8665_v17  ;;  %v12227_v24 = vld [vmem:[%s16185_s7 + $0x160] sm:$0xff]  }
 0x622   : > { %v15790_v32 = vpop.eup %12459  ;;  %10860 = vmatprep.mubr.msk.bf16.mxu0 %vm3173_vm2, %v8955_v8  ;;  %9607 = vmatpush1.bf16.msra.mxu0 %v12222_v3  ;;  %v8851_v58 = vmax.f32 %v15779_v22, %v15784_v54  ;;  %v8667_v43 = vadd.f32 %v15315_v60, %v8215_v21  ;;  %12483 = vtanh.f32 %v8474_v48  ;;  %v7729_v18 = vpop.f32.mrb[252].mxu0  ;;  %v12229_v22 = vld [vmem:[%s16185_s7 + $0x170] sm:$0xff]  }
 0x623   : > { %v15799_v34 = vpop.eup %12461  ;;  %9608 = vmatprep.subr.bf16.mxu0 %v15495_v47  ;;  %12485 = vtanh.f32 %v8666_v14  ;;  %v8219_v56 = vpop.f32.mrb[252].mxu1  ;;  %v8476_v57 = vadd.f32 %v15311_v42, %v7729_v18  ;;  %v12232_v54 = vld [vmem:[%s16185_s7 + $0x190] sm:$0xff]  }
 0x624   : > { %v15803_v7 = vpop.eup %12463  ;;  %v8852_v41 = vmax.f32 %v15790_v32, %v15799_v34  ;;  %12487 = vtanh.f32 %v8475_v16  ;;  %v8668_v37 = vadd.f32 %v15311_v42, %v8219_v56  ;;  %v7731_v51 = vpop.f32.mrb[253].mxu0 }
 0x625   : > { %v15807_v31 = vpop.eup %12465  ;;  %v8221_v55 = vpop.f32.mrb[253].mxu1  ;;  %12489 = vtanh.f32 %v8667_v43  ;;  %v8477_v59 = vadd.f32 %v15315_v60, %v7731_v51 }
 0x626   : > { %v15809_v44 = vpop.eup %12467  ;;  %9609 = vmatpush1.bf16.msra.mxu0 %v12224_v52  ;;  %v8853_v46 = vmax.f32 %v15803_v7, %v15807_v31  ;;  %v8669_v45 = vadd.f32 %v15315_v60, %v8221_v55  ;;  %v7733_v49 = vpop.f32.mrb[254].mxu0  ;;  %12491 = vtanh.f32 %v8476_v57 }
 0x627   : > { %v15818_v27 = vpop.eup %12469  ;;  %v8223_v61 = vpop.f32.mrb[254].mxu1  ;;  %9610 = vmatprep.subr.bf16.mxu0 %v15495_v47  ;;  %v8478_v6 = vadd.f32 %v15311_v42, %v7733_v49  ;;  %12493 = vtanh.f32 %v8668_v37 }
 0x628   : > { %v15823_v12 = vpop.eup %12471  ;;  %v8854_v53 = vmax.f32 %v15809_v44, %v15818_v27  ;;  %v7735_v29 = vpop.f32.mrb[255].mxu0  ;;  %v8670_v25 = vadd.f32 %v15311_v42, %v8223_v61  ;;  %12495 = vtanh.f32 %v8477_v59  ;;  %v12228_v61 = vld [vmem:[%s16185_s7 + $0x168] sm:$0xff]  }
 0x629   : > { %v8225_v38 = vpop.f32.mrb[255].mxu1  ;;  %v15828_v10 = vpop.eup %12473  ;;  %9367 = vmatmul.mubr.bf16.gmra.mrb[44].mxu0 %v8954_v1  ;;  %v8479_v36 = vadd.f32 %v15315_v60, %v7735_v29  ;;  %12497 = vtanh.f32 %v8669_v45 }
 0x62a   : > { %v12476_v40 = vpop.eup %12475  ;;  %9611 = vmatpush1.bf16.msra.mxu0 %v12225_v9  ;;  %v8855_v0 = vmax.f32 %v15823_v12, %v15828_v10  ;;  %v8671_v39 = vadd.f32 %v15315_v60, %v8225_v38  ;;  %12499 = vtanh.f32 %v8478_v6  ;;  %v7739_v50 = vpop.f32.mrb[0].mxu0  ;;  %v12231_v12 = vld [vmem:[%s16185_s7 + $0x180] sm:$0xff]  }
 0x62b   : > { %v12478_v26 = vpop.eup %12477  ;;  %9612 = vmatprep.subr.bf16.mxu0 %v15495_v47  ;;  %12501 = vtanh.f32 %v8670_v25  ;;  %v8229_v5 = vpop.f32.mrb[0].mxu1  ;;  %v8480_v17 = vadd.f32 %v15311_v42, %v7739_v50  ;;  %v12235_v10 = vld [vmem:[%s16185_s7 + $0x1a0] sm:$0xff]  }
 0x62c   : > { %v12480_v23 = vpop.eup %12479  ;;  %v8856_v1 = vmax.f32 %v12476_v40, %v12478_v26  ;;  %12503 = vtanh.f32 %v8479_v36  ;;  %v8672_v11 = vadd.f32 %v15311_v42, %v8229_v5  ;;  %v7741_v2 = vpop.f32.mrb[1].mxu0 }
 0x62d   : > { %v12482_v8 = vpop.eup %12481  ;;  %v8231_v48 = vpop.f32.mrb[1].mxu1  ;;  %12505 = vtanh.f32 %v8671_v39  ;;  %v8481_v14 = vadd.f32 %v15315_v60, %v7741_v2 }
 0x62e   : > { %v12484_v3 = vpop.eup %12483  ;;  %v15845_v35 = vmax.f32 %v8848_v19, %v8856_v1  ;;  %9613 = vmatpush1.bf16.msra.mxu0 %v12226_v28  ;;  %v8673_v13 = vadd.f32 %v15315_v60, %v8231_v48  ;;  %v7743_v15 = vpop.f32.mrb[2].mxu0  ;;  %v8857_v16 = vmax.f32 %v12480_v23, %v12482_v8  ;;  %12507 = vtanh.f32 %v8480_v17 }
 0x62f   : > { %v12486_v21 = vpop.eup %12485  ;;  %v8233_v19 = vpop.f32.mrb[2].mxu1  ;;  %9614 = vmatprep.subr.bf16.mxu0 %v15495_v47  ;;  %v8482_v18 = vadd.f32 %v15311_v42, %v7743_v15  ;;  %12509 = vtanh.f32 %v8672_v11 }
 0x630   : > { %v12488_v52 = vpop.eup %12487  ;;  %v8858_v43 = vmax.f32 %v12484_v3, %v12486_v21  ;;  %v7745_v56 = vpop.f32.mrb[3].mxu0  ;;  %v8674_v51 = vadd.f32 %v15311_v42, %v8233_v19  ;;  %v8921_v55 = vmax.f32 %v8849_v20, %v8857_v16  ;;  %12511 = vtanh.f32 %v8481_v14  ;;  %v12230_v14 = vld [vmem:[%s16185_s7 + $0x178] sm:$0xff]  }
 0x631   : > { %v8235_v57 = vpop.f32.mrb[3].mxu1  ;;  %v12490_v37 = vpop.eup %12489  ;;  %v8483_v45 = vadd.f32 %v15315_v60, %v7745_v56  ;;  %12513 = vtanh.f32 %v8673_v13  ;;  %v12234_v13 = vld [vmem:[%s16185_s7 + $0x198] sm:$0xff]  }
 0x632   : > { %v12492_v9 = vpop.eup %12491  ;;  %v8922_v59 = vmax.f32 %v8850_v63, %v8858_v43  ;;  %v8859_v49 = vmax.f32 %v12488_v52, %v12490_v37  ;;  %9615 = vmatpush1.bf16.msra.mxu0 %v12227_v24  ;;  %v8675_v29 = vadd.f32 %v15315_v60, %v8235_v57  ;;  %12515 = vtanh.f32 %v8482_v18  ;;  %v7749_v63 = vpop.f32.mrb[4].mxu0 }
 0x633   : > { %v12494_v6 = vpop.eup %12493  ;;  %9616 = vmatprep.subr.bf16.mxu0 %v15495_v47  ;;  %12517 = vtanh.f32 %v8674_v51  ;;  %v8239_v38 = vpop.f32.mrb[4].mxu1  ;;  %v8484_v28 = vadd.f32 %v15311_v42, %v7749_v63 }
 0x634   : > { %v12496_v33 = vpop.eup %12495  ;;  %v8956_v30 = vpack.c.bf16 %v8922_v59, %v15845_v35  ;;  %v8860_v62 = vmax.f32 %v12492_v9, %v12494_v6  ;;  %v8923_v4 = vmax.f32 %v8851_v58, %v8859_v49  ;;  %12519 = vtanh.f32 %v8483_v45  ;;  %v7751_v26 = vpop.f32.mrb[5].mxu0 }
 0x635   : > { %v12498_v20 = vpop.eup %12497  ;;  %v8241_v39 = vpop.f32.mrb[5].mxu1  ;;  %12521 = vtanh.f32 %v8675_v29  ;;  %v8676_v32 = vadd.f32 %v15311_v42, %v8239_v38  ;;  %v8485_v34 = vadd.f32 %v15315_v60, %v7751_v26 }
 0x636   : > { %v12500_v25 = vpop.eup %12499  ;;  %v15876_v40 = vmax.f32 %v8852_v41, %v8860_v62  ;;  %v8957_v36 = vpack.c.bf16 %v8923_v4, %v8921_v55  ;;  %9617 = vmatpush1.bf16.msra.mxu0 %v12228_v61  ;;  %v8677_v41 = vadd.f32 %v15315_v60, %v8241_v39  ;;  %v7753_v23 = vpop.f32.mrb[6].mxu0  ;;  %12523 = vtanh.f32 %v8484_v28 }
 0x637   : > { %v12502_v58 = vpop.eup %12501  ;;  %v8243_v1 = vpop.f32.mrb[6].mxu1  ;;  %9618 = vmatprep.subr.bf16.mxu0 %v15495_v47  ;;  %v8486_v5 = vadd.f32 %v15311_v42, %v7753_v23  ;;  %12525 = vtanh.f32 %v8676_v32  ;;  %v8861_v2 = vmax.f32 %v12496_v33, %v12498_v20 }
 0x638   : > { %v12504_v8 = vpop.eup %12503  ;;  %v8862_v50 = vmax.f32 %v12500_v25, %v12502_v58  ;;  %10891 = vmatprep.mubr.msk.bf16.mxu1 %vm3173_vm2, %v8957_v36  ;;  %v7755_v3 = vpop.f32.mrb[7].mxu0  ;;  %v8678_v11 = vadd.f32 %v15311_v42, %v8243_v1  ;;  %12527 = vtanh.f32 %v8485_v34  ;;  %v12233_v25 = vld [vmem:[%s16185_s7 + $0x188] sm:$0xff]  }
 0x639   : > { %v8245_v35 = vpop.f32.mrb[7].mxu1  ;;  %v12506_v17 = vpop.eup %12505  ;;  %9499 = vmatmul.mubr.bf16.vlgmr.msra.gmra.mrb[40].mxu1 %v8956_v30  ;;  %v8487_v24 = vadd.f32 %v15315_v60, %v7755_v3  ;;  %12529 = vtanh.f32 %v8677_v41  ;;  %v8925_v27 = vmax.f32 %v8853_v46, %v8861_v2  ;;  %v12236_v36 = vld [vmem:[%s16185_s7 + $0x1a8] sm:$0xff]  }
 0x63a   : > { %v15892_v48 = vpop.eup %12507  ;;  %v8926_v47 = vmax.f32 %v8854_v53, %v8862_v50  ;;  %v8863_v21 = vmax.f32 %v12504_v8, %v12506_v17  ;;  %9619 = vmatpush1.bf16.msra.mxu0 %v12229_v22  ;;  %9747 = vmatpush1.bf16.msra.mxu1 %v12232_v54  ;;  %v8679_v44 = vadd.f32 %v15315_v60, %v8245_v35  ;;  %v15910_v53 = vld [vmem:[#allocation2] sm:$0xff]  ;;  %12531 = vtanh.f32 %v8486_v5  ;;  %v7759_v31 = vpop.f32.mrb[8].mxu0  ;;  %v12237_v5 = vld [vmem:[%s16185_s7 + $0x1b0] sm:$0xff]  }
 0x63b   : > { %v15904_v15 = vpop.eup %12509  ;;  %9620 = vmatprep.subr.bf16.mxu0 %v15910_v53  ;;  %9748 = vmatprep.subr.bf16.mxu1 %v15910_v53  ;;  %12533 = vtanh.f32 %v8678_v11  ;;  %v8249_v46 = vpop.f32.mrb[8].mxu1  ;;  %v8488_v57 = vadd.f32 %v15311_v42, %v7759_v31 }
 0x63c   : > { %v15914_v19 = vpop.eup %12511  ;;  %v8958_v16 = vpack.c.bf16 %v8926_v47, %v15876_v40  ;;  %v8864_v52 = vmax.f32 %v15892_v48, %v15904_v15  ;;  %v8927_v43 = vmax.f32 %v8855_v0, %v8863_v21  ;;  %12535 = vtanh.f32 %v8487_v24  ;;  %v7761_v51 = vpop.f32.mrb[9].mxu0 }
 0x63d   : > { %v15922_v7 = vpop.eup %12513  ;;  %v8680_v37 = vadd.f32 %v15311_v42, %v8249_v46  ;;  %v8251_v55 = vpop.f32.mrb[9].mxu1  ;;  %12537 = vtanh.f32 %v8679_v44  ;;  %v8489_v9 = vadd.f32 %v15315_v60, %v7761_v51  ;;  %v12238_v46 = vld [vmem:[%s16185_s7 + $0x1b8] sm:$0xff]  }
 0x63e   : > { %v15924_v18 = vpop.eup %12515  ;;  %v8959_v56 = vpack.c.bf16 %v8927_v43, %v8925_v27  ;;  %9621 = vmatpush1.bf16.msra.mxu0 %v12230_v14  ;;  %9749 = vmatpush1.bf16.msra.mxu1 %v12234_v13  ;;  %v8681_v59 = vadd.f32 %v15315_v60, %v8251_v55  ;;  %v7763_v45 = vpop.f32.mrb[10].mxu0  ;;  %v8865_v61 = vmax.f32 %v15914_v19, %v15922_v7  ;;  %12539 = vtanh.f32 %v8488_v57 }
 0x63f   : > { %v15934_v0 = vpop.eup %12517  ;;  %v8253_v49 = vpop.f32.mrb[10].mxu1  ;;  %9622 = vmatprep.subr.bf16.mxu0 %v15910_v53  ;;  %9750 = vmatprep.subr.bf16.mxu1 %v15910_v53  ;;  %v8490_v33 = vadd.f32 %v15311_v42, %v7763_v45  ;;  %12541 = vtanh.f32 %v8680_v37 }
 0x640   : > { %v15942_v6 = vpop.eup %12519  ;;  %v8866_v29 = vmax.f32 %v15924_v18, %v15934_v0  ;;  %10892 = vmatprep.mubr.msk.bf16.mxu1 %vm3173_vm2, %v8959_v56  ;;  %v7765_v30 = vpop.f32.mrb[11].mxu0  ;;  %v8682_v20 = vadd.f32 %v15311_v42, %v8253_v49  ;;  %12543 = vtanh.f32 %v8489_v9 }
 0x641   : > { %v8255_v62 = vpop.f32.mrb[11].mxu1  ;;  %v15948_v4 = vpop.eup %12521  ;;  %9507 = vmatmul.mubr.bf16.gmra.mrb[44].mxu1 %v8958_v16  ;;  %v8491_v38 = vadd.f32 %v15315_v60, %v7765_v30  ;;  %12545 = vtanh.f32 %v8681_v59 }
 0x642   : > { %v15951_v63 = vpop.eup %12523  ;;  %9623 = vmatpush1.bf16.msra.mxu0 %v12231_v12  ;;  %v8867_v40 = vmax.f32 %v15942_v6, %v15948_v4  ;;  %9751 = vmatpush1.bf16.msra.mxu1 %v12235_v10  ;;  %v8683_v26 = vadd.f32 %v15315_v60, %v8255_v62  ;;  %12547 = vtanh.f32 %v8490_v33  ;;  %v7769_v58 = vpop.f32.mrb[12].mxu0  ;;  %v12239_v62 = vld [vmem:[%s16185_s7 + $0x1c0] sm:$0xff]   ;;  %v12241_v6 = vld [vmem:[%s16185_s7 + $0x1d0] sm:$0xff]  }
 0x643   : > { %v15962_v28 = vpop.eup %12525  ;;  %9624 = vmatprep.subr.bf16.mxu0 %v15910_v53  ;;  %9752 = vmatprep.subr.bf16.mxu1 %v15910_v53  ;;  %12549 = vtanh.f32 %v8682_v20  ;;  %v8259_v32 = vpop.f32.mrb[12].mxu1  ;;  %v8492_v41 = vadd.f32 %v15311_v42, %v7769_v58 }
 0x644   : > { %v15967_v39 = vpop.eup %12527  ;;  %v8868_v22 = vmax.f32 %v15951_v63, %v15962_v28  ;;  %12551 = vtanh.f32 %v8491_v38  ;;  %v8684_v23 = vadd.f32 %v15311_v42, %v8259_v32  ;;  %v7771_v1 = vpop.f32.mrb[13].mxu0 }
 0x645   : > { %v15971_v54 = vpop.eup %12529  ;;  %v8261_v8 = vpop.f32.mrb[13].mxu1  ;;  %12553 = vtanh.f32 %v8683_v26  ;;  %v8493_v35 = vadd.f32 %v15315_v60, %v7771_v1 }
 0x646   : > { %v15973_v34 = vpop.eup %12531  ;;  %9625 = vmatpush1.bf16.msra.mxu0 %v12233_v25  ;;  %9753 = vmatpush1.bf16.msra.mxu1 %v12236_v36  ;;  %v8869_v50 = vmax.f32 %v15967_v39, %v15971_v54  ;;  %v8685_v17 = vadd.f32 %v15315_v60, %v8261_v8  ;;  %v7773_v11 = vpop.f32.mrb[14].mxu0  ;;  %12555 = vtanh.f32 %v8492_v41 }
 0x647   : > { %v15982_v3 = vpop.eup %12533  ;;  %v8263_v2 = vpop.f32.mrb[14].mxu1  ;;  %9754 = vmatprep.subr.bf16.mxu1 %v15910_v53  ;;  %v8494_v21 = vadd.f32 %v15311_v42, %v7773_v11  ;;  %12557 = vtanh.f32 %v8684_v23 }
 0x648   : > { %v15987_v47 = vpop.eup %12535  ;;  %v8870_v24 = vmax.f32 %v15973_v34, %v15982_v3  ;;  %v7775_v14 = vpop.f32.mrb[15].mxu0  ;;  %v8686_v27 = vadd.f32 %v15311_v42, %v8263_v2  ;;  %12559 = vtanh.f32 %v8493_v35  ;;  %v12240_v2 = vld [vmem:[%s16185_s7 + $0x1c8] sm:$0xff]  }
 0x649   : > { %v8265_v13 = vpop.f32.mrb[15].mxu1  ;;  %v15992_v44 = vpop.eup %12537  ;;  %v8495_v43 = vadd.f32 %v15315_v60, %v7775_v14  ;;  %12561 = vtanh.f32 %v8685_v17 }
 0x64a   : > { %v12540_v16 = vpop.eup %12539  ;;  %v8871_v31 = vmax.f32 %v15987_v47, %v15992_v44  ;;  %9755 = vmatpush1.bf16.msra.mxu1 %v12237_v5  ;;  %v8687_v57 = vadd.f32 %v15315_v60, %v8265_v13  ;;  %12563 = vtanh.f32 %v8494_v21  ;;  %v7779_v12 = vpop.f32.mrb[16].mxu0 }
 0x64b   : > { %v12542_v56 = vpop.eup %12541  ;;  %9756 = vmatprep.subr.bf16.mxu1 %v15910_v53  ;;  %12565 = vtanh.f32 %v8686_v27  ;;  %v8269_v10 = vpop.f32.mrb[16].mxu1  ;;  %v8496_v45 = vadd.f32 %v15311_v42, %v7779_v12 }
 0x64c   : > { %v12544_v37 = vpop.eup %12543  ;;  %v8872_v51 = vmax.f32 %v12540_v16, %v12542_v56  ;;  %12567 = vtanh.f32 %v8495_v43  ;;  %v8688_v49 = vadd.f32 %v15311_v42, %v8269_v10  ;;  %v7781_v33 = vpop.f32.mrb[17].mxu0 }
 0x64d   : > { %v12546_v55 = vpop.eup %12545  ;;  %v8271_v30 = vpop.f32.mrb[17].mxu1  ;;  %12569 = vtanh.f32 %v8687_v57  ;;  %v8497_v38 = vadd.f32 %v15315_v60, %v7781_v33 }
 0x64e   : > { %v12548_v9 = vpop.eup %12547  ;;  %v16006_v59 = vmax.f32 %v8864_v52, %v8872_v51  ;;  %9757 = vmatpush1.bf16.msra.mxu1 %v12238_v46  ;;  %v8689_v48 = vadd.f32 %v15315_v60, %v8271_v30  ;;  %v7783_v15 = vpop.f32.mrb[18].mxu0  ;;  %v8873_v25 = vmax.f32 %v12544_v37, %v12546_v55  ;;  %12571 = vtanh.f32 %v8496_v45 }
 0x64f   : > { %v12550_v20 = vpop.eup %12549  ;;  %v8273_v52 = vpop.f32.mrb[18].mxu1  ;;  %9758 = vmatprep.subr.bf16.mxu1 %v15910_v53  ;;  %v8498_v58 = vadd.f32 %v15311_v42, %v7783_v15  ;;  %12573 = vtanh.f32 %v8688_v49 }
 0x650   : > { %v12552_v36 = vpop.eup %12551  ;;  %v8874_v26 = vmax.f32 %v12548_v9, %v12550_v20  ;;  %v7785_v32 = vpop.f32.mrb[19].mxu0  ;;  %v8690_v1 = vadd.f32 %v15311_v42, %v8273_v52  ;;  %v8929_v8 = vmax.f32 %v8865_v61, %v8873_v25  ;;  %12575 = vtanh.f32 %v8497_v38  ;;  %v12242_v38 = vld [vmem:[%s16185_s7 + $0x1d8] sm:$0xff]  }
 0x651   : > { %v8275_v41 = vpop.f32.mrb[19].mxu1  ;;  %v12554_v23 = vpop.eup %12553  ;;  %v8499_v17 = vadd.f32 %v15315_v60, %v7785_v32  ;;  %12577 = vtanh.f32 %v8689_v48 }
 0x652   : > { %v12556_v5 = vpop.eup %12555  ;;  %v8930_v35 = vmax.f32 %v8866_v29, %v8874_v26  ;;  %v8875_v11 = vmax.f32 %v12552_v36, %v12554_v23  ;;  %9759 = vmatpush1.bf16.msra.mxu1 %v12239_v62  ;;  %v8691_v14 = vadd.f32 %v15315_v60, %v8275_v41  ;;  %12579 = vtanh.f32 %v8498_v58  ;;  %v7789_v29 = vpop.f32.mrb[20].mxu0 }
 0x653   : > { %v12558_v21 = vpop.eup %12557  ;;  %9760 = vmatprep.subr.bf16.mxu1 %v15910_v53  ;;  %12581 = vtanh.f32 %v8690_v1  ;;  %v8279_v13 = vpop.f32.mrb[20].mxu1  ;;  %v8500_v46 = vadd.f32 %v15311_v42, %v7789_v29 }
 0x654   : > { %v12560_v19 = vpop.eup %12559  ;;  %v8960_v7 = vpack.c.bf16 %v8930_v35, %v16006_v59  ;;  %v8876_v18 = vmax.f32 %v12556_v5, %v12558_v21  ;;  %v8931_v0 = vmax.f32 %v8867_v40, %v8875_v11  ;;  %12583 = vtanh.f32 %v8499_v17  ;;  %v7791_v56 = vpop.f32.mrb[21].mxu0 }
 0x655   : > { %v12562_v61 = vpop.eup %12561  ;;  %v8281_v57 = vpop.f32.mrb[21].mxu1  ;;  %12585 = vtanh.f32 %v8691_v14  ;;  %v8692_v40 = vadd.f32 %v15311_v42, %v8279_v13  ;;  %v8501_v37 = vadd.f32 %v15315_v60, %v7791_v56 }
 0x656   : > { %v12564_v27 = vpop.eup %12563  ;;  %v16037_v16 = vmax.f32 %v8868_v22, %v8876_v18  ;;  %v8961_v43 = vpack.c.bf16 %v8931_v0, %v8929_v8  ;;  %9761 = vmatpush1.bf16.msra.mxu1 %v12240_v2  ;;  %v8693_v63 = vadd.f32 %v15315_v60, %v8281_v57  ;;  %v7793_v28 = vpop.f32.mrb[22].mxu0  ;;  %12587 = vtanh.f32 %v8500_v46 }
 0x657   : > { %v12566_v4 = vpop.eup %12565  ;;  %v8283_v22 = vpop.f32.mrb[22].mxu1  ;;  %9762 = vmatprep.subr.bf16.mxu1 %v15910_v53  ;;  %v8502_v12 = vadd.f32 %v15311_v42, %v7793_v28  ;;  %12589 = vtanh.f32 %v8692_v40  ;;  %v8877_v49 = vmax.f32 %v12560_v19, %v12562_v61 }
 0x658   : > { %v12568_v51 = vpop.eup %12567  ;;  %v8878_v55 = vmax.f32 %v12564_v27, %v12566_v4  ;;  %10923 = vmatprep.mubr.msk.bf16.mxu0 %vm3173_vm2, %v8961_v43  ;;  %v7795_v10 = vpop.f32.mrb[23].mxu0  ;;  %v8694_v45 = vadd.f32 %v15311_v42, %v8283_v22  ;;  %12591 = vtanh.f32 %v8501_v37 }
 0x659   : > { %v8285_v9 = vpop.f32.mrb[23].mxu1  ;;  %v12570_v59 = vpop.eup %12569  ;;  %9639 = vmatmul.mubr.bf16.vlgmr.msra.gmra.mrb[48].mxu0 %v8960_v7  ;;  %v8503_v62 = vadd.f32 %v15315_v60, %v7795_v10  ;;  %12593 = vtanh.f32 %v8693_v63  ;;  %v8933_v52 = vmax.f32 %v8869_v50, %v8877_v49 }
 0x65a   : > { %v16050_v33 = vpop.eup %12571  ;;  %v8934_v30 = vmax.f32 %v8870_v24, %v8878_v55  ;;  %v8879_v20 = vmax.f32 %v12568_v51, %v12570_v59  ;;  %9763 = vmatpush1.bf16.msra.mxu1 %v12241_v6  ;;  %v8695_v15 = vadd.f32 %v15315_v60, %v8285_v9  ;;  %12595 = vtanh.f32 %v8502_v12  ;;  %v7799_v26 = vpop.f32.mrb[24].mxu0 }
 0x65b   : > { %v16059_v48 = vpop.eup %12573  ;;  %9764 = vmatprep.subr.bf16.mxu1 %v15910_v53  ;;  %12597 = vtanh.f32 %v8694_v45  ;;  %v8289_v39 = vpop.f32.mrb[24].mxu1  ;;  %v8504_v50 = vadd.f32 %v15311_v42, %v7799_v26 }
 0x65c   : > { %v16066_v34 = vpop.eup %12575  ;;  %v8962_v3 = vpack.c.bf16 %v8934_v30, %v16037_v16  ;;  %v8880_v24 = vmax.f32 %v16050_v33, %v16059_v48  ;;  %v8935_v25 = vmax.f32 %v8871_v31, %v8879_v20  ;;  %12599 = vtanh.f32 %v8503_v62  ;;  %v7801_v32 = vpop.f32.mrb[25].mxu0 }
 0x65d   : > { %v16074_v36 = vpop.eup %12577  ;;  %v8696_v58 = vadd.f32 %v15311_v42, %v8289_v39  ;;  %v8291_v41 = vpop.f32.mrb[25].mxu1  ;;  %12601 = vtanh.f32 %v8695_v15  ;;  %v8505_v47 = vadd.f32 %v15315_v60, %v7801_v32 }
 0x65e   : > { %v16076_v54 = vpop.eup %12579  ;;  %v8963_v53 = vpack.c.bf16 %v8935_v25, %v8933_v52  ;;  %9765 = vmatpush1.bf16.msra.mxu1 %v12242_v38  ;;  %v8697_v44 = vadd.f32 %v15315_v60, %v8291_v41  ;;  %v7803_v31 = vpop.f32.mrb[26].mxu0  ;;  %v8881_v8 = vmax.f32 %v16066_v34, %v16074_v36  ;;  %12603 = vtanh.f32 %v8504_v50 }
 0x65f   : > { %v16080_v23 = vpop.eup %12581  ;;  %v8293_v1 = vpop.f32.mrb[26].mxu1  ;;  %v8506_v17 = vadd.f32 %v15311_v42, %v7803_v31  ;;  %12605 = vtanh.f32 %v8696_v58 }
 0x660   : > { %v16086_v5 = vpop.eup %12583  ;;  %v8882_v35 = vmax.f32 %v16076_v54, %v16080_v23  ;;  %10924 = vmatprep.mubr.msk.bf16.mxu0 %vm3173_vm2, %v8963_v53  ;;  %v7805_v11 = vpop.f32.mrb[27].mxu0  ;;  %v8698_v14 = vadd.f32 %v15311_v42, %v8293_v1  ;;  %12607 = vtanh.f32 %v8505_v47 }
 0x661   : > { %v8295_v2 = vpop.f32.mrb[27].mxu1  ;;  %v16092_v21 = vpop.eup %12585  ;;  %9647 = vmatmul.mubr.bf16.gmra.mrb[52].mxu0 %v8962_v3  ;;  %v8507_v7 = vadd.f32 %v15315_v60, %v7805_v11  ;;  %12609 = vtanh.f32 %v8697_v44 }
 0x662   : > { %v16095_v19 = vpop.eup %12587  ;;  %v8883_v18 = vmax.f32 %v16086_v5, %v16092_v21  ;;  %v8699_v61 = vadd.f32 %v15315_v60, %v8295_v2  ;;  %12611 = vtanh.f32 %v8506_v17  ;;  %v7809_v16 = vpop.f32.mrb[28].mxu0 }
 0x663   : > { %v16100_v0 = vpop.eup %12589  ;;  %12613 = vtanh.f32 %v8698_v14  ;;  %v8299_v43 = vpop.f32.mrb[28].mxu1  ;;  %v8508_v56 = vadd.f32 %v15311_v42, %v7809_v16 }
 0x664   : > { %v16103_v29 = vpop.eup %12591  ;;  %v8884_v13 = vmax.f32 %v16095_v19, %v16100_v0  ;;  %12615 = vtanh.f32 %v8507_v7  ;;  %v8700_v57 = vadd.f32 %v15311_v42, %v8299_v43  ;;  %v7811_v6 = vpop.f32.mrb[29].mxu0 }
 0x665   : > { %v16107_v27 = vpop.eup %12593  ;;  %v8301_v4 = vpop.f32.mrb[29].mxu1  ;;  %12617 = vtanh.f32 %v8699_v61  ;;  %v8509_v63 = vadd.f32 %v15315_v60, %v7811_v6  ;;  %v12245_v6 = vld [vmem:[%s16187_s9 + $0x10] sm:$0xff]  }
 0x666   : > { %v16109_v46 = vpop.eup %12595  ;;  %v8885_v40 = vmax.f32 %v16103_v29, %v16107_v27  ;;  %v8701_v28 = vadd.f32 %v15315_v60, %v8301_v4  ;;  %v7813_v22 = vpop.f32.mrb[30].mxu0  ;;  %12619 = vtanh.f32 %v8508_v56  ;;  %v12243_v56 = vld [vmem:[%s16187_s9] sm:$0xff]   ;;  %v12246_v4 = vld [vmem:[%s16187_s9 + $0x18] sm:$0xff]  }
 0x667   : > { %v12598_v37 = vpop.eup %12597  ;;  %v8303_v51 = vpop.f32.mrb[30].mxu1  ;;  %v8510_v10 = vadd.f32 %v15311_v42, %v7813_v22  ;;  %12621 = vtanh.f32 %v8700_v57  ;;  %v12244_v57 = vld [vmem:[%s16187_s9 + $0x8] sm:$0xff]   ;;  %10980 = vmatprep.subr.bf16.mxu0 %v12243_v56  ;;  %v12247_v22 = vld [vmem:[%s16187_s9 + $0x20] sm:$0xff]  }
 0x668   : > { %v12600_v55 = vpop.eup %12599  ;;  %v8886_v12 = vmax.f32 %v16109_v46, %v12598_v37  ;;  %v7815_v9 = vpop.f32.mrb[31].mxu0  ;;  %v8702_v49 = vadd.f32 %v15311_v42, %v8303_v51  ;;  %12623 = vtanh.f32 %v8509_v63  ;;  %10981 = vmatpush3.bf16.msra.mxu0 %v12243_v56 }
 0x669   : > { %v8305_v59 = vpop.f32.mrb[31].mxu1  ;;  %v12602_v45 = vpop.eup %12601  ;;  %v8511_v62 = vadd.f32 %v15315_v60, %v7815_v9  ;;  %12625 = vtanh.f32 %v8701_v28  ;;  %10982 = vmatprep.subr.bf16.mxu0 %v12244_v57 }
 0x66a   : > { %v12604_v30 = vpop.eup %12603  ;;  %v8887_v20 = vmax.f32 %v12600_v55, %v12602_v45  ;;  %v8703_v15 = vadd.f32 %v15315_v60, %v8305_v59  ;;  %12627 = vtanh.f32 %v8510_v10 }
 0x66b   : > { %v12606_v38 = vpop.eup %12605  ;;  %12629 = vtanh.f32 %v8702_v49  ;;  %v12249_v49 = vld [vmem:[%s16187_s9 + $0x30] sm:$0xff]  }
 0x66c   : > { %v12608_v52 = vpop.eup %12607  ;;  %v8888_v3 = vmax.f32 %v12604_v30, %v12606_v38  ;;  %12631 = vtanh.f32 %v8511_v62  ;;  %10983 = vmatpush3.bf16.msra.mxu0 %v12244_v57 }
 0x66d   : > { %v12610_v25 = vpop.eup %12609  ;;  %12633 = vtanh.f32 %v8703_v15  ;;  %10984 = vmatprep.subr.bf16.mxu0 %v12245_v6 }
 0x66e   : > { %v12612_v26 = vpop.eup %12611  ;;  %v8936_v39 = vmax.f32 %v8880_v24, %v8888_v3  ;;  %v8889_v42 = vmax.f32 %v12608_v52, %v12610_v25 }
 0x66f   : > { %v12614_v53 = vpop.eup %12613 }
 0x670   : > { %v12616_v50 = vpop.eup %12615  ;;  %v8890_v58 = vmax.f32 %v12612_v26, %v12614_v53  ;;  %v8937_v60 = vmax.f32 %v8881_v8, %v8889_v42  ;;  %10985 = vmatpush3.bf16.msra.mxu0 %v12245_v6 }
 0x671   : > { %v12618_v32 = vpop.eup %12617  ;;  %10986 = vmatprep.subr.bf16.mxu0 %v12246_v4 }
 0x672   : > { %v12620_v41 = vpop.eup %12619  ;;  %v8938_v47 = vmax.f32 %v8882_v35, %v8890_v58  ;;  %v8891_v44 = vmax.f32 %v12616_v50, %v12618_v32 }
 0x673   : > { %v12622_v31 = vpop.eup %12621 }
 0x674   : > { %v12624_v33 = vpop.eup %12623  ;;  %v8964_v48 = vpack.c.bf16 %v8938_v47, %v8936_v39  ;;  %v8892_v24 = vmax.f32 %v12620_v41, %v12622_v31  ;;  %v8939_v1 = vmax.f32 %v8883_v18, %v8891_v44  ;;  %10987 = vmatpush3.bf16.msra.mxu0 %v12246_v4 }
 0x675   : > { %v12626_v5 = vpop.eup %12625  ;;  %10988 = vmatprep.subr.bf16.mxu0 %v12247_v22 }
 0x676   : > { %v12628_v17 = vpop.eup %12627  ;;  %v8940_v11 = vmax.f32 %v8884_v13, %v8892_v24  ;;  %v8965_v2 = vpack.c.bf16 %v8939_v1, %v8937_v60  ;;  %v8893_v21 = vmax.f32 %v12624_v33, %v12626_v5 }
 0x677   : > { %v12630_v14 = vpop.eup %12629 }
 0x678   : > { %v12632_v34 = vpop.eup %12631  ;;  %v8894_v36 = vmax.f32 %v12628_v17, %v12630_v14  ;;  %10955 = vmatprep.mubr.msk.bf16.mxu1 %vm3173_vm2, %v8965_v2  ;;  %v8941_v8 = vmax.f32 %v8885_v40, %v8893_v21  ;;  %10989 = vmatpush3.bf16.msra.mxu0 %v12247_v22 }
 0x679   : > { %v12634_v19 = vpop.eup %12633  ;;  %9779 = vmatmul.mubr.bf16.vlgmr.msra.gmra.mrb[48].mxu1 %v8964_v48 }
 0x67a   : > { %v8942_v54 = vmax.f32 %v8886_v12, %v8894_v36  ;;  %v8895_v23 = vmax.f32 %v12632_v34, %v12634_v19  ;;  %v12248_v12 = vld [vmem:[%s16187_s9 + $0x28] sm:$0xff]  }
 0x67b   : > { %10990 = vmatprep.subr.bf16.mxu0 %v12248_v12 }
 0x67c   : > { %v8966_v35 = vpack.c.bf16 %v8942_v54, %v8940_v11  ;;  %v8943_v7 = vmax.f32 %v8887_v20, %v8895_v23  ;;  %10991 = vmatpush3.bf16.msra.mxu0 %v12248_v12  ;;  %v12250_v20 = vld [vmem:[%s16187_s9 + $0x38] sm:$0xff]  }
 0x67d   : > { %10992 = vmatprep.subr.bf16.mxu0 %v12249_v49 }
 0x67e   : > { %v8967_v0 = vpack.c.bf16 %v8943_v7, %v8941_v8 }
 0x680   : > { %10956 = vmatprep.mubr.msk.bf16.mxu1 %vm3173_vm2, %v8967_v0  ;;  %10993 = vmatpush3.bf16.msra.mxu0 %v12249_v49 }
 0x681   : > { %9787 = vmatmul.mubr.bf16.gmra.mrb[52].mxu1 %v8966_v35  ;;  %10994 = vmatprep.subr.bf16.mxu0 %v12250_v20 }
 0x684   : > { %10995 = vmatpush3.bf16.msra.mxu0 %v12250_v20 }
 0x6ac   : > { %v9224_v18 = vpop.f32.mrb[32].mxu1 }
 0x6ad   : > { %v9226_v61 = vpop.f32.mrb[33].mxu1 }
 0x6ae   : > { %v9227_v29 = vpop.f32.mrb[34].mxu1  ;;  %v10957_v61 = vld [vmem:[%s16186_s8] ss:$0 sm:$0xff] }
 0x6af   : > { %v9229_v13 = vpop.f32.mrb[35].mxu1 }
 0x6b4   : > { %v9232_v27 = vpop.f32.mrb[36].mxu1 }
 0x6b5   : > { %v9234_v16 = vpop.f32.mrb[37].mxu1 }
 0x6b6   : > { %v9235_v43 = vpop.f32.mrb[38].mxu1 }
 0x6b7   : > { %v9237_v46 = vpop.f32.mrb[39].mxu1 }
 0x6cc   : > { %v9109_v40 = vpop.f32.mrb[32].mxu0 }
 0x6cd   : > { %v9225_v37 = vadd.f32 %v9224_v18, %v9109_v40  ;;  %v9111_v63 = vpop.f32.mrb[33].mxu0 }
 0x6ce   : > { %v9112_v28 = vpop.f32.mrb[34].mxu0 }
 0x6cf   : > { %v9228_v51 = vadd.f32 %v9227_v29, %v9112_v28  ;;  %v9114_v55 = vpop.f32.mrb[35].mxu0 }
 0x6d4   : > { %v9117_v10 = vpop.f32.mrb[36].mxu0 }
 0x6d5   : > { %v9233_v9 = vadd.f32 %v9232_v27, %v9117_v10  ;;  %v9119_v59 = vpop.f32.mrb[37].mxu0 }
 0x6d6   : > { %v9120_v45 = vpop.f32.mrb[38].mxu0 }
 0x6d7   : > { %v9236_v30 = vadd.f32 %v9235_v43, %v9120_v45  ;;  %v9122_v62 = vpop.f32.mrb[39].mxu0  ;;  %v10958_v45 = vld [vmem:[%s16188_s10] ss:$0 sm:$0xff] }
 0x6f4   : > { %v9360_v38 = vpop.f32.mrb[40].mxu0 }
 0x6f5   : > { %v9375_v15 = vadd.f32 %v9360_v38, %v9225_v37  ;;  %v9362_v52 = vpop.f32.mrb[41].mxu0 }
 0x6f6   : > { %v9363_v3 = vpop.f32.mrb[42].mxu0 }
 0x6f7   : > { %v9376_v25 = vadd.f32 %v9363_v3, %v9228_v51  ;;  %v9365_v26 = vpop.f32.mrb[43].mxu0 }
 0x6fc   : > { %v9368_v39 = vpop.f32.mrb[44].mxu0 }
 0x6fd   : > { %v9377_v42 = vadd.f32 %v9368_v39, %v9233_v9  ;;  %v9370_v53 = vpop.f32.mrb[45].mxu0 }
 0x6fe   : > { %v9371_v50 = vpop.f32.mrb[46].mxu0 }
 0x6ff   : > { %v9378_v58 = vadd.f32 %v9371_v50, %v9236_v30  ;;  %v9373_v60 = vpop.f32.mrb[47].mxu0 }
 0x70c   : > { %v9500_v32 = vpop.f32.mrb[40].mxu1 }
 0x70d   : > { %v9515_v41 = vadd.f32 %v9500_v32, %v9375_v15  ;;  %v9502_v47 = vpop.f32.mrb[41].mxu1 }
 0x70e   : > { %v9503_v44 = vpop.f32.mrb[42].mxu1 }
 0x70f   : > { %v9516_v31 = vadd.f32 %v9503_v44, %v9376_v25  ;;  %v9505_v33 = vpop.f32.mrb[43].mxu1 }
 0x714   : > { %v9508_v48 = vpop.f32.mrb[44].mxu1 }
 0x715   : > { %v9517_v24 = vadd.f32 %v9508_v48, %v9377_v42  ;;  %v9510_v1 = vpop.f32.mrb[45].mxu1 }
 0x716   : > { %v9511_v5 = vpop.f32.mrb[46].mxu1 }
 0x717   : > { %v9518_v17 = vadd.f32 %v9511_v5, %v9378_v58  ;;  %v9513_v11 = vpop.f32.mrb[47].mxu1 }
 0x72c   : > { %v9640_v2 = vpop.f32.mrb[48].mxu0 }
 0x72d   : > { %v9655_v21 = vadd.f32 %v9640_v2, %v9515_v41  ;;  %v9642_v14 = vpop.f32.mrb[49].mxu0 }
 0x72e   : > { %v9643_v34 = vpop.f32.mrb[50].mxu0 }
 0x72f   : > { %v9656_v36 = vadd.f32 %v9643_v34, %v9516_v31  ;;  %v9645_v8 = vpop.f32.mrb[51].mxu0 }
 0x734   : > { %v9648_v19 = vpop.f32.mrb[52].mxu0 }
 0x735   : > { %v9657_v54 = vadd.f32 %v9648_v19, %v9517_v24  ;;  %v9650_v23 = vpop.f32.mrb[53].mxu0 }
 0x736   : > { %v9651_v35 = vpop.f32.mrb[54].mxu0 }
 0x737   : > { %v9658_v7 = vadd.f32 %v9651_v35, %v9518_v17  ;;  %v9653_v0 = vpop.f32.mrb[55].mxu0 }
 0x74c   : > { %v9780_v18 = vpop.f32.mrb[48].mxu1 }
 0x74d   : > { %v9795_v29 = vadd.f32 %v9780_v18, %v9655_v21  ;;  %v9782_v13 = vpop.f32.mrb[49].mxu1 }
 0x74e   : > { %v9783_v27 = vpop.f32.mrb[50].mxu1 }
 0x74f   : > { %v9806_v16 = vadd.f32 %v10957_v61, %v9795_v29  ;;  %v9796_v43 = vadd.f32 %v9783_v27, %v9656_v36  ;;  %v9785_v46 = vpop.f32.mrb[51].mxu1 }
 0x751   : > { %v9807_v56 = vadd.f32 %v10957_v61, %v9796_v43  ;;  %v9810_v57 = vmax.f32 %v9806_v16, 0.0 }
 0x753   : > { %v9811_v6 = vmax.f32 %v9807_v56, 0.0 }
 0x754   : > { %v9788_v4 = vpop.f32.mrb[52].mxu1 }
 0x755   : > { %v9797_v40 = vadd.f32 %v9788_v4, %v9657_v54  ;;  %v9790_v37 = vpop.f32.mrb[53].mxu1  ;;  %v9814_v63 = vpack.c.bf16 %v9811_v6, %v9810_v57 }
 0x756   : > { %v9791_v28 = vpop.f32.mrb[54].mxu1 }
 0x757   : > { %v9808_v22 = vadd.f32 %v10957_v61, %v9797_v40  ;;  %v9798_v51 = vadd.f32 %v9791_v28, %v9658_v7  ;;  %v9793_v55 = vpop.f32.mrb[55].mxu1  ;;  %10996 = vmatprep.mubr.bf16.mxu0 %v9814_v63 }
 0x759   : > { %v9809_v12 = vadd.f32 %v10957_v61, %v9798_v51  ;;  %v9812_v10 = vmax.f32 %v9808_v22, 0.0 }
 0x75b   : > { %v9813_v9 = vmax.f32 %v9809_v12, 0.0 }
 0x75d   : > { %v9815_v59 = vpack.c.bf16 %v9813_v9, %v9812_v10 }
 0x75f   : > { %10997 = vmatmul.mubr.bf16.vlgmr.msra.gmra.mrb[56].mxu0 %v9815_v59 }
 0x832   : > { %v10998_v49 = vpop.f32.mrb[56].mxu0 }
 0x833   : > { %v9921_v30 = vpop.f32.mrb[57].mxu0  ;;  %v9930_v52 = vadd.f32 %v10998_v49, %v10958_v45 }
 0x834   : > { %v9922_v62 = vadd.f32 %v10958_v45, %v9921_v30  ;;  %v10999_v20 = vpop.f32.mrb[58].mxu0 }
 0x835   : > { %v9924_v38 = vpop.f32.mrb[59].mxu0  ;;  %v9933_v3 = vadd.f32 %v10999_v20, %v10958_v45  ;;  %9938 = vst [vmem:[%s809_s28 + $0x10] sm:$0xff] %v9930_v52 }
 0x836   : > { %9936 = vst [vmem:[%s809_s28] sm:$0xff] %v9922_v62  ;;  %v9925_v15 = vadd.f32 %v10958_v45, %v9924_v38 }
 0x837   : > { %9939 = vst [vmem:[%s809_s28 + $0x18] sm:$0xff] %v9933_v3 }
 0x838   : > { %9937 = vst [vmem:[%s809_s28 + $0x8] sm:$0xff] %v9925_v15 }
 0x839 PF: > { %p18_p9 = scmp.ge.s32.totalorder %s12744_s21, 4   ;;  %s16190_s17 = smov %s12660_s18 }
 0x83a   : > { %s16191_s18 = smov %s12753_s24  ;;  %s16192_s19 = smov %s12744_s21 }
 0x83b   :  { %20 = sbr.rel (!%p18_p9) target bundleno = 2 (0x2), region = 158 }

</bundles_post_ra>
